<compile_context>
chip_gen: v6e
topology: v6e:2x2x1
jax: 0.10.0
libtpu: 0.0.40
codegen_flags: <defaults>
</compile_context>

<pallas_src>
import functools

import jax
import jax.numpy as jnp
from jax.experimental import pallas as pl
from jax.experimental.pallas import tpu as pltpu

EPS = 1e-5


# ---------------------------------------------------------------------------
# Kernels
# ---------------------------------------------------------------------------
def _conv1_kernel(x_ref, w_ref, y_ref, s_ref, q_ref):
    """1x1 conv as a bf16 MXU matmul (f32 accumulate) + one-pass BN partials."""
    y = jnp.dot(x_ref[...], w_ref[...], preferred_element_type=jnp.float32)
    y_ref[...] = y.astype(y_ref.dtype)                    # bf16 activation out
    s_ref[...] = jnp.sum(y, axis=0, keepdims=True).reshape(s_ref.shape)
    q_ref[...] = jnp.sum(y * y, axis=0, keepdims=True).reshape(q_ref.shape)


def _conv2_kernel(h1_ref, a_ref, b_ref, w_ref, y_ref, s_ref, q_ref, zpad_ref):
    """BN1 scale/shift + ReLU, 2-wide zero halo, dilated 3x3 as 9 accumulated
    matmuls (dilation=2 -> taps at offsets {0, 2, 4} of the padded slab)."""
    _, H, W, P = h1_ref.shape

    # BN apply + ReLU in f32 (v5e has no bf16 VALU; accuracy is free here).
    z = jnp.maximum(h1_ref[0].astype(jnp.float32) * a_ref[...] + b_ref[...],
                    0.0)

    # Zero only the 2-wide halo bands each step (not the full slab): the
    # interior is fully overwritten below, and per-step border zeroing stays
    # correct however the grid is split across cores (a zero-once-at-step-0
    # scheme would leave the second core's private scratch uninitialized).
    zrow = jnp.zeros((2, W + 4, P), zpad_ref.dtype)
    zcol = jnp.zeros((H + 4, 2, P), zpad_ref.dtype)
    zpad_ref[pl.ds(0, 2), :, :] = zrow
    zpad_ref[pl.ds(H + 2, 2), :, :] = zrow
    zpad_ref[:, pl.ds(0, 2), :] = zcol
    zpad_ref[:, pl.ds(W + 2, 2), :] = zcol
    zpad_ref[pl.ds(2, H), pl.ds(2, W), :] = z.astype(zpad_ref.dtype)

    # 9 taps accumulated straight into one f32 accumulator: no (H*W, 9P)
    # im2col concat is materialized; MXU accumulation is free.
    acc = jnp.zeros((H * W, P), jnp.float32)
    for kh in range(3):
        for kw in range(3):
            tap = zpad_ref[pl.ds(2 * kh, H), pl.ds(2 * kw, W), :]
            acc += jnp.dot(tap.reshape(H * W, P), w_ref[kh * 3 + kw],
                           preferred_element_type=jnp.float32)

    y_ref[...] = acc.reshape(y_ref.shape).astype(y_ref.dtype)
    s_ref[...] = jnp.sum(acc, axis=0, keepdims=True).reshape(s_ref.shape)
    q_ref[...] = jnp.sum(acc * acc, axis=0, keepdims=True).reshape(q_ref.shape)


def _conv3_kernel(h2_ref, a_ref, b_ref, w_ref, y_ref, s_ref, q_ref):
    """BN2 scale/shift + ReLU + 1x1 conv + one-pass BN3 partials."""
    z = jnp.maximum(h2_ref[...].astype(jnp.float32) * a_ref[...] + b_ref[...],
                    0.0)
    y = jnp.dot(z.astype(jnp.bfloat16), w_ref[...],
                preferred_element_type=jnp.float32)
    y_ref[...] = y.astype(y_ref.dtype)
    s_ref[...] = jnp.sum(y, axis=0, keepdims=True).reshape(s_ref.shape)
    q_ref[...] = jnp.sum(y * y, axis=0, keepdims=True).reshape(q_ref.shape)


def _residual_kernel(h3_ref, x_ref, a_ref, b_ref, o_ref):
    """BN3 scale/shift + identity residual + ReLU on a lane-dense 2-D view."""
    o_ref[...] = jnp.maximum(
        h3_ref[...].astype(jnp.float32) * a_ref[...] + b_ref[...] + x_ref[...],
        0.0)


# ---------------------------------------------------------------------------
# Glue helpers (tiny O(C) / layout-only work)
# ---------------------------------------------------------------------------
@functools.lru_cache(maxsize=1)
def _vmem_limit_bytes():
    """Scoped-VMEM limit derived from physical capacity, with headroom.

    v7x: 64 MiB physical -> ~48 MiB scoped; v5e/v6e: 128 MiB -> 96 MiB scoped.
    Falls back to a conservative 48 MiB if the hardware query is unavailable.
    """
    cap = 64 * 1024 * 1024
    try:
        c = int(pltpu.get_tpu_info().vmem_capacity_bytes)
        if c > 0:
            cap = c
    except Exception:          # best-effort hardware query
        pass
    return max(32 * 1024 * 1024, min(96 * 1024 * 1024, (cap * 3) // 4))


def _cp(grid_rank=1):
    return pltpu.CompilerParams(
        dimension_semantics=("parallel",) * grid_rank,
        vmem_limit_bytes=_vmem_limit_bytes())


def _pick_tile(n, target):
    """Largest multiple-of-8 divisor of n that is <= target.

    Guarded fallback: if no multiple-of-8 divisor fits under target, use the
    *smallest* multiple-of-8 divisor (bounded block) rather than silently
    degrading to one whole-array block; only if n has no multiple-of-8
    divisor at all do we fall back to n itself.
    """
    divs = [d for d in range(8, n + 1, 8) if n % d == 0]
    if not divs:
        return n
    fits = [d for d in divs if d <= target]
    return max(fits) if fits else min(divs)


def _rows_that_fit(bytes_per_row):
    """Rows whose blocks (all operands summed per row, x2 double-buffering,
    +50% headroom for weights/scratch/stats) fit the scoped VMEM budget."""
    r = _vmem_limit_bytes() // (3 * max(1, int(bytes_per_row)))
    return max(8, (int(r) // 8) * 8)


def _bn_scale_shift(ssum, ssq, gamma, beta, count):
    """Finalize cross-tile (sum, sumsq) partials into BN scale/shift.

    One-pass variance (E[x^2] - E[x]^2), clamped at 0; adequate at these
    magnitudes -- switch to per-tile centered sums if tolerances tighten.
    """
    s = jnp.sum(ssum, axis=(0, 1))
    q = jnp.sum(ssq, axis=(0, 1))
    mean = s / count
    var = jnp.maximum(q / count - mean * mean, 0.0)
    scale = gamma * jax.lax.rsqrt(var + EPS)
    shift = beta - mean * scale
    return scale.reshape(1, -1), shift.reshape(1, -1)


# ---------------------------------------------------------------------------
# Forward wrapper
# ---------------------------------------------------------------------------
def detnet_bottleneck_forward(x_nchw, params, *, row_tile=1024):
    """x_nchw: (B, Cin, H, W) float32; params hold PyTorch-layout weights.

    Implements detnet_bottleneck with stride=1 and an identity shortcut
    (block_type='A', in_planes == planes).
    """
    B, Cin, H, W = x_nchw.shape
    P = params["w1"].shape[0]            # planes
    Cout = params["w3"].shape[0]         # planes (conv3 is planes -> planes)
    assert Cout == Cin, "identity shortcut needs in_planes == planes ('A')"
    rows = B * H * W

    # NHWC boundary transposes.  Intermediates are bf16 (mem-bound passes);
    # the residual x and the final output stay f32.
    x_nhwc = jnp.transpose(x_nchw, (0, 2, 3, 1)).astype(jnp.float32)
    x2d = x_nhwc.astype(jnp.bfloat16).reshape(rows, Cin)

    # Weight re-layout (layout glue; weights stay VMEM-resident, bf16 on MXU).
    w1m = params["w1"].T.astype(jnp.bfloat16)                        # (Cin, P)
    w2m = jnp.transpose(params["w2"], (2, 3, 1, 0)).reshape(9, P, P)
    w2m = w2m.astype(jnp.bfloat16)                                   # (9, P, P)
    w3m = params["w3"].T.astype(jnp.bfloat16)                        # (P, Cout)

    # Row tiles for the 1x1-conv passes: as large as the scoped VMEM budget
    # allows (mem-bound kernels hit ~85% of HBM roofline at 512-1024 rows).
    tr = _pick_tile(rows, min(row_tile, _rows_that_fit((Cin + P) * 2)))
    nt = rows // tr

    # ---- pass 1: conv1 (1x1) + BN1 partial stats ---------------------------
    h1, s1, q1 = pl.pallas_call(
        _conv1_kernel,
        grid=(nt,),
        in_specs=[pl.BlockSpec((tr, Cin), lambda i: (i, 0)),
                  pl.BlockSpec((Cin, P), lambda i: (0, 0))],
        out_specs=(pl.BlockSpec((tr, P), lambda i: (i, 0)),
                   pl.BlockSpec((1, 1, P), lambda i: (i, 0, 0)),
                   pl.BlockSpec((1, 1, P), lambda i: (i, 0, 0))),
        out_shape=(jax.ShapeDtypeStruct((rows, P), jnp.bfloat16),
                   jax.ShapeDtypeStruct((nt, 1, P), jnp.float32),
                   jax.ShapeDtypeStruct((nt, 1, P), jnp.float32)),
        compiler_params=_cp(1),
    )(x2d, w1m)
    scale1, shift1 = _bn_scale_shift(s1, q1, params["g1"], params["b1"], rows)

    # ---- pass 2: BN1+ReLU + conv2 (3x3, dilation=2, pad=2) + BN2 stats -----
    # TODO(synk): for very small batches on v7x, additionally tile over H with
    # a 2-row halo exchange so both TensorCores stay fed; grid=(B,) is enough
    # for training-sized batches.
    h2, s2, q2 = pl.pallas_call(
        _conv2_kernel,
        grid=(B,),
        in_specs=[pl.BlockSpec((1, H, W, P), lambda b: (b, 0, 0, 0)),
                  pl.BlockSpec((1, P), lambda b: (0, 0)),
                  pl.BlockSpec((1, P), lambda b: (0, 0)),
                  pl.BlockSpec((9, P, P), lambda b: (0, 0, 0))],
        out_specs=(pl.BlockSpec((1, H, W, P), lambda b: (b, 0, 0, 0)),
                   pl.BlockSpec((1, 1, P), lambda b: (b, 0, 0)),
                   pl.BlockSpec((1, 1, P), lambda b: (b, 0, 0))),
        out_shape=(jax.ShapeDtypeStruct((B, H, W, P), jnp.bfloat16),
                   jax.ShapeDtypeStruct((B, 1, P), jnp.float32),
                   jax.ShapeDtypeStruct((B, 1, P), jnp.float32)),
        scratch_shapes=[pltpu.VMEM((H + 4, W + 4, P), jnp.bfloat16)],
        compiler_params=_cp(1),
    )(h1.reshape(B, H, W, P), scale1, shift1, w2m)
    scale2, shift2 = _bn_scale_shift(s2, q2, params["g2"], params["b2"], rows)

    # ---- pass 3: BN2+ReLU + conv3 (1x1) + BN3 partial stats ----------------
    tr3 = _pick_tile(rows, min(row_tile, _rows_that_fit((P + Cout) * 2 + P * 4)))
    nt3 = rows // tr3
    h3, s3, q3 = pl.pallas_call(
        _conv3_kernel,
        grid=(nt3,),
        in_specs=[pl.BlockSpec((tr3, P), lambda i: (i, 0)),
                  pl.BlockSpec((1, P), lambda i: (0, 0)),
                  pl.BlockSpec((1, P), lambda i: (0, 0)),
                  pl.BlockSpec((P, Cout), lambda i: (0, 0))],
        out_specs=(pl.BlockSpec((tr3, Cout), lambda i: (i, 0)),
                   pl.BlockSpec((1, 1, Cout), lambda i: (i, 0, 0)),
                   pl.BlockSpec((1, 1, Cout), lambda i: (i, 0, 0))),
        out_shape=(jax.ShapeDtypeStruct((rows, Cout), jnp.bfloat16),
                   jax.ShapeDtypeStruct((nt3, 1, Cout), jnp.float32),
                   jax.ShapeDtypeStruct((nt3, 1, Cout), jnp.float32)),
        compiler_params=_cp(1),
    )(h2.reshape(rows, P), scale2, shift2, w3m)
    scale3, shift3 = _bn_scale_shift(s3, q3, params["g3"], params["b3"], rows)

    # ---- pass 4: BN3 + identity residual + ReLU (lane-dense 2-D view) ------
    lane = W * Cout                  # multiple of 128 at production widths
    td = _pick_tile(B * H, min(max(8, row_tile // max(W, 1)),
                               _rows_that_fit(lane * 10)))
    ntd = (B * H) // td
    x_res = x_nhwc.reshape(B * H, lane)      # f32 residual, aliased into out
    out2d = pl.pallas_call(
        _residual_kernel,
        grid=(ntd,),
        in_specs=[pl.BlockSpec((td, lane), lambda i: (i, 0)),
                  pl.BlockSpec((td, lane), lambda i: (i, 0)),
                  pl.BlockSpec((1, lane), lambda i: (0, 0)),
                  pl.BlockSpec((1, lane), lambda i: (0, 0))],
        out_specs=pl.BlockSpec((td, lane), lambda i: (i, 0)),
        out_shape=jax.ShapeDtypeStruct((B * H, lane), jnp.float32),
        input_output_aliases={1: 0},     # reuse the residual buffer for out
        compiler_params=_cp(1),
    )(h3.reshape(B * H, lane), x_res,
      jnp.tile(scale3, (1, W)), jnp.tile(shift3, (1, W)))

    out_nhwc = out2d.reshape(B, H, W, Cout)
    return jnp.transpose(out_nhwc, (0, 3, 1, 2))


# ---------------------------------------------------------------------------
# Pure-JAX NCHW reference mirroring the PyTorch forward (f32, HIGHEST)
# ---------------------------------------------------------------------------
def detnet_bottleneck_ref(x, p):
    hp = jax.lax.Precision.HIGHEST

    def bn(y, g, b):
        mean = jnp.mean(y, axis=(0, 2, 3), keepdims=True)
        var = jnp.mean((y - mean) ** 2, axis=(0, 2, 3), keepdims=True)
        return ((y - mean) * jax.lax.rsqrt(var + EPS) * g.reshape(1, -1, 1, 1)
                + b.reshape(1, -1, 1, 1))

    out = jnp.einsum("bchw,oc->bohw", x, p["w1"], precision=hp)
    out = jax.nn.relu(bn(out, p["g1"], p["b1"]))
    out = jax.lax.conv_general_dilated(
        out, p["w2"], window_strides=(1, 1), padding=((2, 2), (2, 2)),
        rhs_dilation=(2, 2),
        dimension_numbers=("NCHW", "OIHW", "NCHW"), precision=hp)
    out = jax.nn.relu(bn(out, p["g2"], p["b2"]))
    out = jnp.einsum("bchw,oc->bohw", out, p["w3"], precision=hp)
    out = bn(out, p["g3"], p["b3"])
    return jax.nn.relu(out + x)      # block_type 'A', stride=1 -> identity


if __name__ == "__main__":
    B, H, W = 2, 16, 16
    planes = 32
    in_planes = planes               # block_type 'A': identity shortcut

    key = jax.random.PRNGKey(0)
    keys = jax.random.split(key, 10)
    params = {
        "w1": 0.2 * jax.random.normal(keys[0], (planes, in_planes), jnp.float32),
        "w2": 0.2 * jax.random.normal(keys[1], (planes, planes, 3, 3), jnp.float32),
        "w3": 0.2 * jax.random.normal(keys[2], (planes, planes), jnp.float32),
        "g1": 1.0 + 0.1 * jax.random.normal(keys[3], (planes,), jnp.float32),
        "b1": 0.1 * jax.random.normal(keys[4], (planes,), jnp.float32),
        "g2": 1.0 + 0.1 * jax.random.normal(keys[5], (planes,), jnp.float32),
        "b2": 0.1 * jax.random.normal(keys[6], (planes,), jnp.float32),
        "g3": 1.0 + 0.1 * jax.random.normal(keys[7], (planes,), jnp.float32),
        "b3": 0.1 * jax.random.normal(keys[8], (planes,), jnp.float32),
    }
    x = jax.random.normal(keys[9], (B, in_planes, H, W), jnp.float32)

    fwd = jax.jit(detnet_bottleneck_forward)
    out = jax.block_until_ready(fwd(x, params))

    ref = jax.block_until_ready(detnet_bottleneck_ref(x, params))
    assert out.shape == ref.shape == (B, in_planes, H, W)
    err = float(jnp.max(jnp.abs(out - ref)))
    # Tolerance accounts for bf16 MXU matmuls + bf16-stored intermediates vs
    # an f32 HIGHEST-precision reference through three chained conv+BN stages.
    assert jnp.allclose(out, ref, rtol=8e-2, atol=8e-2), err

    print("KERNEL_OK")
</pallas_src>

<mosaic_0001>
module attributes {stable_mosaic.version = 11 : i64} {
  func.func @_conv1_kernel(%arg0: i32, %arg1: memref<512x32xbf16, #tpu.memory_space<vmem>>, %arg2: memref<32x32xbf16, #tpu.memory_space<vmem>>, %arg3: memref<512x32xbf16, #tpu.memory_space<vmem>>, %arg4: memref<1x1x32xf32, #tpu.memory_space<vmem>>, %arg5: memref<1x1x32xf32, #tpu.memory_space<vmem>>) attributes {dimension_semantics = [#tpu.dimension_semantics<parallel>], iteration_bounds = array<i64: 1>, scalar_prefetch = 0 : i64, scratch_operands = 0 : i64, tpu.core_type = #tpu.core_type<tc>, window_params = [{transform_indices = @transform_0, window_bounds = array<i64: 512, 32>}, {pipeline_mode = #tpu.pipeline_mode<synchronous>, transform_indices = @transform_1, window_bounds = array<i64: 32, 32>}, {transform_indices = @transform_2, window_bounds = array<i64: 512, 32>}, {transform_indices = @transform_3, window_bounds = array<i64: 1, 1, 32>}, {transform_indices = @transform_4, window_bounds = array<i64: 1, 1, 32>}]} {
    %c0 = arith.constant 0 : index
    %c0_0 = arith.constant 0 : index
    %0 = vector.load %arg1[%c0, %c0_0] : memref<512x32xbf16, #tpu.memory_space<vmem>>, vector<512x32xbf16>
    %c0_1 = arith.constant 0 : index
    %c0_2 = arith.constant 0 : index
    %1 = vector.load %arg2[%c0_1, %c0_2] : memref<32x32xbf16, #tpu.memory_space<vmem>>, vector<32x32xbf16>
    %cst = arith.constant dense<0.000000e+00> : vector<512x32xf32>
    %2 = tpu.matmul %0, %1, %cst {dimension_numbers = #tpu.dot_dimension_numbers<[1], [0], [0], [1], [0, 0, 1, 1], [], []>} : vector<512x32xbf16>, vector<32x32xbf16>, vector<512x32xf32> -> vector<512x32xf32>
    %3 = arith.truncf %2 : vector<512x32xf32> to vector<512x32xbf16>
    %c0_3 = arith.constant 0 : index
    %c0_4 = arith.constant 0 : index
    %4 = vector.load %arg3[%c0_3, %c0_4] : memref<512x32xbf16, #tpu.memory_space<vmem>>, vector<512x32xbf16>
    tpu.vector_store %arg3[%c0_3, %c0_4], %3 {strides = array<i32>} : memref<512x32xbf16, #tpu.memory_space<vmem>>, vector<512x32xbf16>,
    %cst_5 = arith.constant dense<0.000000e+00> : vector<32xf32>
    %5 = vector.multi_reduction <add>, %2, %cst_5 [0] : vector<512x32xf32> to vector<32xf32>
    %6 = vector.shape_cast %5 : vector<32xf32> to vector<1x32xf32>
    %7 = vector.shape_cast %6 : vector<1x32xf32> to vector<1x1x32xf32>
    %c0_6 = arith.constant 0 : index
    %c0_7 = arith.constant 0 : index
    %c0_8 = arith.constant 0 : index
    %8 = vector.load %arg4[%c0_6, %c0_7, %c0_8] : memref<1x1x32xf32, #tpu.memory_space<vmem>>, vector<1x1x32xf32>
    tpu.vector_store %arg4[%c0_6, %c0_7, %c0_8], %7 {strides = array<i32>} : memref<1x1x32xf32, #tpu.memory_space<vmem>>, vector<1x1x32xf32>,
    %9 = arith.mulf %2, %2 : vector<512x32xf32>
    %cst_9 = arith.constant dense<0.000000e+00> : vector<32xf32>
    %10 = vector.multi_reduction <add>, %9, %cst_9 [0] : vector<512x32xf32> to vector<32xf32>
    %11 = vector.shape_cast %10 : vector<32xf32> to vector<1x32xf32>
    %12 = vector.shape_cast %11 : vector<1x32xf32> to vector<1x1x32xf32>
    %c0_10 = arith.constant 0 : index
    %c0_11 = arith.constant 0 : index
    %c0_12 = arith.constant 0 : index
    %13 = vector.load %arg5[%c0_10, %c0_11, %c0_12] : memref<1x1x32xf32, #tpu.memory_space<vmem>>, vector<1x1x32xf32>
    tpu.vector_store %arg5[%c0_10, %c0_11, %c0_12], %12 {strides = array<i32>} : memref<1x1x32xf32, #tpu.memory_space<vmem>>, vector<1x1x32xf32>,
    return
  }
  func.func @transform_0(%arg0: i32) -> (i32, i32) {
    %c0_i32 = arith.constant 0 : i32
    %c0_i32_0 = arith.constant 0 : i32
    return %arg0, %c0_i32 : i32, i32
  }
  func.func @transform_1(%arg0: i32) -> (i32, i32) {
    %c0_i32 = arith.constant 0 : i32
    %c0_i32_0 = arith.constant 0 : i32
    %c0_i32_1 = arith.constant 0 : i32
    return %c0_i32, %c0_i32_0 : i32, i32
  }
  func.func @transform_2(%arg0: i32) -> (i32, i32) {
    %c0_i32 = arith.constant 0 : i32
    %c0_i32_0 = arith.constant 0 : i32
    return %arg0, %c0_i32 : i32, i32
  }
  func.func @transform_3(%arg0: i32) -> (i32, i32, i32) {
    %c0_i32 = arith.constant 0 : i32
    %c0_i32_0 = arith.constant 0 : i32
    %c0_i32_1 = arith.constant 0 : i32
    return %arg0, %c0_i32, %c0_i32_0 : i32, i32, i32
  }
  func.func @transform_4(%arg0: i32) -> (i32, i32, i32) {
    %c0_i32 = arith.constant 0 : i32
    %c0_i32_0 = arith.constant 0 : i32
    %c0_i32_1 = arith.constant 0 : i32
    return %arg0, %c0_i32, %c0_i32_0 : i32, i32, i32
  }
}

module attributes {stable_mosaic.version = 11 : i64} {
  func.func @_conv2_kernel(%arg0: i32, %arg1: memref<1x16x16x32xbf16, #tpu.memory_space<vmem>>, %arg2: memref<1x32xf32, #tpu.memory_space<vmem>>, %arg3: memref<1x32xf32, #tpu.memory_space<vmem>>, %arg4: memref<9x32x32xbf16, #tpu.memory_space<vmem>>, %arg5: memref<1x16x16x32xbf16, #tpu.memory_space<vmem>>, %arg6: memref<1x1x32xf32, #tpu.memory_space<vmem>>, %arg7: memref<1x1x32xf32, #tpu.memory_space<vmem>>, %arg8: memref<20x20x32xbf16, #tpu.memory_space<vmem>>) attributes {dimension_semantics = [#tpu.dimension_semantics<parallel>], iteration_bounds = array<i64: 2>, scalar_prefetch = 0 : i64, scratch_operands = 1 : i64, tpu.core_type = #tpu.core_type<tc>, window_params = [{transform_indices = @transform_0, window_bounds = array<i64: 1, 16, 16, 32>}, {pipeline_mode = #tpu.pipeline_mode<synchronous>, transform_indices = @transform_1, window_bounds = array<i64: 1, 32>}, {pipeline_mode = #tpu.pipeline_mode<synchronous>, transform_indices = @transform_2, window_bounds = array<i64: 1, 32>}, {pipeline_mode = #tpu.pipeline_mode<synchronous>, transform_indices = @transform_3, window_bounds = array<i64: 9, 32, 32>}, {transform_indices = @transform_4, window_bounds = array<i64: 1, 16, 16, 32>}, {transform_indices = @transform_5, window_bounds = array<i64: 1, 1, 32>}, {transform_indices = @transform_6, window_bounds = array<i64: 1, 1, 32>}]} {
    %c0 = arith.constant 0 : index
    %c0_0 = arith.constant 0 : index
    %c0_1 = arith.constant 0 : index
    %c0_2 = arith.constant 0 : index
    %0 = vector.load %arg1[%c0, %c0_0, %c0_1, %c0_2] : memref<1x16x16x32xbf16, #tpu.memory_space<vmem>>, vector<1x16x16x32xbf16>
    %1 = vector.shape_cast %0 : vector<1x16x16x32xbf16> to vector<16x16x32xbf16>
    %2 = arith.extf %1 : vector<16x16x32xbf16> to vector<16x16x32xf32>
    %c0_3 = arith.constant 0 : index
    %c0_4 = arith.constant 0 : index
    %3 = vector.load %arg2[%c0_3, %c0_4] : memref<1x32xf32, #tpu.memory_space<vmem>>, vector<1x32xf32>
    %4 = vector.shape_cast %3 : vector<1x32xf32> to vector<1x1x32xf32>
    %5 = vector.broadcast %4 : vector<1x1x32xf32> to vector<16x16x32xf32>
    %6 = arith.mulf %2, %5 : vector<16x16x32xf32>
    %c0_5 = arith.constant 0 : index
    %c0_6 = arith.constant 0 : index
    %7 = vector.load %arg3[%c0_5, %c0_6] : memref<1x32xf32, #tpu.memory_space<vmem>>, vector<1x32xf32>
    %8 = vector.shape_cast %7 : vector<1x32xf32> to vector<1x1x32xf32>
    %9 = vector.broadcast %8 : vector<1x1x32xf32> to vector<16x16x32xf32>
    %10 = arith.addf %6, %9 : vector<16x16x32xf32>
    %cst = arith.constant 0.000000e+00 : f32
    %11 = vector.broadcast %cst : f32 to vector<16x16x32xf32>
    %12 = arith.maximumf %10, %11 : vector<16x16x32xf32>
    %cst_7 = arith.constant 0.000000e+00 : bf16
    %13 = vector.broadcast %cst_7 : bf16 to vector<2x20x32xbf16>
    %cst_8 = arith.constant 0.000000e+00 : bf16
    %14 = vector.broadcast %cst_8 : bf16 to vector<20x2x32xbf16>
    %c0_9 = arith.constant 0 : index
    %c0_10 = arith.constant 0 : index
    %c0_11 = arith.constant 0 : index
    %15 = vector.load %arg8[%c0_9, %c0_10, %c0_11] : memref<20x20x32xbf16, #tpu.memory_space<vmem>>, vector<2x20x32xbf16>
    tpu.vector_store %arg8[%c0_9, %c0_10, %c0_11], %13 {strides = array<i32>} : memref<20x20x32xbf16, #tpu.memory_space<vmem>>, vector<2x20x32xbf16>,
    %c18 = arith.constant 18 : index
    %c0_12 = arith.constant 0 : index
    %c0_13 = arith.constant 0 : index
    %16 = vector.load %arg8[%c18, %c0_12, %c0_13] : memref<20x20x32xbf16, #tpu.memory_space<vmem>>, vector<2x20x32xbf16>
    tpu.vector_store %arg8[%c18, %c0_12, %c0_13], %13 {strides = array<i32>} : memref<20x20x32xbf16, #tpu.memory_space<vmem>>, vector<2x20x32xbf16>,
    %c0_14 = arith.constant 0 : index
    %c0_15 = arith.constant 0 : index
    %c0_16 = arith.constant 0 : index
    %17 = vector.load %arg8[%c0_14, %c0_15, %c0_16] : memref<20x20x32xbf16, #tpu.memory_space<vmem>>, vector<20x2x32xbf16>
    tpu.vector_store %arg8[%c0_14, %c0_15, %c0_16], %14 {strides = array<i32>} : memref<20x20x32xbf16, #tpu.memory_space<vmem>>, vector<20x2x32xbf16>,
    %c0_17 = arith.constant 0 : index
    %c18_18 = arith.constant 18 : index
    %c0_19 = arith.constant 0 : index
    %18 = vector.load %arg8[%c0_17, %c18_18, %c0_19] : memref<20x20x32xbf16, #tpu.memory_space<vmem>>, vector<20x2x32xbf16>
    tpu.vector_store %arg8[%c0_17, %c18_18, %c0_19], %14 {strides = array<i32>} : memref<20x20x32xbf16, #tpu.memory_space<vmem>>, vector<20x2x32xbf16>,
    %19 = arith.truncf %12 : vector<16x16x32xf32> to vector<16x16x32xbf16>
    %c2 = arith.constant 2 : index
    %c2_20 = arith.constant 2 : index
    %c0_21 = arith.constant 0 : index
    %20 = vector.load %arg8[%c2, %c2_20, %c0_21] : memref<20x20x32xbf16, #tpu.memory_space<vmem>>, vector<16x16x32xbf16>
    tpu.vector_store %arg8[%c2, %c2_20, %c0_21], %19 {strides = array<i32>} : memref<20x20x32xbf16, #tpu.memory_space<vmem>>, vector<16x16x32xbf16>,
    %cst_22 = arith.constant 0.000000e+00 : f32
    %21 = vector.broadcast %cst_22 : f32 to vector<256x32xf32>
    %c0_23 = arith.constant 0 : index
    %c0_24 = arith.constant 0 : index
    %c0_25 = arith.constant 0 : index
    %22 = vector.load %arg8[%c0_23, %c0_24, %c0_25] : memref<20x20x32xbf16, #tpu.memory_space<vmem>>, vector<16x16x32xbf16>
    %23 = vector.shape_cast %22 : vector<16x16x32xbf16> to vector<256x32xbf16>
    %c0_26 = arith.constant 0 : index
    %c0_27 = arith.constant 0 : index
    %c0_28 = arith.constant 0 : index
    %24 = vector.load %arg4[%c0_26, %c0_27, %c0_28] : memref<9x32x32xbf16, #tpu.memory_space<vmem>>, vector<1x32x32xbf16>
    %25 = vector.shape_cast %24 : vector<1x32x32xbf16> to vector<32x32xbf16>
    %cst_29 = arith.constant dense<0.000000e+00> : vector<256x32xf32>
    %26 = tpu.matmul %23, %25, %cst_29 {dimension_numbers = #tpu.dot_dimension_numbers<[1], [0], [0], [1], [0, 0, 1, 1], [], []>} : vector<256x32xbf16>, vector<32x32xbf16>, vector<256x32xf32> -> vector<256x32xf32>
    %27 = arith.addf %21, %26 : vector<256x32xf32>
    %c0_30 = arith.constant 0 : index
    %c2_31 = arith.constant 2 : index
    %c0_32 = arith.constant 0 : index
    %28 = vector.load %arg8[%c0_30, %c2_31, %c0_32] : memref<20x20x32xbf16, #tpu.memory_space<vmem>>, vector<16x16x32xbf16>
    %29 = vector.shape_cast %28 : vector<16x16x32xbf16> to vector<256x32xbf16>
    %c1 = arith.constant 1 : index
    %c0_33 = arith.constant 0 : index
    %c0_34 = arith.constant 0 : index
    %30 = vector.load %arg4[%c1, %c0_33, %c0_34] : memref<9x32x32xbf16, #tpu.memory_space<vmem>>, vector<1x32x32xbf16>
    %31 = vector.shape_cast %30 : vector<1x32x32xbf16> to vector<32x32xbf16>
    %cst_35 = arith.constant dense<0.000000e+00> : vector<256x32xf32>
    %32 = tpu.matmul %29, %31, %cst_35 {dimension_numbers = #tpu.dot_dimension_numbers<[1], [0], [0], [1], [0, 0, 1, 1], [], []>} : vector<256x32xbf16>, vector<32x32xbf16>, vector<256x32xf32> -> vector<256x32xf32>
    %33 = arith.addf %27, %32 : vector<256x32xf32>
    %c0_36 = arith.constant 0 : index
    %c4 = arith.constant 4 : index
    %c0_37 = arith.constant 0 : index
    %34 = vector.load %arg8[%c0_36, %c4, %c0_37] : memref<20x20x32xbf16, #tpu.memory_space<vmem>>, vector<16x16x32xbf16>
    %35 = vector.shape_cast %34 : vector<16x16x32xbf16> to vector<256x32xbf16>
    %c2_38 = arith.constant 2 : index
    %c0_39 = arith.constant 0 : index
    %c0_40 = arith.constant 0 : index
    %36 = vector.load %arg4[%c2_38, %c0_39, %c0_40] : memref<9x32x32xbf16, #tpu.memory_space<vmem>>, vector<1x32x32xbf16>
    %37 = vector.shape_cast %36 : vector<1x32x32xbf16> to vector<32x32xbf16>
    %cst_41 = arith.constant dense<0.000000e+00> : vector<256x32xf32>
    %38 = tpu.matmul %35, %37, %cst_41 {dimension_numbers = #tpu.dot_dimension_numbers<[1], [0], [0], [1], [0, 0, 1, 1], [], []>} : vector<256x32xbf16>, vector<32x32xbf16>, vector<256x32xf32> -> vector<256x32xf32>
    %39 = arith.addf %33, %38 : vector<256x32xf32>
    %c2_42 = arith.constant 2 : index
    %c0_43 = arith.constant 0 : index
    %c0_44 = arith.constant 0 : index
    %40 = vector.load %arg8[%c2_42, %c0_43, %c0_44] : memref<20x20x32xbf16, #tpu.memory_space<vmem>>, vector<16x16x32xbf16>
    %41 = vector.shape_cast %40 : vector<16x16x32xbf16> to vector<256x32xbf16>
    %c3 = arith.constant 3 : index
    %c0_45 = arith.constant 0 : index
    %c0_46 = arith.constant 0 : index
    %42 = vector.load %arg4[%c3, %c0_45, %c0_46] : memref<9x32x32xbf16, #tpu.memory_space<vmem>>, vector<1x32x32xbf16>
    %43 = vector.shape_cast %42 : vector<1x32x32xbf16> to vector<32x32xbf16>
    %cst_47 = arith.constant dense<0.000000e+00> : vector<256x32xf32>
    %44 = tpu.matmul %41, %43, %cst_47 {dimension_numbers = #tpu.dot_dimension_numbers<[1], [0], [0], [1], [0, 0, 1, 1], [], []>} : vector<256x32xbf16>, vector<32x32xbf16>, vector<256x32xf32> -> vector<256x32xf32>
    %45 = arith.addf %39, %44 : vector<256x32xf32>
    %c2_48 = arith.constant 2 : index
    %c2_49 = arith.constant 2 : index
    %c0_50 = arith.constant 0 : index
    %46 = vector.load %arg8[%c2_48, %c2_49, %c0_50] : memref<20x20x32xbf16, #tpu.memory_space<vmem>>, vector<16x16x32xbf16>
    %47 = vector.shape_cast %46 : vector<16x16x32xbf16> to vector<256x32xbf16>
    %c4_51 = arith.constant 4 : index
    %c0_52 = arith.constant 0 : index
    %c0_53 = arith.constant 0 : index
    %48 = vector.load %arg4[%c4_51, %c0_52, %c0_53] : memref<9x32x32xbf16, #tpu.memory_space<vmem>>, vector<1x32x32xbf16>
    %49 = vector.shape_cast %48 : vector<1x32x32xbf16> to vector<32x32xbf16>
    %cst_54 = arith.constant dense<0.000000e+00> : vector<256x32xf32>
    %50 = tpu.matmul %47, %49, %cst_54 {dimension_numbers = #tpu.dot_dimension_numbers<[1], [0], [0], [1], [0, 0, 1, 1], [], []>} : vector<256x32xbf16>, vector<32x32xbf16>, vector<256x32xf32> -> vector<256x32xf32>
    %51 = arith.addf %45, %50 : vector<256x32xf32>
    %c2_55 = arith.constant 2 : index
    %c4_56 = arith.constant 4 : index
    %c0_57 = arith.constant 0 : index
    %52 = vector.load %arg8[%c2_55, %c4_56, %c0_57] : memref<20x20x32xbf16, #tpu.memory_space<vmem>>, vector<16x16x32xbf16>
    %53 = vector.shape_cast %52 : vector<16x16x32xbf16> to vector<256x32xbf16>
    %c5 = arith.constant 5 : index
    %c0_58 = arith.constant 0 : index
    %c0_59 = arith.constant 0 : index
    %54 = vector.load %arg4[%c5, %c0_58, %c0_59] : memref<9x32x32xbf16, #tpu.memory_space<vmem>>, vector<1x32x32xbf16>
    %55 = vector.shape_cast %54 : vector<1x32x32xbf16> to vector<32x32xbf16>
    %cst_60 = arith.constant dense<0.000000e+00> : vector<256x32xf32>
    %56 = tpu.matmul %53, %55, %cst_60 {dimension_numbers = #tpu.dot_dimension_numbers<[1], [0], [0], [1], [0, 0, 1, 1], [], []>} : vector<256x32xbf16>, vector<32x32xbf16>, vector<256x32xf32> -> vector<256x32xf32>
    %57 = arith.addf %51, %56 : vector<256x32xf32>
    %c4_61 = arith.constant 4 : index
    %c0_62 = arith.constant 0 : index
    %c0_63 = arith.constant 0 : index
    %58 = vector.load %arg8[%c4_61, %c0_62, %c0_63] : memref<20x20x32xbf16, #tpu.memory_space<vmem>>, vector<16x16x32xbf16>
    %59 = vector.shape_cast %58 : vector<16x16x32xbf16> to vector<256x32xbf16>
    %c6 = arith.constant 6 : index
    %c0_64 = arith.constant 0 : index
    %c0_65 = arith.constant 0 : index
    %60 = vector.load %arg4[%c6, %c0_64, %c0_65] : memref<9x32x32xbf16, #tpu.memory_space<vmem>>, vector<1x32x32xbf16>
    %61 = vector.shape_cast %60 : vector<1x32x32xbf16> to vector<32x32xbf16>
    %cst_66 = arith.constant dense<0.000000e+00> : vector<256x32xf32>
    %62 = tpu.matmul %59, %61, %cst_66 {dimension_numbers = #tpu.dot_dimension_numbers<[1], [0], [0], [1], [0, 0, 1, 1], [], []>} : vector<256x32xbf16>, vector<32x32xbf16>, vector<256x32xf32> -> vector<256x32xf32>
    %63 = arith.addf %57, %62 : vector<256x32xf32>
    %c4_67 = arith.constant 4 : index
    %c2_68 = arith.constant 2 : index
    %c0_69 = arith.constant 0 : index
    %64 = vector.load %arg8[%c4_67, %c2_68, %c0_69] : memref<20x20x32xbf16, #tpu.memory_space<vmem>>, vector<16x16x32xbf16>
    %65 = vector.shape_cast %64 : vector<16x16x32xbf16> to vector<256x32xbf16>
    %c7 = arith.constant 7 : index
    %c0_70 = arith.constant 0 : index
    %c0_71 = arith.constant 0 : index
    %66 = vector.load %arg4[%c7, %c0_70, %c0_71] : memref<9x32x32xbf16, #tpu.memory_space<vmem>>, vector<1x32x32xbf16>
    %67 = vector.shape_cast %66 : vector<1x32x32xbf16> to vector<32x32xbf16>
    %cst_72 = arith.constant dense<0.000000e+00> : vector<256x32xf32>
    %68 = tpu.matmul %65, %67, %cst_72 {dimension_numbers = #tpu.dot_dimension_numbers<[1], [0], [0], [1], [0, 0, 1, 1], [], []>} : vector<256x32xbf16>, vector<32x32xbf16>, vector<256x32xf32> -> vector<256x32xf32>
    %69 = arith.addf %63, %68 : vector<256x32xf32>
    %c4_73 = arith.constant 4 : index
    %c4_74 = arith.constant 4 : index
    %c0_75 = arith.constant 0 : index
    %70 = vector.load %arg8[%c4_73, %c4_74, %c0_75] : memref<20x20x32xbf16, #tpu.memory_space<vmem>>, vector<16x16x32xbf16>
    %71 = vector.shape_cast %70 : vector<16x16x32xbf16> to vector<256x32xbf16>
    %c8 = arith.constant 8 : index
    %c0_76 = arith.constant 0 : index
    %c0_77 = arith.constant 0 : index
    %72 = vector.load %arg4[%c8, %c0_76, %c0_77] : memref<9x32x32xbf16, #tpu.memory_space<vmem>>, vector<1x32x32xbf16>
    %73 = vector.shape_cast %72 : vector<1x32x32xbf16> to vector<32x32xbf16>
    %cst_78 = arith.constant dense<0.000000e+00> : vector<256x32xf32>
    %74 = tpu.matmul %71, %73, %cst_78 {dimension_numbers = #tpu.dot_dimension_numbers<[1], [0], [0], [1], [0, 0, 1, 1], [], []>} : vector<256x32xbf16>, vector<32x32xbf16>, vector<256x32xf32> -> vector<256x32xf32>
    %75 = arith.addf %69, %74 : vector<256x32xf32>
    %76 = vector.shape_cast %75 : vector<256x32xf32> to vector<1x16x16x32xf32>
    %77 = arith.truncf %76 : vector<1x16x16x32xf32> to vector<1x16x16x32xbf16>
    %c0_79 = arith.constant 0 : index
    %c0_80 = arith.constant 0 : index
    %c0_81 = arith.constant 0 : index
    %c0_82 = arith.constant 0 : index
    %78 = vector.load %arg5[%c0_79, %c0_80, %c0_81, %c0_82] : memref<1x16x16x32xbf16, #tpu.memory_space<vmem>>, vector<1x16x16x32xbf16>
    tpu.vector_store %arg5[%c0_79, %c0_80, %c0_81, %c0_82], %77 {strides = array<i32>} : memref<1x16x16x32xbf16, #tpu.memory_space<vmem>>, vector<1x16x16x32xbf16>,
    %cst_83 = arith.constant dense<0.000000e+00> : vector<32xf32>
    %79 = vector.multi_reduction <add>, %75, %cst_83 [0] : vector<256x32xf32> to vector<32xf32>
    %80 = vector.shape_cast %79 : vector<32xf32> to vector<1x32xf32>
    %81 = vector.shape_cast %80 : vector<1x32xf32> to vector<1x1x32xf32>
    %c0_84 = arith.constant 0 : index
    %c0_85 = arith.constant 0 : index
    %c0_86 = arith.constant 0 : index
    %82 = vector.load %arg6[%c0_84, %c0_85, %c0_86] : memref<1x1x32xf32, #tpu.memory_space<vmem>>, vector<1x1x32xf32>
    tpu.vector_store %arg6[%c0_84, %c0_85, %c0_86], %81 {strides = array<i32>} : memref<1x1x32xf32, #tpu.memory_space<vmem>>, vector<1x1x32xf32>,
    %83 = arith.mulf %75, %75 : vector<256x32xf32>
    %cst_87 = arith.constant dense<0.000000e+00> : vector<32xf32>
    %84 = vector.multi_reduction <add>, %83, %cst_87 [0] : vector<256x32xf32> to vector<32xf32>
    %85 = vector.shape_cast %84 : vector<32xf32> to vector<1x32xf32>
    %86 = vector.shape_cast %85 : vector<1x32xf32> to vector<1x1x32xf32>
    %c0_88 = arith.constant 0 : index
    %c0_89 = arith.constant 0 : index
    %c0_90 = arith.constant 0 : index
    %87 = vector.load %arg7[%c0_88, %c0_89, %c0_90] : memref<1x1x32xf32, #tpu.memory_space<vmem>>, vector<1x1x32xf32>
    tpu.vector_store %arg7[%c0_88, %c0_89, %c0_90], %86 {strides = array<i32>} : memref<1x1x32xf32, #tpu.memory_space<vmem>>, vector<1x1x32xf32>,
    return
  }
  func.func @transform_0(%arg0: i32) -> (i32, i32, i32, i32) {
    %c0_i32 = arith.constant 0 : i32
    %c0_i32_0 = arith.constant 0 : i32
    %c0_i32_1 = arith.constant 0 : i32
    %c0_i32_2 = arith.constant 0 : i32
    return %arg0, %c0_i32, %c0_i32_0, %c0_i32_1 : i32, i32, i32, i32
  }
  func.func @transform_1(%arg0: i32) -> (i32, i32) {
    %c0_i32 = arith.constant 0 : i32
    %c0_i32_0 = arith.constant 0 : i32
    %c0_i32_1 = arith.constant 0 : i32
    return %c0_i32, %c0_i32_0 : i32, i32
  }
  func.func @transform_2(%arg0: i32) -> (i32, i32) {
    %c0_i32 = arith.constant 0 : i32
    %c0_i32_0 = arith.constant 0 : i32
    %c0_i32_1 = arith.constant 0 : i32
    return %c0_i32, %c0_i32_0 : i32, i32
  }
  func.func @transform_3(%arg0: i32) -> (i32, i32, i32) {
    %c0_i32 = arith.constant 0 : i32
    %c0_i32_0 = arith.constant 0 : i32
    %c0_i32_1 = arith.constant 0 : i32
    %c0_i32_2 = arith.constant 0 : i32
    return %c0_i32, %c0_i32_0, %c0_i32_1 : i32, i32, i32
  }
  func.func @transform_4(%arg0: i32) -> (i32, i32, i32, i32) {
    %c0_i32 = arith.constant 0 : i32
    %c0_i32_0 = arith.constant 0 : i32
    %c0_i32_1 = arith.constant 0 : i32
    %c0_i32_2 = arith.constant 0 : i32
    return %arg0, %c0_i32, %c0_i32_0, %c0_i32_1 : i32, i32, i32, i32
  }
  func.func @transform_5(%arg0: i32) -> (i32, i32, i32) {
    %c0_i32 = arith.constant 0 : i32
    %c0_i32_0 = arith.constant 0 : i32
    %c0_i32_1 = arith.constant 0 : i32
    return %arg0, %c0_i32, %c0_i32_0 : i32, i32, i32
  }
  func.func @transform_6(%arg0: i32) -> (i32, i32, i32) {
    %c0_i32 = arith.constant 0 : i32
    %c0_i32_0 = arith.constant 0 : i32
    %c0_i32_1 = arith.constant 0 : i32
    return %arg0, %c0_i32, %c0_i32_0 : i32, i32, i32
  }
}

module attributes {stable_mosaic.version = 11 : i64} {
  func.func @_conv3_kernel(%arg0: i32, %arg1: memref<512x32xbf16, #tpu.memory_space<vmem>>, %arg2: memref<1x32xf32, #tpu.memory_space<vmem>>, %arg3: memref<1x32xf32, #tpu.memory_space<vmem>>, %arg4: memref<32x32xbf16, #tpu.memory_space<vmem>>, %arg5: memref<512x32xbf16, #tpu.memory_space<vmem>>, %arg6: memref<1x1x32xf32, #tpu.memory_space<vmem>>, %arg7: memref<1x1x32xf32, #tpu.memory_space<vmem>>) attributes {dimension_semantics = [#tpu.dimension_semantics<parallel>], iteration_bounds = array<i64: 1>, scalar_prefetch = 0 : i64, scratch_operands = 0 : i64, tpu.core_type = #tpu.core_type<tc>, window_params = [{transform_indices = @transform_0, window_bounds = array<i64: 512, 32>}, {pipeline_mode = #tpu.pipeline_mode<synchronous>, transform_indices = @transform_1, window_bounds = array<i64: 1, 32>}, {pipeline_mode = #tpu.pipeline_mode<synchronous>, transform_indices = @transform_2, window_bounds = array<i64: 1, 32>}, {pipeline_mode = #tpu.pipeline_mode<synchronous>, transform_indices = @transform_3, window_bounds = array<i64: 32, 32>}, {transform_indices = @transform_4, window_bounds = array<i64: 512, 32>}, {transform_indices = @transform_5, window_bounds = array<i64: 1, 1, 32>}, {transform_indices = @transform_6, window_bounds = array<i64: 1, 1, 32>}]} {
    %c0 = arith.constant 0 : index
    %c0_0 = arith.constant 0 : index
    %0 = vector.load %arg1[%c0, %c0_0] : memref<512x32xbf16, #tpu.memory_space<vmem>>, vector<512x32xbf16>
    %1 = arith.extf %0 : vector<512x32xbf16> to vector<512x32xf32>
    %c0_1 = arith.constant 0 : index
    %c0_2 = arith.constant 0 : index
    %2 = vector.load %arg2[%c0_1, %c0_2] : memref<1x32xf32, #tpu.memory_space<vmem>>, vector<1x32xf32>
    %3 = vector.broadcast %2 : vector<1x32xf32> to vector<512x32xf32>
    %4 = arith.mulf %1, %3 : vector<512x32xf32>
    %c0_3 = arith.constant 0 : index
    %c0_4 = arith.constant 0 : index
    %5 = vector.load %arg3[%c0_3, %c0_4] : memref<1x32xf32, #tpu.memory_space<vmem>>, vector<1x32xf32>
    %6 = vector.broadcast %5 : vector<1x32xf32> to vector<512x32xf32>
    %7 = arith.addf %4, %6 : vector<512x32xf32>
    %cst = arith.constant 0.000000e+00 : f32
    %8 = vector.broadcast %cst : f32 to vector<512x32xf32>
    %9 = arith.maximumf %7, %8 : vector<512x32xf32>
    %10 = arith.truncf %9 : vector<512x32xf32> to vector<512x32xbf16>
    %c0_5 = arith.constant 0 : index
    %c0_6 = arith.constant 0 : index
    %11 = vector.load %arg4[%c0_5, %c0_6] : memref<32x32xbf16, #tpu.memory_space<vmem>>, vector<32x32xbf16>
    %cst_7 = arith.constant dense<0.000000e+00> : vector<512x32xf32>
    %12 = tpu.matmul %10, %11, %cst_7 {dimension_numbers = #tpu.dot_dimension_numbers<[1], [0], [0], [1], [0, 0, 1, 1], [], []>} : vector<512x32xbf16>, vector<32x32xbf16>, vector<512x32xf32> -> vector<512x32xf32>
    %13 = arith.truncf %12 : vector<512x32xf32> to vector<512x32xbf16>
    %c0_8 = arith.constant 0 : index
    %c0_9 = arith.constant 0 : index
    %14 = vector.load %arg5[%c0_8, %c0_9] : memref<512x32xbf16, #tpu.memory_space<vmem>>, vector<512x32xbf16>
    tpu.vector_store %arg5[%c0_8, %c0_9], %13 {strides = array<i32>} : memref<512x32xbf16, #tpu.memory_space<vmem>>, vector<512x32xbf16>,
    %cst_10 = arith.constant dense<0.000000e+00> : vector<32xf32>
    %15 = vector.multi_reduction <add>, %12, %cst_10 [0] : vector<512x32xf32> to vector<32xf32>
    %16 = vector.shape_cast %15 : vector<32xf32> to vector<1x32xf32>
    %17 = vector.shape_cast %16 : vector<1x32xf32> to vector<1x1x32xf32>
    %c0_11 = arith.constant 0 : index
    %c0_12 = arith.constant 0 : index
    %c0_13 = arith.constant 0 : index
    %18 = vector.load %arg6[%c0_11, %c0_12, %c0_13] : memref<1x1x32xf32, #tpu.memory_space<vmem>>, vector<1x1x32xf32>
    tpu.vector_store %arg6[%c0_11, %c0_12, %c0_13], %17 {strides = array<i32>} : memref<1x1x32xf32, #tpu.memory_space<vmem>>, vector<1x1x32xf32>,
    %19 = arith.mulf %12, %12 : vector<512x32xf32>
    %cst_14 = arith.constant dense<0.000000e+00> : vector<32xf32>
    %20 = vector.multi_reduction <add>, %19, %cst_14 [0] : vector<512x32xf32> to vector<32xf32>
    %21 = vector.shape_cast %20 : vector<32xf32> to vector<1x32xf32>
    %22 = vector.shape_cast %21 : vector<1x32xf32> to vector<1x1x32xf32>
    %c0_15 = arith.constant 0 : index
    %c0_16 = arith.constant 0 : index
    %c0_17 = arith.constant 0 : index
    %23 = vector.load %arg7[%c0_15, %c0_16, %c0_17] : memref<1x1x32xf32, #tpu.memory_space<vmem>>, vector<1x1x32xf32>
    tpu.vector_store %arg7[%c0_15, %c0_16, %c0_17], %22 {strides = array<i32>} : memref<1x1x32xf32, #tpu.memory_space<vmem>>, vector<1x1x32xf32>,
    return
  }
  func.func @transform_0(%arg0: i32) -> (i32, i32) {
    %c0_i32 = arith.constant 0 : i32
    %c0_i32_0 = arith.constant 0 : i32
    return %arg0, %c0_i32 : i32, i32
  }
  func.func @transform_1(%arg0: i32) -> (i32, i32) {
    %c0_i32 = arith.constant 0 : i32
    %c0_i32_0 = arith.constant 0 : i32
    %c0_i32_1 = arith.constant 0 : i32
    return %c0_i32, %c0_i32_0 : i32, i32
  }
  func.func @transform_2(%arg0: i32) -> (i32, i32) {
    %c0_i32 = arith.constant 0 : i32
    %c0_i32_0 = arith.constant 0 : i32
    %c0_i32_1 = arith.constant 0 : i32
    return %c0_i32, %c0_i32_0 : i32, i32
  }
  func.func @transform_3(%arg0: i32) -> (i32, i32) {
    %c0_i32 = arith.constant 0 : i32
    %c0_i32_0 = arith.constant 0 : i32
    %c0_i32_1 = arith.constant 0 : i32
    return %c0_i32, %c0_i32_0 : i32, i32
  }
  func.func @transform_4(%arg0: i32) -> (i32, i32) {
    %c0_i32 = arith.constant 0 : i32
    %c0_i32_0 = arith.constant 0 : i32
    return %arg0, %c0_i32 : i32, i32
  }
  func.func @transform_5(%arg0: i32) -> (i32, i32, i32) {
    %c0_i32 = arith.constant 0 : i32
    %c0_i32_0 = arith.constant 0 : i32
    %c0_i32_1 = arith.constant 0 : i32
    return %arg0, %c0_i32, %c0_i32_0 : i32, i32, i32
  }
  func.func @transform_6(%arg0: i32) -> (i32, i32, i32) {
    %c0_i32 = arith.constant 0 : i32
    %c0_i32_0 = arith.constant 0 : i32
    %c0_i32_1 = arith.constant 0 : i32
    return %arg0, %c0_i32, %c0_i32_0 : i32, i32, i32
  }
}

module attributes {stable_mosaic.version = 11 : i64} {
  func.func @_residual_kernel(%arg0: i32, %arg1: memref<32x512xbf16, #tpu.memory_space<vmem>>, %arg2: memref<32x512xf32, #tpu.memory_space<vmem>>, %arg3: memref<1x512xf32, #tpu.memory_space<vmem>>, %arg4: memref<1x512xf32, #tpu.memory_space<vmem>>, %arg5: memref<32x512xf32, #tpu.memory_space<vmem>>) attributes {dimension_semantics = [#tpu.dimension_semantics<parallel>], iteration_bounds = array<i64: 1>, scalar_prefetch = 0 : i64, scratch_operands = 0 : i64, tpu.core_type = #tpu.core_type<tc>, window_params = [{transform_indices = @transform_0, window_bounds = array<i64: 32, 512>}, {transform_indices = @transform_1, window_bounds = array<i64: 32, 512>}, {pipeline_mode = #tpu.pipeline_mode<synchronous>, transform_indices = @transform_2, window_bounds = array<i64: 1, 512>}, {pipeline_mode = #tpu.pipeline_mode<synchronous>, transform_indices = @transform_3, window_bounds = array<i64: 1, 512>}, {transform_indices = @transform_4, window_bounds = array<i64: 32, 512>}]} {
    %c0 = arith.constant 0 : index
    %c0_0 = arith.constant 0 : index
    %0 = vector.load %arg1[%c0, %c0_0] : memref<32x512xbf16, #tpu.memory_space<vmem>>, vector<32x512xbf16>
    %1 = arith.extf %0 : vector<32x512xbf16> to vector<32x512xf32>
    %c0_1 = arith.constant 0 : index
    %c0_2 = arith.constant 0 : index
    %2 = vector.load %arg3[%c0_1, %c0_2] : memref<1x512xf32, #tpu.memory_space<vmem>>, vector<1x512xf32>
    %3 = vector.broadcast %2 : vector<1x512xf32> to vector<32x512xf32>
    %4 = arith.mulf %1, %3 : vector<32x512xf32>
    %c0_3 = arith.constant 0 : index
    %c0_4 = arith.constant 0 : index
    %5 = vector.load %arg4[%c0_3, %c0_4] : memref<1x512xf32, #tpu.memory_space<vmem>>, vector<1x512xf32>
    %6 = vector.broadcast %5 : vector<1x512xf32> to vector<32x512xf32>
    %7 = arith.addf %4, %6 : vector<32x512xf32>
    %c0_5 = arith.constant 0 : index
    %c0_6 = arith.constant 0 : index
    %8 = vector.load %arg2[%c0_5, %c0_6] : memref<32x512xf32, #tpu.memory_space<vmem>>, vector<32x512xf32>
    %9 = arith.addf %7, %8 : vector<32x512xf32>
    %cst = arith.constant 0.000000e+00 : f32
    %10 = vector.broadcast %cst : f32 to vector<32x512xf32>
    %11 = arith.maximumf %9, %10 : vector<32x512xf32>
    %c0_7 = arith.constant 0 : index
    %c0_8 = arith.constant 0 : index
    %12 = vector.load %arg5[%c0_7, %c0_8] : memref<32x512xf32, #tpu.memory_space<vmem>>, vector<32x512xf32>
    tpu.vector_store %arg5[%c0_7, %c0_8], %11 {strides = array<i32>} : memref<32x512xf32, #tpu.memory_space<vmem>>, vector<32x512xf32>,
    return
  }
  func.func @transform_0(%arg0: i32) -> (i32, i32) {
    %c0_i32 = arith.constant 0 : i32
    %c0_i32_0 = arith.constant 0 : i32
    return %arg0, %c0_i32 : i32, i32
  }
  func.func @transform_1(%arg0: i32) -> (i32, i32) {
    %c0_i32 = arith.constant 0 : i32
    %c0_i32_0 = arith.constant 0 : i32
    return %arg0, %c0_i32 : i32, i32
  }
  func.func @transform_2(%arg0: i32) -> (i32, i32) {
    %c0_i32 = arith.constant 0 : i32
    %c0_i32_0 = arith.constant 0 : i32
    %c0_i32_1 = arith.constant 0 : i32
    return %c0_i32, %c0_i32_0 : i32, i32
  }
  func.func @transform_3(%arg0: i32) -> (i32, i32) {
    %c0_i32 = arith.constant 0 : i32
    %c0_i32_0 = arith.constant 0 : i32
    %c0_i32_1 = arith.constant 0 : i32
    return %c0_i32, %c0_i32_0 : i32, i32
  }
  func.func @transform_4(%arg0: i32) -> (i32, i32) {
    %c0_i32 = arith.constant 0 : i32
    %c0_i32_0 = arith.constant 0 : i32
    return %arg0, %c0_i32 : i32, i32
  }
}

</mosaic_0001>

<bundles_post_ra>
// kernel: detnet_bottleneck_forward.4
= control target key start
LH: loop header
LB: loop body
LE: loop exit
PB: predicated region body
PF: predicated region fallthrough
CT: control target
= control target key end

     0   :  { %vm255_vm0 = vcmask 261120   ;;  %vm897_vm1 = vcmask 257024   ;;  %vm1095_vm2 = vcmask 253952   ;;  %s2414_s1 = inlined_call_operand.vmem [shape: bf16[32,32], index: 1, kind: input, shape index: {}]   ;;  %s2415_s0 = inlined_call_operand.vmem [shape: bf16[512,32], index: 0, kind: input, shape index: {}]   ;;  %s2416_s2 = inlined_call_operand.vmem [shape: bf16[512,32], index: 2, kind: output, shape index: {0}]   ;;  %s2417_s3 = inlined_call_operand.vmem [shape: f32[1,1,32], index: 3, kind: output, shape index: {1}]   ;;  %s2418_s4 = inlined_call_operand.vmem [shape: f32[1,1,32], index: 4, kind: output, shape index: {2}]  }
   0x1   :  { %v1607_v0 = vld [vmem:[%s2414_s1 + $0x8] sm:$0xff]   ;;  %v1608_v1 = vld [vmem:[%s2414_s1] sm:$0xff]   ;;  %v1611_v4 = vld [vmem:[%s2415_s0 + $0x10] sm:$0xff]  }
   0x2   :  { %1535 = vmatprep.subr.bf16.mxu0 %v1607_v0  ;;  %v1609_v2 = vld [vmem:[%s2415_s0] sm:$0xff]   ;;  %1603 = vmatprep.subr.bf16.mxu1 %v1607_v0  ;;  %v1610_v3 = vld [vmem:[%s2415_s0 + $0x8] sm:$0xff]   ;;  %v1612_v5 = vld [vmem:[%s2415_s0 + $0x18] sm:$0xff]  }
   0x3   :  { %1536 = vmatpush3.bf16.msra.mxu0 %v1607_v0  ;;  %1605 = vmatpush3.bf16.msra.mxu1 %v1607_v0  ;;  %v1613_v6 = vld [vmem:[%s2415_s0 + $0x20] sm:$0xff]   ;;  %v1626_v8 = vld [vmem:[%s2415_s0 + $0x88] sm:$0xff]   ;;  %v1627_v9 = vld [vmem:[%s2415_s0 + $0x90] sm:$0xff]  }
   0x4   :  { %1537 = vmatprep.subr.bf16.mxu0 %v1608_v1  ;;  %1539 = vmatprep.mubr.msk.bf16.mxu0 %vm255_vm0, %v1609_v2  ;;  %v1625_v7 = vld [vmem:[%s2415_s0 + $0x80] sm:$0xff]   ;;  %v1614_v10 = vld [vmem:[%s2415_s0 + $0x28] sm:$0xff]   ;;  %v1615_v11 = vld [vmem:[%s2415_s0 + $0x30] sm:$0xff]  }
   0x5   :  { %1604 = vmatprep.subr.bf16.mxu1 %v1608_v1  ;;  %1571 = vmatprep.mubr.msk.bf16.mxu1 %vm255_vm0, %v1625_v7  ;;  %v1628_v12 = vld [vmem:[%s2415_s0 + $0x98] sm:$0xff]   ;;  %v1629_v13 = vld [vmem:[%s2415_s0 + $0xa0] sm:$0xff]   ;;  %v1630_v16 = vld [vmem:[%s2415_s0 + $0xa8] sm:$0xff]  }
   0x6   :  { %v1616_v14 = vld [vmem:[%s2415_s0 + $0x38] sm:$0xff]   ;;  %v1617_v15 = vld [vmem:[%s2415_s0 + $0x40] sm:$0xff]   ;;  %v1631_v17 = vld [vmem:[%s2415_s0 + $0xb0] sm:$0xff]  }
   0x7   :  { %1538 = vmatpush3.bf16.msra.mxu0 %v1608_v1  ;;  %1606 = vmatpush3.bf16.msra.mxu1 %v1608_v1  ;;  %v1618_v18 = vld [vmem:[%s2415_s0 + $0x48] sm:$0xff]   ;;  %v1619_v19 = vld [vmem:[%s2415_s0 + $0x50] sm:$0xff]   ;;  %v1632_v20 = vld [vmem:[%s2415_s0 + $0xb8] sm:$0xff]  }
   0x8   :  { %v1633_v21 = vld [vmem:[%s2415_s0 + $0xc0] sm:$0xff]   ;;  %v1620_v22 = vld [vmem:[%s2415_s0 + $0x58] sm:$0xff]   ;;  %v1634_v24 = vld [vmem:[%s2415_s0 + $0xc8] sm:$0xff]  }
   0x9   :  { %v1621_v23 = vld [vmem:[%s2415_s0 + $0x60] sm:$0xff]   ;;  %v1635_v25 = vld [vmem:[%s2415_s0 + $0xd0] sm:$0xff]   ;;  %v1622_v26 = vld [vmem:[%s2415_s0 + $0x68] sm:$0xff]  }
   0xa   :  { %1540 = vmatmul.mubr.msk.bf16.vlgmr.msra.gmra.mxu0 %vm255_vm0, %v1610_v3  ;;  %1572 = vmatmul.mubr.msk.bf16.vlgmr.msra.gmra.mxu1 %vm255_vm0, %v1626_v8  ;;  %v1623_v27 = vld [vmem:[%s2415_s0 + $0x70] sm:$0xff]   ;;  %v1636_v28 = vld [vmem:[%s2415_s0 + $0xd8] sm:$0xff]   ;;  %v1637_v29 = vld [vmem:[%s2415_s0 + $0xe0] sm:$0xff]  }
   0xb   :  { %1543 = vmatprep.mubr.msk.bf16.mxu0 %vm255_vm0, %v1611_v4  ;;  %1575 = vmatprep.mubr.msk.bf16.mxu1 %vm255_vm0, %v1627_v9  ;;  %v1624_v30 = vld [vmem:[%s2415_s0 + $0x78] sm:$0xff]   ;;  %v1638_v31 = vld [vmem:[%s2415_s0 + $0xe8] sm:$0xff]   ;;  %v1639_v32 = vld [vmem:[%s2415_s0 + $0xf0] sm:$0xff]  }
   0xc   :  { %v1640_v33 = vld [vmem:[%s2415_s0 + $0xf8] sm:$0xff]  }
  0x12   :  { %1544 = vmatmul.mubr.msk.bf16.gmra.mxu0 %vm255_vm0, %v1612_v5  ;;  %1576 = vmatmul.mubr.msk.bf16.gmra.mxu1 %vm255_vm0, %v1628_v12 }
  0x13   :  { %1547 = vmatprep.mubr.msk.bf16.mxu0 %vm255_vm0, %v1613_v6  ;;  %1579 = vmatprep.mubr.msk.bf16.mxu1 %vm255_vm0, %v1629_v13 }
  0x1a   :  { %1548 = vmatmul.mubr.msk.bf16.gmra.mxu0 %vm255_vm0, %v1614_v10  ;;  %1580 = vmatmul.mubr.msk.bf16.gmra.mxu1 %vm255_vm0, %v1630_v16 }
  0x1b   :  { %1551 = vmatprep.mubr.msk.bf16.mxu0 %vm255_vm0, %v1615_v11  ;;  %1583 = vmatprep.mubr.msk.bf16.mxu1 %vm255_vm0, %v1631_v17 }
  0x22   :  { %1552 = vmatmul.mubr.msk.bf16.gmra.mxu0 %vm255_vm0, %v1616_v14  ;;  %1584 = vmatmul.mubr.msk.bf16.gmra.mxu1 %vm255_vm0, %v1632_v20 }
  0x23   :  { %1555 = vmatprep.mubr.msk.bf16.mxu0 %vm255_vm0, %v1617_v15  ;;  %1587 = vmatprep.mubr.msk.bf16.mxu1 %vm255_vm0, %v1633_v21 }
  0x2a   :  { %1556 = vmatmul.mubr.msk.bf16.gmra.mxu0 %vm255_vm0, %v1618_v18  ;;  %1588 = vmatmul.mubr.msk.bf16.gmra.mxu1 %vm255_vm0, %v1634_v24 }
  0x2b   :  { %1559 = vmatprep.mubr.msk.bf16.mxu0 %vm255_vm0, %v1619_v19  ;;  %1591 = vmatprep.mubr.msk.bf16.mxu1 %vm255_vm0, %v1635_v25 }
  0x32   :  { %1560 = vmatmul.mubr.msk.bf16.gmra.mxu0 %vm255_vm0, %v1620_v22  ;;  %1592 = vmatmul.mubr.msk.bf16.gmra.mxu1 %vm255_vm0, %v1636_v28 }
  0x33   :  { %1563 = vmatprep.mubr.msk.bf16.mxu0 %vm255_vm0, %v1621_v23  ;;  %1595 = vmatprep.mubr.msk.bf16.mxu1 %vm255_vm0, %v1637_v29 }
  0x3a   :  { %1564 = vmatmul.mubr.msk.bf16.gmra.mxu0 %vm255_vm0, %v1622_v26  ;;  %1596 = vmatmul.mubr.msk.bf16.gmra.mxu1 %vm255_vm0, %v1638_v31 }
  0x3b   :  { %1567 = vmatprep.mubr.msk.bf16.mxu0 %vm255_vm0, %v1623_v27  ;;  %1599 = vmatprep.mubr.msk.bf16.mxu1 %vm255_vm0, %v1639_v32 }
  0x42   :  { %1568 = vmatmul.mubr.msk.bf16.gmra.mxu0 %vm255_vm0, %v1624_v30  ;;  %1600 = vmatmul.mubr.msk.bf16.gmra.mxu1 %vm255_vm0, %v1640_v33 }
  0xca   :  { %v1541_v34 = vpop.f32.mrf.mxu0  ;;  %v1827_v61 = vpop.f32.mrf.mxu1 }
  0xcb   :  { %v1439_v35 = vpack.c.bf16 %v1541_v34, %v1541_v34  ;;  %v1099_v41 = vmul.f32 %v1541_v34, %v1541_v34  ;;  %v965_v47 = vsel %vm255_vm0, %v1541_v34, 0.0  ;;  %v1471_v1 = vpack.c.bf16 %v1827_v61, %v1827_v61 }
  0xcc   :  { %v386_v36 = vpop.f32.mrf.mxu0  ;;  %v1837_v5 = vpop.f32.mrf.mxu1 }
  0xcd   :  { %900 = vst.msk [vmem:[%s2416_s2 + $0x8] sm:$0xf] %vm897_vm1, %v1439_v35  ;;  %v1437_v37 = vpack.c.bf16 %v386_v36, %v386_v36  ;;  %v1097_v39 = vmul.f32 %v386_v36, %v386_v36  ;;  %v962_v43 = vsel %vm255_vm0, %v386_v36, 0.0  ;;  %v1164_v57 = vsel %vm255_vm0, %v1099_v41, 0.0  ;;  %932 = vst.msk [vmem:[%s2416_s2 + $0x88] sm:$0xf] %vm897_vm1, %v1471_v1 }
  0xce   :  { %v1542_v38 = vpop.f32.mrf.mxu0  ;;  %v1469_v10 = vpack.c.bf16 %v1837_v5, %v1837_v5  ;;  %v1851_v15 = vpop.f32.mrf.mxu1 }
  0xcf   :  { %898 = vst.msk [vmem:[%s2416_s2] sm:$0xf] %vm897_vm1, %v1437_v37  ;;  %v1440_v40 = vpack.c.bf16 %v1542_v38, %v1542_v38  ;;  %v1161_v50 = vsel %vm255_vm0, %v1097_v39, 0.0  ;;  %v1100_v51 = vmul.f32 %v1542_v38, %v1542_v38  ;;  %v967_v58 = vsel %vm255_vm0, %v1542_v38, 0.0 }
  0xd0   :  { %v389_v42 = vpop.f32.mrf.mxu0  ;;  %930 = vst.msk [vmem:[%s2416_s2 + $0x80] sm:$0xf] %vm897_vm1, %v1469_v10  ;;  %v1863_v23 = vpop.f32.mrf.mxu1  ;;  %v1472_v27 = vpack.c.bf16 %v1851_v15, %v1851_v15 }
  0xd1   :  { %901 = vst.msk [vmem:[%s2416_s2 + $0xc] sm:$0xf] %vm897_vm1, %v1440_v40  ;;  %v1438_v44 = vpack.c.bf16 %v389_v42, %v389_v42  ;;  %v963_v45 = vsel %vm255_vm0, %v389_v42, 0.0  ;;  %v1098_v46 = vmul.f32 %v389_v42, %v389_v42  ;;  %v1166_v2 = vsel %vm255_vm0, %v1100_v51, 0.0 }
  0xd2   :  { %v964_v48 = vadd.f32 %v963_v45, %v962_v43  ;;  %v1545_v49 = vpop.f32.mrf.mxu0  ;;  %v1873_v32 = vpop.f32.mrf.mxu1  ;;  %933 = vst.msk [vmem:[%s2416_s2 + $0x8c] sm:$0xf] %vm897_vm1, %v1472_v27 }
  0xd3   :  { %899 = vst.msk [vmem:[%s2416_s2 + $0x4] sm:$0xf] %vm897_vm1, %v1438_v44  ;;  %v1162_v52 = vsel %vm255_vm0, %v1098_v46, 0.0  ;;  %v1443_v53 = vpack.c.bf16 %v1545_v49, %v1545_v49  ;;  %v1103_v6 = vmul.f32 %v1545_v49, %v1545_v49  ;;  %v973_v19 = vsel %vm255_vm0, %v1545_v49, 0.0 }
  0xd4   :  { %v966_v54 = vadd.f32 %v965_v47, %v964_v48  ;;  %v1163_v55 = vadd.f32 %v1162_v52, %v1161_v50  ;;  %v402_v56 = vpop.f32.mrf.mxu0  ;;  %v1885_v39 = vpop.f32.mrf.mxu1  ;;  %v1470_v44 = vpack.c.bf16 %v1863_v23, %v1863_v23 }
  0xd5   :  { %904 = vst.msk [vmem:[%s2416_s2 + $0x18] sm:$0xf] %vm897_vm1, %v1443_v53  ;;  %v1441_v59 = vpack.c.bf16 %v402_v56, %v402_v56  ;;  %v1101_v60 = vmul.f32 %v402_v56, %v402_v56  ;;  %v969_v3 = vsel %vm255_vm0, %v402_v56, 0.0  ;;  %v1172_v28 = vsel %vm255_vm0, %v1103_v6, 0.0 }
  0xd6   :  { %v1165_v62 = vadd.f32 %v1164_v57, %v1163_v55  ;;  %v968_v63 = vadd.f32 %v967_v58, %v966_v54  ;;  %v1546_v0 = vpop.f32.mrf.mxu0  ;;  %v1895_v49 = vpop.f32.mrf.mxu1  ;;  %931 = vst.msk [vmem:[%s2416_s2 + $0x84] sm:$0xf] %vm897_vm1, %v1470_v44 }
  0xd7   :  { %902 = vst.msk [vmem:[%s2416_s2 + $0x10] sm:$0xf] %vm897_vm1, %v1441_v59  ;;  %v1444_v4 = vpack.c.bf16 %v1546_v0, %v1546_v0  ;;  %v1168_v11 = vsel %vm255_vm0, %v1101_v60, 0.0  ;;  %v1104_v20 = vmul.f32 %v1546_v0, %v1546_v0  ;;  %v975_v29 = vsel %vm255_vm0, %v1546_v0, 0.0 }
  0xd8   :  { %v970_v7 = vadd.f32 %v969_v3, %v968_v63  ;;  %v1167_v8 = vadd.f32 %v1166_v2, %v1165_v62  ;;  %v405_v9 = vpop.f32.mrf.mxu0  ;;  %v1907_v57 = vpop.f32.mrf.mxu1  ;;  %v1475_v62 = vpack.c.bf16 %v1873_v32, %v1873_v32 }
  0xd9   :  { %905 = vst.msk [vmem:[%s2416_s2 + $0x1c] sm:$0xf] %vm897_vm1, %v1444_v4  ;;  %v1442_v12 = vpack.c.bf16 %v405_v9, %v405_v9  ;;  %v971_v13 = vsel %vm255_vm0, %v405_v9, 0.0  ;;  %v1102_v14 = vmul.f32 %v405_v9, %v405_v9  ;;  %v1174_v36 = vsel %vm255_vm0, %v1104_v20, 0.0 }
  0xda   :  { %v1169_v16 = vadd.f32 %v1168_v11, %v1167_v8  ;;  %v972_v17 = vadd.f32 %v971_v13, %v970_v7  ;;  %v1549_v18 = vpop.f32.mrf.mxu0  ;;  %v1917_v3 = vpop.f32.mrf.mxu1  ;;  %936 = vst.msk [vmem:[%s2416_s2 + $0x98] sm:$0xf] %vm897_vm1, %v1475_v62 }
  0xdb   :  { %903 = vst.msk [vmem:[%s2416_s2 + $0x14] sm:$0xf] %vm897_vm1, %v1442_v12  ;;  %v1170_v21 = vsel %vm255_vm0, %v1102_v14, 0.0  ;;  %v1447_v22 = vpack.c.bf16 %v1549_v18, %v1549_v18  ;;  %v1107_v40 = vmul.f32 %v1549_v18, %v1549_v18  ;;  %v981_v53 = vsel %vm255_vm0, %v1549_v18, 0.0 }
  0xdc   :  { %v974_v24 = vadd.f32 %v973_v19, %v972_v17  ;;  %v1171_v25 = vadd.f32 %v1170_v21, %v1169_v16  ;;  %v418_v26 = vpop.f32.mrf.mxu0  ;;  %v1929_v11 = vpop.f32.mrf.mxu1  ;;  %v1473_v17 = vpack.c.bf16 %v1885_v39, %v1885_v39 }
  0xdd   :  { %908 = vst.msk [vmem:[%s2416_s2 + $0x28] sm:$0xf] %vm897_vm1, %v1447_v22  ;;  %v1445_v30 = vpack.c.bf16 %v418_v26, %v418_v26  ;;  %v1105_v31 = vmul.f32 %v418_v26, %v418_v26  ;;  %v977_v37 = vsel %vm255_vm0, %v418_v26, 0.0  ;;  %v1180_v63 = vsel %vm255_vm0, %v1107_v40, 0.0 }
  0xde   :  { %v1173_v33 = vadd.f32 %v1172_v28, %v1171_v25  ;;  %v976_v34 = vadd.f32 %v975_v29, %v974_v24  ;;  %v1550_v35 = vpop.f32.mrf.mxu0  ;;  %v1939_v22 = vpop.f32.mrf.mxu1  ;;  %934 = vst.msk [vmem:[%s2416_s2 + $0x90] sm:$0xf] %vm897_vm1, %v1473_v17 }
  0xdf   :  { %906 = vst.msk [vmem:[%s2416_s2 + $0x20] sm:$0xf] %vm897_vm1, %v1445_v30  ;;  %v1448_v38 = vpack.c.bf16 %v1550_v35, %v1550_v35  ;;  %v1176_v45 = vsel %vm255_vm0, %v1105_v31, 0.0  ;;  %v1108_v54 = vmul.f32 %v1550_v35, %v1550_v35  ;;  %v983_v0 = vsel %vm255_vm0, %v1550_v35, 0.0 }
  0xe0   :  { %v978_v41 = vadd.f32 %v977_v37, %v976_v34  ;;  %v1175_v42 = vadd.f32 %v1174_v36, %v1173_v33  ;;  %v421_v43 = vpop.f32.mrf.mxu0  ;;  %v1951_v31 = vpop.f32.mrf.mxu1  ;;  %v1476_v36 = vpack.c.bf16 %v1895_v49, %v1895_v49 }
  0xe1   :  { %909 = vst.msk [vmem:[%s2416_s2 + $0x2c] sm:$0xf] %vm897_vm1, %v1448_v38  ;;  %v1446_v46 = vpack.c.bf16 %v421_v43, %v421_v43  ;;  %v979_v47 = vsel %vm255_vm0, %v421_v43, 0.0  ;;  %v1106_v48 = vmul.f32 %v421_v43, %v421_v43  ;;  %v1182_v8 = vsel %vm255_vm0, %v1108_v54, 0.0 }
  0xe2   :  { %v1177_v50 = vadd.f32 %v1176_v45, %v1175_v42  ;;  %v980_v51 = vadd.f32 %v979_v47, %v978_v41  ;;  %v1553_v52 = vpop.f32.mrf.mxu0  ;;  %v1961_v42 = vpop.f32.mrf.mxu1  ;;  %937 = vst.msk [vmem:[%s2416_s2 + $0x9c] sm:$0xf] %vm897_vm1, %v1476_v36 }
  0xe3   :  { %907 = vst.msk [vmem:[%s2416_s2 + $0x24] sm:$0xf] %vm897_vm1, %v1446_v46  ;;  %v1178_v55 = vsel %vm255_vm0, %v1106_v48, 0.0  ;;  %v1451_v56 = vpack.c.bf16 %v1553_v52, %v1553_v52  ;;  %v1111_v12 = vmul.f32 %v1553_v52, %v1553_v52  ;;  %v989_v27 = vsel %vm255_vm0, %v1553_v52, 0.0 }
  0xe4   :  { %v982_v58 = vadd.f32 %v981_v53, %v980_v51  ;;  %v1179_v59 = vadd.f32 %v1178_v55, %v1177_v50  ;;  %v434_v60 = vpop.f32.mrf.mxu0  ;;  %v1973_v50 = vpop.f32.mrf.mxu1  ;;  %v1474_v55 = vpack.c.bf16 %v1907_v57, %v1907_v57 }
  0xe5   :  { %912 = vst.msk [vmem:[%s2416_s2 + $0x38] sm:$0xf] %vm897_vm1, %v1451_v56  ;;  %v1449_v1 = vpack.c.bf16 %v434_v60, %v434_v60  ;;  %v1109_v2 = vmul.f32 %v434_v60, %v434_v60  ;;  %v985_v9 = vsel %vm255_vm0, %v434_v60, 0.0  ;;  %v1188_v37 = vsel %vm255_vm0, %v1111_v12, 0.0 }
  0xe6   :  { %v1181_v4 = vadd.f32 %v1180_v63, %v1179_v59  ;;  %v984_v6 = vadd.f32 %v983_v0, %v982_v58  ;;  %v1554_v7 = vpop.f32.mrf.mxu0  ;;  %v1983_v62 = vpop.f32.mrf.mxu1  ;;  %935 = vst.msk [vmem:[%s2416_s2 + $0x94] sm:$0xf] %vm897_vm1, %v1474_v55 }
  0xe7   :  { %910 = vst.msk [vmem:[%s2416_s2 + $0x30] sm:$0xf] %vm897_vm1, %v1449_v1  ;;  %v1452_v10 = vpack.c.bf16 %v1554_v7, %v1554_v7  ;;  %v1184_v18 = vsel %vm255_vm0, %v1109_v2, 0.0  ;;  %v1112_v28 = vmul.f32 %v1554_v7, %v1554_v7  ;;  %v991_v38 = vsel %vm255_vm0, %v1554_v7, 0.0 }
  0xe8   :  { %v986_v13 = vadd.f32 %v985_v9, %v984_v6  ;;  %v1183_v14 = vadd.f32 %v1182_v8, %v1181_v4  ;;  %v437_v16 = vpop.f32.mrf.mxu0  ;;  %v1995_v8 = vpop.f32.mrf.mxu1 }
  0xe9   :  { %913 = vst.msk [vmem:[%s2416_s2 + $0x3c] sm:$0xf] %vm897_vm1, %v1452_v10  ;;  %v1450_v19 = vpack.c.bf16 %v437_v16, %v437_v16  ;;  %v987_v20 = vsel %vm255_vm0, %v437_v16, 0.0  ;;  %v1110_v21 = vmul.f32 %v437_v16, %v437_v16  ;;  %v1190_v46 = vsel %vm255_vm0, %v1112_v28, 0.0 }
  0xea   :  { %v1185_v24 = vadd.f32 %v1184_v18, %v1183_v14  ;;  %v988_v25 = vadd.f32 %v987_v20, %v986_v13  ;;  %v1557_v26 = vpop.f32.mrf.mxu0  ;;  %v1479_v13 = vpack.c.bf16 %v1917_v3, %v1917_v3 }
  0xeb   :  { %911 = vst.msk [vmem:[%s2416_s2 + $0x34] sm:$0xf] %vm897_vm1, %v1450_v19  ;;  %v1186_v29 = vsel %vm255_vm0, %v1110_v21, 0.0  ;;  %v1455_v30 = vpack.c.bf16 %v1557_v26, %v1557_v26  ;;  %v1115_v51 = vmul.f32 %v1557_v26, %v1557_v26  ;;  %v997_v2 = vsel %vm255_vm0, %v1557_v26, 0.0  ;;  %v2005_v19 = vpop.f32.mrf.mxu1 }
  0xec   :  { %v990_v33 = vadd.f32 %v989_v27, %v988_v25  ;;  %v1187_v34 = vadd.f32 %v1186_v29, %v1185_v24  ;;  %v450_v35 = vpop.f32.mrf.mxu0  ;;  %940 = vst.msk [vmem:[%s2416_s2 + $0xa8] sm:$0xf] %vm897_vm1, %v1479_v13 }
  0xed   :  { %916 = vst.msk [vmem:[%s2416_s2 + $0x48] sm:$0xf] %vm897_vm1, %v1455_v30  ;;  %v1453_v40 = vpack.c.bf16 %v450_v35, %v450_v35  ;;  %v1113_v41 = vmul.f32 %v450_v35, %v450_v35  ;;  %v993_v47 = vsel %vm255_vm0, %v450_v35, 0.0  ;;  %v1196_v14 = vsel %vm255_vm0, %v1115_v51, 0.0  ;;  %v2017_v28 = vpop.f32.mrf.mxu1 }
  0xee   :  { %v1189_v43 = vadd.f32 %v1188_v37, %v1187_v34  ;;  %v992_v44 = vadd.f32 %v991_v38, %v990_v33  ;;  %v1558_v45 = vpop.f32.mrf.mxu0  ;;  %v1477_v35 = vpack.c.bf16 %v1929_v11, %v1929_v11 }
  0xef   :  { %914 = vst.msk [vmem:[%s2416_s2 + $0x40] sm:$0xf] %vm897_vm1, %v1453_v40  ;;  %v1456_v48 = vpack.c.bf16 %v1558_v45, %v1558_v45  ;;  %v1192_v56 = vsel %vm255_vm0, %v1113_v41, 0.0  ;;  %v1116_v4 = vmul.f32 %v1558_v45, %v1558_v45  ;;  %v999_v16 = vsel %vm255_vm0, %v1558_v45, 0.0  ;;  %v2027_v41 = vpop.f32.mrf.mxu1 }
  0xf0   :  { %v994_v52 = vadd.f32 %v993_v47, %v992_v44  ;;  %v1191_v53 = vadd.f32 %v1190_v46, %v1189_v43  ;;  %v453_v54 = vpop.f32.mrf.mxu0  ;;  %938 = vst.msk [vmem:[%s2416_s2 + $0xa0] sm:$0xf] %vm897_vm1, %v1477_v35 }
  0xf1   :  { %917 = vst.msk [vmem:[%s2416_s2 + $0x4c] sm:$0xf] %vm897_vm1, %v1456_v48  ;;  %v1454_v58 = vpack.c.bf16 %v453_v54, %v453_v54  ;;  %v995_v59 = vsel %vm255_vm0, %v453_v54, 0.0  ;;  %v1114_v60 = vmul.f32 %v453_v54, %v453_v54  ;;  %v1198_v25 = vsel %vm255_vm0, %v1116_v4, 0.0 }
  0xf2   :  { %v1193_v63 = vadd.f32 %v1192_v56, %v1191_v53  ;;  %v996_v0 = vadd.f32 %v995_v59, %v994_v52  ;;  %v1561_v1 = vpop.f32.mrf.mxu0  ;;  %v2039_v52 = vpop.f32.mrf.mxu1  ;;  %v1480_v56 = vpack.c.bf16 %v1939_v22, %v1939_v22 }
  0xf3   :  { %915 = vst.msk [vmem:[%s2416_s2 + $0x44] sm:$0xf] %vm897_vm1, %v1454_v58  ;;  %v1194_v6 = vsel %vm255_vm0, %v1114_v60, 0.0  ;;  %v1459_v7 = vpack.c.bf16 %v1561_v1, %v1561_v1  ;;  %v1119_v29 = vmul.f32 %v1561_v1, %v1561_v1  ;;  %v1005_v46 = vsel %vm255_vm0, %v1561_v1, 0.0 }
  0xf4   :  { %v998_v9 = vadd.f32 %v997_v2, %v996_v0  ;;  %v1195_v10 = vadd.f32 %v1194_v6, %v1193_v63  ;;  %v466_v12 = vpop.f32.mrf.mxu0  ;;  %v2049_v0 = vpop.f32.mrf.mxu1  ;;  %941 = vst.msk [vmem:[%s2416_s2 + $0xac] sm:$0xf] %vm897_vm1, %v1480_v56 }
  0xf5   :  { %920 = vst.msk [vmem:[%s2416_s2 + $0x58] sm:$0xf] %vm897_vm1, %v1459_v7  ;;  %v1457_v17 = vpack.c.bf16 %v466_v12, %v466_v12  ;;  %v1117_v18 = vmul.f32 %v466_v12, %v466_v12  ;;  %v1001_v26 = vsel %vm255_vm0, %v466_v12, 0.0  ;;  %v1204_v58 = vsel %vm255_vm0, %v1119_v29, 0.0 }
  0xf6   :  { %v1197_v20 = vadd.f32 %v1196_v14, %v1195_v10  ;;  %v1000_v21 = vadd.f32 %v999_v16, %v998_v9  ;;  %v1562_v24 = vpop.f32.mrf.mxu0  ;;  %v2061_v10 = vpop.f32.mrf.mxu1 }
  0xf7   :  { %918 = vst.msk [vmem:[%s2416_s2 + $0x50] sm:$0xf] %vm897_vm1, %v1457_v17  ;;  %v1460_v27 = vpack.c.bf16 %v1562_v24, %v1562_v24  ;;  %v1200_v36 = vsel %vm255_vm0, %v1117_v18, 0.0  ;;  %v1120_v47 = vmul.f32 %v1562_v24, %v1562_v24  ;;  %v1007_v59 = vsel %vm255_vm0, %v1562_v24, 0.0 }
  0xf8   :  { %v1002_v30 = vadd.f32 %v1001_v26, %v1000_v21  ;;  %v1199_v33 = vadd.f32 %v1198_v25, %v1197_v20  ;;  %v469_v34 = vpop.f32.mrf.mxu0  ;;  %v1478_v17 = vpack.c.bf16 %v1951_v31, %v1951_v31  ;;  %v2071_v25 = vpop.f32.mrf.mxu1 }
  0xf9   :  { %921 = vst.msk [vmem:[%s2416_s2 + $0x5c] sm:$0xf] %vm897_vm1, %v1460_v27  ;;  %v1458_v37 = vpack.c.bf16 %v469_v34, %v469_v34  ;;  %v1003_v38 = vsel %vm255_vm0, %v469_v34, 0.0  ;;  %v1118_v40 = vmul.f32 %v469_v34, %v469_v34  ;;  %v1206_v6 = vsel %vm255_vm0, %v1120_v47, 0.0 }
  0xfa   :  { %v1201_v43 = vadd.f32 %v1200_v36, %v1199_v33  ;;  %v1004_v44 = vadd.f32 %v1003_v38, %v1002_v30  ;;  %v1565_v45 = vpop.f32.mrf.mxu0  ;;  %939 = vst.msk [vmem:[%s2416_s2 + $0xa4] sm:$0xf] %vm897_vm1, %v1478_v17  ;;  %v2083_v36 = vpop.f32.mrf.mxu1 }
  0xfb   :  { %919 = vst.msk [vmem:[%s2416_s2 + $0x54] sm:$0xf] %vm897_vm1, %v1458_v37  ;;  %v1202_v48 = vsel %vm255_vm0, %v1118_v40, 0.0  ;;  %v1463_v51 = vpack.c.bf16 %v1565_v45, %v1565_v45  ;;  %v1123_v12 = vmul.f32 %v1565_v45, %v1565_v45  ;;  %v1013_v30 = vsel %vm255_vm0, %v1565_v45, 0.0 }
  0xfc   :  { %v1006_v53 = vadd.f32 %v1005_v46, %v1004_v44  ;;  %v1203_v54 = vadd.f32 %v1202_v48, %v1201_v43  ;;  %v482_v55 = vpop.f32.mrf.mxu0  ;;  %v1483_v43 = vpack.c.bf16 %v1961_v42, %v1961_v42  ;;  %v2093_v48 = vpop.f32.mrf.mxu1 }
  0xfd   :  { %924 = vst.msk [vmem:[%s2416_s2 + $0x68] sm:$0xf] %vm897_vm1, %v1463_v51  ;;  %v1461_v60 = vpack.c.bf16 %v482_v55, %v482_v55  ;;  %v1121_v63 = vmul.f32 %v482_v55, %v482_v55  ;;  %v1009_v7 = vsel %vm255_vm0, %v482_v55, 0.0  ;;  %v1212_v44 = vsel %vm255_vm0, %v1123_v12, 0.0 }
  0xfe   :  { %v1205_v1 = vadd.f32 %v1204_v58, %v1203_v54  ;;  %v1008_v2 = vadd.f32 %v1007_v59, %v1006_v53  ;;  %v1566_v4 = vpop.f32.mrf.mxu0  ;;  %944 = vst.msk [vmem:[%s2416_s2 + $0xb8] sm:$0xf] %vm897_vm1, %v1483_v43  ;;  %v2105_v59 = vpop.f32.mrf.mxu1  ;;  %v1025_v43 = vsel %vm255_vm0, %v1837_v5, 0.0 }
  0xff   :  { %922 = vst.msk [vmem:[%s2416_s2 + $0x60] sm:$0xf] %vm897_vm1, %v1461_v60  ;;  %v1464_v9 = vpack.c.bf16 %v1566_v4, %v1566_v4  ;;  %v1208_v18 = vsel %vm255_vm0, %v1121_v63, 0.0  ;;  %v1124_v33 = vmul.f32 %v1566_v4, %v1566_v4  ;;  %v1015_v45 = vsel %vm255_vm0, %v1566_v4, 0.0 }
 0x100   :  { %v1010_v13 = vadd.f32 %v1009_v7, %v1008_v2  ;;  %v1207_v14 = vadd.f32 %v1206_v6, %v1205_v1  ;;  %v485_v16 = vpop.f32.mrf.mxu0  ;;  %v1481_v4 = vpack.c.bf16 %v1973_v50, %v1973_v50 }
 0x101   :  { %925 = vst.msk [vmem:[%s2416_s2 + $0x6c] sm:$0xf] %vm897_vm1, %v1464_v9  ;;  %v1462_v20 = vpack.c.bf16 %v485_v16, %v485_v16  ;;  %v1011_v21 = vsel %vm255_vm0, %v485_v16, 0.0  ;;  %v1122_v24 = vmul.f32 %v485_v16, %v485_v16  ;;  %v1214_v55 = vsel %vm255_vm0, %v1124_v33, 0.0  ;;  %v2119_v16 = vpop.f32.mrf.mxu1 }
 0x102   :  { %v1209_v26 = vadd.f32 %v1208_v18, %v1207_v14  ;;  %v1012_v27 = vadd.f32 %v1011_v21, %v1010_v13  ;;  %v1569_v29 = vpop.f32.mrf.mxu0  ;;  %942 = vst.msk [vmem:[%s2416_s2 + $0xb0] sm:$0xf] %vm897_vm1, %v1481_v4  ;;  %v1484_v21 = vpack.c.bf16 %v1983_v62, %v1983_v62  ;;  %v1129_v33 = vmul.f32 %v1837_v5, %v1837_v5 }
 0x103   :  { %923 = vst.msk [vmem:[%s2416_s2 + $0x64] sm:$0xf] %vm897_vm1, %v1462_v20  ;;  %v1210_v34 = vsel %vm255_vm0, %v1122_v24, 0.0  ;;  %v1467_v35 = vpack.c.bf16 %v1569_v29, %v1569_v29  ;;  %v1127_v60 = vmul.f32 %v1569_v29, %v1569_v29  ;;  %v1021_v17 = vsel %vm255_vm0, %v1569_v29, 0.0 }
 0x104   :  { %v1014_v37 = vadd.f32 %v1013_v30, %v1012_v27  ;;  %v1211_v38 = vadd.f32 %v1210_v34, %v1209_v26  ;;  %v498_v40 = vpop.f32.mrf.mxu0  ;;  %v1482_v27 = vpack.c.bf16 %v1995_v8, %v1995_v8  ;;  %945 = vst.msk [vmem:[%s2416_s2 + $0xbc] sm:$0xf] %vm897_vm1, %v1484_v21  ;;  %v1487_v34 = vpack.c.bf16 %v2005_v19, %v2005_v19 }
 0x105   :  { %928 = vst.msk [vmem:[%s2416_s2 + $0x78] sm:$0xf] %vm897_vm1, %v1467_v35  ;;  %v1465_v46 = vpack.c.bf16 %v498_v40, %v498_v40  ;;  %v1125_v47 = vmul.f32 %v498_v40, %v498_v40  ;;  %v1017_v56 = vsel %vm255_vm0, %v498_v40, 0.0  ;;  %v1220_v30 = vsel %vm255_vm0, %v1127_v60, 0.0 }
 0x106   :  { %v1213_v51 = vadd.f32 %v1212_v44, %v1211_v38  ;;  %v1016_v53 = vadd.f32 %v1015_v45, %v1014_v37  ;;  %v1570_v54 = vpop.f32.mrf.mxu0  ;;  %943 = vst.msk [vmem:[%s2416_s2 + $0xb4] sm:$0xf] %vm897_vm1, %v1482_v27  ;;  %v2145_v38 = vpop.f32.mrf.mxu1  ;;  %v1130_v44 = vmul.f32 %v1863_v23, %v1863_v23  ;;  %948 = vst.msk [vmem:[%s2416_s2 + $0xc8] sm:$0xf] %vm897_vm1, %v1487_v34  ;;  %v1224_v5 = vsel %vm255_vm0, %v1129_v33, 0.0 }
 0x107   :  { %926 = vst.msk [vmem:[%s2416_s2 + $0x70] sm:$0xf] %vm897_vm1, %v1465_v46  ;;  %v1468_v58 = vpack.c.bf16 %v1570_v54, %v1570_v54  ;;  %v1216_v6 = vsel %vm255_vm0, %v1125_v47, 0.0  ;;  %v1128_v18 = vmul.f32 %v1570_v54, %v1570_v54  ;;  %v1023_v29 = vsel %vm255_vm0, %v1570_v54, 0.0 }
 0x108   :  { %v1018_v63 = vadd.f32 %v1017_v56, %v1016_v53  ;;  %v1215_v1 = vadd.f32 %v1214_v55, %v1213_v51  ;;  %v501_v2 = vpop.f32.mrf.mxu0  ;;  %v1485_v45 = vpack.c.bf16 %v2017_v28, %v2017_v28  ;;  %v1488_v51 = vpack.c.bf16 %v2027_v41, %v2027_v41  ;;  %v2175_v60 = vpop.f32.mrf.mxu1 }
 0x109   :  { %929 = vst.msk [vmem:[%s2416_s2 + $0x7c] sm:$0xf] %vm897_vm1, %v1468_v58  ;;  %v1466_v7 = vpack.c.bf16 %v501_v2, %v501_v2  ;;  %v1019_v9 = vsel %vm255_vm0, %v501_v2, 0.0  ;;  %v1126_v12 = vmul.f32 %v501_v2, %v501_v2  ;;  %v1222_v40 = vsel %vm255_vm0, %v1128_v18, 0.0 }
 0x10a   :  { %v1217_v13 = vadd.f32 %v1216_v6, %v1215_v1  ;;  %v1020_v14 = vadd.f32 %v1019_v9, %v1018_v63  ;;  %v1131_v53 = vmul.f32 %v1827_v61, %v1827_v61  ;;  %v1027_v54 = vsel %vm255_vm0, %v1863_v23, 0.0  ;;  %946 = vst.msk [vmem:[%s2416_s2 + $0xc0] sm:$0xf] %vm897_vm1, %v1485_v45  ;;  %949 = vst.msk [vmem:[%s2416_s2 + $0xcc] sm:$0xf] %vm897_vm1, %v1488_v51  ;;  %v2205_v18 = vpop.f32.mrf.mxu1 }
 0x10b   :  { %927 = vst.msk [vmem:[%s2416_s2 + $0x74] sm:$0xf] %vm897_vm1, %v1466_v7  ;;  %v1218_v20 = vsel %vm255_vm0, %v1126_v12, 0.0  ;;  %v1486_v55 = vpack.c.bf16 %v2039_v52, %v2039_v52  ;;  %v1029_v23 = vsel %vm255_vm0, %v1827_v61, 0.0  ;;  %v1132_v63 = vmul.f32 %v1851_v15, %v1851_v15 }
 0x10c   :  { %v1022_v24 = vadd.f32 %v1021_v17, %v1020_v14  ;;  %v1219_v26 = vadd.f32 %v1218_v20, %v1217_v13  ;;  %v1226_v1 = vsel %vm255_vm0, %v1130_v44, 0.0  ;;  %v1491_v2 = vpack.c.bf16 %v2049_v0, %v2049_v0 }
 0x10d   :  { %947 = vst.msk [vmem:[%s2416_s2 + $0xc4] sm:$0xf] %vm897_vm1, %v1486_v55  ;;  %v1489_v7 = vpack.c.bf16 %v2061_v10, %v2061_v10  ;;  %v1228_v61 = vsel %vm255_vm0, %v1131_v53, 0.0  ;;  %v1031_v9 = vsel %vm255_vm0, %v1851_v15, 0.0  ;;  %v1133_v12 = vmul.f32 %v1885_v39, %v1885_v39 }
 0x10e   :  { %v1024_v35 = vadd.f32 %v1023_v29, %v1022_v24  ;;  %v1221_v37 = vadd.f32 %v1220_v30, %v1219_v26  ;;  %952 = vst.msk [vmem:[%s2416_s2 + $0xd8] sm:$0xf] %vm897_vm1, %v1491_v2  ;;  %v1492_v13 = vpack.c.bf16 %v2071_v25, %v2071_v25  ;;  %v1230_v15 = vsel %vm255_vm0, %v1132_v63, 0.0 }
 0x10f   :  { %950 = vst.msk [vmem:[%s2416_s2 + $0xd0] sm:$0xf] %vm897_vm1, %v1489_v7  ;;  %v1033_v20 = vsel %vm255_vm0, %v1885_v39, 0.0  ;;  %v1134_v21 = vmul.f32 %v1907_v57, %v1907_v57  ;;  %v1490_v24 = vpack.c.bf16 %v2083_v36, %v2083_v36  ;;  %v1495_v30 = vpack.c.bf16 %v2093_v48, %v2093_v48 }
 0x110   :  { %v1223_v46 = vadd.f32 %v1222_v40, %v1221_v37  ;;  %v1026_v47 = vadd.f32 %v1025_v43, %v1024_v35  ;;  %953 = vst.msk [vmem:[%s2416_s2 + $0xdc] sm:$0xf] %vm897_vm1, %v1492_v13  ;;  %v1135_v29 = vmul.f32 %v1873_v32, %v1873_v32  ;;  %v1232_v39 = vsel %vm255_vm0, %v1133_v12, 0.0  ;;  %v2235_v40 = vpop.f32.mrf.mxu1 }
 0x111   :  { %v1035_v33 = vsel %vm255_vm0, %v1907_v57, 0.0  ;;  %951 = vst.msk [vmem:[%s2416_s2 + $0xd4] sm:$0xf] %vm897_vm1, %v1490_v24  ;;  %v1493_v34 = vpack.c.bf16 %v2105_v59, %v2105_v59  ;;  %956 = vst.msk [vmem:[%s2416_s2 + $0xe8] sm:$0xf] %vm897_vm1, %v1495_v30  ;;  %v1037_v57 = vsel %vm255_vm0, %v1873_v32, 0.0  ;;  %v1136_v43 = vmul.f32 %v1895_v49, %v1895_v49 }
 0x112   :  { %v1028_v56 = vadd.f32 %v1027_v54, %v1026_v47  ;;  %v1225_v58 = vadd.f32 %v1224_v5, %v1223_v46  ;;  %v1234_v44 = vsel %vm255_vm0, %v1134_v21, 0.0  ;;  %v1496_v45 = vpack.c.bf16 %v2119_v16, %v2119_v16 }
 0x113   :  { %954 = vst.msk [vmem:[%s2416_s2 + $0xe0] sm:$0xf] %vm897_vm1, %v1493_v34  ;;  %v1494_v51 = vpack.c.bf16 %v2145_v38, %v2145_v38  ;;  %v1236_v32 = vsel %vm255_vm0, %v1135_v29, 0.0  ;;  %v1039_v53 = vsel %vm255_vm0, %v1895_v49, 0.0  ;;  %v1137_v5 = vmul.f32 %v1929_v11, %v1929_v11 }
 0x114   :  { %v1030_v4 = vadd.f32 %v1029_v23, %v1028_v56  ;;  %v1227_v6 = vadd.f32 %v1226_v1, %v1225_v58  ;;  %957 = vst.msk [vmem:[%s2416_s2 + $0xec] sm:$0xf] %vm897_vm1, %v1496_v45  ;;  %v1499_v54 = vpack.c.bf16 %v2175_v60, %v2175_v60  ;;  %v2265_v58 = vpop.f32.mrf.mxu1  ;;  %v1238_v49 = vsel %vm255_vm0, %v1136_v43, 0.0 }
 0x115   :  { %955 = vst.msk [vmem:[%s2416_s2 + $0xe4] sm:$0xf] %vm897_vm1, %v1494_v51  ;;  %v1041_v23 = vsel %vm255_vm0, %v1929_v11, 0.0  ;;  %v1138_v63 = vmul.f32 %v1951_v31, %v1951_v31  ;;  %v1497_v1 = vpack.c.bf16 %v2205_v18, %v2205_v18  ;;  %v1139_v7 = vmul.f32 %v1917_v3, %v1917_v3 }
 0x116   :  { %v1229_v14 = vadd.f32 %v1228_v61, %v1227_v6  ;;  %v1032_v17 = vadd.f32 %v1031_v9, %v1030_v4  ;;  %960 = vst.msk [vmem:[%s2416_s2 + $0xf8] sm:$0xf] %vm897_vm1, %v1499_v54  ;;  %v1500_v6 = vpack.c.bf16 %v2235_v40, %v2235_v40  ;;  %v1240_v11 = vsel %vm255_vm0, %v1137_v5, 0.0 }
 0x117   :  { %v1043_v61 = vsel %vm255_vm0, %v1951_v31, 0.0  ;;  %958 = vst.msk [vmem:[%s2416_s2 + $0xf0] sm:$0xf] %vm897_vm1, %v1497_v1  ;;  %v1498_v9 = vpack.c.bf16 %v2265_v58, %v2265_v58  ;;  %v1140_v31 = vmul.f32 %v1939_v22, %v1939_v22  ;;  %v1244_v21 = vsel %vm255_vm0, %v1139_v7, 0.0 }
 0x118   :  { %v1034_v26 = vadd.f32 %v1033_v20, %v1032_v17  ;;  %v1231_v27 = vadd.f32 %v1230_v15, %v1229_v14  ;;  %961 = vst.msk [vmem:[%s2416_s2 + $0xfc] sm:$0xf] %vm897_vm1, %v1500_v6  ;;  %v1045_v14 = vsel %vm255_vm0, %v1917_v3, 0.0  ;;  %v1242_v17 = vsel %vm255_vm0, %v1138_v63, 0.0 }
 0x119   :  { %959 = vst.msk [vmem:[%s2416_s2 + $0xf4] sm:$0xf] %vm897_vm1, %v1498_v9  ;;  %v1047_v24 = vsel %vm255_vm0, %v1939_v22, 0.0  ;;  %v1141_v3 = vmul.f32 %v1973_v50, %v1973_v50  ;;  %v1246_v30 = vsel %vm255_vm0, %v1140_v31, 0.0  ;;  %v1049_v29 = vsel %vm255_vm0, %v1973_v50, 0.0 }
 0x11a   :  { %v1233_v35 = vadd.f32 %v1232_v39, %v1231_v27  ;;  %v1036_v37 = vadd.f32 %v1035_v33, %v1034_v26  ;;  %v1142_v39 = vmul.f32 %v1995_v8, %v1995_v8  ;;  %v1144_v50 = vmul.f32 %v1983_v62, %v1983_v62 }
 0x11b   :  { %v1248_v22 = vsel %vm255_vm0, %v1141_v3, 0.0  ;;  %v1059_v63 = vsel %vm255_vm0, %v2039_v52, 0.0  ;;  %v1063_v9 = vsel %vm255_vm0, %v2027_v41, 0.0  ;;  %v1150_v31 = vmul.f32 %v2083_v36, %v2083_v36 }
 0x11c   :  { %v1038_v46 = vadd.f32 %v1037_v57, %v1036_v37  ;;  %v1235_v47 = vadd.f32 %v1234_v44, %v1233_v35  ;;  %v1143_v35 = vmul.f32 %v1961_v42, %v1961_v42  ;;  %v1051_v37 = vsel %vm255_vm0, %v1995_v8, 0.0 }
 0x11d   :  { %v1053_v44 = vsel %vm255_vm0, %v1961_v42, 0.0  ;;  %v1250_v45 = vsel %vm255_vm0, %v1142_v39, 0.0  ;;  %v1145_v8 = vmul.f32 %v2017_v28, %v2017_v28  ;;  %v1254_v54 = vsel %vm255_vm0, %v1144_v50, 0.0 }
 0x11e   :  { %v1237_v55 = vadd.f32 %v1236_v32, %v1235_v47  ;;  %v1040_v56 = vadd.f32 %v1039_v53, %v1038_v46  ;;  %v1252_v51 = vsel %vm255_vm0, %v1143_v35, 0.0  ;;  %v1055_v32 = vsel %vm255_vm0, %v1983_v62, 0.0 }
 0x11f   :  { %v1057_v42 = vsel %vm255_vm0, %v2017_v28, 0.0  ;;  %v1256_v62 = vsel %vm255_vm0, %v1145_v8, 0.0  ;;  %v1148_v28 = vmul.f32 %v2027_v41, %v2027_v41  ;;  %v1075_v50 = vsel %vm255_vm0, %v2145_v38, 0.0 }
 0x120   :  { %v1042_v2 = vadd.f32 %v1041_v23, %v1040_v56  ;;  %v1239_v4 = vadd.f32 %v1238_v49, %v1237_v55  ;;  %v1146_v55 = vmul.f32 %v2039_v52, %v2039_v52  ;;  %v1147_v23 = vmul.f32 %v2005_v19, %v2005_v19 }
 0x121   :  { %v1149_v52 = vmul.f32 %v2061_v10, %v2061_v10 }
 0x122   :  { %v1241_v12 = vadd.f32 %v1240_v11, %v1239_v4  ;;  %v1044_v13 = vadd.f32 %v1043_v61, %v1042_v2  ;;  %v1061_v4 = vsel %vm255_vm0, %v2005_v19, 0.0  ;;  %v1258_v6 = vsel %vm255_vm0, %v1146_v55, 0.0 }
 0x123   :  { %v1260_v61 = vsel %vm255_vm0, %v1147_v23, 0.0  ;;  %v1065_v19 = vsel %vm255_vm0, %v2061_v10, 0.0  ;;  %v1264_v41 = vsel %vm255_vm0, %v1149_v52, 0.0  ;;  %v1152_v10 = vmul.f32 %v2071_v25, %v2071_v25 }
 0x124   :  { %v1046_v15 = vadd.f32 %v1045_v14, %v1044_v13  ;;  %v1243_v20 = vadd.f32 %v1242_v17, %v1241_v12  ;;  %v1262_v14 = vsel %vm255_vm0, %v1148_v28, 0.0 }
 0x126   :  { %v1245_v26 = vadd.f32 %v1244_v21, %v1243_v20  ;;  %v1048_v27 = vadd.f32 %v1047_v24, %v1046_v15  ;;  %v1151_v20 = vmul.f32 %v2049_v0, %v2049_v0  ;;  %v1067_v21 = vsel %vm255_vm0, %v2083_v36, 0.0 }
 0x127   :  { %v1153_v36 = vmul.f32 %v2105_v59, %v2105_v59 }
 0x128   :  { %v1050_v33 = vadd.f32 %v1049_v29, %v1048_v27  ;;  %v1247_v34 = vadd.f32 %v1246_v30, %v1245_v26  ;;  %v1069_v26 = vsel %vm255_vm0, %v2049_v0, 0.0  ;;  %v1266_v27 = vsel %vm255_vm0, %v1150_v31, 0.0 }
 0x129   :  { %v1268_v39 = vsel %vm255_vm0, %v1151_v20, 0.0  ;;  %v1073_v0 = vsel %vm255_vm0, %v2105_v59, 0.0  ;;  %v1156_v59 = vmul.f32 %v2119_v16, %v2119_v16 }
 0x12a   :  { %v1249_v57 = vadd.f32 %v1248_v22, %v1247_v34  ;;  %v1052_v43 = vadd.f32 %v1051_v37, %v1050_v33  ;;  %v1071_v33 = vsel %vm255_vm0, %v2071_v25, 0.0  ;;  %v1270_v22 = vsel %vm255_vm0, %v1152_v10, 0.0 }
 0x12b   :  { %v1154_v37 = vmul.f32 %v2145_v38, %v2145_v38  ;;  %v1272_v25 = vsel %vm255_vm0, %v1153_v36, 0.0  ;;  %v1157_v38 = vmul.f32 %v2205_v18, %v2205_v18  ;;  %v1278_v55 = vsel %vm255_vm0, %v1156_v59, 0.0 }
 0x12c   :  { %v1054_v46 = vadd.f32 %v1053_v44, %v1052_v43  ;;  %v1251_v47 = vadd.f32 %v1250_v45, %v1249_v57  ;;  %v1155_v44 = vmul.f32 %v2093_v48, %v2093_v48 }
 0x12e   :  { %v1253_v53 = vadd.f32 %v1252_v51, %v1251_v47  ;;  %v1056_v5 = vadd.f32 %v1055_v32, %v1054_v46  ;;  %v1077_v47 = vsel %vm255_vm0, %v2093_v48, 0.0  ;;  %v1274_v51 = vsel %vm255_vm0, %v1154_v37, 0.0 }
 0x12f   :  { %v1081_v48 = vsel %vm255_vm0, %v2205_v18, 0.0  ;;  %v1160_v18 = vmul.f32 %v2235_v40, %v2235_v40 }
 0x130   :  { %v1058_v56 = vadd.f32 %v1057_v42, %v1056_v5  ;;  %v1255_v49 = vadd.f32 %v1254_v54, %v1253_v53  ;;  %v1276_v53 = vsel %vm255_vm0, %v1155_v44, 0.0  ;;  %v1079_v5 = vsel %vm255_vm0, %v2119_v16, 0.0 }
 0x131   :  { %v1280_v16 = vsel %vm255_vm0, %v1157_v38, 0.0 }
 0x132   :  { %v1257_v1 = vadd.f32 %v1256_v62, %v1255_v49  ;;  %v1060_v2 = vadd.f32 %v1059_v63, %v1058_v56  ;;  %v1158_v56 = vmul.f32 %v2265_v58, %v2265_v58  ;;  %v1159_v62 = vmul.f32 %v2175_v60, %v2175_v60 }
 0x133   :  { %v1083_v63 = vsel %vm255_vm0, %v2265_v58, 0.0  ;;  %v1286_v58 = vsel %vm255_vm0, %v1160_v18, 0.0 }
 0x134   :  { %v1062_v7 = vadd.f32 %v1061_v4, %v1060_v2  ;;  %v1259_v11 = vadd.f32 %v1258_v6, %v1257_v1  ;;  %v1085_v4 = vsel %vm255_vm0, %v2175_v60, 0.0  ;;  %v1282_v28 = vsel %vm255_vm0, %v1158_v56, 0.0 }
 0x136   :  { %v1261_v12 = vadd.f32 %v1260_v61, %v1259_v11  ;;  %v1064_v13 = vadd.f32 %v1063_v9, %v1062_v7  ;;  %v1284_v11 = vsel %vm255_vm0, %v1159_v62, 0.0  ;;  %v1087_v61 = vsel %vm255_vm0, %v2235_v40, 0.0 }
 0x138   :  { %v1066_v17 = vadd.f32 %v1065_v19, %v1064_v13  ;;  %v1263_v15 = vadd.f32 %v1262_v14, %v1261_v12 }
 0x13a   :  { %v1265_v24 = vadd.f32 %v1264_v41, %v1263_v15  ;;  %v1068_v3 = vadd.f32 %v1067_v21, %v1066_v17 }
 0x13c   :  { %v1070_v30 = vadd.f32 %v1069_v26, %v1068_v3  ;;  %v1267_v29 = vadd.f32 %v1266_v27, %v1265_v24 }
 0x13e   :  { %v1269_v34 = vadd.f32 %v1268_v39, %v1267_v29  ;;  %v1072_v35 = vadd.f32 %v1071_v33, %v1070_v30 }
 0x140   :  { %v1074_v57 = vadd.f32 %v1073_v0, %v1072_v35  ;;  %v1271_v43 = vadd.f32 %v1270_v22, %v1269_v34 }
 0x142   :  { %v1273_v45 = vadd.f32 %v1272_v25, %v1271_v43  ;;  %v1076_v46 = vadd.f32 %v1075_v50, %v1074_v57 }
 0x144   :  { %v1078_v32 = vadd.f32 %v1077_v47, %v1076_v46  ;;  %v1275_v8 = vadd.f32 %v1274_v51, %v1273_v45 }
 0x146   :  { %v1277_v54 = vadd.f32 %v1276_v53, %v1275_v8  ;;  %v1080_v42 = vadd.f32 %v1079_v5, %v1078_v32 }
 0x148   :  { %v1082_v49 = vadd.f32 %v1081_v48, %v1080_v42  ;;  %v1279_v23 = vadd.f32 %v1278_v55, %v1277_v54 }
 0x14a   :  { %v1281_v1 = vadd.f32 %v1280_v16, %v1279_v23  ;;  %v1084_v2 = vadd.f32 %v1083_v63, %v1082_v49 }
 0x14c   :  { %v1086_v6 = vadd.f32 %v1085_v4, %v1084_v2  ;;  %v1283_v7 = vadd.f32 %v1282_v28, %v1281_v1 }
 0x14e   :  { %v1088_v9 = vadd.f32 %v1087_v61, %v1086_v6  ;;  %v1285_v52 = vadd.f32 %v1284_v11, %v1283_v7 }
 0x150   :  { %v1089_v12 = vrot.slane %v1088_v9, 4  ;;  %v1287_v13 = vadd.f32 %v1286_v58, %v1285_v52 }
 0x152   :  { %v1090_v14 = vadd.f32 %v1089_v12, %v1088_v9  ;;  %v1288_v60 = vrot.slane %v1287_v13, 4 }
 0x154   :  { %v1091_v19 = vrot.slane %v1090_v14, 2  ;;  %v1289_v31 = vadd.f32 %v1288_v60, %v1287_v13 }
 0x156   :  { %v1092_v17 = vadd.f32 %v1091_v19, %v1090_v14  ;;  %v1290_v15 = vrot.slane %v1289_v31, 2 }
 0x158   :  { %v1093_v20 = vrot.slane %v1092_v17, 1  ;;  %v1291_v41 = vadd.f32 %v1290_v15, %v1289_v31 }
 0x15a   :  { %v1094_v21 = vadd.f32 %v1093_v20, %v1092_v17  ;;  %v1292_v24 = vrot.slane %v1291_v41, 1 }
 0x15c   :  { %1096 = vst.msk [vmem:[%s2417_s3] sm:$0x1] %vm1095_vm2, %v1094_v21  ;;  %v1293_v40 = vadd.f32 %v1292_v24, %v1291_v41 }
 0x15e   :  { %1294 = vst.msk [vmem:[%s2418_s4] sm:$0x1] %vm1095_vm2, %v1293_v40 }

// kernel: detnet_bottleneck_forward.6
= control target key start
LH: loop header
LB: loop body
LE: loop exit
PB: predicated region body
PF: predicated region fallthrough
CT: control target
= control target key end

     0   :  { %vm403_vm0 = vcmask 261120   ;;  %vm1045_vm1 = vcmask 257024   ;;  %vm1243_vm2 = vcmask 253952   ;;  %s2841_s3 = inlined_call_operand.vmem [shape: bf16[32,32], index: 3, kind: input, shape index: {}]   ;;  %s2842_s0 = inlined_call_operand.vmem [shape: bf16[512,32], index: 0, kind: input, shape index: {}]   ;;  %s2843_s1 = inlined_call_operand.vmem [shape: f32[1,32], index: 1, kind: input, shape index: {}]   ;;  %s2844_s2 = inlined_call_operand.vmem [shape: f32[1,32], index: 2, kind: input, shape index: {}]   ;;  %s2845_s4 = inlined_call_operand.vmem [shape: bf16[512,32], index: 4, kind: output, shape index: {0}]   ;;  %s2846_s5 = inlined_call_operand.vmem [shape: f32[1,1,32], index: 5, kind: output, shape index: {1}]   ;;  %s2847_s6 = inlined_call_operand.vmem [shape: f32[1,1,32], index: 6, kind: output, shape index: {2}]  }
   0x1   :  { %v1884_v0 = vld [vmem:[%s2841_s3 + $0x8] sm:$0xff]   ;;  %v1885_v1 = vld [vmem:[%s2841_s3] sm:$0xff]   ;;  %v1748_v7 = vld [vmem:[%s2842_s0 + $0x10] sm:$0xff]  }
   0x2   :  { %1812 = vmatprep.subr.bf16.mxu0 %v1884_v0  ;;  %v1620_v2 = vld [vmem:[%s2842_s0] sm:$0xff]   ;;  %1880 = vmatprep.subr.bf16.mxu1 %v1884_v0  ;;  %v1747_v6 = vld [vmem:[%s2842_s0 + $0x8] sm:$0xff]   ;;  %v1749_v8 = vld [vmem:[%s2842_s0 + $0x18] sm:$0xff]   ;;  %v1629_v12 = vunpack.c.l.bf16 %v1748_v7  ;;  %v1630_v13 = vunpack.c.h.bf16 %v1748_v7 }
   0x3   :  { %v1933_v3 = vld [vmem:[%s2843_s1] ss:$0 sm:$0xff]  ;;  %1813 = vmatpush3.bf16.msra.mxu0 %v1884_v0  ;;  %v1621_v4 = vunpack.c.l.bf16 %v1620_v2  ;;  %v1622_v5 = vunpack.c.h.bf16 %v1620_v2  ;;  %1882 = vmatpush3.bf16.msra.mxu1 %v1884_v0  ;;  %v1625_v10 = vunpack.c.l.bf16 %v1747_v6  ;;  %v1626_v11 = vunpack.c.h.bf16 %v1747_v6  ;;  %v1751_v35 = vld [vmem:[%s2842_s0 + $0x28] sm:$0xff]   ;;  %v1752_v40 = vld [vmem:[%s2842_s0 + $0x30] sm:$0xff]  }
   0x4   :  { %1814 = vmatprep.subr.bf16.mxu0 %v1885_v1  ;;  %v1947_v9 = vld [vmem:[%s2844_s2] ss:$0 sm:$0xff]  ;;  %1881 = vmatprep.subr.bf16.mxu1 %v1885_v1  ;;  %v1633_v16 = vunpack.c.l.bf16 %v1749_v8  ;;  %v1634_v17 = vunpack.c.h.bf16 %v1749_v8  ;;  %v160_v20 = vmul.f32 %v1629_v12, %v1933_v3  ;;  %v161_v21 = vmul.f32 %v1630_v13, %v1933_v3  ;;  %v1753_v51 = vld [vmem:[%s2842_s0 + $0x38] sm:$0xff]   ;;  %v1755_v8 = vld [vmem:[%s2842_s0 + $0x48] sm:$0xff]  }
   0x5   :  { %v156_v14 = vmul.f32 %v1621_v4, %v1933_v3  ;;  %v157_v15 = vmul.f32 %v1622_v5, %v1933_v3  ;;  %v158_v18 = vmul.f32 %v1625_v10, %v1933_v3  ;;  %v159_v19 = vmul.f32 %v1626_v11, %v1933_v3  ;;  %v1750_v30 = vld [vmem:[%s2842_s0 + $0x20] sm:$0xff]   ;;  %v1756_v11 = vld [vmem:[%s2842_s0 + $0x50] sm:$0xff]  }
   0x6   :  { %v162_v24 = vmul.f32 %v1633_v16, %v1933_v3  ;;  %v163_v25 = vmul.f32 %v1634_v17, %v1933_v3  ;;  %v231_v28 = vadd.f32 %v1947_v9, %v160_v20  ;;  %v232_v29 = vadd.f32 %v1947_v9, %v161_v21  ;;  %v1754_v63 = vld [vmem:[%s2842_s0 + $0x40] sm:$0xff]   ;;  %v1757_v20 = vld [vmem:[%s2842_s0 + $0x58] sm:$0xff]  }
   0x7   :  { %1815 = vmatpush3.bf16.msra.mxu0 %v1885_v1  ;;  %v227_v22 = vadd.f32 %v1947_v9, %v156_v14  ;;  %v228_v23 = vadd.f32 %v1947_v9, %v157_v15  ;;  %v229_v26 = vadd.f32 %v1947_v9, %v158_v18  ;;  %v230_v27 = vadd.f32 %v1947_v9, %v159_v19 }
   0x8   :  { %1883 = vmatpush3.bf16.msra.mxu1 %v1885_v1  ;;  %v233_v33 = vadd.f32 %v1947_v9, %v162_v24  ;;  %v234_v34 = vadd.f32 %v1947_v9, %v163_v25  ;;  %v295_v38 = vmax.f32 %v231_v28, 0.0  ;;  %v296_v39 = vmax.f32 %v232_v29, 0.0 }
   0x9   :  { %v291_v31 = vmax.f32 %v227_v22, 0.0  ;;  %v292_v32 = vmax.f32 %v228_v23, 0.0  ;;  %v293_v36 = vmax.f32 %v229_v26, 0.0  ;;  %v294_v37 = vmax.f32 %v230_v27, 0.0 }
   0xa   :  { %v1637_v42 = vunpack.c.l.bf16 %v1750_v30  ;;  %v357_v44 = vpack.c.bf16 %v296_v39, %v295_v38  ;;  %v1638_v45 = vunpack.c.h.bf16 %v1750_v30  ;;  %v1641_v46 = vunpack.c.l.bf16 %v1751_v35 }
   0xb   :  { %v355_v41 = vpack.c.bf16 %v292_v32, %v291_v31  ;;  %v356_v43 = vpack.c.bf16 %v294_v37, %v293_v36  ;;  %v297_v47 = vmax.f32 %v233_v33, 0.0  ;;  %v1642_v49 = vunpack.c.h.bf16 %v1751_v35  ;;  %v1758_v31 = vld [vmem:[%s2842_s0 + $0x60] sm:$0xff]  }
   0xc   :  { %v164_v48 = vmul.f32 %v1637_v42, %v1933_v3  ;;  %v1645_v50 = vunpack.c.l.bf16 %v1752_v40  ;;  %v298_v52 = vmax.f32 %v234_v34, 0.0  ;;  %v165_v53 = vmul.f32 %v1638_v45, %v1933_v3 }
   0xd   :  { %1816 = vmatprep.mubr.msk.bf16.mxu0 %vm403_vm0, %v355_v41  ;;  %v166_v54 = vmul.f32 %v1641_v46, %v1933_v3  ;;  %v1646_v55 = vunpack.c.h.bf16 %v1752_v40  ;;  %v167_v57 = vmul.f32 %v1642_v49, %v1933_v3  ;;  %v1649_v61 = vunpack.c.l.bf16 %v1753_v51 }
   0xe   :  { %1817 = vmatmul.mubr.msk.bf16.vlgmr.msra.gmra.mxu0 %vm403_vm0, %v356_v43  ;;  %v235_v56 = vadd.f32 %v1947_v9, %v164_v48  ;;  %v168_v58 = vmul.f32 %v1645_v50, %v1933_v3  ;;  %v236_v59 = vadd.f32 %v1947_v9, %v165_v53  ;;  %v1650_v62 = vunpack.c.h.bf16 %v1753_v51 }
   0xf   :  { %1820 = vmatprep.mubr.msk.bf16.mxu0 %vm403_vm0, %v357_v44  ;;  %v169_v60 = vmul.f32 %v1646_v55, %v1933_v3  ;;  %v237_v1 = vadd.f32 %v1947_v9, %v166_v54  ;;  %v238_v2 = vadd.f32 %v1947_v9, %v167_v57  ;;  %v358_v5 = vpack.c.bf16 %v298_v52, %v297_v47  ;;  %v1759_v44 = vld [vmem:[%s2842_s0 + $0x68] sm:$0xff]  }
  0x10   :  { %v299_v0 = vmax.f32 %v235_v56, 0.0  ;;  %v239_v4 = vadd.f32 %v1947_v9, %v168_v58  ;;  %v300_v6 = vmax.f32 %v236_v59, 0.0  ;;  %v1653_v10 = vunpack.c.l.bf16 %v1754_v63  ;;  %v1760_v56 = vld [vmem:[%s2842_s0 + $0x70] sm:$0xff]  }
  0x11   :  { %v240_v7 = vadd.f32 %v1947_v9, %v169_v60  ;;  %v170_v13 = vmul.f32 %v1649_v61, %v1933_v3  ;;  %v171_v14 = vmul.f32 %v1650_v62, %v1933_v3  ;;  %v1654_v15 = vunpack.c.h.bf16 %v1754_v63 }
  0x12   :  { %v359_v12 = vpack.c.bf16 %v300_v6, %v299_v0  ;;  %v301_v16 = vmax.f32 %v237_v1, 0.0  ;;  %v302_v17 = vmax.f32 %v238_v2, 0.0  ;;  %v303_v18 = vmax.f32 %v239_v4, 0.0  ;;  %v2043_v1 = vld [vmem:[%s2842_s0 + $0x78] sm:$0xff]   ;;  %v1762_v2 = vld [vmem:[%s2842_s0 + $0x80] sm:$0xff]  }
  0x13   :  { %v1657_v19 = vunpack.c.l.bf16 %v1755_v8  ;;  %v304_v21 = vmax.f32 %v240_v7, 0.0  ;;  %v172_v22 = vmul.f32 %v1653_v10, %v1933_v3  ;;  %v1658_v23 = vunpack.c.h.bf16 %v1755_v8 }
  0x14   :  { %v1661_v24 = vunpack.c.l.bf16 %v1756_v11  ;;  %v173_v25 = vmul.f32 %v1654_v15, %v1933_v3  ;;  %v1662_v27 = vunpack.c.h.bf16 %v1756_v11  ;;  %v1665_v30 = vunpack.c.l.bf16 %v1757_v20 }
  0x15   :  { %v174_v26 = vmul.f32 %v1657_v19, %v1933_v3  ;;  %v175_v28 = vmul.f32 %v1658_v23, %v1933_v3  ;;  %v241_v32 = vadd.f32 %v1947_v9, %v170_v13  ;;  %v242_v33 = vadd.f32 %v1947_v9, %v171_v14  ;;  %v1763_v19 = vld [vmem:[%s2842_s0 + $0x88] sm:$0xff]  }
  0x16   :  { %1821 = vmatmul.mubr.msk.bf16.gmra.mxu0 %vm403_vm0, %v358_v5  ;;  %v176_v29 = vmul.f32 %v1661_v24, %v1933_v3  ;;  %v177_v34 = vmul.f32 %v1662_v27, %v1933_v3  ;;  %v1666_v35 = vunpack.c.h.bf16 %v1757_v20  ;;  %v360_v36 = vpack.c.bf16 %v302_v17, %v301_v16  ;;  %v1764_v24 = vld [vmem:[%s2842_s0 + $0x90] sm:$0xff]  }
  0x17   :  { %1824 = vmatprep.mubr.msk.bf16.mxu0 %vm403_vm0, %v359_v12  ;;  %v361_v37 = vpack.c.bf16 %v304_v21, %v303_v18  ;;  %v243_v38 = vadd.f32 %v1947_v9, %v172_v22  ;;  %v178_v39 = vmul.f32 %v1665_v30, %v1933_v3  ;;  %v244_v40 = vadd.f32 %v1947_v9, %v173_v25 }
  0x18   :  { %v245_v41 = vadd.f32 %v1947_v9, %v174_v26  ;;  %v179_v42 = vmul.f32 %v1666_v35, %v1933_v3  ;;  %v1669_v43 = vunpack.c.l.bf16 %v1758_v31  ;;  %v246_v45 = vadd.f32 %v1947_v9, %v175_v28 }
  0x19   :  { %v247_v46 = vadd.f32 %v1947_v9, %v176_v29  ;;  %v248_v47 = vadd.f32 %v1947_v9, %v177_v34  ;;  %v249_v48 = vadd.f32 %v1947_v9, %v178_v39  ;;  %v1670_v50 = vunpack.c.h.bf16 %v1758_v31 }
  0x1a   :  { %v250_v49 = vadd.f32 %v1947_v9, %v179_v42  ;;  %v180_v51 = vmul.f32 %v1669_v43, %v1933_v3  ;;  %v305_v52 = vmax.f32 %v241_v32, 0.0  ;;  %v306_v53 = vmax.f32 %v242_v33, 0.0  ;;  %v1765_v33 = vld [vmem:[%s2842_s0 + $0x98] sm:$0xff]  }
  0x1b   :  { %v1673_v54 = vunpack.c.l.bf16 %v1759_v44  ;;  %v1674_v55 = vunpack.c.h.bf16 %v1759_v44  ;;  %v307_v57 = vmax.f32 %v243_v38, 0.0  ;;  %v308_v58 = vmax.f32 %v244_v40, 0.0 }
  0x1c   :  { %v309_v59 = vmax.f32 %v245_v41, 0.0  ;;  %v181_v60 = vmul.f32 %v1670_v50, %v1933_v3  ;;  %v310_v61 = vmax.f32 %v246_v45, 0.0  ;;  %v311_v62 = vmax.f32 %v247_v46, 0.0  ;;  %v1766_v46 = vld [vmem:[%s2842_s0 + $0xa0] sm:$0xff]  }
  0x1d   :  { %v312_v63 = vmax.f32 %v248_v47, 0.0  ;;  %v182_v0 = vmul.f32 %v1673_v54, %v1933_v3  ;;  %v313_v4 = vmax.f32 %v249_v48, 0.0  ;;  %v314_v5 = vmax.f32 %v250_v49, 0.0 }
  0x1e   :  { %1825 = vmatmul.mubr.msk.bf16.gmra.mxu0 %vm403_vm0, %v360_v36  ;;  %v2049_v6 = vadd.f32 %v1947_v9, %v180_v51  ;;  %v1677_v7 = vunpack.c.l.bf16 %v1760_v56  ;;  %v362_v8 = vpack.c.bf16 %v306_v53, %v305_v52  ;;  %v2052_v10 = vadd.f32 %v1947_v9, %v181_v60 }
  0x1f   :  { %1828 = vmatprep.mubr.msk.bf16.mxu0 %vm403_vm0, %v361_v37  ;;  %v183_v11 = vmul.f32 %v1674_v55, %v1933_v3  ;;  %v1678_v12 = vunpack.c.h.bf16 %v1760_v56  ;;  %v363_v13 = vpack.c.bf16 %v308_v58, %v307_v57  ;;  %v1681_v14 = vunpack.c.l.bf16 %v2043_v1  ;;  %v1767_v55 = vld [vmem:[%s2842_s0 + $0xa8] sm:$0xff]  }
  0x20   :  { %v1685_v15 = vunpack.c.l.bf16 %v1762_v2  ;;  %v364_v16 = vpack.c.bf16 %v310_v61, %v309_v59  ;;  %v365_v17 = vpack.c.bf16 %v312_v63, %v311_v62  ;;  %v2057_v18 = vadd.f32 %v1947_v9, %v182_v0 }
  0x21   :  { %v2062_v20 = vpack.c.bf16 %v314_v5, %v313_v4  ;;  %v315_v21 = vmax.f32 %v2049_v6, 0.0  ;;  %v184_v22 = vmul.f32 %v1677_v7, %v1933_v3  ;;  %v1686_v23 = vunpack.c.h.bf16 %v1762_v2  ;;  %v1768_v7 = vld [vmem:[%s2842_s0 + $0xb0] sm:$0xff]   ;;  %v1770_v6 = vld [vmem:[%s2842_s0 + $0xc0] sm:$0xff]  }
  0x22   :  { %v316_v25 = vmax.f32 %v2052_v10, 0.0  ;;  %v2072_v26 = vadd.f32 %v1947_v9, %v183_v11  ;;  %v185_v27 = vmul.f32 %v1678_v12, %v1933_v3  ;;  %v188_v28 = vmul.f32 %v1685_v15, %v1933_v3 }
  0x23   :  { %v1682_v29 = vunpack.c.h.bf16 %v2043_v1  ;;  %v2079_v30 = vmul.f32 %v1681_v14, %v1933_v3  ;;  %v189_v31 = vmul.f32 %v1686_v23, %v1933_v3  ;;  %v1689_v32 = vunpack.c.l.bf16 %v1763_v19 }
  0x24   :  { %v317_v34 = vmax.f32 %v2057_v18, 0.0  ;;  %v259_v35 = vadd.f32 %v1947_v9, %v188_v28  ;;  %v1690_v36 = vunpack.c.h.bf16 %v1763_v19  ;;  %v1693_v37 = vunpack.c.l.bf16 %v1764_v24  ;;  %v1772_v18 = vld [vmem:[%s2842_s0 + $0xd0] sm:$0xff]  }
  0x25   :  { %v2088_v38 = vadd.f32 %v1947_v9, %v184_v22  ;;  %v260_v39 = vadd.f32 %v1947_v9, %v189_v31  ;;  %v190_v40 = vmul.f32 %v1689_v32, %v1933_v3  ;;  %v1694_v41 = vunpack.c.h.bf16 %v1764_v24  ;;  %v1769_v24 = vld [vmem:[%s2842_s0 + $0xb8] sm:$0xff]  }
  0x26   :  { %1829 = vmatmul.mubr.msk.bf16.gmra.mxu0 %vm403_vm0, %v362_v8  ;;  %v323_v42 = vmax.f32 %v259_v35, 0.0  ;;  %v191_v43 = vmul.f32 %v1690_v36, %v1933_v3  ;;  %v192_v44 = vmul.f32 %v1693_v37, %v1933_v3  ;;  %v1697_v45 = vunpack.c.l.bf16 %v1765_v33 }
  0x27   :  { %1832 = vmatprep.mubr.msk.bf16.mxu0 %vm403_vm0, %v363_v13  ;;  %v2098_v47 = vadd.f32 %v1947_v9, %v185_v27  ;;  %v324_v48 = vmax.f32 %v260_v39, 0.0  ;;  %v261_v49 = vadd.f32 %v1947_v9, %v190_v40  ;;  %v193_v50 = vmul.f32 %v1694_v41, %v1933_v3 }
  0x28   :  { %v262_v51 = vadd.f32 %v1947_v9, %v191_v43  ;;  %v263_v52 = vadd.f32 %v1947_v9, %v192_v44  ;;  %v1698_v53 = vunpack.c.h.bf16 %v1765_v33  ;;  %v194_v54 = vmul.f32 %v1697_v45, %v1933_v3 }
  0x29   :  { %v371_v56 = vpack.c.bf16 %v324_v48, %v323_v42  ;;  %v325_v57 = vmax.f32 %v261_v49, 0.0  ;;  %v264_v58 = vadd.f32 %v1947_v9, %v193_v50  ;;  %v1701_v59 = vunpack.c.l.bf16 %v1766_v46 }
  0x2a   :  { %v326_v60 = vmax.f32 %v262_v51, 0.0  ;;  %v327_v61 = vmax.f32 %v263_v52, 0.0  ;;  %v195_v62 = vmul.f32 %v1698_v53, %v1933_v3  ;;  %v265_v63 = vadd.f32 %v1947_v9, %v194_v54  ;;  %v1771_v52 = vld [vmem:[%s2842_s0 + $0xc8] sm:$0xff]  }
  0x2b   :  { %1848 = vmatprep.mubr.msk.bf16.mxu1 %vm403_vm0, %v371_v56  ;;  %v328_v0 = vmax.f32 %v264_v58, 0.0  ;;  %v1702_v2 = vunpack.c.h.bf16 %v1766_v46  ;;  %v196_v4 = vmul.f32 %v1701_v59, %v1933_v3  ;;  %v1705_v5 = vunpack.c.l.bf16 %v1767_v55 }
  0x2c   :  { %v372_v8 = vpack.c.bf16 %v326_v60, %v325_v57  ;;  %v266_v10 = vadd.f32 %v1947_v9, %v195_v62  ;;  %v329_v11 = vmax.f32 %v265_v63, 0.0  ;;  %v1706_v12 = vunpack.c.h.bf16 %v1767_v55 }
  0x2d   :  { %v373_v13 = vpack.c.bf16 %v328_v0, %v327_v61  ;;  %v197_v14 = vmul.f32 %v1702_v2, %v1933_v3  ;;  %v267_v15 = vadd.f32 %v1947_v9, %v196_v4  ;;  %v1709_v22 = vunpack.c.l.bf16 %v1768_v7 }
  0x2e   :  { %1833 = vmatmul.mubr.msk.bf16.gmra.mxu0 %vm403_vm0, %v364_v16  ;;  %v198_v16 = vmul.f32 %v1705_v5, %v1933_v3  ;;  %1849 = vmatmul.mubr.msk.bf16.vlgmr.msra.gmra.mxu1 %vm403_vm0, %v372_v8  ;;  %v199_v19 = vmul.f32 %v1706_v12, %v1933_v3  ;;  %v1710_v23 = vunpack.c.h.bf16 %v1768_v7  ;;  %v367_v27 = vpack.c.bf16 %v316_v25, %v315_v21 }
  0x2f   :  { %1836 = vmatprep.mubr.msk.bf16.mxu0 %vm403_vm0, %v365_v17  ;;  %v330_v17 = vmax.f32 %v266_v10, 0.0  ;;  %v318_v28 = vmax.f32 %v2072_v26, 0.0  ;;  %1852 = vmatprep.mubr.msk.bf16.mxu1 %vm403_vm0, %v373_v13  ;;  %v268_v31 = vadd.f32 %v1947_v9, %v197_v14  ;;  %v331_v32 = vmax.f32 %v267_v15, 0.0  ;;  %v1773_v14 = vld [vmem:[%s2842_s0 + $0xd8] sm:$0xff]  }
  0x30   :  { %v319_v33 = vmax.f32 %v2088_v38, 0.0  ;;  %v187_v35 = vmul.f32 %v1682_v29, %v1933_v3  ;;  %v200_v36 = vmul.f32 %v1709_v22, %v1933_v3  ;;  %v201_v37 = vmul.f32 %v1710_v23, %v1933_v3 }
  0x31   :  { %v320_v21 = vmax.f32 %v2098_v47, 0.0  ;;  %v332_v25 = vmax.f32 %v268_v31, 0.0  ;;  %v1713_v26 = vunpack.c.l.bf16 %v1769_v24  ;;  %v1714_v39 = vunpack.c.h.bf16 %v1769_v24 }
  0x32   :  { %v374_v38 = vpack.c.bf16 %v330_v17, %v329_v11  ;;  %v269_v1 = vadd.f32 %v1947_v9, %v198_v16  ;;  %v270_v29 = vadd.f32 %v1947_v9, %v199_v19  ;;  %v271_v40 = vadd.f32 %v1947_v9, %v200_v36  ;;  %v1774_v17 = vld [vmem:[%s2842_s0 + $0xe0] sm:$0xff]  }
  0x33   :  { %v375_v41 = vpack.c.bf16 %v332_v25, %v331_v32  ;;  %v272_v42 = vadd.f32 %v1947_v9, %v201_v37  ;;  %v1717_v43 = vunpack.c.l.bf16 %v1770_v6  ;;  %v1718_v44 = vunpack.c.h.bf16 %v1770_v6 }
  0x34   :  { %v257_v45 = vadd.f32 %v1947_v9, %v2079_v30  ;;  %v258_v46 = vadd.f32 %v1947_v9, %v187_v35  ;;  %v203_v47 = vmul.f32 %v1714_v39, %v1933_v3  ;;  %v368_v48 = vpack.c.bf16 %v318_v28, %v317_v34  ;;  %v1775_v39 = vld [vmem:[%s2842_s0 + $0xe8] sm:$0xff]  }
  0x35   :  { %v369_v49 = vpack.c.bf16 %v320_v21, %v319_v33  ;;  %v333_v50 = vmax.f32 %v269_v1, 0.0  ;;  %v334_v51 = vmax.f32 %v270_v29, 0.0  ;;  %v335_v30 = vmax.f32 %v271_v40, 0.0  ;;  %v1776_v29 = vld [vmem:[%s2842_s0 + $0xf0] sm:$0xff]  }
  0x36   :  { %1837 = vmatmul.mubr.msk.bf16.gmra.mxu0 %vm403_vm0, %v2062_v20  ;;  %v202_v20 = vmul.f32 %v1713_v26, %v1933_v3  ;;  %1853 = vmatmul.mubr.msk.bf16.gmra.mxu1 %vm403_vm0, %v374_v38  ;;  %v336_v53 = vmax.f32 %v272_v42, 0.0  ;;  %v204_v54 = vmul.f32 %v1717_v43, %v1933_v3  ;;  %v205_v55 = vmul.f32 %v1718_v44, %v1933_v3 }
  0x37   :  { %1840 = vmatprep.mubr.msk.bf16.mxu0 %vm403_vm0, %v367_v27  ;;  %1856 = vmatprep.mubr.msk.bf16.mxu1 %vm403_vm0, %v375_v41  ;;  %v321_v34 = vmax.f32 %v257_v45, 0.0  ;;  %v322_v56 = vmax.f32 %v258_v46, 0.0  ;;  %v274_v58 = vadd.f32 %v1947_v9, %v203_v47  ;;  %v1721_v59 = vunpack.c.l.bf16 %v1771_v52 }
  0x38   :  { %v273_v57 = vadd.f32 %v1947_v9, %v202_v20  ;;  %v376_v60 = vpack.c.bf16 %v334_v51, %v333_v50  ;;  %v1722_v61 = vunpack.c.h.bf16 %v1771_v52  ;;  %v1725_v62 = vunpack.c.l.bf16 %v1772_v18 }
  0x39   :  { %v1726_v63 = vunpack.c.h.bf16 %v1772_v18  ;;  %v377_v0 = vpack.c.bf16 %v336_v53, %v335_v30  ;;  %v275_v2 = vadd.f32 %v1947_v9, %v204_v54  ;;  %v276_v4 = vadd.f32 %v1947_v9, %v205_v55  ;;  %v1777_v18 = vld [vmem:[%s2842_s0 + $0xf8] sm:$0xff]  }
  0x3a   :  { %v337_v5 = vmax.f32 %v273_v57, 0.0  ;;  %v338_v7 = vmax.f32 %v274_v58, 0.0  ;;  %v206_v8 = vmul.f32 %v1721_v59, %v1933_v3  ;;  %v370_v10 = vpack.c.bf16 %v322_v56, %v321_v34 }
  0x3b   :  { %v207_v11 = vmul.f32 %v1722_v61, %v1933_v3  ;;  %v208_v12 = vmul.f32 %v1725_v62, %v1933_v3  ;;  %v209_v13 = vmul.f32 %v1726_v63, %v1933_v3  ;;  %v339_v15 = vmax.f32 %v275_v2, 0.0 }
  0x3c   :  { %v340_v16 = vmax.f32 %v276_v4, 0.0  ;;  %v378_v19 = vpack.c.bf16 %v338_v7, %v337_v5  ;;  %v277_v22 = vadd.f32 %v1947_v9, %v206_v8  ;;  %v1729_v23 = vunpack.c.l.bf16 %v1773_v14 }
  0x3d   :  { %v278_v24 = vadd.f32 %v1947_v9, %v207_v11  ;;  %v279_v27 = vadd.f32 %v1947_v9, %v208_v12  ;;  %v280_v28 = vadd.f32 %v1947_v9, %v209_v13  ;;  %v1730_v31 = vunpack.c.h.bf16 %v1773_v14 }
  0x3e   :  { %1841 = vmatmul.mubr.msk.bf16.gmra.mxu0 %vm403_vm0, %v368_v48  ;;  %1857 = vmatmul.mubr.msk.bf16.gmra.mxu1 %vm403_vm0, %v376_v60  ;;  %v379_v32 = vpack.c.bf16 %v340_v16, %v339_v15  ;;  %v1733_v33 = vunpack.c.l.bf16 %v1774_v17  ;;  %v1734_v35 = vunpack.c.h.bf16 %v1774_v17  ;;  %v341_v36 = vmax.f32 %v277_v22, 0.0 }
  0x3f   :  { %1844 = vmatprep.mubr.msk.bf16.mxu0 %vm403_vm0, %v369_v49  ;;  %1860 = vmatprep.mubr.msk.bf16.mxu1 %vm403_vm0, %v377_v0  ;;  %v210_v37 = vmul.f32 %v1729_v23, %v1933_v3  ;;  %v342_v6 = vmax.f32 %v278_v24, 0.0  ;;  %v343_v21 = vmax.f32 %v279_v27, 0.0  ;;  %v344_v25 = vmax.f32 %v280_v28, 0.0 }
  0x40   :  { %v211_v26 = vmul.f32 %v1730_v31, %v1933_v3  ;;  %v212_v38 = vmul.f32 %v1733_v33, %v1933_v3  ;;  %v213_v1 = vmul.f32 %v1734_v35, %v1933_v3  ;;  %v1737_v41 = vunpack.c.l.bf16 %v1775_v39 }
  0x41   :  { %v281_v40 = vadd.f32 %v1947_v9, %v210_v37  ;;  %v380_v42 = vpack.c.bf16 %v342_v6, %v341_v36  ;;  %v381_v43 = vpack.c.bf16 %v344_v25, %v343_v21  ;;  %v1738_v45 = vunpack.c.h.bf16 %v1775_v39 }
  0x42   :  { %v282_v44 = vadd.f32 %v1947_v9, %v211_v26  ;;  %v283_v46 = vadd.f32 %v1947_v9, %v212_v38  ;;  %v284_v20 = vadd.f32 %v1947_v9, %v213_v1  ;;  %v1741_v47 = vunpack.c.l.bf16 %v1776_v29 }
  0x43   :  { %v1742_v48 = vunpack.c.h.bf16 %v1776_v29  ;;  %v214_v49 = vmul.f32 %v1737_v41, %v1933_v3  ;;  %v345_v50 = vmax.f32 %v281_v40, 0.0  ;;  %v215_v52 = vmul.f32 %v1738_v45, %v1933_v3 }
  0x44   :  { %v346_v51 = vmax.f32 %v282_v44, 0.0  ;;  %v347_v30 = vmax.f32 %v283_v46, 0.0  ;;  %v348_v53 = vmax.f32 %v284_v20, 0.0  ;;  %v216_v54 = vmul.f32 %v1741_v47, %v1933_v3 }
  0x45   :  { %v217_v55 = vmul.f32 %v1742_v48, %v1933_v3  ;;  %v285_v34 = vadd.f32 %v1947_v9, %v214_v49  ;;  %v286_v57 = vadd.f32 %v1947_v9, %v215_v52  ;;  %v1745_v58 = vunpack.c.l.bf16 %v1777_v18 }
  0x46   :  { %1845 = vmatmul.mubr.msk.bf16.gmra.mxu0 %vm403_vm0, %v370_v10  ;;  %1861 = vmatmul.mubr.msk.bf16.gmra.mxu1 %vm403_vm0, %v378_v19  ;;  %v382_v56 = vpack.c.bf16 %v346_v51, %v345_v50  ;;  %v1746_v59 = vunpack.c.h.bf16 %v1777_v18  ;;  %v383_v60 = vpack.c.bf16 %v348_v53, %v347_v30  ;;  %v287_v61 = vadd.f32 %v1947_v9, %v216_v54 }
  0x47   :  { %1864 = vmatprep.mubr.msk.bf16.mxu1 %vm403_vm0, %v379_v32  ;;  %v288_v62 = vadd.f32 %v1947_v9, %v217_v55  ;;  %v349_v63 = vmax.f32 %v285_v34, 0.0  ;;  %v350_v0 = vmax.f32 %v286_v57, 0.0  ;;  %v218_v2 = vmul.f32 %v1745_v58, %v1933_v3 }
  0x48   :  { %v219_v4 = vmul.f32 %v1746_v59, %v1933_v3  ;;  %v351_v5 = vmax.f32 %v287_v61, 0.0 }
  0x49   :  { %v352_v7 = vmax.f32 %v288_v62, 0.0  ;;  %v384_v8 = vpack.c.bf16 %v350_v0, %v349_v63  ;;  %v289_v10 = vadd.f32 %v1947_v9, %v218_v2 }
  0x4a   :  { %v290_v11 = vadd.f32 %v1947_v9, %v219_v4 }
  0x4b   :  { %v385_v12 = vpack.c.bf16 %v352_v7, %v351_v5  ;;  %v353_v13 = vmax.f32 %v289_v10, 0.0 }
  0x4c   :  { %v354_v14 = vmax.f32 %v290_v11, 0.0 }
  0x4e   :  { %1865 = vmatmul.mubr.msk.bf16.gmra.mxu1 %vm403_vm0, %v380_v42  ;;  %v386_v15 = vpack.c.bf16 %v354_v14, %v353_v13 }
  0x4f   :  { %1868 = vmatprep.mubr.msk.bf16.mxu1 %vm403_vm0, %v381_v43 }
  0x56   :  { %1869 = vmatmul.mubr.msk.bf16.gmra.mxu1 %vm403_vm0, %v382_v56 }
  0x57   :  { %1872 = vmatprep.mubr.msk.bf16.mxu1 %vm403_vm0, %v383_v60 }
  0x5e   :  { %1873 = vmatmul.mubr.msk.bf16.gmra.mxu1 %vm403_vm0, %v384_v8 }
  0x5f   :  { %1876 = vmatprep.mubr.msk.bf16.mxu1 %vm403_vm0, %v385_v12 }
  0x66   :  { %1877 = vmatmul.mubr.msk.bf16.gmra.mxu1 %vm403_vm0, %v386_v15 }
  0xce   :  { %v1818_v3 = vpop.f32.mrf.mxu0 }
  0xcf   :  { %v1557_v16 = vpack.c.bf16 %v1818_v3, %v1818_v3  ;;  %v1247_v24 = vmul.f32 %v1818_v3, %v1818_v3  ;;  %v1113_v35 = vsel %vm403_vm0, %v1818_v3, 0.0 }
  0xd0   :  { %v534_v17 = vpop.f32.mrf.mxu0 }
  0xd1   :  { %1048 = vst.msk [vmem:[%s2845_s4 + $0x8] sm:$0xf] %vm1045_vm1, %v1557_v16  ;;  %v1555_v9 = vpack.c.bf16 %v534_v17, %v534_v17  ;;  %v1245_v22 = vmul.f32 %v534_v17, %v534_v17  ;;  %v1110_v28 = vsel %vm403_vm0, %v534_v17, 0.0  ;;  %v1312_v29 = vsel %vm403_vm0, %v1247_v24, 0.0 }
  0xd2   :  { %v1819_v19 = vpop.f32.mrf.mxu0 }
  0xd3   :  { %1046 = vst.msk [vmem:[%s2845_s4] sm:$0xf] %vm1045_vm1, %v1555_v9  ;;  %v1558_v23 = vpack.c.bf16 %v1819_v19, %v1819_v19  ;;  %v1309_v6 = vsel %vm403_vm0, %v1245_v22, 0.0  ;;  %v1248_v21 = vmul.f32 %v1819_v19, %v1819_v19  ;;  %v1115_v40 = vsel %vm403_vm0, %v1819_v19, 0.0 }
  0xd4   :  { %v537_v27 = vpop.f32.mrf.mxu0 }
  0xd5   :  { %1049 = vst.msk [vmem:[%s2845_s4 + $0xc] sm:$0xf] %vm1045_vm1, %v1558_v23  ;;  %v1556_v31 = vpack.c.bf16 %v537_v27, %v537_v27  ;;  %v1111_v32 = vsel %vm403_vm0, %v537_v27, 0.0  ;;  %v1246_v33 = vmul.f32 %v537_v27, %v537_v27  ;;  %v1314_v46 = vsel %vm403_vm0, %v1248_v21, 0.0 }
  0xd6   :  { %v1112_v36 = vadd.f32 %v1111_v32, %v1110_v28  ;;  %v1822_v37 = vpop.f32.mrf.mxu0 }
  0xd7   :  { %1047 = vst.msk [vmem:[%s2845_s4 + $0x4] sm:$0xf] %vm1045_vm1, %v1556_v31  ;;  %v1310_v25 = vsel %vm403_vm0, %v1246_v33, 0.0  ;;  %v1561_v26 = vpack.c.bf16 %v1822_v37, %v1822_v37  ;;  %v1251_v48 = vmul.f32 %v1822_v37, %v1822_v37  ;;  %v1121_v56 = vsel %vm403_vm0, %v1822_v37, 0.0 }
  0xd8   :  { %v1114_v39 = vadd.f32 %v1113_v35, %v1112_v36  ;;  %v1311_v38 = vadd.f32 %v1310_v25, %v1309_v6  ;;  %v550_v1 = vpop.f32.mrf.mxu0 }
  0xd9   :  { %1052 = vst.msk [vmem:[%s2845_s4 + $0x18] sm:$0xf] %vm1045_vm1, %v1561_v26  ;;  %v1559_v41 = vpack.c.bf16 %v550_v1, %v550_v1  ;;  %v1249_v42 = vmul.f32 %v550_v1, %v550_v1  ;;  %v1117_v20 = vsel %vm403_vm0, %v550_v1, 0.0  ;;  %v1320_v63 = vsel %vm403_vm0, %v1251_v48, 0.0 }
  0xda   :  { %v1313_v43 = vadd.f32 %v1312_v29, %v1311_v38  ;;  %v1116_v44 = vadd.f32 %v1115_v40, %v1114_v39  ;;  %v1823_v45 = vpop.f32.mrf.mxu0 }
  0xdb   :  { %1050 = vst.msk [vmem:[%s2845_s4 + $0x10] sm:$0xf] %vm1045_vm1, %v1559_v41  ;;  %v1562_v47 = vpack.c.bf16 %v1823_v45, %v1823_v45  ;;  %v1316_v52 = vsel %vm403_vm0, %v1249_v42, 0.0  ;;  %v1252_v57 = vmul.f32 %v1823_v45, %v1823_v45  ;;  %v1123_v0 = vsel %vm403_vm0, %v1823_v45, 0.0 }
  0xdc   :  { %v1118_v49 = vadd.f32 %v1117_v20, %v1116_v44  ;;  %v1315_v50 = vadd.f32 %v1314_v46, %v1313_v43  ;;  %v553_v51 = vpop.f32.mrf.mxu0 }
  0xdd   :  { %1053 = vst.msk [vmem:[%s2845_s4 + $0x1c] sm:$0xf] %vm1045_vm1, %v1562_v47  ;;  %v1560_v30 = vpack.c.bf16 %v553_v51, %v553_v51  ;;  %v1119_v53 = vsel %vm403_vm0, %v553_v51, 0.0  ;;  %v1250_v54 = vmul.f32 %v553_v51, %v553_v51  ;;  %v1322_v10 = vsel %vm403_vm0, %v1252_v57, 0.0 }
  0xde   :  { %v1317_v55 = vadd.f32 %v1316_v52, %v1315_v50  ;;  %v1120_v18 = vadd.f32 %v1119_v53, %v1118_v49  ;;  %v1826_v34 = vpop.f32.mrf.mxu0 }
  0xdf   :  { %1051 = vst.msk [vmem:[%s2845_s4 + $0x14] sm:$0xf] %vm1045_vm1, %v1560_v30  ;;  %v1318_v58 = vsel %vm403_vm0, %v1250_v54, 0.0  ;;  %v1565_v59 = vpack.c.bf16 %v1826_v34, %v1826_v34  ;;  %v1255_v13 = vmul.f32 %v1826_v34, %v1826_v34  ;;  %v1129_v27 = vsel %vm403_vm0, %v1826_v34, 0.0 }
  0xe0   :  { %v1122_v60 = vadd.f32 %v1121_v56, %v1120_v18  ;;  %v1319_v61 = vadd.f32 %v1318_v58, %v1317_v55  ;;  %v566_v62 = vpop.f32.mrf.mxu0 }
  0xe1   :  { %1056 = vst.msk [vmem:[%s2845_s4 + $0x28] sm:$0xf] %vm1045_vm1, %v1565_v59  ;;  %v1563_v2 = vpack.c.bf16 %v566_v62, %v566_v62  ;;  %v1253_v4 = vmul.f32 %v566_v62, %v566_v62  ;;  %v1125_v11 = vsel %vm403_vm0, %v566_v62, 0.0  ;;  %v1328_v37 = vsel %vm403_vm0, %v1255_v13, 0.0 }
  0xe2   :  { %v1321_v5 = vadd.f32 %v1320_v63, %v1319_v61  ;;  %v1124_v7 = vadd.f32 %v1123_v0, %v1122_v60  ;;  %v1827_v8 = vpop.f32.mrf.mxu0 }
  0xe3   :  { %1054 = vst.msk [vmem:[%s2845_s4 + $0x20] sm:$0xf] %vm1045_vm1, %v1563_v2  ;;  %v1566_v12 = vpack.c.bf16 %v1827_v8, %v1827_v8  ;;  %v1324_v16 = vsel %vm403_vm0, %v1253_v4, 0.0  ;;  %v1256_v28 = vmul.f32 %v1827_v8, %v1827_v8  ;;  %v1131_v6 = vsel %vm403_vm0, %v1827_v8, 0.0 }
  0xe4   :  { %v1126_v14 = vadd.f32 %v1125_v11, %v1124_v7  ;;  %v1323_v15 = vadd.f32 %v1322_v10, %v1321_v5  ;;  %v569_v3 = vpop.f32.mrf.mxu0 }
  0xe5   :  { %1057 = vst.msk [vmem:[%s2845_s4 + $0x2c] sm:$0xf] %vm1045_vm1, %v1566_v12  ;;  %v1564_v17 = vpack.c.bf16 %v569_v3, %v569_v3  ;;  %v1127_v9 = vsel %vm403_vm0, %v569_v3, 0.0  ;;  %v1254_v19 = vmul.f32 %v569_v3, %v569_v3  ;;  %v1330_v1 = vsel %vm403_vm0, %v1256_v28, 0.0 }
  0xe6   :  { %v1325_v22 = vadd.f32 %v1324_v16, %v1323_v15  ;;  %v1128_v23 = vadd.f32 %v1127_v9, %v1126_v14  ;;  %v1830_v24 = vpop.f32.mrf.mxu0 }
  0xe7   :  { %1055 = vst.msk [vmem:[%s2845_s4 + $0x24] sm:$0xf] %vm1045_vm1, %v1564_v17  ;;  %v1326_v31 = vsel %vm403_vm0, %v1254_v19, 0.0  ;;  %v1569_v32 = vpack.c.bf16 %v1830_v24, %v1830_v24  ;;  %v1259_v41 = vmul.f32 %v1830_v24, %v1830_v24  ;;  %v1137_v51 = vsel %vm403_vm0, %v1830_v24, 0.0 }
  0xe8   :  { %v1130_v33 = vadd.f32 %v1129_v27, %v1128_v23  ;;  %v1327_v35 = vadd.f32 %v1326_v31, %v1325_v22  ;;  %v582_v36 = vpop.f32.mrf.mxu0 }
  0xe9   :  { %1060 = vst.msk [vmem:[%s2845_s4 + $0x38] sm:$0xf] %vm1045_vm1, %v1569_v32  ;;  %v1567_v21 = vpack.c.bf16 %v582_v36, %v582_v36  ;;  %v1257_v25 = vmul.f32 %v582_v36, %v582_v36  ;;  %v1133_v29 = vsel %vm403_vm0, %v582_v36, 0.0  ;;  %v1336_v34 = vsel %vm403_vm0, %v1259_v41, 0.0 }
  0xea   :  { %v1329_v26 = vadd.f32 %v1328_v37, %v1327_v35  ;;  %v1132_v39 = vadd.f32 %v1131_v6, %v1130_v33  ;;  %v1831_v38 = vpop.f32.mrf.mxu0 }
  0xeb   :  { %1058 = vst.msk [vmem:[%s2845_s4 + $0x30] sm:$0xf] %vm1045_vm1, %v1567_v21  ;;  %v1570_v40 = vpack.c.bf16 %v1831_v38, %v1831_v38  ;;  %v1332_v45 = vsel %vm403_vm0, %v1257_v25, 0.0  ;;  %v1260_v52 = vmul.f32 %v1831_v38, %v1831_v38  ;;  %v1139_v56 = vsel %vm403_vm0, %v1831_v38, 0.0 }
  0xec   :  { %v1134_v42 = vadd.f32 %v1133_v29, %v1132_v39  ;;  %v1331_v43 = vadd.f32 %v1330_v1, %v1329_v26  ;;  %v585_v44 = vpop.f32.mrf.mxu0 }
  0xed   :  { %1061 = vst.msk [vmem:[%s2845_s4 + $0x3c] sm:$0xf] %vm1045_vm1, %v1570_v40  ;;  %v1568_v46 = vpack.c.bf16 %v585_v44, %v585_v44  ;;  %v1135_v20 = vsel %vm403_vm0, %v585_v44, 0.0  ;;  %v1258_v47 = vmul.f32 %v585_v44, %v585_v44  ;;  %v1338_v63 = vsel %vm403_vm0, %v1260_v52, 0.0 }
  0xee   :  { %v1333_v48 = vadd.f32 %v1332_v45, %v1331_v43  ;;  %v1136_v49 = vadd.f32 %v1135_v20, %v1134_v42  ;;  %v1834_v50 = vpop.f32.mrf.mxu0  ;;  %v2326_v62 = vpop.f32.mrf.mxu1 }
  0xef   :  { %1059 = vst.msk [vmem:[%s2845_s4 + $0x34] sm:$0xf] %vm1045_vm1, %v1568_v46  ;;  %v1334_v30 = vsel %vm403_vm0, %v1258_v47, 0.0  ;;  %v1573_v53 = vpack.c.bf16 %v1834_v50, %v1834_v50  ;;  %v1263_v4 = vmul.f32 %v1834_v50, %v1834_v50  ;;  %v1589_v10 = vpack.c.bf16 %v2326_v62, %v2326_v62 }
  0xf0   :  { %v1138_v54 = vadd.f32 %v1137_v51, %v1136_v49  ;;  %v1335_v55 = vadd.f32 %v1334_v30, %v1333_v48  ;;  %v598_v18 = vpop.f32.mrf.mxu0  ;;  %v2336_v11 = vpop.f32.mrf.mxu1  ;;  %v1145_v22 = vsel %vm403_vm0, %v1834_v50, 0.0 }
  0xf1   :  { %1064 = vst.msk [vmem:[%s2845_s4 + $0x48] sm:$0xf] %vm1045_vm1, %v1573_v53  ;;  %v1571_v57 = vpack.c.bf16 %v598_v18, %v598_v18  ;;  %v1261_v58 = vmul.f32 %v598_v18, %v598_v18  ;;  %v1141_v0 = vsel %vm403_vm0, %v598_v18, 0.0  ;;  %1080 = vst.msk [vmem:[%s2845_s4 + $0x88] sm:$0xf] %vm1045_vm1, %v1589_v10  ;;  %v1587_v9 = vpack.c.bf16 %v2336_v11, %v2336_v11 }
  0xf2   :  { %v1337_v59 = vadd.f32 %v1336_v34, %v1335_v55  ;;  %v1140_v60 = vadd.f32 %v1139_v56, %v1138_v54  ;;  %v1835_v61 = vpop.f32.mrf.mxu0  ;;  %v2350_v19 = vpop.f32.mrf.mxu1  ;;  %v1344_v35 = vsel %vm403_vm0, %v1263_v4, 0.0 }
  0xf3   :  { %1062 = vst.msk [vmem:[%s2845_s4 + $0x40] sm:$0xf] %vm1045_vm1, %v1571_v57  ;;  %v1574_v2 = vpack.c.bf16 %v1835_v61, %v1835_v61  ;;  %v1340_v12 = vsel %vm403_vm0, %v1261_v58, 0.0  ;;  %v1264_v23 = vmul.f32 %v1835_v61, %v1835_v61  ;;  %1078 = vst.msk [vmem:[%s2845_s4 + $0x80] sm:$0xf] %vm1045_vm1, %v1587_v9  ;;  %v1147_v36 = vsel %vm403_vm0, %v1835_v61, 0.0 }
  0xf4   :  { %v1142_v5 = vadd.f32 %v1141_v0, %v1140_v60  ;;  %v1339_v7 = vadd.f32 %v1338_v63, %v1337_v59  ;;  %v601_v8 = vpop.f32.mrf.mxu0  ;;  %v2362_v33 = vpop.f32.mrf.mxu1  ;;  %v1590_v39 = vpack.c.bf16 %v2350_v19, %v2350_v19 }
  0xf5   :  { %1065 = vst.msk [vmem:[%s2845_s4 + $0x4c] sm:$0xf] %vm1045_vm1, %v1574_v2  ;;  %v1572_v13 = vpack.c.bf16 %v601_v8, %v601_v8  ;;  %v1143_v14 = vsel %vm403_vm0, %v601_v8, 0.0  ;;  %v1262_v15 = vmul.f32 %v601_v8, %v601_v8  ;;  %v1346_v1 = vsel %vm403_vm0, %v1264_v23, 0.0 }
  0xf6   :  { %v1341_v3 = vadd.f32 %v1340_v12, %v1339_v7  ;;  %v1144_v16 = vadd.f32 %v1143_v14, %v1142_v5  ;;  %v1838_v17 = vpop.f32.mrf.mxu0  ;;  %v2372_v38 = vpop.f32.mrf.mxu1  ;;  %1081 = vst.msk [vmem:[%s2845_s4 + $0x8c] sm:$0xf] %vm1045_vm1, %v1590_v39  ;;  %v1588_v52 = vpack.c.bf16 %v2362_v33, %v2362_v33 }
  0xf7   :  { %1063 = vst.msk [vmem:[%s2845_s4 + $0x44] sm:$0xf] %vm1045_vm1, %v1572_v13  ;;  %v1342_v24 = vsel %vm403_vm0, %v1262_v15, 0.0  ;;  %v1577_v27 = vpack.c.bf16 %v1838_v17, %v1838_v17  ;;  %v1267_v41 = vmul.f32 %v1838_v17, %v1838_v17  ;;  %v1153_v53 = vsel %vm403_vm0, %v1838_v17, 0.0 }
  0xf8   :  { %v1146_v28 = vadd.f32 %v1145_v22, %v1144_v16  ;;  %v1343_v31 = vadd.f32 %v1342_v24, %v1341_v3  ;;  %v614_v32 = vpop.f32.mrf.mxu0  ;;  %v2384_v45 = vpop.f32.mrf.mxu1  ;;  %1079 = vst.msk [vmem:[%s2845_s4 + $0x84] sm:$0xf] %vm1045_vm1, %v1588_v52  ;;  %v1593_v5 = vpack.c.bf16 %v2372_v38, %v2372_v38 }
  0xf9   :  { %1068 = vst.msk [vmem:[%s2845_s4 + $0x58] sm:$0xf] %vm1045_vm1, %v1577_v27  ;;  %v1575_v37 = vpack.c.bf16 %v614_v32, %v614_v32  ;;  %v1265_v6 = vmul.f32 %v614_v32, %v614_v32  ;;  %v1149_v29 = vsel %vm403_vm0, %v614_v32, 0.0  ;;  %v1352_v59 = vsel %vm403_vm0, %v1267_v41, 0.0 }
  0xfa   :  { %v1345_v21 = vadd.f32 %v1344_v35, %v1343_v31  ;;  %v1148_v25 = vadd.f32 %v1147_v36, %v1146_v28  ;;  %v1839_v26 = vpop.f32.mrf.mxu0  ;;  %v2394_v30 = vpop.f32.mrf.mxu1  ;;  %1084 = vst.msk [vmem:[%s2845_s4 + $0x98] sm:$0xf] %vm1045_vm1, %v1593_v5  ;;  %v1591_v31 = vpack.c.bf16 %v2384_v45, %v2384_v45 }
  0xfb   :  { %1066 = vst.msk [vmem:[%s2845_s4 + $0x50] sm:$0xf] %vm1045_vm1, %v1575_v37  ;;  %v1578_v40 = vpack.c.bf16 %v1839_v26, %v1839_v26  ;;  %v1348_v46 = vsel %vm403_vm0, %v1265_v6, 0.0  ;;  %v1268_v54 = vmul.f32 %v1839_v26, %v1839_v26  ;;  %v1155_v60 = vsel %vm403_vm0, %v1839_v26, 0.0 }
  0xfc   :  { %v1150_v42 = vadd.f32 %v1149_v29, %v1148_v25  ;;  %v1347_v43 = vadd.f32 %v1346_v1, %v1345_v21  ;;  %v617_v44 = vpop.f32.mrf.mxu0  ;;  %v2406_v58 = vpop.f32.mrf.mxu1  ;;  %1082 = vst.msk [vmem:[%s2845_s4 + $0x90] sm:$0xf] %vm1045_vm1, %v1591_v31 }
  0xfd   :  { %1069 = vst.msk [vmem:[%s2845_s4 + $0x5c] sm:$0xf] %vm1045_vm1, %v1578_v40  ;;  %v1576_v20 = vpack.c.bf16 %v617_v44, %v617_v44  ;;  %v1151_v47 = vsel %vm403_vm0, %v617_v44, 0.0  ;;  %v1266_v48 = vmul.f32 %v617_v44, %v617_v44  ;;  %v1354_v8 = vsel %vm403_vm0, %v1268_v54, 0.0 }
  0xfe   :  { %v1349_v49 = vadd.f32 %v1348_v46, %v1347_v43  ;;  %v1152_v50 = vadd.f32 %v1151_v47, %v1150_v42  ;;  %v1842_v51 = vpop.f32.mrf.mxu0  ;;  %v2416_v7 = vpop.f32.mrf.mxu1  ;;  %v1594_v46 = vpack.c.bf16 %v2394_v30, %v2394_v30 }
  0xff   :  { %1067 = vst.msk [vmem:[%s2845_s4 + $0x54] sm:$0xf] %vm1045_vm1, %v1576_v20  ;;  %v1350_v55 = vsel %vm403_vm0, %v1266_v48, 0.0  ;;  %v1581_v18 = vpack.c.bf16 %v1842_v51, %v1842_v51  ;;  %v1271_v13 = vmul.f32 %v1842_v51, %v1842_v51  ;;  %v1161_v35 = vsel %vm403_vm0, %v1842_v51, 0.0 }
 0x100   :  { %v1154_v34 = vadd.f32 %v1153_v53, %v1152_v50  ;;  %v1351_v56 = vadd.f32 %v1350_v55, %v1349_v49  ;;  %v630_v57 = vpop.f32.mrf.mxu0  ;;  %v2428_v16 = vpop.f32.mrf.mxu1  ;;  %1085 = vst.msk [vmem:[%s2845_s4 + $0x9c] sm:$0xf] %vm1045_vm1, %v1594_v46 }
 0x101   :  { %1072 = vst.msk [vmem:[%s2845_s4 + $0x68] sm:$0xf] %vm1045_vm1, %v1581_v18  ;;  %v1579_v61 = vpack.c.bf16 %v630_v57, %v630_v57  ;;  %v1269_v63 = vmul.f32 %v630_v57, %v630_v57  ;;  %v1157_v10 = vsel %vm403_vm0, %v630_v57, 0.0  ;;  %v1360_v1 = vsel %vm403_vm0, %v1271_v13, 0.0 }
 0x102   :  { %v1353_v0 = vadd.f32 %v1352_v59, %v1351_v56  ;;  %v1156_v2 = vadd.f32 %v1155_v60, %v1154_v34  ;;  %v1843_v4 = vpop.f32.mrf.mxu0  ;;  %v2438_v32 = vpop.f32.mrf.mxu1  ;;  %v1592_v60 = vpack.c.bf16 %v2406_v58, %v2406_v58 }
 0x103   :  { %1070 = vst.msk [vmem:[%s2845_s4 + $0x60] sm:$0xf] %vm1045_vm1, %v1579_v61  ;;  %v1582_v12 = vpack.c.bf16 %v1843_v4, %v1843_v4  ;;  %v1356_v17 = vsel %vm403_vm0, %v1269_v63, 0.0  ;;  %v1272_v36 = vmul.f32 %v1843_v4, %v1843_v4  ;;  %v1163_v29 = vsel %vm403_vm0, %v1843_v4, 0.0 }
 0x104   :  { %v1158_v14 = vadd.f32 %v1157_v10, %v1156_v2  ;;  %v1355_v15 = vadd.f32 %v1354_v8, %v1353_v0  ;;  %v633_v3 = vpop.f32.mrf.mxu0  ;;  %v2450_v39 = vpop.f32.mrf.mxu1  ;;  %v1597_v4 = vpack.c.bf16 %v2416_v7, %v2416_v7  ;;  %1083 = vst.msk [vmem:[%s2845_s4 + $0x94] sm:$0xf] %vm1045_vm1, %v1592_v60 }
 0x105   :  { %1073 = vst.msk [vmem:[%s2845_s4 + $0x6c] sm:$0xf] %vm1045_vm1, %v1582_v12  ;;  %v1580_v9 = vpack.c.bf16 %v633_v3, %v633_v3  ;;  %v1159_v22 = vsel %vm403_vm0, %v633_v3, 0.0  ;;  %v1270_v23 = vmul.f32 %v633_v3, %v633_v3  ;;  %v1362_v47 = vsel %vm403_vm0, %v1272_v36, 0.0 }
 0x106   :  { %v1357_v24 = vadd.f32 %v1356_v17, %v1355_v15  ;;  %v1160_v27 = vadd.f32 %v1159_v22, %v1158_v14  ;;  %v1846_v28 = vpop.f32.mrf.mxu0  ;;  %v2460_v20 = vpop.f32.mrf.mxu1  ;;  %v1277_v14 = vmul.f32 %v2336_v11, %v2336_v11  ;;  %1088 = vst.msk [vmem:[%s2845_s4 + $0xa8] sm:$0xf] %vm1045_vm1, %v1597_v4  ;;  %v1595_v15 = vpack.c.bf16 %v2428_v16, %v2428_v16 }
 0x107   :  { %1071 = vst.msk [vmem:[%s2845_s4 + $0x64] sm:$0xf] %vm1045_vm1, %v1580_v9  ;;  %v1358_v37 = vsel %vm403_vm0, %v1270_v23, 0.0  ;;  %v1585_v6 = vpack.c.bf16 %v1846_v28, %v1846_v28  ;;  %v1275_v50 = vmul.f32 %v1846_v28, %v1846_v28  ;;  %v1169_v63 = vsel %vm403_vm0, %v1846_v28, 0.0 }
 0x108   :  { %v1162_v21 = vadd.f32 %v1161_v35, %v1160_v27  ;;  %v1359_v25 = vadd.f32 %v1358_v37, %v1357_v24  ;;  %v646_v26 = vpop.f32.mrf.mxu0  ;;  %v2472_v54 = vpop.f32.mrf.mxu1  ;;  %v1598_v9 = vpack.c.bf16 %v2438_v32, %v2438_v32  ;;  %v1173_v24 = vsel %vm403_vm0, %v2336_v11, 0.0  ;;  %1086 = vst.msk [vmem:[%s2845_s4 + $0xa0] sm:$0xf] %vm1045_vm1, %v1595_v15 }
 0x109   :  { %1076 = vst.msk [vmem:[%s2845_s4 + $0x78] sm:$0xf] %vm1045_vm1, %v1585_v6  ;;  %v1583_v40 = vpack.c.bf16 %v646_v26, %v646_v26  ;;  %v1273_v41 = vmul.f32 %v646_v26, %v646_v26  ;;  %v1165_v48 = vsel %vm403_vm0, %v646_v26, 0.0  ;;  %v1368_v12 = vsel %vm403_vm0, %v1275_v50, 0.0 }
 0x10a   :  { %v1361_v42 = vadd.f32 %v1360_v1, %v1359_v25  ;;  %v1164_v43 = vadd.f32 %v1163_v29, %v1162_v21  ;;  %v1847_v44 = vpop.f32.mrf.mxu0  ;;  %v2482_v61 = vpop.f32.mrf.mxu1  ;;  %v1278_v27 = vmul.f32 %v2362_v33, %v2362_v33  ;;  %v1596_v28 = vpack.c.bf16 %v2450_v39, %v2450_v39  ;;  %1089 = vst.msk [vmem:[%s2845_s4 + $0xac] sm:$0xf] %vm1045_vm1, %v1598_v9 }
 0x10b   :  { %1074 = vst.msk [vmem:[%s2845_s4 + $0x70] sm:$0xf] %vm1045_vm1, %v1583_v40  ;;  %v1586_v49 = vpack.c.bf16 %v1847_v44, %v1847_v44  ;;  %v1364_v55 = vsel %vm403_vm0, %v1273_v41, 0.0  ;;  %v1276_v0 = vmul.f32 %v1847_v44, %v1847_v44  ;;  %v1171_v13 = vsel %vm403_vm0, %v1847_v44, 0.0 }
 0x10c   :  { %v1166_v51 = vadd.f32 %v1165_v48, %v1164_v43  ;;  %v1363_v52 = vadd.f32 %v1362_v47, %v1361_v42  ;;  %v649_v53 = vpop.f32.mrf.mxu0  ;;  %v2496_v10 = vpop.f32.mrf.mxu1  ;;  %v1279_v11 = vmul.f32 %v2326_v62, %v2326_v62  ;;  %v1372_v37 = vsel %vm403_vm0, %v1277_v14, 0.0  ;;  %1087 = vst.msk [vmem:[%s2845_s4 + $0xa4] sm:$0xf] %vm1045_vm1, %v1596_v28 }
 0x10d   :  { %1077 = vst.msk [vmem:[%s2845_s4 + $0x7c] sm:$0xf] %vm1045_vm1, %v1586_v49  ;;  %v1584_v18 = vpack.c.bf16 %v649_v53, %v649_v53  ;;  %v1167_v34 = vsel %vm403_vm0, %v649_v53, 0.0  ;;  %v1274_v56 = vmul.f32 %v649_v53, %v649_v53  ;;  %v1370_v23 = vsel %vm403_vm0, %v1276_v0, 0.0 }
 0x10e   :  { %v1365_v57 = vadd.f32 %v1364_v55, %v1363_v52  ;;  %v1168_v59 = vadd.f32 %v1167_v34, %v1166_v51  ;;  %v2510_v22 = vpop.f32.mrf.mxu1  ;;  %v1175_v6 = vsel %vm403_vm0, %v2362_v33, 0.0  ;;  %v1601_v21 = vpack.c.bf16 %v2460_v20, %v2460_v20 }
 0x10f   :  { %1075 = vst.msk [vmem:[%s2845_s4 + $0x74] sm:$0xf] %vm1045_vm1, %v1584_v18  ;;  %v1366_v2 = vsel %vm403_vm0, %v1274_v56, 0.0  ;;  %v1599_v1 = vpack.c.bf16 %v2472_v54, %v2472_v54  ;;  %v1177_v40 = vsel %vm403_vm0, %v2326_v62, 0.0  ;;  %v1280_v33 = vmul.f32 %v2350_v19, %v2350_v19 }
 0x110   :  { %v1170_v5 = vadd.f32 %v1169_v63, %v1168_v59  ;;  %v1367_v8 = vadd.f32 %v1366_v2, %v1365_v57  ;;  %v2527_v36 = vpop.f32.mrf.mxu1  ;;  %v1374_v41 = vsel %vm403_vm0, %v1278_v27, 0.0  ;;  %1092 = vst.msk [vmem:[%s2845_s4 + $0xb8] sm:$0xf] %vm1045_vm1, %v1601_v21  ;;  %v1602_v42 = vpack.c.bf16 %v2482_v61, %v2482_v61 }
 0x111   :  { %1090 = vst.msk [vmem:[%s2845_s4 + $0xb0] sm:$0xf] %vm1045_vm1, %v1599_v1  ;;  %v1376_v46 = vsel %vm403_vm0, %v1279_v11, 0.0  ;;  %v1179_v47 = vsel %vm403_vm0, %v2350_v19, 0.0  ;;  %v1281_v48 = vmul.f32 %v2384_v45, %v2384_v45  ;;  %v1600_v49 = vpack.c.bf16 %v2496_v10, %v2496_v10 }
 0x112   :  { %v1172_v3 = vadd.f32 %v1171_v13, %v1170_v5  ;;  %v1369_v17 = vadd.f32 %v1368_v12, %v1367_v8  ;;  %v2542_v29 = vpop.f32.mrf.mxu1  ;;  %1093 = vst.msk [vmem:[%s2845_s4 + $0xbc] sm:$0xf] %vm1045_vm1, %v1602_v42  ;;  %v1605_v52 = vpack.c.bf16 %v2510_v22, %v2510_v22  ;;  %v1378_v19 = vsel %vm403_vm0, %v1280_v33, 0.0 }
 0x113   :  { %v1181_v55 = vsel %vm403_vm0, %v2384_v45, 0.0  ;;  %v1282_v18 = vmul.f32 %v2406_v58, %v2406_v58  ;;  %1091 = vst.msk [vmem:[%s2845_s4 + $0xb4] sm:$0xf] %vm1045_vm1, %v1600_v49  ;;  %v1603_v34 = vpack.c.bf16 %v2527_v36, %v2527_v36  ;;  %v1283_v45 = vmul.f32 %v2372_v38, %v2372_v38 }
 0x114   :  { %v1371_v31 = vadd.f32 %v1370_v23, %v1369_v17  ;;  %v1174_v35 = vadd.f32 %v1173_v24, %v1172_v3  ;;  %v2559_v62 = vpop.f32.mrf.mxu1  ;;  %1096 = vst.msk [vmem:[%s2845_s4 + $0xc8] sm:$0xf] %vm1045_vm1, %v1605_v52  ;;  %v1380_v60 = vsel %vm403_vm0, %v1281_v48, 0.0  ;;  %v1183_v63 = vsel %vm403_vm0, %v2406_v58, 0.0 }
 0x115   :  { %1094 = vst.msk [vmem:[%s2845_s4 + $0xc0] sm:$0xf] %vm1045_vm1, %v1603_v34  ;;  %v1606_v0 = vpack.c.bf16 %v2542_v29, %v2542_v29  ;;  %v1604_v5 = vpack.c.bf16 %v2559_v62, %v2559_v62  ;;  %v1185_v12 = vsel %vm403_vm0, %v2372_v38, 0.0  ;;  %v1284_v58 = vmul.f32 %v2394_v30, %v2394_v30 }
 0x116   :  { %v1176_v25 = vadd.f32 %v1175_v6, %v1174_v35  ;;  %v1373_v26 = vadd.f32 %v1372_v37, %v1371_v31  ;;  %v2574_v53 = vpop.f32.mrf.mxu1  ;;  %v1382_v13 = vsel %vm403_vm0, %v1282_v18, 0.0  ;;  %v1384_v17 = vsel %vm403_vm0, %v1283_v45, 0.0 }
 0x117   :  { %1097 = vst.msk [vmem:[%s2845_s4 + $0xcc] sm:$0xf] %vm1045_vm1, %v1606_v0  ;;  %v1609_v14 = vpack.c.bf16 %v2574_v53, %v2574_v53  ;;  %1095 = vst.msk [vmem:[%s2845_s4 + $0xc4] sm:$0xf] %vm1045_vm1, %v1604_v5  ;;  %v1187_v9 = vsel %vm403_vm0, %v2394_v30, 0.0  ;;  %v1285_v23 = vmul.f32 %v2428_v16, %v2428_v16  ;;  %v1386_v30 = vsel %vm403_vm0, %v1284_v58, 0.0 }
 0x118   :  { %v1178_v43 = vadd.f32 %v1177_v40, %v1176_v25  ;;  %v1375_v44 = vadd.f32 %v1374_v41, %v1373_v26  ;;  %v2591_v59 = vpop.f32.mrf.mxu1  ;;  %v1189_v11 = vsel %vm403_vm0, %v2428_v16, 0.0  ;;  %v1286_v37 = vmul.f32 %v2450_v39, %v2450_v39 }
 0x119   :  { %1100 = vst.msk [vmem:[%s2845_s4 + $0xd8] sm:$0xf] %vm1045_vm1, %v1609_v14  ;;  %v1607_v24 = vpack.c.bf16 %v2591_v59, %v2591_v59  ;;  %v1287_v16 = vmul.f32 %v2416_v7, %v2416_v7  ;;  %v1388_v1 = vsel %vm403_vm0, %v1285_v23, 0.0  ;;  %v1191_v40 = vsel %vm403_vm0, %v2450_v39, 0.0 }
 0x11a   :  { %v1377_v50 = vadd.f32 %v1376_v46, %v1375_v44  ;;  %v1180_v51 = vadd.f32 %v1179_v47, %v1178_v43  ;;  %v2606_v8 = vpop.f32.mrf.mxu1  ;;  %v1193_v46 = vsel %vm403_vm0, %v2416_v7, 0.0  ;;  %v1288_v39 = vmul.f32 %v2438_v32, %v2438_v32 }
 0x11b   :  { %v1610_v31 = vpack.c.bf16 %v2606_v8, %v2606_v8  ;;  %1098 = vst.msk [vmem:[%s2845_s4 + $0xd0] sm:$0xf] %vm1045_vm1, %v1607_v24  ;;  %v1390_v47 = vsel %vm403_vm0, %v1286_v37, 0.0  ;;  %v1195_v52 = vsel %vm403_vm0, %v2438_v32, 0.0  ;;  %v1197_v32 = vsel %vm403_vm0, %v2472_v54, 0.0 }
 0x11c   :  { %v1182_v56 = vadd.f32 %v1181_v55, %v1180_v51  ;;  %v1379_v57 = vadd.f32 %v1378_v19, %v1377_v50  ;;  %v2623_v38 = vpop.f32.mrf.mxu1  ;;  %v1392_v51 = vsel %vm403_vm0, %v1287_v16, 0.0  ;;  %v1289_v19 = vmul.f32 %v2472_v54, %v2472_v54 }
 0x11d   :  { %v1608_v6 = vpack.c.bf16 %v2623_v38, %v2623_v38  ;;  %1101 = vst.msk [vmem:[%s2845_s4 + $0xdc] sm:$0xf] %vm1045_vm1, %v1610_v31  ;;  %v1290_v45 = vmul.f32 %v2496_v10, %v2496_v10  ;;  %v1199_v5 = vsel %vm403_vm0, %v2496_v10, 0.0  ;;  %v1295_v16 = vmul.f32 %v2510_v22, %v2510_v22 }
 0x11e   :  { %v1381_v2 = vadd.f32 %v1380_v60, %v1379_v57  ;;  %v1184_v4 = vadd.f32 %v1183_v63, %v1182_v56  ;;  %v2638_v35 = vpop.f32.mrf.mxu1  ;;  %v1394_v57 = vsel %vm403_vm0, %v1288_v39, 0.0  ;;  %v1396_v54 = vsel %vm403_vm0, %v1289_v19, 0.0 }
 0x11f   :  { %1099 = vst.msk [vmem:[%s2845_s4 + $0xd4] sm:$0xf] %vm1045_vm1, %v1608_v6  ;;  %v1613_v33 = vpack.c.bf16 %v2638_v35, %v2638_v35  ;;  %v1398_v10 = vsel %vm403_vm0, %v1290_v45, 0.0  ;;  %v1205_v6 = vsel %vm403_vm0, %v2527_v36, 0.0  ;;  %v1217_v45 = vsel %vm403_vm0, %v2574_v53, 0.0 }
 0x120   :  { %v1186_v15 = vadd.f32 %v1185_v12, %v1184_v4  ;;  %v1383_v3 = vadd.f32 %v1382_v13, %v1381_v2  ;;  %v2655_v26 = vpop.f32.mrf.mxu1  ;;  %v1291_v4 = vmul.f32 %v2460_v20, %v2460_v20 }
 0x121   :  { %v1611_v43 = vpack.c.bf16 %v2655_v26, %v2655_v26  ;;  %1104 = vst.msk [vmem:[%s2845_s4 + $0xe8] sm:$0xf] %vm1045_vm1, %v1613_v33 }
 0x122   :  { %v1385_v27 = vadd.f32 %v1384_v17, %v1383_v3  ;;  %v1188_v28 = vadd.f32 %v1187_v9, %v1186_v15  ;;  %v2670_v44 = vpop.f32.mrf.mxu1  ;;  %v1201_v15 = vsel %vm403_vm0, %v2460_v20, 0.0  ;;  %v1292_v3 = vmul.f32 %v2482_v61, %v2482_v61 }
 0x123   :  { %v1614_v48 = vpack.c.bf16 %v2670_v44, %v2670_v44  ;;  %1102 = vst.msk [vmem:[%s2845_s4 + $0xe0] sm:$0xf] %vm1045_vm1, %v1611_v43  ;;  %v1203_v20 = vsel %vm403_vm0, %v2482_v61, 0.0  ;;  %v1294_v61 = vmul.f32 %v2559_v62, %v2559_v62 }
 0x124   :  { %v1190_v21 = vadd.f32 %v1189_v11, %v1188_v28  ;;  %v1387_v25 = vadd.f32 %v1386_v30, %v1385_v27  ;;  %v2687_v7 = vpop.f32.mrf.mxu1  ;;  %v1400_v27 = vsel %vm403_vm0, %v1291_v4, 0.0  ;;  %v1293_v28 = vmul.f32 %v2527_v36, %v2527_v36 }
 0x125   :  { %1105 = vst.msk [vmem:[%s2845_s4 + $0xec] sm:$0xf] %vm1045_vm1, %v1614_v48  ;;  %v1612_v55 = vpack.c.bf16 %v2687_v7, %v2687_v7  ;;  %v1402_v37 = vsel %vm403_vm0, %v1292_v3, 0.0  ;;  %v1406_v43 = vsel %vm403_vm0, %v1294_v61, 0.0  ;;  %v1211_v48 = vsel %vm403_vm0, %v2542_v29, 0.0 }
 0x126   :  { %v1389_v41 = vadd.f32 %v1388_v1, %v1387_v25  ;;  %v1192_v42 = vadd.f32 %v1191_v40, %v1190_v21  ;;  %v2700_v56 = vpop.f32.mrf.mxu1  ;;  %v1404_v1 = vsel %vm403_vm0, %v1293_v28, 0.0  ;;  %v1207_v40 = vsel %vm403_vm0, %v2559_v62, 0.0 }
 0x127   :  { %1103 = vst.msk [vmem:[%s2845_s4 + $0xe4] sm:$0xf] %vm1045_vm1, %v1612_v55  ;;  %v1617_v60 = vpack.c.bf16 %v2700_v56, %v2700_v56  ;;  %v1297_v62 = vmul.f32 %v2591_v59, %v2591_v59 }
 0x128   :  { %v1194_v49 = vadd.f32 %v1193_v46, %v1192_v42  ;;  %v1391_v50 = vadd.f32 %v1390_v47, %v1389_v41  ;;  %v2713_v2 = vpop.f32.mrf.mxu1  ;;  %v1209_v41 = vsel %vm403_vm0, %v2510_v22, 0.0  ;;  %v1296_v42 = vmul.f32 %v2542_v29, %v2542_v29 }
 0x129   :  { %1108 = vst.msk [vmem:[%s2845_s4 + $0xf8] sm:$0xf] %vm1045_vm1, %v1617_v60  ;;  %v1615_v12 = vpack.c.bf16 %v2713_v2, %v2713_v2  ;;  %v1408_v47 = vsel %vm403_vm0, %v1295_v16, 0.0  ;;  %v1213_v22 = vsel %vm403_vm0, %v2591_v59, 0.0  ;;  %v1412_v29 = vsel %vm403_vm0, %v1297_v62, 0.0 }
 0x12a   :  { %v1393_v18 = vadd.f32 %v1392_v51, %v1391_v50  ;;  %v1196_v34 = vadd.f32 %v1195_v52, %v1194_v49  ;;  %v2726_v14 = vpop.f32.mrf.mxu1  ;;  %v1410_v51 = vsel %vm403_vm0, %v1296_v42, 0.0  ;;  %v1298_v52 = vmul.f32 %v2623_v38, %v2623_v38 }
 0x12b   :  { %1106 = vst.msk [vmem:[%s2845_s4 + $0xf0] sm:$0xf] %vm1045_vm1, %v1615_v12  ;;  %v1618_v17 = vpack.c.bf16 %v2726_v14, %v2726_v14  ;;  %v1300_v59 = vmul.f32 %v2606_v8, %v2606_v8 }
 0x12c   :  { %v1198_v63 = vadd.f32 %v1197_v32, %v1196_v34  ;;  %v1395_v0 = vadd.f32 %v1394_v57, %v1393_v18  ;;  %v2739_v24 = vpop.f32.mrf.mxu1  ;;  %v1299_v18 = vmul.f32 %v2574_v53, %v2574_v53  ;;  %v1215_v34 = vsel %vm403_vm0, %v2623_v38, 0.0 }
 0x12d   :  { %1109 = vst.msk [vmem:[%s2845_s4 + $0xfc] sm:$0xf] %vm1045_vm1, %v1618_v17  ;;  %v1616_v31 = vpack.c.bf16 %v2739_v24, %v2739_v24  ;;  %v1414_v60 = vsel %vm403_vm0, %v1298_v52, 0.0  ;;  %v1301_v38 = vmul.f32 %v2655_v26, %v2655_v26  ;;  %v1221_v53 = vsel %vm403_vm0, %v2655_v26, 0.0 }
 0x12e   :  { %v1397_v58 = vadd.f32 %v1396_v54, %v1395_v0  ;;  %v1200_v13 = vadd.f32 %v1199_v5, %v1198_v63  ;;  %v1416_v4 = vsel %vm403_vm0, %v1299_v18, 0.0  ;;  %v1219_v54 = vsel %vm403_vm0, %v2606_v8, 0.0 }
 0x12f   :  { %1107 = vst.msk [vmem:[%s2845_s4 + $0xf4] sm:$0xf] %vm1045_vm1, %v1616_v31  ;;  %v1420_v8 = vsel %vm403_vm0, %v1301_v38, 0.0  ;;  %v1223_v17 = vsel %vm403_vm0, %v2687_v7, 0.0  ;;  %v1304_v26 = vmul.f32 %v2670_v44, %v2670_v44 }
 0x130   :  { %v1202_v9 = vadd.f32 %v1201_v15, %v1200_v13  ;;  %v1399_v23 = vadd.f32 %v1398_v10, %v1397_v58  ;;  %v1418_v58 = vsel %vm403_vm0, %v1300_v59, 0.0  ;;  %v1302_v13 = vmul.f32 %v2687_v7, %v2687_v7 }
 0x131   :  { %v1303_v10 = vmul.f32 %v2638_v35, %v2638_v35  ;;  %v1305_v7 = vmul.f32 %v2713_v2, %v2713_v2  ;;  %v1426_v61 = vsel %vm403_vm0, %v1304_v26, 0.0 }
 0x132   :  { %v1401_v30 = vadd.f32 %v1400_v27, %v1399_v23  ;;  %v1204_v11 = vadd.f32 %v1203_v20, %v1202_v9  ;;  %v1225_v27 = vsel %vm403_vm0, %v2638_v35, 0.0  ;;  %v1422_v20 = vsel %vm403_vm0, %v1302_v13, 0.0 }
 0x133   :  { %v1229_v35 = vsel %vm403_vm0, %v2713_v2, 0.0  ;;  %v1308_v2 = vmul.f32 %v2726_v14, %v2726_v14 }
 0x134   :  { %v1206_v21 = vadd.f32 %v1205_v6, %v1204_v11  ;;  %v1403_v25 = vadd.f32 %v1402_v37, %v1401_v30  ;;  %v1424_v30 = vsel %vm403_vm0, %v1303_v10, 0.0  ;;  %v1227_v11 = vsel %vm403_vm0, %v2670_v44, 0.0 }
 0x135   :  { %v1428_v44 = vsel %vm403_vm0, %v1305_v7, 0.0 }
 0x136   :  { %v1405_v33 = vadd.f32 %v1404_v1, %v1403_v25  ;;  %v1208_v36 = vadd.f32 %v1207_v40, %v1206_v21  ;;  %v1306_v21 = vmul.f32 %v2739_v24, %v2739_v24  ;;  %v1307_v1 = vmul.f32 %v2700_v56, %v2700_v56 }
 0x137   :  { %v1231_v40 = vsel %vm403_vm0, %v2739_v24, 0.0  ;;  %v1434_v24 = vsel %vm403_vm0, %v1308_v2, 0.0 }
 0x138   :  { %v1210_v46 = vadd.f32 %v1209_v41, %v1208_v36  ;;  %v1407_v39 = vadd.f32 %v1406_v43, %v1405_v33  ;;  %v1233_v41 = vsel %vm403_vm0, %v2700_v56, 0.0  ;;  %v1430_v42 = vsel %vm403_vm0, %v1306_v21, 0.0 }
 0x13a   :  { %v1409_v49 = vadd.f32 %v1408_v47, %v1407_v39  ;;  %v1212_v50 = vadd.f32 %v1211_v48, %v1210_v46  ;;  %v1432_v39 = vsel %vm403_vm0, %v1307_v1, 0.0  ;;  %v1235_v47 = vsel %vm403_vm0, %v2726_v14, 0.0 }
 0x13c   :  { %v1214_v19 = vadd.f32 %v1213_v22, %v1212_v50  ;;  %v1411_v55 = vadd.f32 %v1410_v51, %v1409_v49 }
 0x13e   :  { %v1413_v57 = vadd.f32 %v1412_v29, %v1411_v55  ;;  %v1216_v32 = vadd.f32 %v1215_v34, %v1214_v19 }
 0x140   :  { %v1218_v63 = vadd.f32 %v1217_v45, %v1216_v32  ;;  %v1415_v0 = vadd.f32 %v1414_v60, %v1413_v57 }
 0x142   :  { %v1417_v5 = vadd.f32 %v1416_v4, %v1415_v0  ;;  %v1220_v12 = vadd.f32 %v1219_v54, %v1218_v63 }
 0x144   :  { %v1222_v15 = vadd.f32 %v1221_v53, %v1220_v12  ;;  %v1419_v3 = vadd.f32 %v1418_v58, %v1417_v5 }
 0x146   :  { %v1421_v9 = vadd.f32 %v1420_v8, %v1419_v3  ;;  %v1224_v23 = vadd.f32 %v1223_v17, %v1222_v15 }
 0x148   :  { %v1226_v28 = vadd.f32 %v1225_v27, %v1224_v23  ;;  %v1423_v31 = vadd.f32 %v1422_v20, %v1421_v9 }
 0x14a   :  { %v1425_v37 = vadd.f32 %v1424_v30, %v1423_v31  ;;  %v1228_v6 = vadd.f32 %v1227_v11, %v1226_v28 }
 0x14c   :  { %v1230_v25 = vadd.f32 %v1229_v35, %v1228_v6  ;;  %v1427_v16 = vadd.f32 %v1426_v61, %v1425_v37 }
 0x14e   :  { %v1429_v33 = vadd.f32 %v1428_v44, %v1427_v16  ;;  %v1232_v36 = vadd.f32 %v1231_v40, %v1230_v25 }
 0x150   :  { %v1234_v43 = vadd.f32 %v1233_v41, %v1232_v36  ;;  %v1431_v46 = vadd.f32 %v1430_v42, %v1429_v33 }
 0x152   :  { %v1236_v48 = vadd.f32 %v1235_v47, %v1234_v43  ;;  %v1433_v62 = vadd.f32 %v1432_v39, %v1431_v46 }
 0x154   :  { %v1237_v49 = vrot.slane %v1236_v48, 4  ;;  %v1435_v50 = vadd.f32 %v1434_v24, %v1433_v62 }
 0x156   :  { %v1238_v51 = vadd.f32 %v1237_v49, %v1236_v48  ;;  %v1436_v56 = vrot.slane %v1435_v50, 4 }
 0x158   :  { %v1239_v22 = vrot.slane %v1238_v51, 2  ;;  %v1437_v52 = vadd.f32 %v1436_v56, %v1435_v50 }
 0x15a   :  { %v1240_v19 = vadd.f32 %v1239_v22, %v1238_v51  ;;  %v1438_v55 = vrot.slane %v1437_v52, 2 }
 0x15c   :  { %v1241_v18 = vrot.slane %v1240_v19, 1  ;;  %v1439_v29 = vadd.f32 %v1438_v55, %v1437_v52 }
 0x15e   :  { %v1242_v34 = vadd.f32 %v1241_v18, %v1240_v19  ;;  %v1440_v57 = vrot.slane %v1439_v29, 1 }
 0x160   :  { %1244 = vst.msk [vmem:[%s2846_s5] sm:$0x1] %vm1243_vm2, %v1242_v34  ;;  %v1441_v14 = vadd.f32 %v1440_v57, %v1439_v29 }
 0x162   :  { %1442 = vst.msk [vmem:[%s2847_s6] sm:$0x1] %vm1243_vm2, %v1441_v14 }

// kernel: detnet_bottleneck_forward.7
= control target key start
LH: loop header
LB: loop body
LE: loop exit
PB: predicated region body
PF: predicated region fallthrough
CT: control target
= control target key end

     0   :  { %v43_v0 = vlaneseq  ;;  %s384_s0 = inlined_call_operand.vmem [shape: bf16[32,512], index: 0, kind: input, shape index: {}]   ;;  %s385_s2 = inlined_call_operand.vmem [shape: f32[1,512], index: 2, kind: input, shape index: {}]   ;;  %s386_s3 = inlined_call_operand.vmem [shape: f32[1,512], index: 3, kind: input, shape index: {}]   ;;  %s387_s1 = inlined_call_operand.vmem [shape: f32[32,512], index: 1, kind: input, shape index: {}, may-alias: {1,4}]   ;;  %s388_s4 = inlined_call_operand.vmem [shape: f32[32,512], index: 4, kind: output, shape index: {}, may-alias: {1,4}]  }
   0x1   :  { %v17_v1 = vld [vmem:[%s384_s0] sm:$0xff]  ;;  %v18_v3 = vld [vmem:[%s384_s0 + $0x8] sm:$0xff]  ;;  %v19_v8 = vld [vmem:[%s384_s0 + $0x10] sm:$0xff] }
   0x2   :  { %v44_v2 = vshrl.u32 %v43_v0, 7  ;;  %v25_v4 = vunpack.c.l.bf16 %v17_v1  ;;  %v41_v5 = vld [vmem:[%s385_s2] sm:$0xf]  ;;  %v26_v7 = vunpack.c.h.bf16 %v17_v1  ;;  %v27_v13 = vunpack.c.l.bf16 %v18_v3  ;;  %v20_v21 = vld [vmem:[%s384_s0 + $0x18] sm:$0xff]  ;;  %v118_v31 = vld [vmem:[%s387_s1 + $0x8] sm:$0xff] }
   0x3   :  { %v79_v6 = vld [vmem:[%s386_s3] sm:$0xf]  ;;  %v28_v14 = vunpack.c.h.bf16 %v18_v3  ;;  %v29_v15 = vunpack.c.l.bf16 %v19_v8  ;;  %v30_v16 = vunpack.c.h.bf16 %v19_v8  ;;  %v122_v35 = vld [vmem:[%s387_s1 + $0x28] sm:$0xff]  ;;  %v31_v36 = vunpack.c.l.bf16 %v20_v21  ;;  %v119_v40 = vld [vmem:[%s387_s1 + $0x10] sm:$0xff] }
   0x4   :  { %v45_v9 = vsub.s32 0, %v44_v2  ;;  %v49_v10 = vsub.s32 1, %v44_v2  ;;  %v53_v11 = vsub.s32 2, %v44_v2  ;;  %v57_v12 = vsub.s32 3, %v44_v2  ;;  %v117_v27 = vld [vmem:[%s387_s1] sm:$0xff]  ;;  %v120_v41 = vld [vmem:[%s387_s1 + $0x18] sm:$0xff] }
   0x5   :  { %v121_v34 = vld [vmem:[%s387_s1 + $0x20] sm:$0xff]  ;;  %v32_v37 = vunpack.c.h.bf16 %v20_v21  ;;  %v123_v52 = vld [vmem:[%s387_s1 + $0x30] sm:$0xff]  ;;  %v124_v53 = vld [vmem:[%s387_s1 + $0x38] sm:$0xff] }
   0x6   :  { %v225_v17 = vrot.slane %v41_v5, %v45_v9  ;;  %v227_v18 = vrot.slane %v79_v6, %v45_v9  ;;  %v229_v19 = vrot.slane %v41_v5, %v49_v10  ;;  %v231_v20 = vrot.slane %v79_v6, %v49_v10  ;;  %v21_v58 = vld [vmem:[%s384_s0 + $0x20] sm:$0xff]  ;;  %v22_v59 = vld [vmem:[%s384_s0 + $0x28] sm:$0xff]  ;;  %v23_v0 = vld [vmem:[%s384_s0 + $0x30] sm:$0xff] }
   0x7   :  { %v236_v22 = vrot.slane %v41_v5, %v53_v11  ;;  %v238_v23 = vrot.slane %v79_v6, %v53_v11  ;;  %v240_v24 = vrot.slane %v41_v5, %v57_v12  ;;  %v242_v25 = vrot.slane %v79_v6, %v57_v12  ;;  %v24_v9 = vld [vmem:[%s384_s0 + $0x38] sm:$0xff] }
   0x8   :  { %v63_v26 = vmul.f32 %v225_v17, %v25_v4  ;;  %v64_v28 = vmul.f32 %v229_v19, %v26_v7  ;;  %v67_v29 = vmul.f32 %v225_v17, %v29_v15  ;;  %v68_v30 = vmul.f32 %v229_v19, %v30_v16 }
   0x9   :  { %v65_v32 = vmul.f32 %v236_v22, %v27_v13  ;;  %v66_v33 = vmul.f32 %v240_v24, %v28_v14  ;;  %v69_v46 = vmul.f32 %v236_v22, %v31_v36  ;;  %v70_v47 = vmul.f32 %v240_v24, %v32_v37 }
   0xa   :  { %v101_v38 = vadd.f32 %v227_v18, %v63_v26  ;;  %v102_v39 = vadd.f32 %v231_v20, %v64_v28  ;;  %v105_v42 = vadd.f32 %v227_v18, %v67_v29  ;;  %v106_v43 = vadd.f32 %v231_v20, %v68_v30 }
   0xb   :  { %v103_v44 = vadd.f32 %v238_v23, %v65_v32  ;;  %v104_v45 = vadd.f32 %v242_v25, %v66_v33  ;;  %v107_v56 = vadd.f32 %v238_v23, %v69_v46  ;;  %v108_v57 = vadd.f32 %v242_v25, %v70_v47 }
   0xc   :  { %v133_v48 = vadd.f32 %v117_v27, %v101_v38  ;;  %v134_v49 = vadd.f32 %v118_v31, %v102_v39  ;;  %v137_v50 = vadd.f32 %v121_v34, %v105_v42  ;;  %v138_v51 = vadd.f32 %v122_v35, %v106_v43 }
   0xd   :  { %v135_v54 = vadd.f32 %v119_v40, %v103_v44  ;;  %v136_v55 = vadd.f32 %v120_v41, %v104_v45  ;;  %v139_v3 = vadd.f32 %v123_v52, %v107_v56  ;;  %v140_v4 = vadd.f32 %v124_v53, %v108_v57 }
   0xe   :  { %v149_v60 = vmax.f32 %v133_v48, 0.0  ;;  %v150_v61 = vmax.f32 %v134_v49, 0.0  ;;  %v153_v62 = vmax.f32 %v137_v50, 0.0  ;;  %v154_v63 = vmax.f32 %v138_v51, 0.0 }
   0xf   :  { %v151_v1 = vmax.f32 %v135_v54, 0.0  ;;  %v152_v2 = vmax.f32 %v136_v55, 0.0  ;;  %v33_v5 = vunpack.c.l.bf16 %v21_v58  ;;  %v34_v6 = vunpack.c.h.bf16 %v21_v58 }
  0x10   :  { %165 = vst [vmem:[%s388_s4] sm:$0xff] %v149_v60  ;;  %166 = vst [vmem:[%s388_s4 + $0x8] sm:$0xff] %v150_v61  ;;  %v35_v7 = vunpack.c.l.bf16 %v22_v59  ;;  %v36_v8 = vunpack.c.h.bf16 %v22_v59  ;;  %v155_v10 = vmax.f32 %v139_v3, 0.0  ;;  %v156_v11 = vmax.f32 %v140_v4, 0.0 }
  0x11   :  { %169 = vst [vmem:[%s388_s4 + $0x20] sm:$0xff] %v153_v62  ;;  %170 = vst [vmem:[%s388_s4 + $0x28] sm:$0xff] %v154_v63  ;;  %v37_v12 = vunpack.c.l.bf16 %v23_v0  ;;  %v38_v13 = vunpack.c.h.bf16 %v23_v0  ;;  %v71_v14 = vmul.f32 %v225_v17, %v33_v5  ;;  %v72_v16 = vmul.f32 %v229_v19, %v34_v6 }
  0x12   :  { %167 = vst [vmem:[%s388_s4 + $0x10] sm:$0xff] %v151_v1  ;;  %168 = vst [vmem:[%s388_s4 + $0x18] sm:$0xff] %v152_v2  ;;  %v73_v21 = vmul.f32 %v236_v22, %v35_v7  ;;  %v74_v26 = vmul.f32 %v240_v24, %v36_v8  ;;  %v39_v32 = vunpack.c.l.bf16 %v24_v9  ;;  %v40_v33 = vunpack.c.h.bf16 %v24_v9 }
  0x13   :  { %v75_v30 = vmul.f32 %v225_v17, %v37_v12  ;;  %v76_v31 = vmul.f32 %v229_v19, %v38_v13  ;;  %v109_v34 = vadd.f32 %v227_v18, %v71_v14  ;;  %v110_v35 = vadd.f32 %v231_v20, %v72_v16 }
  0x14   :  { %v111_v36 = vadd.f32 %v238_v23, %v73_v21  ;;  %v112_v37 = vadd.f32 %v242_v25, %v74_v26  ;;  %v77_v40 = vmul.f32 %v236_v22, %v39_v32  ;;  %v78_v41 = vmul.f32 %v240_v24, %v40_v33 }
  0x15   :  { %v113_v19 = vadd.f32 %v227_v18, %v75_v30  ;;  %v114_v39 = vadd.f32 %v231_v20, %v76_v31 }
  0x16   :  { %v115_v20 = vadd.f32 %v238_v23, %v77_v40  ;;  %v116_v22 = vadd.f32 %v242_v25, %v78_v41 }
  0x19   :  { %v125_v15 = vld [vmem:[%s387_s1 + $0x40] sm:$0xff] }
  0x1a   :  { %171 = vst [vmem:[%s388_s4 + $0x30] sm:$0xff] %v155_v10  ;;  %172 = vst [vmem:[%s388_s4 + $0x38] sm:$0xff] %v156_v11  ;;  %v141_v42 = vadd.f32 %v125_v15, %v109_v34 }
  0x1c   :  { %v157_v49 = vmax.f32 %v141_v42, 0.0 }
  0x21   :  { %v126_v27 = vld [vmem:[%s387_s1 + $0x48] sm:$0xff]  ;;  %v127_v28 = vld [vmem:[%s387_s1 + $0x50] sm:$0xff]  ;;  %v128_v29 = vld [vmem:[%s387_s1 + $0x58] sm:$0xff] }
  0x22   :  { %v129_v38 = vld [vmem:[%s387_s1 + $0x60] sm:$0xff]  ;;  %v130_v17 = vld [vmem:[%s387_s1 + $0x68] sm:$0xff]  ;;  %v142_v43 = vadd.f32 %v126_v27, %v110_v35  ;;  %v143_v44 = vadd.f32 %v127_v28, %v111_v36  ;;  %v144_v45 = vadd.f32 %v128_v29, %v112_v37  ;;  %v131_v46 = vld [vmem:[%s387_s1 + $0x70] sm:$0xff] }
  0x23   :  { %v132_v47 = vld [vmem:[%s387_s1 + $0x78] sm:$0xff]  ;;  %v145_v48 = vadd.f32 %v129_v38, %v113_v19  ;;  %v146_v18 = vadd.f32 %v130_v17, %v114_v39  ;;  %v147_v54 = vadd.f32 %v131_v46, %v115_v20 }
  0x24   :  { %v158_v24 = vmax.f32 %v142_v43, 0.0  ;;  %v159_v50 = vmax.f32 %v143_v44, 0.0  ;;  %v160_v51 = vmax.f32 %v144_v45, 0.0  ;;  %v148_v55 = vadd.f32 %v132_v47, %v116_v22  ;;  %173 = vst [vmem:[%s388_s4 + $0x40] sm:$0xff] %v157_v49 }
  0x25   :  { %v161_v52 = vmax.f32 %v145_v48, 0.0  ;;  %v162_v53 = vmax.f32 %v146_v18, 0.0  ;;  %v163_v23 = vmax.f32 %v147_v54, 0.0 }
  0x26   :  { %174 = vst [vmem:[%s388_s4 + $0x48] sm:$0xff] %v158_v24  ;;  %175 = vst [vmem:[%s388_s4 + $0x50] sm:$0xff] %v159_v50  ;;  %v164_v25 = vmax.f32 %v148_v55, 0.0 }
  0x27   :  { %176 = vst [vmem:[%s388_s4 + $0x58] sm:$0xff] %v160_v51  ;;  %177 = vst [vmem:[%s388_s4 + $0x60] sm:$0xff] %v161_v52 }
  0x28   :  { %178 = vst [vmem:[%s388_s4 + $0x68] sm:$0xff] %v162_v53  ;;  %179 = vst [vmem:[%s388_s4 + $0x70] sm:$0xff] %v163_v23 }
  0x29   :  { %180 = vst [vmem:[%s388_s4 + $0x78] sm:$0xff] %v164_v25 }

// kernel: detnet_bottleneck_forward.5
= control target key start
LH: loop header
LB: loop body
LE: loop exit
PB: predicated region body
PF: predicated region fallthrough
CT: control target
= control target key end

     0   :  { %s6480_s21 = smov 0   ;;  %s8488_s0 = inlined_call_operand.vmem [shape: bf16[2,16,16,32], index: 0, kind: input, shape index: {}]   ;;  %s8489_s1 = inlined_call_operand.vmem [shape: f32[1,32], index: 1, kind: input, shape index: {}]   ;;  %s8490_s2 = inlined_call_operand.vmem [shape: f32[1,32], index: 2, kind: input, shape index: {}]   ;;  %s8491_s3 = inlined_call_operand.vmem [shape: bf16[9,32,32], index: 3, kind: input, shape index: {}]   ;;  %s8492_s4 = inlined_call_operand.vmem [shape: bf16[2,16,16,32], index: 4, kind: output, shape index: {0}]   ;;  %s8493_s5 = inlined_call_operand.vmem [shape: f32[2,1,32], index: 5, kind: output, shape index: {1}]   ;;  %s8494_s6 = inlined_call_operand.vmem [shape: f32[2,1,32], index: 6, kind: output, shape index: {2}]  }
   0x1 LB: > { %s5224_s22 = sadd.s32 4294967295, %s6442_s21   ;;  %p5228_p0 = scmp.ge.s32.totalorder %s6442_s21, 1  ;;  %s6442_s21 = sphi %s6480_s21, %s17_s21  }
   0x2   : > { %p217_p1 = scmp.lt.s32.totalorder %s6442_s21, 3 }
   0x4   : > { %p218_p2 = pnand %p5228_p0, %p217_p1 }
   0x6   : > { %221 = sbr.rel (%p218_p2) target bundleno = 606 (0x25e), region = 36 }
   0xb   : > { %v6379_v0 = vld [vmem:[%s8491_s3 + $0x18] sm:$0xff]   ;;  %vm444_vm0 = vcmask 257024   ;;  %v6494_v1 = vld [vmem:[%s8491_s3 + $0x10] sm:$0xff]   ;;  %v6444_v2 = vmov 0   ;;  %vm447_vm1 = vcmask 254976   ;;  %vm480_vm2 = vcmask 254977  }
   0xc   : > { %6042 = vmatprep.subr.bf16.mxu0 %v6379_v0  ;;  %6366 = vmatprep.subr.bf16.mxu1 %v6379_v0  ;;  %445 = vst.msk [vmem:[#allocation2] sm:$0xf] %vm444_vm0, %v6444_v2  ;;  %446 = vst.msk [vmem:[#allocation2 + $0x4] sm:$0xf] %vm444_vm0, %v6444_v2  ;;  %vm894_vm3 = vcmask 1042432   ;;  %vm895_vm4 = vcmask 1046532  }
   0xd   : > { %449 = vst.msk [vmem:[#allocation2 + $0xc] sm:$0xf] %vm444_vm0, %v6444_v2  ;;  %450 = vst.msk [vmem:[#allocation2 + $0x10] sm:$0xf] %vm444_vm0, %v6444_v2  ;;  %p6506_p3 = scmp.lt.s32.totalorder %s5224_s22, 1  ;;  %6043 = vmatpush3.bf16.msra.mxu0 %v6379_v0  ;;  %6368 = vmatpush3.bf16.msra.mxu1 %v6379_v0  ;;  %vm459_vm5 = vcmask 253952  }
   0xe   : > { %453 = vst.msk [vmem:[#allocation2 + $0xd8] sm:$0xf] %vm444_vm0, %v6444_v2  ;;  %454 = vst.msk [vmem:[#allocation2 + $0xdc] sm:$0xf] %vm444_vm0, %v6444_v2  ;;  %6044 = vmatprep.subr.bf16.mxu0 %v6494_v1  ;;  %6367 = vmatprep.subr.bf16.mxu1 %v6494_v1  ;;  %v6565_v3 = vld [vmem:[%s8491_s3 + $0x8] sm:$0xff]   ;;  %vm1074_vm7 = vcmask 261120  }
   0xf   : > { %456 = vst.msk [vmem:[#allocation2 + $0xe4] sm:$0xf] %vm444_vm0, %v6444_v2  ;;  %457 = vst.msk [vmem:[#allocation2 + $0xe8] sm:$0xf] %vm444_vm0, %v6444_v2  ;;  %s8623_s22 = smov (!%p6506_p3, %s5224_s22), 1  ;;  %v6577_v5 = vld [vmem:[%s8491_s3 + $0x28] sm:$0xff]  }
  0x10   : > { %448 = vst.msk [vmem:[#allocation2 + $0x8] sm:$0x3] %vm447_vm1, %v6444_v2  ;;  %458 = vst.msk [vmem:[#allocation2 + $0xec] sm:$0x3] %vm447_vm1, %v6444_v2  ;;  %s5735_s30 = sshll.u32 %s8623_s22, 7  ;;  %vm597_vm8 = vcmask 1040384   ;;  %s265_s10 = scalar_lea.vmem %s8493_s5, %s8623_s22 }
  0x11   : > { %451 = vst.msk [vmem:[#allocation2 + $0x14] sm:$0x3] %vm447_vm1, %v6444_v2  ;;  %455 = vst.msk [vmem:[#allocation2 + $0xe0] sm:$0x3] %vm447_vm1, %v6444_v2  ;;  %6045 = vmatpush3.bf16.msra.mxu0 %v6494_v1  ;;  %6369 = vmatpush3.bf16.msra.mxu1 %v6494_v1  ;;  %s6586_s11 = scalar_lea.vmem %s8488_s0, %s5735_s30  ;;  %v6591_v6 = vld [vmem:[%s8489_s1] ss:$0 sm:$0xff]  ;;  %s8189_s8 = scalar_lea.vmem %s8492_s4, %s5735_s30 }
  0x12   : > { %483 = vst.msk [vmem:[#allocation2 + $0x20] sm:$0x2] %vm480_vm2, %v6444_v2  ;;  %484 = vst.msk [vmem:[#allocation2 + $0x2c] sm:$0x2] %vm480_vm2, %v6444_v2  ;;  %v5870_v7 = vld [vmem:[%s6586_s11 + $0x30] sm:$0xff]   ;;  %6078 = vmatprep.subr.bf16.mxu1 %v6565_v3  ;;  %v5871_v9 = vld [vmem:[%s6586_s11 + $0x38] sm:$0xff]   ;;  %6114 = vmatprep.subr.bf16.mxu0 %v6577_v5  ;;  %s268_s13 = scalar_lea.vmem %s8494_s6, %s8623_s22 }
  0x13   : > { %485 = vst.msk [vmem:[#allocation2 + $0x38] sm:$0x2] %vm480_vm2, %v6444_v2  ;;  %486 = vst.msk [vmem:[#allocation2 + $0x44] sm:$0x2] %vm480_vm2, %v6444_v2  ;;  %v6597_v8 = vld [vmem:[%s8490_s2] ss:$0 sm:$0xff]  ;;  %v5827_v13 = vunpack.c.l.bf16 %v5870_v7  ;;  %v5828_v14 = vunpack.c.h.bf16 %v5870_v7  ;;  %v5831_v15 = vunpack.c.l.bf16 %v5871_v9  ;;  %v5832_v20 = vunpack.c.h.bf16 %v5871_v9 }
  0x14   : > { %487 = vst.msk [vmem:[#allocation2 + $0x50] sm:$0x2] %vm480_vm2, %v6444_v2  ;;  %488 = vst.msk [vmem:[#allocation2 + $0x5c] sm:$0x2] %vm480_vm2, %v6444_v2  ;;  %v6602_v10 = vld [vmem:[#allocation2 + $0x4] sm:$0xf] }
  0x15   : > { %489 = vst.msk [vmem:[#allocation2 + $0x68] sm:$0x2] %vm480_vm2, %v6444_v2  ;;  %490 = vst.msk [vmem:[#allocation2 + $0x74] sm:$0x2] %vm480_vm2, %v6444_v2  ;;  %v814_v11 = vld [vmem:[#allocation2] sm:$0xe]  ;;  %v353_v24 = vmul.f32 %v5827_v13, %v6591_v6  ;;  %v354_v25 = vmul.f32 %v5828_v14, %v6591_v6  ;;  %v355_v36 = vmul.f32 %v5831_v15, %v6591_v6 }
  0x16   : > { %491 = vst.msk [vmem:[#allocation2 + $0x80] sm:$0x2] %vm480_vm2, %v6444_v2  ;;  %492 = vst.msk [vmem:[#allocation2 + $0x8c] sm:$0x2] %vm480_vm2, %v6444_v2  ;;  %v6604_v12 = vld [vmem:[#allocation2 + $0x10] sm:$0xf]  ;;  %v356_v37 = vmul.f32 %v5832_v20, %v6591_v6 }
  0x17   : > { %493 = vst.msk [vmem:[#allocation2 + $0x98] sm:$0x2] %vm480_vm2, %v6444_v2  ;;  %494 = vst.msk [vmem:[#allocation2 + $0xa4] sm:$0x2] %vm480_vm2, %v6444_v2  ;;  %v815_v16 = vld [vmem:[#allocation2 + $0x8] sm:$0x1]  ;;  %v392_v31 = vadd.f32 %v6597_v8, %v353_v24  ;;  %v393_v32 = vadd.f32 %v6597_v8, %v354_v25  ;;  %v394_v44 = vadd.f32 %v6597_v8, %v355_v36 }
  0x18   : > { %495 = vst.msk [vmem:[#allocation2 + $0xb0] sm:$0x2] %vm480_vm2, %v6444_v2  ;;  %496 = vst.msk [vmem:[#allocation2 + $0xbc] sm:$0x2] %vm480_vm2, %v6444_v2  ;;  %v5267_v17 = vrot.slane %v814_v11, 9  ;;  %v899_v18 = vrot.slane %v6602_v10, 5  ;;  %v395_v45 = vadd.f32 %v6597_v8, %v356_v37 }
  0x19   : > { %497 = vst.msk [vmem:[#allocation2 + $0xc8] sm:$0x2] %vm480_vm2, %v6444_v2  ;;  %498 = vst.msk [vmem:[#allocation2 + $0xd4] sm:$0x2] %vm480_vm2, %v6444_v2  ;;  %v906_v19 = vrot.slane %v6604_v12, 5  ;;  %v902_v21 = vrot.slane %v815_v16, 5 }
  0x1a   : > { %481 = vst.msk [vmem:[#allocation2 + $0x8] sm:$0x2] %vm480_vm2, %v6444_v2  ;;  %500 = vst.msk [vmem:[#allocation2 + $0xec] sm:$0x2] %vm480_vm2, %v6444_v2  ;;  %v816_v22 = vld [vmem:[#allocation2 + $0xc] sm:$0xe] }
  0x1b   : > { %482 = vst.msk [vmem:[#allocation2 + $0x14] sm:$0x2] %vm480_vm2, %v6444_v2  ;;  %499 = vst.msk [vmem:[#allocation2 + $0xe0] sm:$0x2] %vm480_vm2, %v6444_v2  ;;  %v817_v23 = vld [vmem:[#allocation2 + $0x14] sm:$0x1] }
  0x1c   : > { %461 = vst.msk [vmem:[#allocation2 + $0xc] sm:$0x1] %vm459_vm5, %v6444_v2  ;;  %460 = vst.msk [vmem:[#allocation2] sm:$0x1] %vm459_vm5, %v6444_v2  ;;  %vm598_vm9 = vcmask 1044484   ;;  %v901_v27 = vrot.slane %v899_v18, 4 }
  0x1d   : > { %462 = vst.msk [vmem:[#allocation2 + $0x18] sm:$0x1] %vm459_vm5, %v6444_v2  ;;  %463 = vst.msk [vmem:[#allocation2 + $0x24] sm:$0x1] %vm459_vm5, %v6444_v2  ;;  %v5268_v28 = vrot.slane %v816_v22, 9  ;;  %v908_v29 = vrot.slane %v906_v19, 4 }
  0x1e   : > { %464 = vst.msk [vmem:[#allocation2 + $0x30] sm:$0x1] %vm459_vm5, %v6444_v2  ;;  %465 = vst.msk [vmem:[#allocation2 + $0x3c] sm:$0x1] %vm459_vm5, %v6444_v2  ;;  %v909_v30 = vrot.slane %v817_v23, 5  ;;  %vm729_vm10 = vcmask 257025  }
  0x1f   : > { %466 = vst.msk [vmem:[#allocation2 + $0x48] sm:$0x1] %vm459_vm5, %v6444_v2  ;;  %467 = vst.msk [vmem:[#allocation2 + $0x54] sm:$0x1] %vm459_vm5, %v6444_v2  ;;  %v5802_v33 = vld [vmem:[%s6586_s11] sm:$0xff]   ;;  %v5865_v38 = vld [vmem:[%s6586_s11 + $0x8] sm:$0xff]  }
  0x20   : > { %468 = vst.msk [vmem:[#allocation2 + $0x60] sm:$0x1] %vm459_vm5, %v6444_v2  ;;  %469 = vst.msk [vmem:[#allocation2 + $0x6c] sm:$0x1] %vm459_vm5, %v6444_v2  ;;  %v424_v41 = vmax.f32 %v392_v31, 0.0  ;;  %v425_v42 = vmax.f32 %v393_v32, 0.0  ;;  %v5803_v46 = vunpack.c.l.bf16 %v5802_v33  ;;  %v5804_v50 = vunpack.c.h.bf16 %v5802_v33 }
  0x21   : > { %470 = vst.msk [vmem:[#allocation2 + $0x78] sm:$0x1] %vm459_vm5, %v6444_v2  ;;  %471 = vst.msk [vmem:[#allocation2 + $0x84] sm:$0x1] %vm459_vm5, %v6444_v2  ;;  %v6384_v47 = vld [vmem:[%s8491_s3 + $0x20] sm:$0xff]   ;;  %v5807_v51 = vunpack.c.l.bf16 %v5865_v38  ;;  %v426_v52 = vmax.f32 %v394_v44, 0.0  ;;  %v5808_v55 = vunpack.c.h.bf16 %v5865_v38 }
  0x22   : > { %472 = vst.msk [vmem:[#allocation2 + $0x90] sm:$0x1] %vm459_vm5, %v6444_v2  ;;  %473 = vst.msk [vmem:[#allocation2 + $0x9c] sm:$0x1] %vm459_vm5, %v6444_v2  ;;  %v5749_v48 = vpack.c.bf16 %v424_v41, %v424_v41  ;;  %v5750_v49 = vpack.c.bf16 %v425_v42, %v425_v42  ;;  %v427_v53 = vmax.f32 %v395_v45, 0.0  ;;  %v341_v54 = vmul.f32 %v5803_v46, %v6591_v6  ;;  %v5872_v61 = vld [vmem:[%s6586_s11 + $0x40] sm:$0xff]  }
  0x23   : > { %474 = vst.msk [vmem:[#allocation2 + $0xa8] sm:$0x1] %vm459_vm5, %v6444_v2  ;;  %475 = vst.msk [vmem:[#allocation2 + $0xb4] sm:$0x1] %vm459_vm5, %v6444_v2  ;;  %v342_v59 = vmul.f32 %v5804_v50, %v6591_v6  ;;  %v343_v60 = vmul.f32 %v5807_v51, %v6591_v6  ;;  %v6645_v62 = vld [vmem:[%s8491_s3 + $0x48] sm:$0xff]   ;;  %v5751_v63 = vpack.c.bf16 %v426_v52, %v426_v52  ;;  %v6675_v52 = vld [vmem:[%s6586_s11 + $0x10] sm:$0xff]  }
  0x24   : > { %476 = vst.msk [vmem:[#allocation2 + $0xc0] sm:$0x1] %vm459_vm5, %v6444_v2  ;;  %477 = vst.msk [vmem:[#allocation2 + $0xcc] sm:$0x1] %vm459_vm5, %v6444_v2  ;;  %v630_v57 = vrot.slane %v5749_v48, 7  ;;  %v632_v58 = vrot.slane %v5750_v49, 7  ;;  %v5752_v0 = vpack.c.bf16 %v427_v53, %v427_v53  ;;  %v380_v1 = vadd.f32 %v6597_v8, %v341_v54 }
  0x25   : > { %478 = vst.msk [vmem:[#allocation2 + $0xd8] sm:$0x1] %vm459_vm5, %v6444_v2  ;;  %479 = vst.msk [vmem:[#allocation2 + $0xe4] sm:$0x1] %vm459_vm5, %v6444_v2  ;;  %v344_v2 = vmul.f32 %v5808_v55, %v6591_v6  ;;  %v381_v9 = vadd.f32 %v6597_v8, %v342_v59  ;;  %v382_v11 = vadd.f32 %v6597_v8, %v343_v60  ;;  %v635_v13 = vrot.slane %v5751_v63, 7 }
  0x26   : > { %vm6569_vm6 = vmor %vm894_vm3, %vm895_vm4  ;;  %v631_v7 = vrot.slane %v630_v57, 4  ;;  %748 = vst.msk [vmem:[#allocation2 + $0x60] sm:$0xe] %vm729_vm10, %v630_v57  ;;  %v637_v14 = vrot.slane %v5752_v0, 7  ;;  %v412_v15 = vmax.f32 %v380_v1, 0.0  ;;  %v1638_v53 = vrot.slane %v6602_v10, 6 }
  0x27   : > { %v900_v26 = vsel %vm6569_vm6, %v5267_v17, %v899_v18  ;;  %v903_v34 = vsel %vm6569_vm6, %v901_v27, %v902_v21  ;;  %v907_v35 = vsel %vm6569_vm6, %v5268_v28, %v906_v19  ;;  %v910_v40 = vsel %vm6569_vm6, %v908_v29, %v909_v30  ;;  %vm6634_vm11 = vmor %vm597_vm8, %vm598_vm9  ;;  %v5873_v17 = vld [vmem:[%s6586_s11 + $0x48] sm:$0xff]   ;;  %751 = vst.msk [vmem:[#allocation2 + $0x6c] sm:$0xe] %vm729_vm10, %v635_v13 }
  0x28   : > { %v5287_v39 = vcombine.low %v900_v26, %v903_v34  ;;  %v5288_v43 = vcombine.low %v907_v35, %v910_v40  ;;  %v383_v16 = vadd.f32 %v6597_v8, %v344_v2  ;;  %v633_v18 = vsel %vm6634_vm11, %v631_v7, %v632_v58 }
  0x29   : > { %v413_v19 = vmax.f32 %v381_v9, 0.0  ;;  %v414_v20 = vmax.f32 %v382_v11, 0.0  ;;  %v5835_v21 = vunpack.c.l.bf16 %v5872_v61  ;;  %749 = vst.msk [vmem:[#allocation2 + $0x64] sm:$0xf] %vm444_vm0, %v633_v18  ;;  %v636_v22 = vrot.slane %v635_v13, 4 }
  0x2a   : > { %6046 = vmatprep.mubr.msk.bf16.mxu0 %vm1074_vm7, %v5287_v39  ;;  %v639_v23 = vrot.slane %v637_v14, 4  ;;  %v5737_v24 = vpack.c.bf16 %v412_v15, %v412_v15  ;;  %v415_v25 = vmax.f32 %v383_v16, 0.0  ;;  %v5836_v28 = vunpack.c.h.bf16 %v5872_v61 }
  0x2b   : > { %6047 = vmatmul.mubr.msk.bf16.vlgmr.msra.gmra.mxu0 %vm1074_vm7, %v5288_v43  ;;  %v5738_v26 = vpack.c.bf16 %v413_v19, %v413_v19  ;;  %v5739_v27 = vpack.c.bf16 %v414_v20, %v414_v20  ;;  %v357_v29 = vmul.f32 %v5835_v21, %v6591_v6  ;;  %v638_v30 = vsel %vm6634_vm11, %v636_v22, %v637_v14 }
  0x2c   : > { %6115 = vmatpush3.bf16.msra.mxu0 %v6577_v5  ;;  %v634_v5 = vrot.slane %v632_v58, 4  ;;  %753 = vst.msk [vmem:[#allocation2 + $0x74] sm:$0x1] %vm459_vm5, %v639_v23  ;;  %v600_v31 = vrot.slane %v5737_v24, 7  ;;  %v5740_v32 = vpack.c.bf16 %v415_v25, %v415_v25  ;;  %v5839_v33 = vunpack.c.l.bf16 %v5873_v17 }
  0x2d   : > { %6116 = vmatprep.subr.bf16.mxu0 %v6384_v47  ;;  %752 = vst.msk [vmem:[#allocation2 + $0x70] sm:$0xf] %vm444_vm0, %v638_v30  ;;  %v602_v34 = vrot.slane %v5738_v26, 7  ;;  %v605_v35 = vrot.slane %v5739_v27, 7  ;;  %v358_v36 = vmul.f32 %v5836_v28, %v6591_v6  ;;  %v396_v37 = vadd.f32 %v6597_v8, %v357_v29  ;;  %v830_v38 = vld [vmem:[#allocation2 + $0x60] sm:$0xe] }
  0x2e   : > { %750 = vst.msk [vmem:[#allocation2 + $0x68] sm:$0x1] %vm459_vm5, %v634_v5  ;;  %v601_v39 = vrot.slane %v600_v31, 4  ;;  %v607_v40 = vrot.slane %v5740_v32, 7  ;;  %v5840_v41 = vunpack.c.h.bf16 %v5873_v17  ;;  %v359_v42 = vmul.f32 %v5839_v33, %v6591_v6  ;;  %v832_v55 = vld [vmem:[#allocation2 + $0x6c] sm:$0xe] }
  0x2f   : > { %730 = vst.msk [vmem:[#allocation2 + $0x18] sm:$0xe] %vm729_vm10, %v600_v31  ;;  %v5275_v43 = vrot.slane %v830_v38, 9  ;;  %v604_v44 = vrot.slane %v602_v34, 4  ;;  %v606_v45 = vrot.slane %v605_v35, 4  ;;  %v397_v46 = vadd.f32 %v6597_v8, %v358_v36  ;;  %v6702_v31 = vld [vmem:[%s6586_s11 + $0x18] sm:$0xff]  }
  0x30   : > { %6117 = vmatpush3.bf16.msra.mxu0 %v6384_v47  ;;  %733 = vst.msk [vmem:[#allocation2 + $0x24] sm:$0xe] %vm729_vm10, %v605_v35  ;;  %v603_v48 = vsel %vm6634_vm11, %v601_v39, %v602_v34  ;;  %v609_v49 = vrot.slane %v607_v40, 4  ;;  %v428_v50 = vmax.f32 %v396_v37, 0.0  ;;  %v360_v51 = vmul.f32 %v5840_v41, %v6591_v6  ;;  %v6678_v54 = vld [vmem:[#allocation2 + $0x64] sm:$0xf] }
  0x31   : > { %6186 = vmatprep.subr.bf16.mxu0 %v6645_v62  ;;  %731 = vst.msk [vmem:[#allocation2 + $0x1c] sm:$0xf] %vm444_vm0, %v603_v48  ;;  %v608_v57 = vsel %vm6634_vm11, %v606_v45, %v607_v40  ;;  %v429_v58 = vmax.f32 %v397_v46, 0.0  ;;  %v398_v59 = vadd.f32 %v6597_v8, %v359_v42  ;;  %v955_v60 = vrot.slane %v6678_v54, 5  ;;  %v6383_v48 = vld [vmem:[%s8491_s3] sm:$0xff]  }
  0x32   : > { %732 = vst.msk [vmem:[#allocation2 + $0x20] sm:$0x1] %vm459_vm5, %v604_v44  ;;  %v5276_v63 = vrot.slane %v832_v55, 9  ;;  %735 = vst.msk [vmem:[#allocation2 + $0x2c] sm:$0x1] %vm459_vm5, %v609_v49  ;;  %v5753_v0 = vpack.c.bf16 %v428_v50, %v428_v50  ;;  %v399_v7 = vadd.f32 %v6597_v8, %v360_v51  ;;  %v5811_v9 = vunpack.c.l.bf16 %v6675_v52 }
  0x33   : > { %734 = vst.msk [vmem:[#allocation2 + $0x28] sm:$0xf] %vm444_vm0, %v608_v57  ;;  %v833_v1 = vld [vmem:[#allocation2 + $0x74] sm:$0x1]  ;;  %v5754_v2 = vpack.c.bf16 %v429_v58, %v429_v58  ;;  %v430_v5 = vmax.f32 %v398_v59, 0.0  ;;  %v956_v11 = vsel %vm6569_vm6, %v5275_v43, %v955_v60  ;;  %v957_v13 = vrot.slane %v955_v60, 4 }
  0x34   : > { %v6692_v14 = vld [vmem:[#allocation2 + $0x70] sm:$0xf]  ;;  %v965_v15 = vrot.slane %v833_v1, 5  ;;  %v640_v16 = vrot.slane %v5753_v0, 7  ;;  %v431_v20 = vmax.f32 %v399_v7, 0.0  ;;  %v5812_v26 = vunpack.c.h.bf16 %v6675_v52  ;;  %v6738_v7 = vld [vmem:[%s6586_s11 + $0x58] sm:$0xff]  }
  0x35   : > { %v831_v47 = vld [vmem:[#allocation2 + $0x68] sm:$0x1]  ;;  %v962_v17 = vrot.slane %v6692_v14, 5  ;;  %v642_v19 = vrot.slane %v5754_v2, 7  ;;  %v5755_v21 = vpack.c.bf16 %v430_v5, %v430_v5  ;;  %v345_v43 = vmul.f32 %v5811_v9, %v6591_v6  ;;  %v5874_v2 = vld [vmem:[%s6586_s11 + $0x50] sm:$0xff]  }
  0x36   : > { %v958_v61 = vrot.slane %v831_v47, 5  ;;  %v818_v18 = vld [vmem:[#allocation2 + $0x18] sm:$0xe]  ;;  %v641_v25 = vrot.slane %v640_v16, 4  ;;  %754 = vst.msk [vmem:[#allocation2 + $0x78] sm:$0xe] %vm729_vm10, %v640_v16  ;;  %v5756_v36 = vpack.c.bf16 %v431_v20, %v431_v20  ;;  %v346_v52 = vmul.f32 %v5812_v26, %v6591_v6 }
  0x37   : > { %v5269_v23 = vrot.slane %v818_v18, 9  ;;  %v820_v24 = vld [vmem:[#allocation2 + $0x24] sm:$0xe]  ;;  %v963_v28 = vsel %vm6569_vm6, %v5276_v63, %v962_v17  ;;  %v964_v29 = vrot.slane %v962_v17, 4  ;;  %v644_v35 = vrot.slane %v642_v19, 4 }
  0x38   : > { %v959_v22 = vsel %vm6569_vm6, %v957_v13, %v958_v61  ;;  %v5270_v30 = vrot.slane %v820_v24, 9  ;;  %v6704_v32 = vld [vmem:[#allocation2 + $0x1c] sm:$0xf]  ;;  %v643_v34 = vsel %vm6634_vm11, %v641_v25, %v642_v19  ;;  %v645_v37 = vrot.slane %v5755_v21, 7 }
  0x39   : > { %v5295_v27 = vcombine.low %v956_v11, %v959_v22  ;;  %v819_v33 = vld [vmem:[#allocation2 + $0x20] sm:$0x1]  ;;  %v966_v38 = vsel %vm6569_vm6, %v964_v29, %v965_v15  ;;  %v913_v39 = vrot.slane %v6704_v32, 5  ;;  %v821_v42 = vld [vmem:[#allocation2 + $0x2c] sm:$0x1]  ;;  %v647_v51 = vrot.slane %v5756_v36, 7 }
  0x3a   : > { %v916_v40 = vrot.slane %v819_v33, 5  ;;  %v6712_v41 = vld [vmem:[#allocation2 + $0x28] sm:$0xf]  ;;  %755 = vst.msk [vmem:[#allocation2 + $0x7c] sm:$0xf] %vm444_vm0, %v643_v34  ;;  %v5296_v44 = vcombine.low %v963_v28, %v966_v38  ;;  %v923_v46 = vrot.slane %v821_v42, 5  ;;  %v384_v58 = vadd.f32 %v6597_v8, %v345_v43 }
  0x3b   : > { %6062 = vmatprep.mubr.msk.bf16.mxu1 %vm1074_vm7, %v5295_v27  ;;  %v920_v45 = vrot.slane %v6712_v41, 5  ;;  %756 = vst.msk [vmem:[#allocation2 + $0x80] sm:$0x1] %vm459_vm5, %v644_v35  ;;  %v646_v47 = vrot.slane %v645_v37, 4  ;;  %v914_v49 = vsel %vm6569_vm6, %v5269_v23, %v913_v39  ;;  %v915_v50 = vrot.slane %v913_v39, 4  ;;  %v6746_v13 = vld [vmem:[%s8491_s3 + $0x38] sm:$0xff]  }
  0x3c   : > { %757 = vst.msk [vmem:[#allocation2 + $0x84] sm:$0xe] %vm729_vm10, %v645_v37  ;;  %6063 = vmatmul.mubr.msk.bf16.vlgmr.msra.gmra.mxu1 %vm1074_vm7, %v5296_v44  ;;  %v5815_v59 = vunpack.c.l.bf16 %v6702_v31  ;;  %v649_v0 = vrot.slane %v647_v51, 4  ;;  %v385_v1 = vadd.f32 %v6597_v8, %v346_v52  ;;  %v5816_v17 = vunpack.c.h.bf16 %v6702_v31 }
  0x3d   : > { %v921_v55 = vsel %vm6569_vm6, %v5270_v30, %v920_v45  ;;  %v922_v57 = vrot.slane %v920_v45, 4  ;;  %6079 = vmatpush3.bf16.msra.mxu1 %v6565_v3  ;;  %v917_v60 = vsel %vm6569_vm6, %v915_v50, %v916_v40  ;;  %v834_v61 = vld [vmem:[#allocation2 + $0x78] sm:$0xe]  ;;  %v648_v63 = vsel %vm6634_vm11, %v646_v47, %v647_v51 }
  0x3e   : > { %v5289_v5 = vcombine.low %v914_v49, %v917_v60  ;;  %v5277_v11 = vrot.slane %v834_v61, 9  ;;  %758 = vst.msk [vmem:[#allocation2 + $0x88] sm:$0xf] %vm444_vm0, %v648_v63  ;;  %v416_v3 = vmax.f32 %v384_v58, 0.0  ;;  %6080 = vmatprep.subr.bf16.mxu1 %v6383_v48  ;;  %v417_v16 = vmax.f32 %v385_v1, 0.0 }
  0x3f   : > { %v924_v9 = vsel %vm6569_vm6, %v922_v57, %v923_v46  ;;  %759 = vst.msk [vmem:[#allocation2 + $0x8c] sm:$0x1] %vm459_vm5, %v649_v0  ;;  %v347_v18 = vmul.f32 %v5815_v59, %v6591_v6  ;;  %v5843_v21 = vunpack.c.l.bf16 %v5874_v2  ;;  %v5844_v22 = vunpack.c.h.bf16 %v5874_v2  ;;  %v5868_v57 = vld [vmem:[%s6586_s11 + $0x20] sm:$0xff]  }
  0x40   : > { %v5290_v15 = vcombine.low %v921_v55, %v924_v9  ;;  %6050 = vmatprep.mubr.msk.bf16.mxu0 %vm1074_vm7, %v5289_v5  ;;  %v5741_v20 = vpack.c.bf16 %v416_v3, %v416_v3  ;;  %v5847_v23 = vunpack.c.l.bf16 %v6738_v7  ;;  %v5742_v27 = vpack.c.bf16 %v417_v16, %v417_v16 }
  0x41   : > { %v6752_v19 = vld [vmem:[#allocation2 + $0x7c] sm:$0xf]  ;;  %v348_v28 = vmul.f32 %v5816_v17, %v6591_v6  ;;  %v386_v29 = vadd.f32 %v6597_v8, %v347_v18  ;;  %6081 = vmatpush3.bf16.msra.mxu1 %v6383_v48  ;;  %v361_v34 = vmul.f32 %v5843_v21, %v6591_v6  ;;  %v362_v42 = vmul.f32 %v5844_v22, %v6591_v6 }
  0x42   : > { %6051 = vmatmul.mubr.msk.bf16.gmra.mxu0 %vm1074_vm7, %v5290_v15  ;;  %v835_v24 = vld [vmem:[#allocation2 + $0x80] sm:$0x1]  ;;  %v969_v25 = vrot.slane %v6752_v19, 5  ;;  %v610_v33 = vrot.slane %v5741_v20, 7  ;;  %6150 = vmatprep.subr.bf16.mxu1 %v6746_v13  ;;  %v612_v37 = vrot.slane %v5742_v27, 7  ;;  %v5848_v48 = vunpack.c.h.bf16 %v6738_v7 }
  0x43   : > { %v836_v26 = vld [vmem:[#allocation2 + $0x84] sm:$0xe]  ;;  %v972_v30 = vrot.slane %v835_v24, 5  ;;  %v387_v38 = vadd.f32 %v6597_v8, %v348_v28  ;;  %v418_v40 = vmax.f32 %v386_v29, 0.0  ;;  %v400_v43 = vadd.f32 %v6597_v8, %v361_v34 }
  0x44   : > { %v5278_v31 = vrot.slane %v836_v26, 9  ;;  %v970_v35 = vsel %vm6569_vm6, %v5277_v11, %v969_v25  ;;  %v971_v36 = vrot.slane %v969_v25, 4  ;;  %v611_v39 = vrot.slane %v610_v33, 4  ;;  %736 = vst.msk [vmem:[#allocation2 + $0x30] sm:$0xe] %vm729_vm10, %v610_v33 }
  0x45   : > { %v6769_v45 = vld [vmem:[#allocation2 + $0x88] sm:$0xf]  ;;  %v614_v46 = vrot.slane %v612_v37, 4  ;;  %v419_v47 = vmax.f32 %v387_v38, 0.0  ;;  %v5743_v55 = vpack.c.bf16 %v418_v40, %v418_v40  ;;  %v401_v60 = vadd.f32 %v6597_v8, %v362_v42 }
  0x46   : > { %v973_v44 = vsel %vm6569_vm6, %v971_v36, %v972_v30  ;;  %v837_v50 = vld [vmem:[#allocation2 + $0x8c] sm:$0x1]  ;;  %v976_v51 = vrot.slane %v6769_v45, 5  ;;  %v613_v52 = vsel %vm6634_vm11, %v611_v39, %v612_v37  ;;  %v432_v61 = vmax.f32 %v400_v43, 0.0 }
  0x47   : > { %v5297_v49 = vcombine.low %v970_v35, %v973_v44  ;;  %v979_v58 = vrot.slane %v837_v50, 5  ;;  %737 = vst.msk [vmem:[#allocation2 + $0x34] sm:$0xf] %vm444_vm0, %v613_v52  ;;  %v5744_v59 = vpack.c.bf16 %v419_v47, %v419_v47  ;;  %v615_v1 = vrot.slane %v5743_v55, 7 }
  0x48   : > { %738 = vst.msk [vmem:[#allocation2 + $0x38] sm:$0x1] %vm459_vm5, %v614_v46  ;;  %v977_v63 = vsel %vm6569_vm6, %v5278_v31, %v976_v51  ;;  %v978_v0 = vrot.slane %v976_v51, 4  ;;  %v363_v2 = vmul.f32 %v5847_v23, %v6591_v6  ;;  %v433_v5 = vmax.f32 %v401_v60, 0.0  ;;  %v5869_v23 = vld [vmem:[%s6586_s11 + $0x28] sm:$0xff]  }
  0x49   : > { %6066 = vmatprep.mubr.msk.bf16.mxu1 %vm1074_vm7, %v5297_v49  ;;  %v617_v7 = vrot.slane %v5744_v59, 7  ;;  %v5757_v9 = vpack.c.bf16 %v432_v61, %v432_v61  ;;  %v364_v11 = vmul.f32 %v5848_v48, %v6591_v6  ;;  %v616_v15 = vrot.slane %v615_v1, 4  ;;  %739 = vst.msk [vmem:[#allocation2 + $0x3c] sm:$0xe] %vm729_vm10, %v615_v1 }
  0x4a   : > { %v980_v3 = vsel %vm6569_vm6, %v978_v0, %v979_v58  ;;  %v402_v16 = vadd.f32 %v6597_v8, %v363_v2  ;;  %v5819_v17 = vunpack.c.l.bf16 %v5868_v57  ;;  %v5758_v22 = vpack.c.bf16 %v433_v5, %v433_v5  ;;  %v5876_v58 = vld [vmem:[%s6586_s11 + $0x60] sm:$0xff]  }
  0x4b   : > { %v5298_v18 = vcombine.low %v977_v63, %v980_v3  ;;  %v822_v20 = vld [vmem:[#allocation2 + $0x30] sm:$0xe]  ;;  %v619_v21 = vrot.slane %v617_v7, 4  ;;  %v650_v24 = vrot.slane %v5757_v9, 7  ;;  %v618_v26 = vsel %vm6634_vm11, %v616_v15, %v617_v7 }
  0x4c   : > { %v5271_v25 = vrot.slane %v822_v20, 9  ;;  %v403_v27 = vadd.f32 %v6597_v8, %v364_v11  ;;  %v434_v28 = vmax.f32 %v402_v16, 0.0  ;;  %740 = vst.msk [vmem:[#allocation2 + $0x40] sm:$0xf] %vm444_vm0, %v618_v26  ;;  %v652_v30 = vrot.slane %v5758_v22, 7 }
  0x4d   : > { %6067 = vmatmul.mubr.msk.bf16.gmra.mxu1 %vm1074_vm7, %v5298_v18  ;;  %741 = vst.msk [vmem:[#allocation2 + $0x44] sm:$0x1] %vm459_vm5, %v619_v21  ;;  %v651_v29 = vrot.slane %v650_v24, 4  ;;  %v5820_v31 = vunpack.c.h.bf16 %v5868_v57  ;;  %v349_v33 = vmul.f32 %v5819_v17, %v6591_v6  ;;  %v5823_v38 = vunpack.c.l.bf16 %v5869_v23 }
  0x4e   : > { %760 = vst.msk [vmem:[#allocation2 + $0x90] sm:$0xe] %vm729_vm10, %v650_v24  ;;  %v6797_v34 = vld [vmem:[#allocation2 + $0x34] sm:$0xf]  ;;  %v435_v36 = vmax.f32 %v403_v27, 0.0  ;;  %v5759_v37 = vpack.c.bf16 %v434_v28, %v434_v28  ;;  %v5824_v39 = vunpack.c.h.bf16 %v5869_v23  ;;  %v654_v44 = vrot.slane %v652_v30, 4 }
  0x4f   : > { %v823_v35 = vld [vmem:[#allocation2 + $0x38] sm:$0x1]  ;;  %v927_v40 = vrot.slane %v6797_v34, 5  ;;  %v653_v43 = vsel %vm6634_vm11, %v651_v29, %v652_v30  ;;  %v350_v48 = vmul.f32 %v5820_v31, %v6591_v6  ;;  %v388_v49 = vadd.f32 %v6597_v8, %v349_v33 }
  0x50   : > { %v930_v42 = vrot.slane %v823_v35, 5  ;;  %761 = vst.msk [vmem:[#allocation2 + $0x94] sm:$0xf] %vm444_vm0, %v653_v43  ;;  %v5760_v46 = vpack.c.bf16 %v435_v36, %v435_v36  ;;  %v655_v47 = vrot.slane %v5759_v37, 7  ;;  %v824_v52 = vld [vmem:[#allocation2 + $0x3c] sm:$0xe]  ;;  %v351_v55 = vmul.f32 %v5823_v38, %v6591_v6 }
  0x51   : > { %v928_v50 = vsel %vm6569_vm6, %v5271_v25, %v927_v40  ;;  %v929_v51 = vrot.slane %v927_v40, 4  ;;  %762 = vst.msk [vmem:[#allocation2 + $0x98] sm:$0x1] %vm459_vm5, %v654_v44  ;;  %v352_v57 = vmul.f32 %v5824_v39, %v6591_v6  ;;  %v5272_v59 = vrot.slane %v824_v52, 9 }
  0x52   : > { %v656_v60 = vrot.slane %v655_v47, 4  ;;  %v657_v61 = vrot.slane %v5760_v46, 7  ;;  %763 = vst.msk [vmem:[#allocation2 + $0x9c] sm:$0xe] %vm729_vm10, %v655_v47  ;;  %v389_v63 = vadd.f32 %v6597_v8, %v350_v48  ;;  %v420_v1 = vmax.f32 %v388_v49, 0.0  ;;  %v5877_v46 = vld [vmem:[%s6586_s11 + $0x68] sm:$0xff]  }
  0x53   : > { %v931_v0 = vsel %vm6569_vm6, %v929_v51, %v930_v42  ;;  %v390_v2 = vadd.f32 %v6597_v8, %v351_v55  ;;  %v391_v7 = vadd.f32 %v6597_v8, %v352_v57  ;;  %v6817_v9 = vld [vmem:[#allocation2 + $0x40] sm:$0xf]  ;;  %v5851_v16 = vunpack.c.l.bf16 %v5876_v58 }
  0x54   : > { %v5291_v5 = vcombine.low %v928_v50, %v931_v0  ;;  %v825_v11 = vld [vmem:[#allocation2 + $0x44] sm:$0x1]  ;;  %v658_v15 = vsel %vm6634_vm11, %v656_v60, %v657_v61  ;;  %v5852_v17 = vunpack.c.h.bf16 %v5876_v58  ;;  %v934_v18 = vrot.slane %v6817_v9, 5 }
  0x55   : > { %v838_v3 = vld [vmem:[#allocation2 + $0x90] sm:$0xe]  ;;  %v937_v20 = vrot.slane %v825_v11, 5  ;;  %v659_v22 = vrot.slane %v657_v61, 4  ;;  %764 = vst.msk [vmem:[#allocation2 + $0xa0] sm:$0xf] %vm444_vm0, %v658_v15  ;;  %v5745_v23 = vpack.c.bf16 %v420_v1, %v420_v1  ;;  %v365_v30 = vmul.f32 %v5851_v16, %v6591_v6 }
  0x56   : > { %v5279_v21 = vrot.slane %v838_v3, 9  ;;  %6054 = vmatprep.mubr.msk.bf16.mxu0 %vm1074_vm7, %v5291_v5  ;;  %v421_v24 = vmax.f32 %v389_v63, 0.0  ;;  %v422_v25 = vmax.f32 %v390_v2, 0.0  ;;  %v423_v26 = vmax.f32 %v391_v7, 0.0 }
  0x57   : > { %v935_v27 = vsel %vm6569_vm6, %v5272_v59, %v934_v18  ;;  %v936_v28 = vrot.slane %v934_v18, 4  ;;  %v6826_v29 = vld [vmem:[#allocation2 + $0x94] sm:$0xf]  ;;  %765 = vst.msk [vmem:[#allocation2 + $0xa4] sm:$0x1] %vm459_vm5, %v659_v22  ;;  %v366_v31 = vmul.f32 %v5852_v17, %v6591_v6  ;;  %v620_v37 = vrot.slane %v5745_v23, 7 }
  0x58   : > { %v839_v33 = vld [vmem:[#allocation2 + $0x98] sm:$0x1]  ;;  %v983_v35 = vrot.slane %v6826_v29, 5  ;;  %v5746_v36 = vpack.c.bf16 %v421_v24, %v421_v24  ;;  %v5747_v38 = vpack.c.bf16 %v422_v25, %v422_v25  ;;  %v5748_v43 = vpack.c.bf16 %v423_v26, %v423_v26  ;;  %v1569_v26 = vld [vmem:[#allocation2] sm:$0xc] }
  0x59   : > { %v938_v39 = vsel %vm6569_vm6, %v936_v28, %v937_v20  ;;  %v986_v40 = vrot.slane %v839_v33, 5  ;;  %v840_v42 = vld [vmem:[#allocation2 + $0x9c] sm:$0xe]  ;;  %v404_v44 = vadd.f32 %v6597_v8, %v365_v30  ;;  %742 = vst.msk [vmem:[#allocation2 + $0x48] sm:$0xe] %vm729_vm10, %v620_v37  ;;  %v621_v51 = vrot.slane %v620_v37, 4 }
  0x5a   : > { %v5292_v47 = vcombine.low %v935_v27, %v938_v39  ;;  %v984_v48 = vsel %vm6569_vm6, %v5279_v21, %v983_v35  ;;  %v985_v49 = vrot.slane %v983_v35, 4  ;;  %v5280_v50 = vrot.slane %v840_v42, 9 }
  0x5b   : > { %v622_v52 = vrot.slane %v5746_v36, 7  ;;  %v625_v55 = vrot.slane %v5747_v38, 7  ;;  %v627_v57 = vrot.slane %v5748_v43, 7  ;;  %v405_v60 = vadd.f32 %v6597_v8, %v366_v31  ;;  %v1570_v31 = vld [vmem:[#allocation2 + $0x8] sm:$0x3] }
  0x5c   : > { %6055 = vmatmul.mubr.msk.bf16.gmra.mxu0 %vm1074_vm7, %v5292_v47  ;;  %v987_v58 = vsel %vm6569_vm6, %v985_v49, %v986_v40  ;;  %v6842_v59 = vld [vmem:[#allocation2 + $0xa0] sm:$0xf]  ;;  %v436_v61 = vmax.f32 %v404_v44, 0.0  ;;  %v5855_v63 = vunpack.c.l.bf16 %v5877_v46  ;;  %v5856_v21 = vunpack.c.h.bf16 %v5877_v46 }
  0x5d   : > { %v5299_v0 = vcombine.low %v984_v48, %v987_v58  ;;  %v990_v1 = vrot.slane %v6842_v59, 5  ;;  %v623_v2 = vsel %vm6634_vm11, %v621_v51, %v622_v52  ;;  %v624_v7 = vrot.slane %v622_v52, 4  ;;  %745 = vst.msk [vmem:[#allocation2 + $0x54] sm:$0xe] %vm729_vm10, %v625_v55 }
  0x5e   : > { %v841_v5 = vld [vmem:[#allocation2 + $0xa4] sm:$0x1]  ;;  %743 = vst.msk [vmem:[#allocation2 + $0x4c] sm:$0xf] %vm444_vm0, %v623_v2  ;;  %v626_v11 = vrot.slane %v625_v55, 4  ;;  %v629_v3 = vrot.slane %v627_v57, 4  ;;  %v5761_v16 = vpack.c.bf16 %v436_v61, %v436_v61  ;;  %v367_v25 = vmul.f32 %v5855_v63, %v6591_v6 }
  0x5f   : > { %v437_v15 = vmax.f32 %v405_v60, 0.0  ;;  %6070 = vmatprep.mubr.msk.bf16.mxu1 %vm1074_vm7, %v5299_v0  ;;  %v991_v17 = vsel %vm6569_vm6, %v5280_v50, %v990_v1  ;;  %v992_v18 = vrot.slane %v990_v1, 4  ;;  %v993_v20 = vrot.slane %v841_v5, 5  ;;  %744 = vst.msk [vmem:[#allocation2 + $0x50] sm:$0x1] %vm459_vm5, %v624_v7 }
  0x60   : > { %v628_v22 = vsel %vm6634_vm11, %v626_v11, %v627_v57  ;;  %747 = vst.msk [vmem:[#allocation2 + $0x5c] sm:$0x1] %vm459_vm5, %v629_v3  ;;  %v660_v23 = vrot.slane %v5761_v16, 7  ;;  %v826_v28 = vld [vmem:[#allocation2 + $0x48] sm:$0xe]  ;;  %v368_v30 = vmul.f32 %v5856_v21, %v6591_v6  ;;  %vm1633_vm12 = vcmask 1041408  }
  0x61   : > { %v5762_v24 = vpack.c.bf16 %v437_v15, %v437_v15  ;;  %v994_v27 = vsel %vm6569_vm6, %v992_v18, %v993_v20  ;;  %746 = vst.msk [vmem:[#allocation2 + $0x58] sm:$0xf] %vm444_vm0, %v628_v22  ;;  %vm1634_vm13 = vcmask 1045508   ;;  %v406_v37 = vadd.f32 %v6597_v8, %v367_v25  ;;  %v1571_v63 = vld [vmem:[#allocation2 + $0xc] sm:$0xc] }
  0x62   : > { %v5300_v33 = vcombine.low %v991_v17, %v994_v27  ;;  %v661_v35 = vrot.slane %v660_v23, 4  ;;  %766 = vst.msk [vmem:[#allocation2 + $0xa8] sm:$0xe] %vm729_vm10, %v660_v23  ;;  %v407_v38 = vadd.f32 %v6597_v8, %v368_v30  ;;  %v5355_v39 = vrot.slane %v1569_v26, 10  ;;  %vm6875_vm14 = vmor %vm1633_vm12, %vm1634_vm13  ;;  %v1572_v5 = vld [vmem:[#allocation2 + $0x14] sm:$0x3] }
  0x63   : > { %v662_v36 = vrot.slane %v5762_v24, 7  ;;  %v1640_v40 = vrot.slane %v1638_v53, 4  ;;  %v5273_v42 = vrot.slane %v826_v28, 9  ;;  %v1641_v46 = vrot.slane %v1570_v31, 6  ;;  %v1573_v22 = vld [vmem:[#allocation2 + $0x18] sm:$0xc] }
  0x64   : > { %6071 = vmatmul.mubr.msk.bf16.gmra.mxu1 %vm1074_vm7, %v5300_v33  ;;  %v828_v6 = vld [vmem:[#allocation2 + $0x54] sm:$0xe]  ;;  %v438_v48 = vmax.f32 %v406_v37, 0.0  ;;  %v439_v49 = vmax.f32 %v407_v38, 0.0  ;;  %v1645_v50 = vrot.slane %v6604_v12, 6  ;;  %v1639_v12 = vsel %vm6875_vm14, %v5355_v39, %v1638_v53 }
  0x65   : > { %v663_v43 = vsel %vm6634_vm11, %v661_v35, %v662_v36  ;;  %v664_v44 = vrot.slane %v662_v36, 4  ;;  %v6870_v47 = vld [vmem:[#allocation2 + $0x4c] sm:$0xf]  ;;  %v5274_v58 = vrot.slane %v828_v6, 9  ;;  %v1642_v7 = vsel %vm6875_vm14, %v1640_v40, %v1641_v46  ;;  %v1574_v26 = vld [vmem:[#allocation2 + $0x20] sm:$0x3] }
  0x66   : > { %767 = vst.msk [vmem:[#allocation2 + $0xac] sm:$0xf] %vm444_vm0, %v663_v43  ;;  %v827_v51 = vld [vmem:[#allocation2 + $0x50] sm:$0x1]  ;;  %v941_v52 = vrot.slane %v6870_v47, 5  ;;  %v5763_v60 = vpack.c.bf16 %v438_v48, %v438_v48  ;;  %v5764_v61 = vpack.c.bf16 %v439_v49, %v439_v49  ;;  %v1647_v18 = vrot.slane %v1645_v50, 4 }
  0x67   : > { %768 = vst.msk [vmem:[#allocation2 + $0xb0] sm:$0x1] %vm459_vm5, %v664_v44  ;;  %v944_v55 = vrot.slane %v827_v51, 5  ;;  %v829_v57 = vld [vmem:[#allocation2 + $0x5c] sm:$0x1]  ;;  %v1652_v10 = vrot.slane %v6704_v32, 6  ;;  %v5375_v30 = vcombine.low %v1639_v12, %v1642_v7 }
  0x68   : > { %v942_v0 = vsel %vm6569_vm6, %v5273_v42, %v941_v52  ;;  %v943_v1 = vrot.slane %v941_v52, 4  ;;  %v6884_v2 = vld [vmem:[#allocation2 + $0x58] sm:$0xf]  ;;  %v951_v3 = vrot.slane %v829_v57, 5  ;;  %v665_v16 = vrot.slane %v5763_v60, 7 }
  0x69   : > { %v948_v11 = vrot.slane %v6884_v2, 5  ;;  %v842_v15 = vld [vmem:[#allocation2 + $0xa8] sm:$0xe]  ;;  %v667_v17 = vrot.slane %v5764_v61, 7  ;;  %v5356_v31 = vrot.slane %v1571_v63, 10  ;;  %v1648_v33 = vrot.slane %v1572_v5, 6 }
  0x6a   : > { %v945_v20 = vsel %vm6569_vm6, %v943_v1, %v944_v55  ;;  %v5281_v21 = vrot.slane %v842_v15, 9  ;;  %v666_v25 = vrot.slane %v665_v16, 4  ;;  %769 = vst.msk [vmem:[#allocation2 + $0xb4] sm:$0xe] %vm729_vm10, %v665_v16  ;;  %v5357_v39 = vrot.slane %v1573_v22, 10 }
  0x6b   : > { %v5293_v24 = vcombine.low %v942_v0, %v945_v20  ;;  %v949_v53 = vsel %vm6569_vm6, %v5274_v58, %v948_v11  ;;  %v950_v23 = vrot.slane %v948_v11, 4  ;;  %v669_v28 = vrot.slane %v667_v17, 4  ;;  %v1575_v48 = vld [vmem:[#allocation2 + $0x24] sm:$0xc]  ;;  %v1576_v55 = vld [vmem:[#allocation2 + $0x2c] sm:$0x3] }
  0x6c   : > { %v668_v38 = vsel %vm6634_vm11, %v666_v25, %v667_v17  ;;  %v1654_v6 = vrot.slane %v1652_v10, 4  ;;  %v1655_v43 = vrot.slane %v1574_v26, 6  ;;  %v1646_v51 = vsel %vm6875_vm14, %v5356_v31, %v1645_v50  ;;  %v1577_v0 = vld [vmem:[#allocation2 + $0x30] sm:$0xc]  ;;  %v1578_v12 = vld [vmem:[#allocation2 + $0x38] sm:$0x3] }
  0x6d   : > { %v6899_v27 = vld [vmem:[#allocation2 + $0xac] sm:$0xf]  ;;  %6058 = vmatprep.mubr.msk.bf16.mxu0 %vm1074_vm7, %v5293_v24  ;;  %v952_v35 = vsel %vm6569_vm6, %v950_v23, %v951_v3  ;;  %770 = vst.msk [vmem:[#allocation2 + $0xb8] sm:$0xf] %vm444_vm0, %v668_v38  ;;  %v1649_v52 = vsel %vm6875_vm14, %v1647_v18, %v1648_v33  ;;  %v1659_v57 = vrot.slane %v6712_v41, 6  ;;  %v1653_v61 = vsel %vm6875_vm14, %v5357_v39, %v1652_v10 }
  0x6e   : > { %v843_v36 = vld [vmem:[#allocation2 + $0xb0] sm:$0x1]  ;;  %v997_v37 = vrot.slane %v6899_v27, 5  ;;  %v5294_v40 = vcombine.low %v949_v53, %v952_v35  ;;  %771 = vst.msk [vmem:[#allocation2 + $0xbc] sm:$0x1] %vm459_vm5, %v669_v28  ;;  %v1656_v63 = vsel %vm6875_vm14, %v1654_v6, %v1655_v43  ;;  %v1666_v1 = vrot.slane %v6797_v34, 6 }
  0x6f   : > { %v1000_v42 = vrot.slane %v843_v36, 5  ;;  %v5376_v7 = vcombine.low %v1646_v51, %v1649_v52  ;;  %v778_v5 = vld [vmem:[#allocation2] sm:$0xf]  ;;  %v5358_v11 = vrot.slane %v1575_v48, 10  ;;  %v1662_v3 = vrot.slane %v1576_v55, 6  ;;  %v6952_v43 = vld [vmem:[%s8491_s3 + $0x68] sm:$0xff]  }
  0x70   : > { %v998_v44 = vsel %vm6569_vm6, %v5281_v21, %v997_v37  ;;  %v999_v46 = vrot.slane %v997_v37, 4  ;;  %6059 = vmatmul.mubr.msk.bf16.gmra.mxu0 %vm1074_vm7, %v5294_v40  ;;  %v5377_v17 = vcombine.low %v1653_v61, %v1656_v63  ;;  %v1661_v18 = vrot.slane %v1659_v57, 4  ;;  %v6388_v53 = vld [vmem:[%s8491_s3 + $0x40] sm:$0xff]   ;;  %v1579_v33 = vld [vmem:[#allocation2 + $0x3c] sm:$0xc] }
  0x71   : > { %6118 = vmatprep.mubr.msk.bf16.mxu0 %vm1074_vm7, %v5375_v30  ;;  %v844_v60 = vld [vmem:[#allocation2 + $0xb4] sm:$0xe]  ;;  %v5359_v20 = vrot.slane %v1577_v0, 10  ;;  %v1668_v10 = vrot.slane %v1666_v1, 4  ;;  %v1669_v24 = vrot.slane %v1578_v12, 6  ;;  %v1660_v30 = vsel %vm6875_vm14, %v5358_v11, %v1659_v57 }
  0x72   : > { %v1001_v49 = vsel %vm6569_vm6, %v999_v46, %v1000_v42  ;;  %v5282_v50 = vrot.slane %v844_v60, 9  ;;  %v6430_v26 = vld [vmem:[#allocation2 + $0x4] sm:$0xf]  ;;  %v1663_v31 = vsel %vm6875_vm14, %v1661_v18, %v1662_v3  ;;  %v1673_v35 = vrot.slane %v6817_v9, 6  ;;  %v1581_v39 = vld [vmem:[#allocation2 + $0x48] sm:$0xc] }
  0x73   : > { %v5301_v58 = vcombine.low %v998_v44, %v1001_v49  ;;  %v5321_v28 = vcombine.low %v778_v5, %v6430_v26  ;;  %v1667_v37 = vsel %vm6875_vm14, %v5359_v20, %v1666_v1  ;;  %v1580_v38 = vld [vmem:[#allocation2 + $0x44] sm:$0x3]  ;;  %v1680_v40 = vrot.slane %v6870_v47, 6  ;;  %v1582_v6 = vld [vmem:[#allocation2 + $0x50] sm:$0x3] }
  0x74   : > { %v6926_v15 = vld [vmem:[#allocation2 + $0xb8] sm:$0xf]  ;;  %v780_v44 = vld [vmem:[#allocation2 + $0xc] sm:$0xf]  ;;  %v5378_v46 = vcombine.low %v1660_v30, %v1663_v31  ;;  %v5360_v48 = vrot.slane %v1579_v33, 10  ;;  %v1675_v51 = vrot.slane %v1673_v35, 4 }
  0x75   : > { %6074 = vmatprep.mubr.msk.bf16.mxu1 %vm1074_vm7, %v5301_v58  ;;  %v845_v16 = vld [vmem:[#allocation2 + $0xbc] sm:$0x1]  ;;  %v1004_v21 = vrot.slane %v6926_v15, 5  ;;  %v1676_v52 = vrot.slane %v1580_v38, 6  ;;  %v5361_v55 = vrot.slane %v1581_v39, 10  ;;  %v1682_v57 = vrot.slane %v1680_v40, 4 }
  0x76   : > { %v1007_v22 = vrot.slane %v845_v16, 5  ;;  %v1683_v58 = vrot.slane %v1582_v6, 6  ;;  %v782_v60 = vld [vmem:[#allocation2 + $0x18] sm:$0xf]  ;;  %v6431_v61 = vld [vmem:[#allocation2 + $0x10] sm:$0xf]  ;;  %v1674_v0 = vsel %vm6875_vm14, %v5360_v48, %v1673_v35 }
  0x77   : > { %v1005_v23 = vsel %vm6569_vm6, %v5282_v50, %v1004_v21  ;;  %v1006_v25 = vrot.slane %v1004_v21, 4  ;;  %v5322_v63 = vcombine.low %v780_v44, %v6431_v61  ;;  %v1677_v1 = vsel %vm6875_vm14, %v1675_v51, %v1676_v52  ;;  %v1583_v12 = vld [vmem:[#allocation2 + $0x54] sm:$0xc]  ;;  %v1584_v50 = vld [vmem:[#allocation2 + $0x5c] sm:$0x3] }
  0x78   : > { %6119 = vmatmul.mubr.msk.bf16.vlgmr.msra.gmra.mxu0 %vm1074_vm7, %v5376_v7  ;;  %v1687_v7 = vrot.slane %v6884_v2, 6  ;;  %v1694_v5 = vrot.slane %v6678_v54, 6  ;;  %v5323_v11 = vcombine.low %v782_v60, %v6704_v32  ;;  %v1681_v3 = vsel %vm6875_vm14, %v5361_v55, %v1680_v40  ;;  %v1586_v18 = vld [vmem:[#allocation2 + $0x68] sm:$0x3]  ;;  %v6387_v20 = vld [vmem:[%s8491_s3 + $0x30] sm:$0xff]  }
  0x79   : > { %6187 = vmatpush3.bf16.msra.mxu0 %v6645_v62  ;;  %6122 = vmatprep.mubr.msk.bf16.mxu0 %vm1074_vm7, %v5377_v17  ;;  %v1008_v36 = vsel %vm6569_vm6, %v1006_v25, %v1007_v22  ;;  %v1670_v62 = vsel %vm6875_vm14, %v1668_v10, %v1669_v24  ;;  %v1684_v16 = vsel %vm6875_vm14, %v1682_v57, %v1683_v58  ;;  %v1585_v17 = vld [vmem:[#allocation2 + $0x60] sm:$0xc]  ;;  %v784_v21 = vld [vmem:[#allocation2 + $0x24] sm:$0xf]  ;;  %v5362_v10 = vrot.slane %v1583_v12, 10 }
  0x7a   : > { %6188 = vmatprep.subr.bf16.mxu0 %v6388_v53  ;;  %v5302_v42 = vcombine.low %v1005_v23, %v1008_v36  ;;  %v5379_v49 = vcombine.low %v1667_v37, %v1670_v62  ;;  %v5380_v22 = vcombine.low %v1674_v0, %v1677_v1  ;;  %v1690_v24 = vrot.slane %v1584_v50, 6  ;;  %v6977_v23 = vld [vmem:[%s8491_s3 + $0x58] sm:$0xff]   ;;  %v1587_v35 = vld [vmem:[#allocation2 + $0x6c] sm:$0xc]  ;;  %v1590_v40 = vld [vmem:[#allocation2 + $0x80] sm:$0x3] }
  0x7b   : > { %v5381_v54 = vcombine.low %v1681_v3, %v1684_v16  ;;  %v1689_v32 = vrot.slane %v1687_v7, 4  ;;  %v1696_v25 = vrot.slane %v1694_v5, 4  ;;  %v1697_v26 = vrot.slane %v1586_v18, 6  ;;  %v1589_v39 = vld [vmem:[#allocation2 + $0x78] sm:$0xc] }
  0x7c   : > { %6075 = vmatmul.mubr.msk.bf16.gmra.mxu1 %vm1074_vm7, %v5302_v42  ;;  %v5324_v30 = vcombine.low %v784_v21, %v6712_v41  ;;  %v1688_v31 = vsel %vm6875_vm14, %v5362_v10, %v1687_v7  ;;  %v1588_v41 = vld [vmem:[#allocation2 + $0x74] sm:$0x3]  ;;  %v1708_v38 = vrot.slane %v6752_v19, 6  ;;  %v788_v42 = vld [vmem:[#allocation2 + $0x3c] sm:$0xf]  ;;  %v5364_v44 = vrot.slane %v1587_v35, 10 }
  0x7d   : > { %6082 = vmatprep.mubr.msk.bf16.mxu1 %vm1074_vm7, %v5321_v28  ;;  %6189 = vmatpush3.bf16.msra.mxu0 %v6388_v53  ;;  %v5363_v53 = vrot.slane %v1585_v17, 10  ;;  %v786_v28 = vld [vmem:[#allocation2 + $0x30] sm:$0xf]  ;;  %v1691_v33 = vsel %vm6875_vm14, %v1689_v32, %v1690_v24  ;;  %v1698_v62 = vsel %vm6875_vm14, %v1696_v25, %v1697_v26  ;;  %v5365_v48 = vrot.slane %v1589_v39, 10  ;;  %v790_v52 = vld [vmem:[#allocation2 + $0x48] sm:$0xf] }
  0x7e   : > { %6258 = vmatprep.subr.bf16.mxu0 %v6952_v43  ;;  %v5325_v36 = vcombine.low %v786_v28, %v6797_v34  ;;  %v5382_v6 = vcombine.low %v1688_v31, %v1691_v33  ;;  %v1711_v51 = vrot.slane %v1590_v40, 6  ;;  %v5326_v55 = vcombine.low %v788_v42, %v6817_v9  ;;  %v1591_v60 = vld [vmem:[#allocation2 + $0x84] sm:$0xc]  ;;  %v1592_v61 = vld [vmem:[#allocation2 + $0x8c] sm:$0x3] }
  0x7f   : > { %v1695_v37 = vsel %vm6875_vm14, %v5363_v53, %v1694_v5  ;;  %v5327_v0 = vcombine.low %v790_v52, %v6870_v47  ;;  %v1709_v1 = vsel %vm6875_vm14, %v5365_v48, %v1708_v38  ;;  %v1593_v12 = vld [vmem:[#allocation2 + $0x90] sm:$0xc]  ;;  %v1722_v50 = vrot.slane %v6826_v29, 6  ;;  %v1594_v7 = vld [vmem:[#allocation2 + $0x98] sm:$0x3] }
  0x80   : > { %6123 = vmatmul.mubr.msk.bf16.gmra.mxu0 %vm1074_vm7, %v5378_v46  ;;  %v1704_v46 = vrot.slane %v1588_v41, 6  ;;  %v5366_v3 = vrot.slane %v1591_v60, 10  ;;  %v1718_v17 = vrot.slane %v1592_v61, 6  ;;  %v792_v47 = vld [vmem:[#allocation2 + $0x54] sm:$0xf]  ;;  %v5367_v18 = vrot.slane %v1593_v12, 10 }
  0x81   : > { %6126 = vmatprep.mubr.msk.bf16.mxu0 %vm1074_vm7, %v5379_v49  ;;  %v1710_v49 = vrot.slane %v1708_v38, 4  ;;  %v1725_v21 = vrot.slane %v1594_v7, 6  ;;  %v5328_v10 = vcombine.low %v792_v47, %v6884_v2  ;;  %v1595_v32 = vld [vmem:[#allocation2 + $0x9c] sm:$0xc]  ;;  %v1729_v53 = vrot.slane %v6842_v59, 6 }
  0x82   : > { %v6432_v25 = vld [vmem:[#allocation2 + $0x64] sm:$0xf]  ;;  %v1723_v28 = vsel %vm6875_vm14, %v5367_v18, %v1722_v50  ;;  %v1597_v31 = vld [vmem:[#allocation2 + $0xa8] sm:$0xc]  ;;  %v1736_v33 = vrot.slane %v6899_v27, 6  ;;  %v5879_v48 = vld [vmem:[%s6586_s11 + $0x78] sm:$0xff]  }
  0x83   : > { %v1712_v9 = vsel %vm6875_vm14, %v1710_v49, %v1711_v51  ;;  %v1596_v2 = vld [vmem:[#allocation2 + $0xa4] sm:$0x3]  ;;  %v1598_v35 = vld [vmem:[#allocation2 + $0xb0] sm:$0x3]  ;;  %v1731_v38 = vrot.slane %v1729_v53, 4  ;;  %v5369_v40 = vrot.slane %v1597_v31, 10  ;;  %v5863_v7 = vunpack.c.l.bf16 %v5879_v48 }
  0x84   : > { %6083 = vmatmul.mubr.msk.bf16.vlgmr.msra.gmra.mxu1 %vm1074_vm7, %v5322_v63  ;;  %v1715_v63 = vrot.slane %v6769_v45, 6  ;;  %v1732_v39 = vrot.slane %v1596_v2, 6  ;;  %v1738_v42 = vrot.slane %v1736_v33, 4  ;;  %v6433_v49 = vld [vmem:[#allocation2 + $0x70] sm:$0xf] }
  0x85   : > { %6151 = vmatpush3.bf16.msra.mxu1 %v6746_v13  ;;  %6086 = vmatprep.mubr.msk.bf16.mxu1 %vm1074_vm7, %v5323_v11  ;;  %v1701_v13 = vrot.slane %v6692_v14, 6  ;;  %v5383_v14 = vcombine.low %v1695_v37, %v1698_v62  ;;  %v5385_v11 = vcombine.low %v1709_v1, %v1712_v9  ;;  %v798_v37 = vld [vmem:[#allocation2 + $0x78] sm:$0xf]  ;;  %v5368_v62 = vrot.slane %v1595_v32, 10  ;;  %v800_v61 = vld [vmem:[#allocation2 + $0x84] sm:$0xf] }
  0x86   : > { %6152 = vmatprep.subr.bf16.mxu1 %v6387_v20  ;;  %v1717_v16 = vrot.slane %v1715_v63, 4  ;;  %v1716_v24 = vsel %vm6875_vm14, %v5366_v3, %v1715_v63  ;;  %v5331_v52 = vcombine.low %v798_v37, %v6752_v19  ;;  %v2424_v60 = vld [vmem:[#allocation2 + $0x18] sm:$0xe]  ;;  %v1737_v63 = vsel %vm6875_vm14, %v5369_v40, %v1736_v33  ;;  %v2426_v9 = vld [vmem:[#allocation2 + $0x20] sm:$0x1] }
  0x87   : > { %v1703_v34 = vrot.slane %v1701_v13, 4  ;;  %v1702_v57 = vsel %vm6875_vm14, %v5364_v44, %v1701_v13  ;;  %v796_v13 = vld [vmem:[#allocation2 + $0x6c] sm:$0xf]  ;;  %v1599_v44 = vld [vmem:[#allocation2 + $0xb4] sm:$0xc]  ;;  %v2525_v32 = vrot.slane %v2426_v9, 5 }
  0x88   : > { %6127 = vmatmul.mubr.msk.bf16.gmra.mxu0 %vm1074_vm7, %v5380_v22  ;;  %v794_v22 = vld [vmem:[#allocation2 + $0x60] sm:$0xf]  ;;  %v5330_v51 = vcombine.low %v796_v13, %v6433_v49  ;;  %v5370_v1 = vrot.slane %v1599_v44, 10  ;;  %v7047_v18 = vld [vmem:[#allocation2 + $0x28] sm:$0xf] }
  0x89   : > { %6130 = vmatprep.mubr.msk.bf16.mxu0 %vm1074_vm7, %v5381_v54  ;;  %6153 = vmatpush3.bf16.msra.mxu1 %v6387_v20  ;;  %v1705_v58 = vsel %vm6875_vm14, %v1703_v34, %v1704_v46  ;;  %v1724_v20 = vrot.slane %v1722_v50, 4  ;;  %v1719_v54 = vsel %vm6875_vm14, %v1717_v16, %v1718_v17  ;;  %v5329_v26 = vcombine.low %v794_v22, %v6432_v25  ;;  %v5878_v46 = vld [vmem:[%s6586_s11 + $0x70] sm:$0xff]   ;;  %v2436_v56 = vld [vmem:[#allocation2 + $0x48] sm:$0xe] }
  0x8a   : > { %6222 = vmatprep.subr.bf16.mxu1 %v6977_v23  ;;  %v5384_v5 = vcombine.low %v1702_v57, %v1705_v58  ;;  %v1743_v34 = vrot.slane %v6926_v15, 6  ;;  %v1733_v57 = vsel %vm6875_vm14, %v1731_v38, %v1732_v39  ;;  %v1600_v58 = vld [vmem:[#allocation2 + $0xbc] sm:$0x3]  ;;  %v5859_v12 = vunpack.c.l.bf16 %v5878_v46  ;;  %v802_v17 = vld [vmem:[#allocation2 + $0x90] sm:$0xf] }
  0x8b   : > { %v5860_v50 = vunpack.c.h.bf16 %v5878_v46  ;;  %v1746_v3 = vrot.slane %v1600_v58, 6  ;;  %v5864_v16 = vunpack.c.h.bf16 %v5879_v48  ;;  %v5332_v25 = vcombine.low %v800_v61, %v6769_v45  ;;  %v2432_v46 = vld [vmem:[#allocation2 + $0x38] sm:$0x1] }
  0x8c   : > { %6087 = vmatmul.mubr.msk.bf16.gmra.mxu1 %vm1074_vm7, %v5324_v30  ;;  %v1726_v30 = vsel %vm6875_vm14, %v1724_v20, %v1725_v21  ;;  %v6434_v20 = vld [vmem:[%s8489_s1] ss:$0 sm:$0xff]  ;;  %v1744_v13 = vsel %vm6875_vm14, %v5370_v1, %v1743_v34  ;;  %v2529_v45 = vrot.slane %v7047_v18, 5 }
  0x8d   : > { %6090 = vmatprep.mubr.msk.bf16.mxu1 %vm1074_vm7, %v5325_v36  ;;  %v5386_v36 = vcombine.low %v1716_v24, %v1719_v54  ;;  %v5387_v41 = vcombine.low %v1723_v28, %v1726_v30  ;;  %v369_v21 = vmul.f32 %v6434_v20, %v5859_v12  ;;  %v370_v22 = vmul.f32 %v6434_v20, %v5860_v50  ;;  %v7054_v28 = vld [vmem:[#allocation2 + $0x34] sm:$0xf]  ;;  %v6435_v30 = vld [vmem:[%s8490_s2] ss:$0 sm:$0xff] }
  0x8e   : > { %v5447_v24 = vrot.slane %v2424_v60, 9 }
  0x8f   : > { %v408_v2 = vadd.f32 %v6435_v30, %v369_v21  ;;  %v409_v31 = vadd.f32 %v6435_v30, %v370_v22 }
  0x90   : > { %6131 = vmatmul.mubr.msk.bf16.gmra.mxu0 %vm1074_vm7, %v5382_v6  ;;  %v1739_v6 = vrot.slane %v1598_v35, 6  ;;  %v5333_v35 = vcombine.low %v802_v17, %v6826_v29 }
  0x91   : > { %6134 = vmatprep.mubr.msk.bf16.mxu0 %vm1074_vm7, %v5383_v14  ;;  %v7029_v14 = vld [vmem:[#allocation2 + $0x1c] sm:$0xf]  ;;  %v441_v38 = vmax.f32 %v409_v31, 0.0 }
  0x92   : > { %v2522_v19 = vrot.slane %v7029_v14, 5 }
  0x93   : > { %v5766_v49 = vpack.c.bf16 %v441_v38, %v441_v38  ;;  %v6403_v38 = vld [vmem:[%s8491_s3 + $0x60] sm:$0xff]  }
  0x94   : > { %6091 = vmatmul.mubr.msk.bf16.gmra.mxu1 %vm1074_vm7, %v5326_v55  ;;  %v1730_v55 = vsel %vm6875_vm14, %v5368_v62, %v1729_v53  ;;  %v2524_v54 = vrot.slane %v2522_v19, 4  ;;  %v372_v53 = vmul.f32 %v6434_v20, %v5864_v16  ;;  %v2523_v40 = vsel %vm6569_vm6, %v5447_v24, %v2522_v19  ;;  %v806_v19 = vld [vmem:[#allocation2 + $0xa8] sm:$0xf] }
  0x95   : > { %6094 = vmatprep.mubr.msk.bf16.mxu1 %vm1074_vm7, %v5327_v0  ;;  %v1740_v0 = vsel %vm6875_vm14, %v1738_v42, %v1739_v6  ;;  %v2430_v42 = vld [vmem:[#allocation2 + $0x30] sm:$0xe]  ;;  %v2536_v6 = vrot.slane %v7054_v28, 5  ;;  %v672_v1 = vrot.slane %v5766_v49, 7  ;;  %v7128_v49 = vld [vmem:[%s8491_s3 + $0x88] sm:$0xff]  }
  0x96   : > { %v5389_v47 = vcombine.low %v1737_v63, %v1740_v0  ;;  %v411_v37 = vadd.f32 %v6435_v30, %v372_v53  ;;  %v2526_v29 = vsel %vm6569_vm6, %v2524_v54, %v2525_v32  ;;  %v7073_v63 = vld [vmem:[#allocation2 + $0x40] sm:$0xf]  ;;  %v5449_v12 = vrot.slane %v2430_v42, 9 }
  0x97   : > { %v5467_v61 = vcombine.low %v2523_v40, %v2526_v29  ;;  %v2538_v50 = vrot.slane %v2536_v6, 4  ;;  %v674_v16 = vrot.slane %v672_v1, 4  ;;  %v5335_v54 = vcombine.low %v806_v19, %v6899_v27  ;;  %v7102_v27 = vld [vmem:[#allocation2 + $0x58] sm:$0xf] }
  0x98   : > { %6135 = vmatmul.mubr.msk.bf16.gmra.mxu0 %vm1074_vm7, %v5384_v5  ;;  %v5388_v5 = vcombine.low %v1730_v55, %v1733_v57  ;;  %v443_v44 = vmax.f32 %v411_v37, 0.0  ;;  %v2531_v57 = vrot.slane %v2529_v45, 4  ;;  %v2537_v32 = vsel %vm6569_vm6, %v5449_v12, %v2536_v6  ;;  %v6390_v29 = vld [vmem:[#allocation2 + $0x18] sm:$0xff]  }
  0x99   : > { %6138 = vmatprep.mubr.msk.bf16.mxu0 %vm1074_vm7, %v5385_v11  ;;  %v1745_v11 = vrot.slane %v1743_v34, 4  ;;  %774 = vst.msk [vmem:[#allocation2 + $0xc8] sm:$0x1] %vm459_vm5, %v674_v16  ;;  %v5451_v37 = vrot.slane %v2436_v56, 9  ;;  %v7135_v12 = vld [vmem:[#allocation2 + $0x7c] sm:$0xf] }
  0x9a   : > { %v5768_v60 = vpack.c.bf16 %v443_v44, %v443_v44  ;;  %v2439_v44 = vld [vmem:[#allocation2 + $0x54] sm:$0xe] }
  0x9b   : > { %v1747_v62 = vsel %vm6875_vm14, %v1745_v11, %v1746_v3  ;;  %v7076_v11 = vld [vmem:[#allocation2 + $0x4c] sm:$0xf]  ;;  %v6394_v16 = vld [vmem:[#allocation2 + $0x30] sm:$0xff]  }
  0x9c   : > { %6095 = vmatmul.mubr.msk.bf16.gmra.mxu1 %vm1074_vm7, %v5328_v10  ;;  %v371_v10 = vmul.f32 %v6434_v20, %v5863_v7  ;;  %v5390_v55 = vcombine.low %v1744_v13, %v1747_v62  ;;  %v2539_v7 = vrot.slane %v2432_v46, 5 }
  0x9d   : > { %6098 = vmatprep.mubr.msk.bf16.mxu1 %vm1074_vm7, %v5329_v26  ;;  %v2427_v26 = vld [vmem:[#allocation2 + $0x24] sm:$0xe] }
  0x9e   : > { %v410_v33 = vadd.f32 %v6435_v30, %v371_v10  ;;  %v5448_v34 = vrot.slane %v2427_v26, 9  ;;  %v2543_v10 = vrot.slane %v7073_v63, 5  ;;  %v2540_v53 = vsel %vm6569_vm6, %v2538_v50, %v2539_v7  ;;  %v2435_v26 = vld [vmem:[#allocation2 + $0x44] sm:$0x1] }
  0x9f   : > { %v2550_v30 = vrot.slane %v7076_v11, 5  ;;  %v6392_v50 = vld [vmem:[#allocation2 + $0x24] sm:$0xff]  }
  0xa0   : > { %6139 = vmatmul.mubr.msk.bf16.gmra.mxu0 %vm1074_vm7, %v5386_v36  ;;  %v2429_v36 = vld [vmem:[#allocation2 + $0x2c] sm:$0x1]  ;;  %v442_v39 = vmax.f32 %v410_v33, 0.0  ;;  %v2530_v20 = vsel %vm6569_vm6, %v5448_v34, %v2529_v45  ;;  %v808_v33 = vld [vmem:[#allocation2 + $0xb4] sm:$0xf]  ;;  %v2546_v45 = vrot.slane %v2435_v26, 5 }
  0xa1   : > { %6142 = vmatprep.mubr.msk.bf16.mxu0 %vm1074_vm7, %v5387_v41  ;;  %v440_v41 = vmax.f32 %v408_v2, 0.0  ;;  %v2532_v58 = vrot.slane %v2429_v36, 5  ;;  %v2438_v2 = vld [vmem:[#allocation2 + $0x50] sm:$0x1]  ;;  %v2545_v36 = vrot.slane %v2543_v10, 4  ;;  %v2552_v62 = vrot.slane %v2550_v30, 4 }
  0xa2   : > { %v5336_v40 = vcombine.low %v808_v33, %v6926_v15  ;;  %v2557_v34 = vrot.slane %v7102_v27, 5  ;;  %v2551_v46 = vsel %vm6569_vm6, %v5451_v37, %v2550_v30  ;;  %v7157_v33 = vld [vmem:[#allocation2 + $0x94] sm:$0xf]  ;;  %v6396_v37 = vld [vmem:[#allocation2 + $0x48] sm:$0xff]  }
  0xa3   : > { %v5765_v48 = vpack.c.bf16 %v440_v41, %v440_v41  ;;  %v2533_v22 = vsel %vm6569_vm6, %v2531_v57, %v2532_v58  ;;  %v2553_v41 = vrot.slane %v2438_v2, 5  ;;  %v2547_v6 = vsel %vm6569_vm6, %v2545_v36, %v2546_v45  ;;  %v7130_v57 = vld [vmem:[#allocation2 + $0x70] sm:$0xf] }
  0xa4   : > { %6099 = vmatmul.mubr.msk.bf16.gmra.mxu1 %vm1074_vm7, %v5330_v51  ;;  %v5767_v51 = vpack.c.bf16 %v442_v39, %v442_v39  ;;  %v5468_v31 = vcombine.low %v2530_v20, %v2533_v22  ;;  %v7109_v39 = vld [vmem:[#allocation2 + $0x64] sm:$0xf]  ;;  %v2445_v20 = vld [vmem:[#allocation2 + $0x6c] sm:$0xe]  ;;  %v2578_v22 = vrot.slane %v7135_v12, 5 }
  0xa5   : > { %6102 = vmatprep.mubr.msk.bf16.mxu1 %vm1074_vm7, %v5331_v52  ;;  %v804_v52 = vld [vmem:[#allocation2 + $0x9c] sm:$0xf]  ;;  %v670_v0 = vrot.slane %v5765_v48, 7  ;;  %v2554_v15 = vsel %vm6569_vm6, %v2552_v62, %v2553_v41 }
  0xa6   : > { %v675_v9 = vrot.slane %v5767_v51, 7  ;;  %v2441_v48 = vld [vmem:[#allocation2 + $0x5c] sm:$0x1]  ;;  %v2442_v51 = vld [vmem:[#allocation2 + $0x60] sm:$0xe]  ;;  %v5471_v58 = vcombine.low %v2551_v46, %v2554_v15  ;;  %v2580_v56 = vrot.slane %v2578_v22, 4 }
  0xa7   : > { %v671_v3 = vrot.slane %v670_v0, 4  ;;  %772 = vst.msk [vmem:[#allocation2 + $0xc0] sm:$0xe] %vm729_vm10, %v670_v0  ;;  %v2560_v0 = vrot.slane %v2441_v48, 5 }
  0xa8   : > { %6143 = vmatmul.mubr.msk.bf16.gmra.mxu0 %vm1074_vm7, %v5388_v5  ;;  %v677_v5 = vrot.slane %v5768_v60, 7  ;;  %v676_v17 = vrot.slane %v675_v9, 4  ;;  %775 = vst.msk [vmem:[#allocation2 + $0xcc] sm:$0xe] %vm729_vm10, %v675_v9  ;;  %v5452_v60 = vrot.slane %v2439_v44, 9 }
  0xa9   : > { %6146 = vmatprep.mubr.msk.bf16.mxu0 %vm1074_vm7, %v5389_v47  ;;  %v5334_v47 = vcombine.low %v804_v52, %v6842_v59  ;;  %v673_v24 = vsel %vm6634_vm11, %v671_v3, %v672_v1  ;;  %v2444_v52 = vld [vmem:[#allocation2 + $0x68] sm:$0x1]  ;;  %v5453_v1 = vrot.slane %v2442_v51, 9  ;;  %v2571_v3 = vrot.slane %v7130_v57, 5 }
  0xaa   : > { %v679_v21 = vrot.slane %v677_v5, 4  ;;  %v678_v59 = vsel %vm6634_vm11, %v676_v17, %v677_v5  ;;  %773 = vst.msk [vmem:[#allocation2 + $0xc4] sm:$0xf] %vm444_vm0, %v673_v24  ;;  %v2567_v19 = vrot.slane %v2444_v52, 5  ;;  %v2558_v7 = vsel %vm6569_vm6, %v5452_v60, %v2557_v34  ;;  %v2450_v24 = vld [vmem:[#allocation2 + $0x80] sm:$0x1] }
  0xab   : > { %776 = vst.msk [vmem:[#allocation2 + $0xd0] sm:$0xf] %vm444_vm0, %v678_v59  ;;  %v6401_v59 = vld [vmem:[%s8491_s3 + $0x50] sm:$0xff]   ;;  %v2581_v2 = vrot.slane %v2450_v24, 5 }
  0xac   : > { %6103 = vmatmul.mubr.msk.bf16.gmra.mxu1 %vm1074_vm7, %v5332_v25  ;;  %v2433_v25 = vld [vmem:[#allocation2 + $0x3c] sm:$0xe]  ;;  %777 = vst.msk [vmem:[#allocation2 + $0xd4] sm:$0x1] %vm459_vm5, %v679_v21  ;;  %v2447_v21 = vld [vmem:[#allocation2 + $0x74] sm:$0x1] }
  0xad   : > { %6106 = vmatprep.mubr.msk.bf16.mxu1 %vm1074_vm7, %v5333_v35  ;;  %v5469_v35 = vcombine.low %v2537_v32, %v2540_v53  ;;  %v5450_v13 = vrot.slane %v2433_v25, 9  ;;  %v5454_v53 = vrot.slane %v2445_v20, 9  ;;  %v2573_v25 = vrot.slane %v2571_v3, 4  ;;  %v6397_v60 = vld [vmem:[#allocation2 + $0x54] sm:$0xff]  }
  0xae   : > { %v2574_v26 = vrot.slane %v2447_v21, 5  ;;  %v2582_v41 = vsel %vm6569_vm6, %v2580_v56, %v2581_v2  ;;  %v6400_v2 = vld [vmem:[#allocation2 + $0x78] sm:$0xff]  }
  0xaf   : > { %v2544_v42 = vsel %vm6569_vm6, %v5450_v13, %v2543_v10  ;;  %v2448_v10 = vld [vmem:[#allocation2 + $0x78] sm:$0xe]  ;;  %v6395_v13 = vld [vmem:[#allocation2 + $0x3c] sm:$0xff]  }
  0xb0   : > { %6147 = vmatmul.mubr.msk.bf16.gmra.mxu0 %vm1074_vm7, %v5390_v55  ;;  %v5470_v55 = vcombine.low %v2544_v42, %v2547_v6  ;;  %v5455_v30 = vrot.slane %v2448_v10, 9  ;;  %v2575_v36 = vsel %vm6569_vm6, %v2573_v25, %v2574_v26  ;;  %v2454_v42 = vld [vmem:[#allocation2 + $0x90] sm:$0xe]  ;;  %v2456_v6 = vld [vmem:[#allocation2 + $0x98] sm:$0x1] }
  0xb1   : > { %6190 = vmatprep.mubr.msk.bf16.mxu0 %vm1074_vm7, %v5467_v61  ;;  %v2559_v61 = vrot.slane %v2557_v34, 4  ;;  %v2595_v52 = vrot.slane %v2456_v6, 5  ;;  %v6399_v25 = vld [vmem:[#allocation2 + $0x6c] sm:$0xff]  }
  0xb2   : > { %v2579_v62 = vsel %vm6569_vm6, %v5455_v30, %v2578_v22 }
  0xb3   : > { %v2561_v5 = vsel %vm6569_vm6, %v2559_v61, %v2560_v0  ;;  %v5475_v34 = vcombine.low %v2579_v62, %v2582_v41  ;;  %v2466_v62 = vld [vmem:[#allocation2 + $0xc0] sm:$0xe]  ;;  %v2468_v41 = vld [vmem:[#allocation2 + $0xc8] sm:$0x1] }
  0xb4   : > { %6107 = vmatmul.mubr.msk.bf16.gmra.mxu1 %vm1074_vm7, %v5334_v47 }
  0xb5   : > { %6110 = vmatprep.mubr.msk.bf16.mxu1 %vm1074_vm7, %v5335_v54  ;;  %v5472_v54 = vcombine.low %v2558_v7, %v2561_v5  ;;  %v2457_v7 = vld [vmem:[#allocation2 + $0x9c] sm:$0xe]  ;;  %v2459_v5 = vld [vmem:[#allocation2 + $0xa4] sm:$0x1] }
  0xb6   : > { %v5458_v21 = vrot.slane %v2457_v7, 9  ;;  %v2602_v10 = vrot.slane %v2459_v5, 5 }
  0xb8   : > { %6191 = vmatmul.mubr.msk.bf16.vlgmr.msra.gmra.mxu0 %vm1074_vm7, %v5468_v31  ;;  %v7155_v31 = vld [vmem:[#allocation2 + $0x88] sm:$0xf] }
  0xb9   : > { %6259 = vmatpush3.bf16.msra.mxu0 %v6952_v43  ;;  %6194 = vmatprep.mubr.msk.bf16.mxu0 %vm1074_vm7, %v5469_v35  ;;  %v2564_v43 = vrot.slane %v7109_v39, 5  ;;  %v7162_v35 = vld [vmem:[%s8491_s3 + $0x78] sm:$0xff]   ;;  %v2585_v45 = vrot.slane %v7155_v31, 5 }
  0xba   : > { %6260 = vmatprep.subr.bf16.mxu0 %v6403_v38 }
  0xbb   : > { %v2566_v9 = vrot.slane %v2564_v43, 4  ;;  %v2565_v17 = vsel %vm6569_vm6, %v5453_v1, %v2564_v43  ;;  %v2587_v15 = vrot.slane %v2585_v45, 4  ;;  %v5457_v43 = vrot.slane %v2454_v42, 9 }
  0xbc   : > { %6111 = vmatmul.mubr.msk.bf16.gmra.mxu1 %vm1074_vm7, %v5336_v40  ;;  %v2453_v40 = vld [vmem:[#allocation2 + $0x8c] sm:$0x1] }
  0xbd   : > { %6261 = vmatpush3.bf16.msra.mxu0 %v6403_v38  ;;  %6154 = vmatprep.mubr.msk.bf16.mxu1 %vm1074_vm7, %v6390_v29  ;;  %v2568_v47 = vsel %vm6569_vm6, %v2566_v9, %v2567_v19  ;;  %v2451_v38 = vld [vmem:[#allocation2 + $0x84] sm:$0xe]  ;;  %v2592_v29 = vrot.slane %v7157_v33, 5  ;;  %v2588_v48 = vrot.slane %v2453_v40, 5 }
  0xbe   : > { %6330 = vmatprep.subr.bf16.mxu0 %v7128_v49  ;;  %v5473_v32 = vcombine.low %v2565_v17, %v2568_v47  ;;  %v5456_v46 = vrot.slane %v2451_v38, 9  ;;  %v6398_v9 = vld [vmem:[#allocation2 + $0x60] sm:$0xff]   ;;  %v2462_v17 = vld [vmem:[#allocation2 + $0xb0] sm:$0x1] }
  0xbf   : > { %v2594_v51 = vrot.slane %v2592_v29, 4  ;;  %v2589_v0 = vsel %vm6569_vm6, %v2587_v15, %v2588_v48  ;;  %v2593_v19 = vsel %vm6569_vm6, %v5457_v43, %v2592_v29  ;;  %v7215_v15 = vld [vmem:[#allocation2 + $0xd0] sm:$0xf]  ;;  %v6402_v48 = vld [vmem:[#allocation2 + $0x84] sm:$0xff]  }
  0xc0   : > { %6195 = vmatmul.mubr.msk.bf16.gmra.mxu0 %vm1074_vm7, %v5470_v55  ;;  %v7179_v55 = vld [vmem:[#allocation2 + $0xa0] sm:$0xf]  ;;  %v2586_v61 = vsel %vm6569_vm6, %v5456_v46, %v2585_v45  ;;  %v2465_v45 = vld [vmem:[#allocation2 + $0xbc] sm:$0x1]  ;;  %v2623_v46 = vrot.slane %v2468_v41, 5  ;;  %v3018_v41 = vrot.slane %v7054_v28, 6 }
  0xc1   : > { %6198 = vmatprep.mubr.msk.bf16.mxu0 %vm1074_vm7, %v5471_v58  ;;  %v7181_v58 = vld [vmem:[#allocation2 + $0xac] sm:$0xf]  ;;  %v2599_v1 = vrot.slane %v7179_v55, 5  ;;  %v5476_v47 = vcombine.low %v2586_v61, %v2589_v0  ;;  %v2616_v6 = vrot.slane %v2465_v45, 5  ;;  %v6416_v28 = vld [vmem:[#allocation2 + $0x60] sm:$0xff]  }
  0xc3   : > { %v2601_v22 = vrot.slane %v2599_v1, 4  ;;  %v2600_v26 = vsel %vm6569_vm6, %v5458_v21, %v2599_v1  ;;  %v2469_v1 = vld [vmem:[#allocation2 + $0xcc] sm:$0xe] }
  0xc4   : > { %6155 = vmatmul.mubr.msk.bf16.vlgmr.msra.gmra.mxu1 %vm1074_vm7, %v6392_v50  ;;  %v2596_v50 = vsel %vm6569_vm6, %v2594_v51, %v2595_v52  ;;  %v2627_v52 = vrot.slane %v7215_v15, 5  ;;  %v5462_v7 = vrot.slane %v2469_v1, 9  ;;  %v2945_v1 = vld [vmem:[#allocation2 + $0x44] sm:$0x3] }
  0xc5   : > { %6223 = vmatpush3.bf16.msra.mxu1 %v6977_v23  ;;  %6158 = vmatprep.mubr.msk.bf16.mxu1 %vm1074_vm7, %v6394_v16  ;;  %v2572_v23 = vsel %vm6569_vm6, %v5454_v53, %v2571_v3  ;;  %v2606_v3 = vrot.slane %v7181_v58, 5  ;;  %v2460_v16 = vld [vmem:[#allocation2 + $0xa8] sm:$0xe]  ;;  %v5477_v20 = vcombine.low %v2593_v19, %v2596_v50  ;;  %v7199_v53 = vld [vmem:[#allocation2 + $0xc4] sm:$0xf]  ;;  %v2603_v30 = vsel %vm6569_vm6, %v2601_v22, %v2602_v10  ;;  %v6410_v22 = vld [vmem:[#allocation2 + $0x30] sm:$0xff]  }
  0xc6   : > { %6224 = vmatprep.subr.bf16.mxu1 %v6401_v59  ;;  %v5474_v44 = vcombine.low %v2572_v23, %v2575_v36  ;;  %v5459_v24 = vrot.slane %v2460_v16, 9  ;;  %v2463_v36 = vld [vmem:[#allocation2 + $0xb4] sm:$0xe]  ;;  %v5478_v38 = vcombine.low %v2600_v26, %v2603_v30  ;;  %v2629_v5 = vrot.slane %v2627_v52, 4  ;;  %v6405_v16 = vld [vmem:[#allocation2 + $0x9c] sm:$0xff]  }
  0xc7   : > { %v5460_v29 = vrot.slane %v2463_v36, 9  ;;  %v3004_v10 = vrot.slane %v7029_v14, 6  ;;  %v6423_v14 = vld [vmem:[%s8491_s3 + $0x80] sm:$0xff]  }
  0xc8   : > { %6199 = vmatmul.mubr.msk.bf16.gmra.mxu0 %vm1074_vm7, %v5472_v54  ;;  %v2609_v54 = vrot.slane %v2462_v17, 5  ;;  %v2628_v17 = vsel %vm6569_vm6, %v5462_v7, %v2627_v52  ;;  %v3025_v52 = vrot.slane %v7073_v63, 6 }
  0xc9   : > { %6202 = vmatprep.mubr.msk.bf16.mxu0 %vm1074_vm7, %v5473_v32  ;;  %6225 = vmatpush3.bf16.msra.mxu1 %v6401_v59  ;;  %v2608_v59 = vrot.slane %v2606_v3, 4  ;;  %v7197_v32 = vld [vmem:[#allocation2 + $0xb8] sm:$0xf]  ;;  %v3006_v30 = vrot.slane %v3004_v10, 4 }
  0xca   : > { %6294 = vmatprep.subr.bf16.mxu1 %v7162_v35  ;;  %v2613_v56 = vrot.slane %v7197_v32, 5 }
  0xcb   : > { %v2610_v23 = vsel %vm6569_vm6, %v2608_v59, %v2609_v54  ;;  %v2939_v59 = vld [vmem:[#allocation2 + $0x20] sm:$0x3]  ;;  %v6407_v54 = vld [vmem:[#allocation2 + $0xb4] sm:$0xff]  }
  0xcc   : > { %6159 = vmatmul.mubr.msk.bf16.gmra.mxu1 %vm1074_vm7, %v6395_v13  ;;  %v2607_v13 = vsel %vm6569_vm6, %v5459_v24, %v2606_v3  ;;  %v2615_v42 = vrot.slane %v2613_v56, 4  ;;  %v2614_v43 = vsel %vm6569_vm6, %v5460_v29, %v2613_v56  ;;  %v2938_v24 = vld [vmem:[#allocation2 + $0x18] sm:$0xc]  ;;  %v3007_v56 = vrot.slane %v2939_v59, 6  ;;  %v6409_v29 = vld [vmem:[#allocation2 + $0xcc] sm:$0xff]  }
  0xcd   : > { %6162 = vmatprep.mubr.msk.bf16.mxu1 %vm1074_vm7, %v6396_v37  ;;  %v2620_v37 = vrot.slane %v7199_v53, 5  ;;  %v5479_v40 = vcombine.low %v2607_v13, %v2610_v23  ;;  %v5501_v26 = vrot.slane %v2938_v24, 10  ;;  %v6414_v13 = vld [vmem:[#allocation2 + $0x48] sm:$0xff]   ;;  %v3011_v23 = vrot.slane %v7047_v18, 6  ;;  %v6418_v24 = vld [vmem:[#allocation2 + $0x78] sm:$0xff]  }
  0xce   : > { %v2617_v51 = vsel %vm6569_vm6, %v2615_v42, %v2616_v6  ;;  %v3008_v45 = vsel %vm6875_vm14, %v3006_v30, %v3007_v56  ;;  %v2948_v56 = vld [vmem:[#allocation2 + $0x54] sm:$0xc] }
  0xcf   : > { %v5480_v19 = vcombine.low %v2614_v43, %v2617_v51  ;;  %v3005_v36 = vsel %vm6875_vm14, %v5501_v26, %v3004_v10  ;;  %v3013_v6 = vrot.slane %v3011_v23, 4  ;;  %v6415_v43 = vld [vmem:[#allocation2 + $0x54] sm:$0xff]  }
  0xd0   : > { %6203 = vmatmul.mubr.msk.bf16.gmra.mxu0 %vm1074_vm7, %v5474_v44  ;;  %v5461_v44 = vrot.slane %v2466_v62, 9  ;;  %v2941_v62 = vld [vmem:[#allocation2 + $0x2c] sm:$0x3]  ;;  %v5521_v18 = vcombine.low %v3005_v36, %v3008_v45  ;;  %v5506_v45 = vrot.slane %v2948_v56, 10 }
  0xd1   : > { %6206 = vmatprep.mubr.msk.bf16.mxu0 %vm1074_vm7, %v5475_v34  ;;  %v2622_v34 = vrot.slane %v2620_v37, 4 }
  0xd2   : > { %v2621_v61 = vsel %vm6569_vm6, %v5461_v44, %v2620_v37  ;;  %v2940_v37 = vld [vmem:[#allocation2 + $0x24] sm:$0xc]  ;;  %v3014_v44 = vrot.slane %v2941_v62, 6 }
  0xd3   : > { %v2624_v0 = vsel %vm6569_vm6, %v2622_v34, %v2623_v46  ;;  %v5502_v42 = vrot.slane %v2940_v37, 10  ;;  %v3020_v46 = vrot.slane %v3018_v41, 4 }
  0xd4   : > { %6163 = vmatmul.mubr.msk.bf16.gmra.mxu1 %vm1074_vm7, %v6397_v60  ;;  %v6404_v60 = vld [vmem:[#allocation2 + $0x90] sm:$0xff]   ;;  %v5481_v50 = vcombine.low %v2621_v61, %v2624_v0  ;;  %v3015_v51 = vsel %vm6875_vm14, %v3013_v6, %v3014_v44  ;;  %v2944_v0 = vld [vmem:[#allocation2 + $0x3c] sm:$0xc] }
  0xd5   : > { %6166 = vmatprep.mubr.msk.bf16.mxu1 %vm1074_vm7, %v6398_v9  ;;  %v2471_v9 = vld [vmem:[#allocation2 + $0xd4] sm:$0x1] }
  0xd6   : > { %v2630_v3 = vrot.slane %v2471_v9, 5  ;;  %v3032_v9 = vrot.slane %v7076_v11, 6  ;;  %v6422_v11 = vld [vmem:[%s8491_s3 + $0x70] sm:$0xff]  }
  0xd8   : > { %6207 = vmatmul.mubr.msk.bf16.gmra.mxu0 %vm1074_vm7, %v5476_v47  ;;  %v2631_v47 = vsel %vm6569_vm6, %v2629_v5, %v2630_v3  ;;  %v5504_v3 = vrot.slane %v2944_v0, 10 }
  0xd9   : > { %6210 = vmatprep.mubr.msk.bf16.mxu0 %vm1074_vm7, %v5477_v20  ;;  %v6406_v20 = vld [vmem:[#allocation2 + $0xa8] sm:$0xff]   ;;  %v5482_v21 = vcombine.low %v2628_v17, %v2631_v47  ;;  %v3028_v17 = vrot.slane %v2945_v1, 6 }
  0xda   : > { %v3026_v59 = vsel %vm6875_vm14, %v5504_v3, %v3025_v52  ;;  %v6421_v3 = vld [vmem:[#allocation2 + $0x9c] sm:$0xff]  }
  0xdc   : > { %6167 = vmatmul.mubr.msk.bf16.gmra.mxu1 %vm1074_vm7, %v6399_v25  ;;  %v6408_v25 = vld [vmem:[#allocation2 + $0xc0] sm:$0xff]  }
  0xdd   : > { %6170 = vmatprep.mubr.msk.bf16.mxu1 %vm1074_vm7, %v6400_v2  ;;  %v6411_v2 = vld [vmem:[#allocation2 + $0x3c] sm:$0xff]  }
  0xe0   : > { %6211 = vmatmul.mubr.msk.bf16.gmra.mxu0 %vm1074_vm7, %v5478_v38  ;;  %v2942_v38 = vld [vmem:[#allocation2 + $0x30] sm:$0xc] }
  0xe1   : > { %6214 = vmatprep.mubr.msk.bf16.mxu0 %vm1074_vm7, %v5479_v40  ;;  %v2943_v40 = vld [vmem:[#allocation2 + $0x38] sm:$0x3]  ;;  %v5503_v34 = vrot.slane %v2942_v38, 10 }
  0xe4   : > { %6171 = vmatmul.mubr.msk.bf16.gmra.mxu1 %vm1074_vm7, %v6402_v48  ;;  %v3021_v48 = vrot.slane %v2943_v40, 6 }
  0xe5   : > { %6174 = vmatprep.mubr.msk.bf16.mxu1 %vm1074_vm7, %v6404_v60  ;;  %v3019_v60 = vsel %vm6875_vm14, %v5503_v34, %v3018_v41  ;;  %v3053_v34 = vrot.slane %v7130_v57, 6 }
  0xe6   : > { %v3022_v61 = vsel %vm6875_vm14, %v3020_v46, %v3021_v48 }
  0xe7   : > { %v5523_v63 = vcombine.low %v3019_v60, %v3022_v61 }
  0xe8   : > { %6215 = vmatmul.mubr.msk.bf16.gmra.mxu0 %vm1074_vm7, %v5480_v19  ;;  %v2946_v19 = vld [vmem:[#allocation2 + $0x48] sm:$0xc] }
  0xe9   : > { %6218 = vmatprep.mubr.msk.bf16.mxu0 %vm1074_vm7, %v5481_v50  ;;  %v2947_v50 = vld [vmem:[#allocation2 + $0x50] sm:$0x3]  ;;  %v5505_v47 = vrot.slane %v2946_v19, 10 }
  0xeb   : > { %v7268_v7 = vpop.f32.mrf.mxu0  ;;  %v3033_v26 = vsel %vm6875_vm14, %v5505_v47, %v3032_v9 }
  0xec   : > { %6175 = vmatmul.mubr.msk.bf16.gmra.mxu1 %vm1074_vm7, %v6405_v16  ;;  %v3027_v16 = vrot.slane %v3025_v52, 4  ;;  %v2955_v52 = vld [vmem:[#allocation2 + $0x80] sm:$0x3] }
  0xed   : > { %6178 = vmatprep.mubr.msk.bf16.mxu1 %vm1074_vm7, %v6406_v20  ;;  %v3034_v20 = vrot.slane %v3032_v9, 4  ;;  %v7274_v10 = vpop.f32.mrf.mxu0  ;;  %v3055_v9 = vrot.slane %v3053_v34, 4 }
  0xf0   : > { %6219 = vmatmul.mubr.msk.bf16.gmra.mxu0 %vm1074_vm7, %v5482_v21  ;;  %v3035_v21 = vrot.slane %v2947_v50, 6 }
  0xf1   : > { %6262 = vmatprep.mubr.msk.bf16.mxu0 %vm1074_vm7, %v6410_v22  ;;  %v6417_v22 = vld [vmem:[#allocation2 + $0x6c] sm:$0xff]  }
  0xf2   : > { %v3036_v30 = vsel %vm6875_vm14, %v3034_v20, %v3035_v21  ;;  %v3067_v21 = vrot.slane %v7155_v31, 6 }
  0xf4   : > { %6179 = vmatmul.mubr.msk.bf16.gmra.mxu1 %vm1074_vm7, %v6407_v54  ;;  %v3029_v54 = vsel %vm6875_vm14, %v3027_v16, %v3028_v17  ;;  %v6424_v16 = vld [vmem:[#allocation2 + $0xa8] sm:$0xff]  }
  0xf5   : > { %6182 = vmatprep.mubr.msk.bf16.mxu1 %vm1074_vm7, %v6408_v25  ;;  %v3039_v25 = vrot.slane %v7102_v27, 6  ;;  %v5524_v36 = vcombine.low %v3026_v59, %v3029_v54  ;;  %v5525_v27 = vcombine.low %v3033_v26, %v3036_v30  ;;  %v2957_v59 = vld [vmem:[#allocation2 + $0x8c] sm:$0x3]  ;;  %v3074_v54 = vrot.slane %v7157_v33, 6  ;;  %v2959_v26 = vld [vmem:[#allocation2 + $0x98] sm:$0x3] }
  0xf7   : > { %v3041_v37 = vrot.slane %v3039_v25, 4  ;;  %v3040_v6 = vsel %vm6875_vm14, %v5506_v45, %v3039_v25  ;;  %v2958_v25 = vld [vmem:[#allocation2 + $0x90] sm:$0xc]  ;;  %v3077_v45 = vrot.slane %v2959_v26, 6  ;;  %v2967_v26 = vld [vmem:[#allocation2 + $0xc8] sm:$0x3] }
  0xf8   : > { %6263 = vmatmul.mubr.msk.bf16.vlgmr.msra.gmra.mxu0 %vm1074_vm7, %v6411_v2  ;;  %v2949_v2 = vld [vmem:[#allocation2 + $0x5c] sm:$0x3] }
  0xf9   : > { %6331 = vmatpush3.bf16.msra.mxu0 %v7128_v49  ;;  %6266 = vmatprep.mubr.msk.bf16.mxu0 %vm1074_vm7, %v6414_v13  ;;  %v3012_v49 = vsel %vm6875_vm14, %v5502_v42, %v3011_v23  ;;  %v2950_v13 = vld [vmem:[#allocation2 + $0x60] sm:$0xc]  ;;  %v2951_v23 = vld [vmem:[#allocation2 + $0x68] sm:$0x3]  ;;  %v3042_v62 = vrot.slane %v2949_v2, 6 }
  0xfa   : > { %6332 = vmatprep.subr.bf16.mxu0 %v6423_v14  ;;  %v5522_v5 = vcombine.low %v3012_v49, %v3015_v51  ;;  %v5507_v41 = vrot.slane %v2950_v13, 10  ;;  %v3049_v40 = vrot.slane %v2951_v23, 6  ;;  %v3060_v49 = vrot.slane %v7135_v12, 6  ;;  %v2954_v51 = vld [vmem:[#allocation2 + $0x78] sm:$0xc] }
  0xfb   : > { %v3043_v44 = vsel %vm6875_vm14, %v3041_v37, %v3042_v62  ;;  %v5509_v50 = vrot.slane %v2954_v51, 10  ;;  %v3069_v13 = vrot.slane %v3067_v21, 4  ;;  %v3070_v23 = vrot.slane %v2957_v59, 6  ;;  %v6425_v37 = vld [vmem:[#allocation2 + $0xb4] sm:$0xff]  }
  0xfc   : > { %6183 = vmatmul.mubr.msk.bf16.gmra.mxu1 %vm1074_vm7, %v6409_v29  ;;  %v6419_v29 = vld [vmem:[#allocation2 + $0x84] sm:$0xff]   ;;  %v7296_v42 = vpop.f32.mrf.mxu1  ;;  %v5526_v61 = vcombine.low %v3040_v6, %v3043_v44 }
  0xfd   : > { %6333 = vmatpush3.bf16.msra.mxu0 %v6423_v14  ;;  %6226 = vmatprep.mubr.msk.bf16.mxu1 %vm1074_vm7, %v5521_v18  ;;  %v7290_v14 = vpop.f32.mrf.mxu0  ;;  %v6420_v18 = vld [vmem:[#allocation2 + $0x90] sm:$0xff]   ;;  %v2961_v6 = vld [vmem:[#allocation2 + $0xa4] sm:$0x3] }
  0xfe   : > { %v7313_v57 = vpop.f32.mrf.mxu1 }
  0xff   : > { %8503 = vst [vmem:[#allocation3_spill] sm:$0xff] %v7313_v57  ;;  %v7585_v57 = vld [vmem:[#allocation2 + $0xa0] sm:$0xf] }
 0x100   : > { %6267 = vmatmul.mubr.msk.bf16.gmra.mxu0 %vm1074_vm7, %v6415_v43  ;;  %v2952_v43 = vld [vmem:[#allocation2 + $0x6c] sm:$0xc]  ;;  %v7318_v17 = vpop.f32.mrf.mxu1 }
 0x101   : > { %6270 = vmatprep.mubr.msk.bf16.mxu0 %vm1074_vm7, %v6416_v28  ;;  %v2953_v28 = vld [vmem:[#allocation2 + $0x74] sm:$0x3]  ;;  %v5508_v1 = vrot.slane %v2952_v43, 10  ;;  %8504 = vst [vmem:[#allocation4_spill] sm:$0xff] %v7318_v17  ;;  %v2962_v43 = vld [vmem:[#allocation2 + $0xa8] sm:$0xc] }
 0x102   : > { %v3056_v19 = vrot.slane %v2953_v28, 6  ;;  %v7335_v31 = vpop.f32.mrf.mxu1  ;;  %v2963_v28 = vld [vmem:[#allocation2 + $0xb0] sm:$0x3] }
 0x103   : > { %v3054_v47 = vsel %vm6875_vm14, %v5508_v1, %v3053_v34  ;;  %8505 = vst [vmem:[#allocation5_spill] sm:$0xff] %v7335_v31 }
 0x104   : > { %6227 = vmatmul.mubr.msk.bf16.vlgmr.msra.gmra.mxu1 %vm1074_vm7, %v5522_v5  ;;  %v3062_v5 = vrot.slane %v3060_v49, 4  ;;  %v3057_v20 = vsel %vm6875_vm14, %v3055_v9, %v3056_v19  ;;  %v2964_v9 = vld [vmem:[#allocation2 + $0xb4] sm:$0xc]  ;;  %v4305_v19 = vld [vmem:[#allocation2 + $0x30] sm:$0xc] }
 0x105   : > { %6295 = vmatpush3.bf16.msra.mxu1 %v7162_v35  ;;  %6230 = vmatprep.mubr.msk.bf16.mxu1 %vm1074_vm7, %v5523_v63  ;;  %v3046_v35 = vrot.slane %v7109_v39, 6  ;;  %v7293_v39 = vpop.f32.mrf.mxu0  ;;  %v3063_v63 = vrot.slane %v2955_v52, 6  ;;  %v5528_v56 = vcombine.low %v3054_v47, %v3057_v20  ;;  %v3095_v20 = vrot.slane %v7197_v32, 6 }
 0x106   : > { %6296 = vmatprep.subr.bf16.mxu1 %v6422_v11  ;;  %v5647_v32 = vrot.slane %v4305_v19, 10 }
 0x107   : > { %v3048_v38 = vrot.slane %v3046_v35, 4  ;;  %v3047_v46 = vsel %vm6875_vm14, %v5507_v41, %v3046_v35  ;;  %v7310_v60 = vpop.f32.mrf.mxu0  ;;  %v3081_v41 = vrot.slane %v7179_v55, 6  ;;  %v7353_v55 = vld [vmem:[#allocation2 + $0x34] sm:$0xf] }
 0x108   : > { %6271 = vmatmul.mubr.msk.bf16.gmra.mxu0 %vm1074_vm7, %v6417_v22  ;;  %v3064_v22 = vsel %vm6875_vm14, %v3062_v5, %v3063_v63  ;;  %v3091_v63 = vrot.slane %v2963_v28, 6 }
 0x109   : > { %6274 = vmatprep.mubr.msk.bf16.mxu0 %vm1074_vm7, %v6418_v24  ;;  %6297 = vmatpush3.bf16.msra.mxu1 %v6422_v11  ;;  %v3050_v48 = vsel %vm6875_vm14, %v3048_v38, %v3049_v40  ;;  %v7315_v12 = vpop.f32.mrf.mxu0  ;;  %v3061_v11 = vsel %vm6875_vm14, %v5509_v50, %v3060_v49  ;;  %v2956_v24 = vld [vmem:[#allocation2 + $0x84] sm:$0xc]  ;;  %v3083_v52 = vrot.slane %v3081_v41, 4  ;;  %v5513_v50 = vrot.slane %v2962_v43, 10 }
 0x10a   : > { %v5527_v0 = vcombine.low %v3047_v46, %v3050_v48  ;;  %v5529_v2 = vcombine.low %v3061_v11, %v3064_v22  ;;  %v5510_v35 = vrot.slane %v2956_v24, 10  ;;  %v6426_v38 = vld [vmem:[#allocation2 + $0xc0] sm:$0xff]   ;;  %v3088_v46 = vrot.slane %v7181_v58, 6 }
 0x10b   : > { %v7332_v30 = vpop.f32.mrf.mxu0  ;;  %v4371_v58 = vrot.slane %v7353_v55, 6  ;;  %v3102_v11 = vrot.slane %v7199_v53, 6  ;;  %v7374_v53 = vld [vmem:[#allocation2 + $0x40] sm:$0xf] }
 0x10c   : > { %6231 = vmatmul.mubr.msk.bf16.gmra.mxu1 %vm1074_vm7, %v5524_v36  ;;  %v5511_v36 = vrot.slane %v2958_v25, 10  ;;  %v3068_v40 = vsel %vm6875_vm14, %v5510_v35, %v3067_v21  ;;  %v3090_v5 = vrot.slane %v3088_v46, 4  ;;  %v2966_v21 = vld [vmem:[#allocation2 + $0xc0] sm:$0xc]  ;;  %v6428_v25 = vld [vmem:[#allocation2 + $0xd8] sm:$0xff]  }
 0x10d   : > { %6234 = vmatprep.mubr.msk.bf16.mxu1 %vm1074_vm7, %v5525_v27  ;;  %v3076_v27 = vrot.slane %v3074_v54, 4  ;;  %v7337_v33 = vpop.f32.mrf.mxu0  ;;  %v7340_v62 = vpop.f32.mrf.mxu1  ;;  %v4372_v28 = vsel %vm6875_vm14, %v5647_v32, %v4371_v58  ;;  %v3793_v32 = vld [vmem:[#allocation2 + $0x38] sm:$0x1] }
 0x10e   : > { %8506 = vst [vmem:[#allocation6_spill] sm:$0xff] %v7340_v62  ;;  %v3075_v44 = vsel %vm6875_vm14, %v5511_v36, %v3074_v54  ;;  %v2965_v54 = vld [vmem:[#allocation2 + $0xbc] sm:$0x3]  ;;  %v5515_v36 = vrot.slane %v2966_v21, 10  ;;  %v4322_v62 = vld [vmem:[#allocation2 + $0x98] sm:$0x3] }
 0x10f   : > { %v3078_v34 = vsel %vm6875_vm14, %v3076_v27, %v3077_v45  ;;  %v3109_v27 = vrot.slane %v7215_v15, 6  ;;  %v7381_v45 = vld [vmem:[#allocation2 + $0x4c] sm:$0xf]  ;;  %v4378_v15 = vrot.slane %v7374_v53, 6 }
 0x110   : > { %6275 = vmatmul.mubr.msk.bf16.gmra.mxu0 %vm1074_vm7, %v6419_v29  ;;  %v3071_v29 = vsel %vm6875_vm14, %v3069_v13, %v3070_v23  ;;  %v5531_v1 = vcombine.low %v3075_v44, %v3078_v34  ;;  %v3089_v13 = vsel %vm6875_vm14, %v5513_v50, %v3088_v46  ;;  %v3092_v23 = vsel %vm6875_vm14, %v3090_v5, %v3091_v63  ;;  %v2969_v34 = vld [vmem:[#allocation2 + $0xd4] sm:$0x3]  ;;  %v4307_v46 = vld [vmem:[#allocation2 + $0x3c] sm:$0xc]  ;;  %v4309_v50 = vld [vmem:[#allocation2 + $0x48] sm:$0xc] }
 0x111   : > { %6278 = vmatprep.mubr.msk.bf16.mxu0 %vm1074_vm7, %v6420_v18  ;;  %v2960_v18 = vld [vmem:[#allocation2 + $0x9c] sm:$0xc]  ;;  %v5530_v49 = vcombine.low %v3068_v40, %v3071_v29  ;;  %v3104_v40 = vrot.slane %v3102_v11, 4  ;;  %v3105_v29 = vrot.slane %v2967_v26, 6  ;;  %v5533_v43 = vcombine.low %v3089_v13, %v3092_v23  ;;  %v4310_v5 = vld [vmem:[#allocation2 + $0x50] sm:$0x3] }
 0x112   : > { %v5512_v51 = vrot.slane %v2960_v18, 10  ;;  %v2968_v18 = vld [vmem:[#allocation2 + $0xcc] sm:$0xc]  ;;  %v3111_v19 = vrot.slane %v3109_v27, 4  ;;  %v5648_v21 = vrot.slane %v4307_v46, 10  ;;  %v3889_v26 = vrot.slane %v7353_v55, 5 }
 0x113   : > { %v4388_v13 = vrot.slane %v4310_v5, 6  ;;  %v4312_v46 = vld [vmem:[#allocation2 + $0x5c] sm:$0x3] }
 0x114   : > { %6235 = vmatmul.mubr.msk.bf16.gmra.mxu1 %vm1074_vm7, %v5526_v61  ;;  %v3084_v61 = vrot.slane %v2961_v6, 6  ;;  %v3082_v22 = vsel %vm6875_vm14, %v5512_v51, %v3081_v41  ;;  %v3097_v41 = vrot.slane %v3095_v20, 4  ;;  %v4308_v51 = vld [vmem:[#allocation2 + $0x44] sm:$0x3] }
 0x115   : > { %6238 = vmatprep.mubr.msk.bf16.mxu1 %vm1074_vm7, %v5527_v0  ;;  %v7358_v0 = vpop.f32.mrf.mxu1 }
 0x116   : > { %8507 = vst [vmem:[#allocation7_spill] sm:$0xff] %v7358_v0  ;;  %v3085_v24 = vsel %vm6875_vm14, %v3083_v52, %v3084_v61  ;;  %v4385_v52 = vrot.slane %v7381_v45, 6  ;;  %v7473_v0 = vld [vmem:[#allocation2 + $0x7c] sm:$0xf] }
 0x117   : > { %v7371_v59 = vpop.f32.mrf.mxu1  ;;  %v5532_v6 = vcombine.low %v3082_v22, %v3085_v24  ;;  %v3791_v22 = vld [vmem:[#allocation2 + $0x30] sm:$0xe] }
 0x118   : > { %6279 = vmatmul.mubr.msk.bf16.gmra.mxu0 %vm1074_vm7, %v6421_v3  ;;  %v4306_v3 = vld [vmem:[#allocation2 + $0x38] sm:$0x3]  ;;  %8508 = vst [vmem:[#allocation8_spill] sm:$0xff] %v7371_v59 }
 0x119   : > { %6282 = vmatprep.mubr.msk.bf16.mxu0 %vm1074_vm7, %v6424_v16  ;;  %v6427_v16 = vld [vmem:[#allocation2 + $0xcc] sm:$0xff]   ;;  %v4374_v35 = vrot.slane %v4306_v3, 6  ;;  %v7386_v44 = vpop.f32.mrf.mxu1  ;;  %v6429_v3 = vld [vmem:[#allocation2 + $0xe4] sm:$0xff]  }
 0x11a   : > { %8509 = vst [vmem:[#allocation9_spill] sm:$0xff] %v7386_v44 }
 0x11c   : > { %6239 = vmatmul.mubr.msk.bf16.gmra.mxu1 %vm1074_vm7, %v5528_v56  ;;  %v7356_v48 = vpop.f32.mrf.mxu0  ;;  %v5514_v56 = vrot.slane %v2964_v9, 10  ;;  %v5516_v9 = vrot.slane %v2968_v18, 10 }
 0x11d   : > { %6242 = vmatprep.mubr.msk.bf16.mxu1 %vm1074_vm7, %v5529_v2  ;;  %v4373_v2 = vrot.slane %v4371_v58, 4 }
 0x11e   : > { %v7362_v47 = vpop.f32.mrf.mxu0  ;;  %v7397_v61 = vsel %vm6875_vm14, %v5514_v56, %v3095_v20  ;;  %v3112_v20 = vrot.slane %v2969_v34, 6  ;;  %v7415_v56 = vld [vmem:[#allocation2 + $0x58] sm:$0xf]  ;;  %v7420_v23 = vsel %vm6875_vm14, %v5516_v9, %v3109_v27  ;;  %v4311_v34 = vld [vmem:[#allocation2 + $0x54] sm:$0xc] }
 0x11f   : > { %v3797_v9 = vld [vmem:[#allocation2 + $0x48] sm:$0xe] }
 0x120   : > { %6283 = vmatmul.mubr.msk.bf16.gmra.mxu0 %vm1074_vm7, %v6425_v37  ;;  %v7384_v37 = vpop.f32.mrf.mxu0  ;;  %v7435_v27 = vsel %vm6875_vm14, %v3111_v19, %v3112_v20  ;;  %v3799_v19 = vld [vmem:[#allocation2 + $0x50] sm:$0x1]  ;;  %v4313_v20 = vld [vmem:[#allocation2 + $0x60] sm:$0xc] }
 0x121   : > { %6286 = vmatprep.mubr.msk.bf16.mxu0 %vm1074_vm7, %v6426_v38  ;;  %v3098_v38 = vrot.slane %v2965_v54, 6  ;;  %v4380_v54 = vrot.slane %v4378_v15, 4 }
 0x122   : > { %v7405_v63 = vpop.f32.mrf.mxu0 }
 0x123   : > { %v3099_v58 = vsel %vm6875_vm14, %v3097_v41, %v3098_v38  ;;  %v7422_v41 = vld [vmem:[#allocation2 + $0x3c] sm:$0xe]  ;;  %v8495_v38 = vrot.slane %v7374_v53, 5 }
 0x124   : > { %6243 = vmatmul.mubr.msk.bf16.gmra.mxu1 %vm1074_vm7, %v5530_v49  ;;  %v4375_v49 = vsel %vm6875_vm14, %v4373_v2, %v4374_v35  ;;  %v5649_v2 = vrot.slane %v4309_v50, 10  ;;  %v4387_v35 = vrot.slane %v4385_v52, 4  ;;  %v5534_v55 = vcombine.low %v7397_v61, %v3099_v58 }
 0x125   : > { %6246 = vmatprep.mubr.msk.bf16.mxu1 %vm1074_vm7, %v5531_v1  ;;  %v7401_v1 = vsel %vm6875_vm14, %v5515_v36, %v3102_v11  ;;  %v7412_v11 = vpop.f32.mrf.mxu1  ;;  %v5667_v24 = vcombine.low %v4372_v28, %v4375_v49  ;;  %v5593_v36 = vrot.slane %v3791_v22, 9  ;;  %v4379_v49 = vsel %vm6875_vm14, %v5648_v21, %v4378_v15 }
 0x126   : > { %8510 = vst [vmem:[#allocation10_spill] sm:$0xff] %v7412_v11  ;;  %v3891_v61 = vrot.slane %v3889_v26, 4  ;;  %v5594_v5 = vrot.slane %v7422_v41, 9  ;;  %v4386_v58 = vsel %vm6875_vm14, %v5649_v2, %v4385_v52  ;;  %v3898_v22 = vrot.slane %v8495_v38, 4  ;;  %v3802_v41 = vld [vmem:[#allocation2 + $0x5c] sm:$0x1] }
 0x127   : > { %v7438_v28 = vpop.f32.mrf.mxu1  ;;  %v7455_v21 = vsel %vm6569_vm6, %v5593_v36, %v3889_v26  ;;  %v5650_v2 = vrot.slane %v4311_v34, 10  ;;  %v3906_v11 = vrot.slane %v3799_v19, 5 }
 0x128   : > { %6287 = vmatmul.mubr.msk.bf16.gmra.mxu0 %vm1074_vm7, %v6427_v16  ;;  %v7409_v16 = vsel %vm6875_vm14, %v3104_v40, %v3105_v29  ;;  %v7425_v40 = vld [vmem:[#allocation2 + $0x64] sm:$0xf]  ;;  %8511 = vst [vmem:[#allocation11_spill] sm:$0xff] %v7438_v28 }
 0x129   : > { %6290 = vmatprep.mubr.msk.bf16.mxu0 %vm1074_vm7, %v6428_v25  ;;  %v4381_v25 = vrot.slane %v4308_v51, 6  ;;  %v5535_v18 = vcombine.low %v7401_v1, %v7409_v16  ;;  %v3892_v1 = vrot.slane %v3793_v32, 5  ;;  %v3800_v16 = vld [vmem:[#allocation2 + $0x54] sm:$0xe]  ;;  %v4399_v15 = vrot.slane %v7425_v40, 6  ;;  %v7464_v28 = vpop.f32.mrf.mxu1 }
 0x12a   : > { %8512 = vst [vmem:[#allocation12_spill] sm:$0xff] %v7464_v28  ;;  %v3913_v28 = vrot.slane %v3802_v41, 5  ;;  %v4318_v41 = vld [vmem:[#allocation2 + $0x80] sm:$0x3] }
 0x12b   : > { %v4382_v51 = vsel %vm6875_vm14, %v4380_v54, %v4381_v25  ;;  %v3910_v54 = vrot.slane %v7415_v56, 5  ;;  %v4314_v25 = vld [vmem:[#allocation2 + $0x68] sm:$0x3]  ;;  %v3893_v26 = vsel %vm6569_vm6, %v3891_v61, %v3892_v1  ;;  %v4401_v34 = vrot.slane %v4399_v15, 4  ;;  %v7484_v19 = vpop.f32.mrf.mxu1 }
 0x12c   : > { %6247 = vmatmul.mubr.msk.bf16.gmra.mxu1 %vm1074_vm7, %v5532_v6  ;;  %v3796_v6 = vld [vmem:[#allocation2 + $0x44] sm:$0x1]  ;;  %v5668_v32 = vcombine.low %v4379_v49, %v4382_v51  ;;  %v5651_v49 = vrot.slane %v4313_v20, 10  ;;  %v4402_v51 = vrot.slane %v4314_v25, 6  ;;  %8513 = vst [vmem:[#allocation13_spill] sm:$0xff] %v7484_v19 }
 0x12d   : > { %6250 = vmatprep.mubr.msk.bf16.mxu1 %vm1074_vm7, %v5533_v43  ;;  %v4392_v43 = vrot.slane %v7415_v56, 6  ;;  %v3899_v36 = vrot.slane %v3796_v6, 5  ;;  %v3912_v59 = vrot.slane %v3910_v54, 4  ;;  %v5536_v6 = vcombine.low %v7420_v23, %v7435_v27  ;;  %v3803_v20 = vld [vmem:[#allocation2 + $0x60] sm:$0xe] }
 0x12f   : > { %v7495_v27 = vsel %vm6569_vm6, %v3898_v22, %v3899_v36  ;;  %v3806_v22 = vld [vmem:[#allocation2 + $0x6c] sm:$0xe] }
 0x130   : > { %v7428_v29 = vpop.f32.mrf.mxu0  ;;  %6291 = vmatmul.mubr.msk.bf16.gmra.mxu0 %vm1074_vm7, %v6429_v3  ;;  %v4389_v3 = vsel %vm6875_vm14, %v4387_v35, %v4388_v13  ;;  %v4394_v35 = vrot.slane %v4392_v43, 4  ;;  %v4395_v13 = vrot.slane %v4312_v46, 6  ;;  %v7471_v46 = vld [vmem:[#allocation2 + $0x70] sm:$0xf] }
 0x131   : > { %6334 = vmatprep.mubr.msk.bf16.mxu0 %vm1074_vm7, %v5667_v24  ;;  %v3903_v24 = vrot.slane %v7381_v45, 5  ;;  %v5669_v38 = vcombine.low %v4386_v58, %v4389_v3  ;;  %v5595_v45 = vrot.slane %v3797_v9, 9  ;;  %v4315_v9 = vld [vmem:[#allocation2 + $0x6c] sm:$0xc]  ;;  %v5613_v58 = vcombine.low %v7455_v21, %v3893_v26 }
 0x132   : > { %v7445_v50 = vpop.f32.mrf.mxu0  ;;  %v4396_v1 = vsel %vm6875_vm14, %v4394_v35, %v4395_v13  ;;  %v8514_v3 = vrot.slane %v7374_v53, 5  ;;  %v4400_v53 = vsel %vm6875_vm14, %v5651_v49, %v4399_v15  ;;  %v3805_v15 = vld [vmem:[#allocation2 + $0x68] sm:$0x1]  ;;  %v4317_v13 = vld [vmem:[#allocation2 + $0x78] sm:$0xc]  ;;  %v5652_v36 = vrot.slane %v4315_v9, 10 }
 0x133   : > { %v3905_v44 = vrot.slane %v3903_v24, 4  ;;  %v7503_v21 = vsel %vm6569_vm6, %v5595_v45, %v3903_v24  ;;  %v7520_v24 = vsel %vm6569_vm6, %v3912_v59, %v3913_v28  ;;  %v5597_v49 = vrot.slane %v3803_v20, 9 }
 0x134   : > { %v7461_v52 = vpop.f32.mrf.mxu0  ;;  %6251 = vmatmul.mubr.msk.bf16.gmra.mxu1 %vm1074_vm7, %v5534_v55  ;;  %v5596_v55 = vrot.slane %v3800_v16, 9  ;;  %v7491_v23 = vsel %vm6569_vm6, %v5594_v5, %v8514_v3  ;;  %v4406_v16 = vrot.slane %v7471_v46, 6  ;;  %v4403_v5 = vsel %vm6875_vm14, %v4401_v34, %v4402_v51 }
 0x135   : > { %6254 = vmatprep.mubr.msk.bf16.mxu1 %vm1074_vm7, %v5535_v18  ;;  %v4393_v18 = vsel %vm6875_vm14, %v5650_v2, %v4392_v43  ;;  %v4316_v43 = vld [vmem:[#allocation2 + $0x74] sm:$0x3]  ;;  %v7512_v2 = vsel %vm6569_vm6, %v3905_v44, %v3906_v11  ;;  %v3917_v34 = vrot.slane %v7425_v40, 5  ;;  %v7525_v44 = vld [vmem:[#allocation2 + $0x88] sm:$0xf]  ;;  %v5598_v59 = vrot.slane %v3806_v22, 9 }
 0x136   : > { %v7469_v56 = vpop.f32.mrf.mxu0  ;;  %v7516_v35 = vsel %vm6569_vm6, %v5596_v55, %v3910_v54  ;;  %v4409_v45 = vrot.slane %v4316_v43, 6  ;;  %v5671_v54 = vcombine.low %v4400_v53, %v4403_v5  ;;  %v4408_v51 = vrot.slane %v4406_v16, 4  ;;  %v4319_v53 = vld [vmem:[#allocation2 + $0x84] sm:$0xc]  ;;  %v7543_v5 = vld [vmem:[#allocation2 + $0x94] sm:$0xf] }
 0x137   : > { %v3924_v28 = vrot.slane %v7471_v46, 5  ;;  %v5614_v55 = vcombine.low %v7491_v23, %v7495_v27  ;;  %v5653_v40 = vrot.slane %v4317_v13, 10  ;;  %v4416_v3 = vrot.slane %v4318_v41, 6  ;;  %v3809_v13 = vld [vmem:[#allocation2 + $0x78] sm:$0xe] }
 0x138   : > { %v7477_v61 = vpop.f32.mrf.mxu0  ;;  %6335 = vmatmul.mubr.msk.bf16.vlgmr.msra.gmra.mxu0 %vm1074_vm7, %v5668_v32  ;;  %v4413_v32 = vrot.slane %v7473_v0, 6  ;;  %v3920_v46 = vrot.slane %v3805_v15, 5  ;;  %v4407_v27 = vsel %vm6875_vm14, %v5652_v36, %v4406_v16  ;;  %v7552_v22 = vsel %vm6569_vm6, %v5597_v49, %v3917_v34  ;;  %v3811_v49 = vld [vmem:[#allocation2 + $0x80] sm:$0x1] }
 0x139   : > { %6338 = vmatprep.mubr.msk.bf16.mxu0 %vm1074_vm7, %v5669_v38  ;;  %v5670_v38 = vcombine.low %v4393_v18, %v4396_v1  ;;  %v3808_v1 = vld [vmem:[#allocation2 + $0x74] sm:$0x1]  ;;  %v3931_v15 = vrot.slane %v7473_v0, 5  ;;  %v4410_v20 = vsel %vm6875_vm14, %v4408_v51, %v4409_v45  ;;  %v3926_v16 = vrot.slane %v3924_v28, 4 }
 0x13a   : > { %v7499_v25 = vpop.f32.mrf.mxu0  ;;  %v4415_v9 = vrot.slane %v4413_v32, 4  ;;  %v3927_v36 = vrot.slane %v3808_v1, 5  ;;  %v4427_v45 = vrot.slane %v7543_v5, 6  ;;  %v3938_v1 = vrot.slane %v7525_v44, 5 }
 0x13b   : > { %v5672_v17 = vcombine.low %v4407_v27, %v4410_v20 }
 0x13c   : > { %v7522_v26 = vpop.f32.mrf.mxu0  ;;  %v7527_v11 = vpop.f32.mrf.mxu1  ;;  %6255 = vmatmul.mubr.msk.bf16.gmra.mxu1 %vm1074_vm7, %v5536_v6  ;;  %v5615_v6 = vcombine.low %v7503_v21, %v7512_v2  ;;  %v3919_v21 = vrot.slane %v3917_v34, 4  ;;  %v4320_v2 = vld [vmem:[#allocation2 + $0x8c] sm:$0x3]  ;;  %v4414_v34 = vsel %vm6875_vm14, %v5653_v40, %v4413_v32  ;;  %v4417_v0 = vsel %vm6875_vm14, %v4415_v9, %v4416_v3 }
 0x13d   : > { %8515 = vst [vmem:[#allocation14_spill] sm:$0xff] %v7527_v11  ;;  %6298 = vmatprep.mubr.msk.bf16.mxu1 %vm1074_vm7, %v5613_v58  ;;  %v4420_v58 = vrot.slane %v7525_v44, 6  ;;  %v4321_v11 = vld [vmem:[#allocation2 + $0x90] sm:$0xc]  ;;  %v4423_v19 = vrot.slane %v4320_v2, 6  ;;  %v3933_v40 = vrot.slane %v3931_v15, 4  ;;  %v7583_v2 = vsel %vm6569_vm6, %v3926_v16, %v3927_v36 }
 0x13e   : > { %v7534_v18 = vpop.f32.mrf.mxu0  ;;  %v7536_v43 = vpop.f32.mrf.mxu1  ;;  %v7578_v32 = vsel %vm6569_vm6, %v3919_v21, %v3920_v46  ;;  %v3934_v9 = vrot.slane %v3811_v49, 5  ;;  %v3814_v3 = vld [vmem:[#allocation2 + $0x8c] sm:$0x1]  ;;  %v4430_v21 = vrot.slane %v4322_v62, 6  ;;  %v3940_v36 = vrot.slane %v3938_v1, 4 }
 0x13f   : > { %8516 = vst [vmem:[#allocation15_spill] sm:$0xff] %v7536_v43 }
 0x140   : > { %v7545_v23 = vpop.f32.mrf.mxu0  ;;  %6339 = vmatmul.mubr.msk.bf16.gmra.mxu0 %vm1074_vm7, %v5670_v38  ;;  %v7555_v41 = vpop.f32.mrf.mxu1  ;;  %v7562_v38 = vsel %vm6569_vm6, %v5598_v59, %v3924_v28  ;;  %v4422_v59 = vrot.slane %v4420_v58, 4  ;;  %v5599_v28 = vrot.slane %v3809_v13, 9  ;;  %v5673_v13 = vcombine.low %v4414_v34, %v4417_v0  ;;  %v7601_v34 = vld [vmem:[#allocation2 + $0xac] sm:$0xf] }
 0x141   : > { %8517 = vst [vmem:[#allocation16_spill] sm:$0xff] %v7555_v41  ;;  %6342 = vmatprep.mubr.msk.bf16.mxu0 %vm1074_vm7, %v5671_v54  ;;  %v5654_v41 = vrot.slane %v4319_v53, 10  ;;  %v3812_v54 = vld [vmem:[#allocation2 + $0x84] sm:$0xe]  ;;  %v7609_v62 = vsel %vm6569_vm6, %v3933_v40, %v3934_v9  ;;  %v4325_v9 = vld [vmem:[#allocation2 + $0xa8] sm:$0xc] }
 0x142   : > { %v7564_v43 = vpop.f32.mrf.mxu0  ;;  %v7571_v51 = vpop.f32.mrf.mxu1  ;;  %v5600_v44 = vrot.slane %v3812_v54, 9  ;;  %v4424_v16 = vsel %vm6875_vm14, %v4422_v59, %v4423_v19  ;;  %v4434_v19 = vrot.slane %v7585_v57, 6  ;;  %v5617_v54 = vcombine.low %v7552_v22, %v7578_v32  ;;  %v3815_v32 = vld [vmem:[#allocation2 + $0x90] sm:$0xe] }
 0x143   : > { %8518 = vst [vmem:[#allocation17_spill] sm:$0xff] %v7571_v51  ;;  %v5655_v51 = vrot.slane %v4321_v11, 10  ;;  %v7593_v27 = vsel %vm6875_vm14, %v5654_v41, %v4420_v58  ;;  %v7599_v11 = vsel %vm6569_vm6, %v5599_v28, %v3931_v15  ;;  %v4323_v58 = vld [vmem:[#allocation2 + $0x9c] sm:$0xc]  ;;  %v4324_v28 = vld [vmem:[#allocation2 + $0xa4] sm:$0x3] }
 0x144   : > { %v7574_v31 = vpop.f32.mrf.mxu0  ;;  %v6084_v53 = vpop.f32.mrf.mxu1  ;;  %6299 = vmatmul.mubr.msk.bf16.vlgmr.msra.gmra.mxu1 %vm1074_vm7, %v5614_v55  ;;  %v4429_v55 = vrot.slane %v4427_v45, 4 }
 0x145   : > { %v1451_v20 = vadd.f32 %v6084_v53, %v7268_v7  ;;  %6302 = vmatprep.mubr.msk.bf16.mxu1 %vm1074_vm7, %v5615_v6  ;;  %v3941_v7 = vrot.slane %v3814_v3, 5  ;;  %v4428_v59 = vsel %vm6875_vm14, %v5655_v51, %v4427_v45  ;;  %v4441_v3 = vrot.slane %v7601_v34, 6 }
 0x146   : > { %v7589_v46 = vpop.f32.mrf.mxu0  ;;  %v1442_v49 = vpop.f32.mrf.mxu1  ;;  %v4431_v22 = vsel %vm6875_vm14, %v4429_v55, %v4430_v21  ;;  %v5656_v51 = vrot.slane %v4323_v58, 10  ;;  %v4436_v21 = vrot.slane %v4434_v19, 4  ;;  %v3945_v58 = vrot.slane %v7543_v5, 5 }
 0x147   : > { %v1443_v6 = vadd.f32 %v1442_v49, %v7274_v10  ;;  %v7613_v15 = vadd.f32 %v7477_v61, %v1451_v20  ;;  %v4437_v49 = vrot.slane %v4324_v28, 6 }
 0x148   : > { %v7604_v0 = vpop.f32.mrf.mxu0  ;;  %6343 = vmatmul.mubr.msk.bf16.gmra.mxu0 %vm1074_vm7, %v5672_v17  ;;  %v6085_v41 = vpop.f32.mrf.mxu1  ;;  %v7622_v17 = vsel %vm6569_vm6, %v5600_v44, %v3938_v1  ;;  %v4326_v44 = vld [vmem:[#allocation2 + $0xb0] sm:$0x3]  ;;  %v4435_v5 = vsel %vm6875_vm14, %v5656_v51, %v4434_v19 }
 0x149   : > { %6346 = vmatprep.mubr.msk.bf16.mxu0 %vm1074_vm7, %v5673_v13  ;;  %v1454_v61 = vadd.f32 %v6085_v41, %v7290_v14  ;;  %v7633_v53 = vadd.f32 %v7499_v25, %v1443_v6  ;;  %v5674_v13 = vcombine.low %v7593_v27, %v4424_v16  ;;  %v7640_v14 = vsel %vm6569_vm6, %v3940_v36, %v3941_v7  ;;  %v3817_v25 = vld [vmem:[#allocation2 + $0x98] sm:$0x1] }
 0x14a   : > { %v7627_v40 = vpop.f32.mrf.mxu0  ;;  %v1445_v1 = vpop.f32.mrf.mxu1  ;;  %v8519_v16 = vcombine.low %v7516_v35, %v7520_v24  ;;  %v5675_v36 = vcombine.low %v4428_v59, %v4431_v22  ;;  %v5601_v7 = vrot.slane %v3815_v32, 9  ;;  %v5657_v41 = vrot.slane %v4325_v9, 10  ;;  %v7667_v32 = vld [vmem:[#allocation2 + $0xc4] sm:$0xf] }
 0x14b   : > { %v1446_v20 = vadd.f32 %v1445_v1, %v7293_v39  ;;  %v7646_v6 = vadd.f32 %v7522_v26, %v1454_v61  ;;  %v7653_v39 = vld [vmem:[#allocation2 + $0xb8] sm:$0xf]  ;;  %v3818_v26 = vld [vmem:[#allocation2 + $0x9c] sm:$0xe]  ;;  %v4443_v61 = vrot.slane %v4441_v3, 4  ;;  %v4444_v45 = vrot.slane %v4326_v44, 6 }
 0x14c   : > { %v7643_v55 = vpop.f32.mrf.mxu0  ;;  %v6088_v27 = vpop.f32.mrf.mxu1  ;;  %6303 = vmatmul.mubr.msk.bf16.gmra.mxu1 %vm1074_vm7, %v8519_v16  ;;  %v3948_v22 = vrot.slane %v3817_v25, 5  ;;  %v4327_v44 = vld [vmem:[#allocation2 + $0xb4] sm:$0xc]  ;;  %v5602_v25 = vrot.slane %v3818_v26, 9  ;;  %v3820_v16 = vld [vmem:[#allocation2 + $0xa4] sm:$0x1] }
 0x14d   : > { %v1467_v1 = vadd.f32 %v6088_v27, %v7310_v60  ;;  %6306 = vmatprep.mubr.msk.bf16.mxu1 %vm1074_vm7, %v5617_v54  ;;  %v7660_v35 = vadd.f32 %v7534_v18, %v1446_v20  ;;  %v3952_v60 = vrot.slane %v7585_v57, 5  ;;  %v4438_v18 = vsel %vm6875_vm14, %v4436_v21, %v4437_v49  ;;  %v4328_v20 = vld [vmem:[#allocation2 + $0xbc] sm:$0x3] }
 0x14e   : > { %v7657_v28 = vpop.f32.mrf.mxu0  ;;  %v1458_v24 = vpop.f32.mrf.mxu1  ;;  %v4448_v27 = vrot.slane %v7653_v39, 6  ;;  %v7682_v57 = vsel %vm6569_vm6, %v5601_v7, %v3945_v58  ;;  %v5658_v59 = vrot.slane %v4327_v44, 10  ;;  %v4451_v10 = vrot.slane %v4328_v20, 6 }
 0x14f   : > { %8520 = vst [vmem:[#allocation18_spill] sm:$0xff] %v7660_v35  ;;  %v1459_v54 = vadd.f32 %v1458_v24, %v7315_v12  ;;  %v7677_v19 = vadd.f32 %v7545_v23, %v1467_v1  ;;  %v3947_v12 = vrot.slane %v3945_v58, 4  ;;  %v4445_v23 = vsel %vm6875_vm14, %v4443_v61, %v4444_v45  ;;  %v4329_v1 = vld [vmem:[#allocation2 + $0xc0] sm:$0xc]  ;;  %v3823_v35 = vld [vmem:[#allocation2 + $0xb0] sm:$0x1] }
 0x150   : > { %v7670_v9 = vpop.f32.mrf.mxu0  ;;  %6347 = vmatmul.mubr.msk.bf16.gmra.mxu0 %vm1074_vm7, %v5674_v13  ;;  %v6089_v51 = vpop.f32.mrf.mxu1  ;;  %v4442_v13 = vsel %vm6875_vm14, %v5657_v41, %v4441_v3  ;;  %v5676_v58 = vcombine.low %v4435_v5, %v4438_v18  ;;  %v3954_v26 = vrot.slane %v3952_v60, 4  ;;  %v4330_v3 = vld [vmem:[#allocation2 + $0xc8] sm:$0x3]  ;;  %v3959_v45 = vrot.slane %v7601_v34, 5 }
 0x151   : > { %8521 = vst [vmem:[#allocation19_spill] sm:$0xff] %v7677_v19  ;;  %6350 = vmatprep.mubr.msk.bf16.mxu0 %vm1074_vm7, %v5675_v36  ;;  %v1470_v21 = vadd.f32 %v6089_v51, %v7332_v30  ;;  %v4455_v36 = vrot.slane %v7667_v32, 6  ;;  %v7693_v24 = vadd.f32 %v7564_v43, %v1459_v54  ;;  %v4450_v51 = vrot.slane %v4448_v27, 4  ;;  %v3821_v19 = vld [vmem:[#allocation2 + $0xa8] sm:$0xe] }
 0x152   : > { %v7687_v49 = vpop.f32.mrf.mxu0  ;;  %v1461_v7 = vpop.f32.mrf.mxu1  ;;  %v8522_v5 = vcombine.low %v7562_v38, %v7583_v2  ;;  %v3949_v54 = vsel %vm6569_vm6, %v3947_v12, %v3948_v22  ;;  %v5677_v18 = vcombine.low %v4442_v13, %v4445_v23  ;;  %v5659_v44 = vrot.slane %v4329_v1, 10  ;;  %v7715_v38 = vld [vmem:[#allocation2 + $0xd0] sm:$0xf]  ;;  %v7726_v13 = vld [vmem:[#allocation2 + $0xdc] sm:$0xf] }
 0x153   : > { %v1462_v30 = vadd.f32 %v1461_v7, %v7337_v33  ;;  %v7700_v61 = vadd.f32 %v7574_v31, %v1470_v21  ;;  %v3955_v33 = vrot.slane %v3820_v16, 5  ;;  %v8523_v34 = vcombine.low %v7599_v11, %v7609_v62 }
 0x154   : > { %v7696_v41 = vpop.f32.mrf.mxu0  ;;  %v6092_v43 = vpop.f32.mrf.mxu1  ;;  %6307 = vmatmul.mubr.msk.bf16.gmra.mxu1 %vm1074_vm7, %v8522_v5  ;;  %v4457_v21 = vrot.slane %v4455_v36, 4  ;;  %v4458_v7 = vrot.slane %v4330_v3, 6  ;;  %v7722_v12 = vsel %vm6569_vm6, %v5602_v25, %v3952_v60  ;;  %v5603_v11 = vrot.slane %v3821_v19, 9  ;;  %v3824_v3 = vld [vmem:[#allocation2 + $0xb4] sm:$0xe] }
 0x155   : > { %v1483_v20 = vadd.f32 %v6092_v43, %v7356_v48  ;;  %6310 = vmatprep.mubr.msk.bf16.mxu1 %vm1074_vm7, %v8523_v34  ;;  %v7718_v2 = vadd.f32 %v7589_v46, %v1462_v30  ;;  %v4449_v48 = vsel %vm6875_vm14, %v5658_v59, %v4448_v27  ;;  %v3962_v62 = vrot.slane %v3823_v35, 5  ;;  %v4331_v27 = vld [vmem:[#allocation2 + $0xcc] sm:$0xc]  ;;  %v4333_v30 = vld [vmem:[#allocation2 + $0xd8] sm:$0xc] }
 0x156   : > { %v7713_v31 = vpop.f32.mrf.mxu0  ;;  %v1474_v22 = vpop.f32.mrf.mxu1  ;;  %v4452_v46 = vsel %vm6875_vm14, %v4450_v51, %v4451_v10  ;;  %v3961_v1 = vrot.slane %v3959_v45, 4  ;;  %v5621_v59 = vcombine.low %v7682_v57, %v3949_v54  ;;  %v7740_v35 = vsel %vm6569_vm6, %v3954_v26, %v3955_v33  ;;  %v4332_v57 = vld [vmem:[#allocation2 + $0xd4] sm:$0x3]  ;;  %v4334_v33 = vld [vmem:[#allocation2 + $0xe0] sm:$0x3] }
 0x157   : > { %v1475_v16 = vadd.f32 %v1474_v22, %v7362_v47  ;;  %v7735_v60 = vadd.f32 %v7604_v0, %v1483_v20  ;;  %v4456_v47 = vsel %vm6875_vm14, %v5659_v44, %v4455_v36  ;;  %v4462_v10 = vrot.slane %v7715_v38, 6  ;;  %v3826_v34 = vld [vmem:[#allocation2 + $0xbc] sm:$0x1] }
 0x158   : > { %v7729_v23 = vpop.f32.mrf.mxu0  ;;  %6351 = vmatmul.mubr.msk.bf16.gmra.mxu0 %vm1074_vm7, %v5676_v58  ;;  %v6093_v25 = vpop.f32.mrf.mxu1  ;;  %v4459_v0 = vsel %vm6875_vm14, %v4457_v21, %v4458_v7  ;;  %v4469_v26 = vrot.slane %v7726_v13, 6  ;;  %v5678_v5 = vcombine.low %v4449_v48, %v4452_v46  ;;  %v7757_v36 = vsel %vm6569_vm6, %v5603_v11, %v3959_v45 }
 0x159   : > { %6354 = vmatprep.mubr.msk.bf16.mxu0 %vm1074_vm7, %v5677_v18  ;;  %v1486_v19 = vadd.f32 %v6093_v25, %v7384_v37  ;;  %v7753_v51 = vadd.f32 %v7627_v40, %v1475_v16  ;;  %v5604_v54 = vrot.slane %v3824_v3, 9  ;;  %v3966_v37 = vrot.slane %v7653_v39, 5 }
 0x15a   : > { %v7747_v58 = vpop.f32.mrf.mxu0  ;;  %v1477_v43 = vpop.f32.mrf.mxu1  ;;  %v3963_v20 = vsel %vm6569_vm6, %v3961_v1, %v3962_v62  ;;  %v5660_v40 = vrot.slane %v4331_v27, 10  ;;  %v8524_v45 = vcombine.low %v7622_v17, %v7640_v14  ;;  %v5679_v39 = vcombine.low %v4456_v47, %v4459_v0 }
 0x15b   : > { %v1478_v18 = vadd.f32 %v1477_v43, %v7405_v63  ;;  %v7766_v21 = vadd.f32 %v7643_v55, %v1486_v19  ;;  %v4464_v22 = vrot.slane %v4462_v10, 4  ;;  %v4465_v48 = vrot.slane %v4332_v57, 6  ;;  %v7776_v55 = vld [vmem:[#allocation2 + $0xe8] sm:$0xf] }
 0x15c   : > { %v7761_v44 = vpop.f32.mrf.mxu0  ;;  %v6096_v7 = vpop.f32.mrf.mxu1  ;;  %6311 = vmatmul.mubr.msk.bf16.gmra.mxu1 %vm1074_vm7, %v8524_v45  ;;  %v5661_v63 = vrot.slane %v4333_v30, 10  ;;  %v4471_v16 = vrot.slane %v4469_v26, 4  ;;  %v4472_v46 = vrot.slane %v4334_v33, 6  ;;  %v3968_v14 = vrot.slane %v3966_v37, 4  ;;  %v3829_v19 = vld [vmem:[#allocation2 + $0xc8] sm:$0x1] }
 0x15d   : > { %v1499_v11 = vadd.f32 %v6096_v7, %v7428_v29  ;;  %6314 = vmatprep.mubr.msk.bf16.mxu1 %vm1074_vm7, %v5621_v59  ;;  %v7779_v1 = vadd.f32 %v7657_v28, %v1478_v18  ;;  %v3969_v3 = vrot.slane %v3826_v34, 5  ;;  %v3973_v25 = vrot.slane %v7667_v32, 5  ;;  %v3827_v28 = vld [vmem:[#allocation2 + $0xc0] sm:$0xe] }
 0x15e   : > { %v7774_v62 = vpop.f32.mrf.mxu0  ;;  %v1490_v17 = vpop.f32.mrf.mxu1  ;;  %v5622_v29 = vcombine.low %v7722_v12, %v7740_v35  ;;  %v7790_v27 = vsel %vm6569_vm6, %v5604_v54, %v3966_v37  ;;  %v5623_v32 = vcombine.low %v7757_v36, %v3963_v20  ;;  %v4466_v12 = vsel %vm6875_vm14, %v4464_v22, %v4465_v48  ;;  %v4335_v36 = vld [vmem:[#allocation2 + $0xe4] sm:$0xc]  ;;  %v4336_v54 = vld [vmem:[#allocation2 + $0xec] sm:$0x3] }
 0x15f   : > { %v1491_v47 = vadd.f32 %v1490_v17, %v7445_v50  ;;  %v7793_v0 = vadd.f32 %v7670_v9, %v1499_v11  ;;  %v4463_v50 = vsel %vm6875_vm14, %v5660_v40, %v4462_v10  ;;  %v4476_v35 = vrot.slane %v7776_v55, 6 }
 0x160   : > { %v7785_v59 = vpop.f32.mrf.mxu0  ;;  %6355 = vmatmul.mubr.msk.bf16.gmra.mxu0 %vm1074_vm7, %v5678_v5  ;;  %v6097_v57 = vpop.f32.mrf.mxu1  ;;  %v4470_v9 = vsel %vm6875_vm14, %v5661_v63, %v4469_v26  ;;  %v4473_v5 = vsel %vm6875_vm14, %v4471_v16, %v4472_v46  ;;  %v3970_v33 = vsel %vm6569_vm6, %v3968_v14, %v3969_v3  ;;  %v5605_v18 = vrot.slane %v3827_v28, 9  ;;  %v3830_v16 = vld [vmem:[#allocation2 + $0xcc] sm:$0xe]  ;;  %v3832_v14 = vld [vmem:[#allocation2 + $0xd4] sm:$0x1] }
 0x161   : > { %6358 = vmatprep.mubr.msk.bf16.mxu0 %vm1074_vm7, %v5679_v39  ;;  %v1502_v30 = vadd.f32 %v6097_v57, %v7461_v52  ;;  %v7810_v37 = vadd.f32 %v7687_v49, %v1491_v47  ;;  %v3975_v20 = vrot.slane %v3973_v25, 4  ;;  %v3976_v52 = vrot.slane %v3829_v19, 5  ;;  %v8525_v47 = vld [vmem:[#allocation3_spill] sm:$0xff]  ;;  %v3835_v19 = vld [vmem:[#allocation2 + $0xe0] sm:$0x1] }
 0x162   : > { %v7803_v43 = vpop.f32.mrf.mxu0  ;;  %v1493_v10 = vpop.f32.mrf.mxu1  ;;  %v5680_v26 = vcombine.low %v4463_v50, %v4466_v12  ;;  %v3980_v7 = vrot.slane %v7715_v38, 5  ;;  %v5681_v49 = vcombine.low %v4470_v9, %v4473_v5  ;;  %v5662_v22 = vrot.slane %v4335_v36, 10  ;;  %v8526_v12 = vld [vmem:[#allocation4_spill] sm:$0xff] }
 0x163   : > { %v1494_v34 = vadd.f32 %v1493_v10, %v7469_v56  ;;  %v7819_v45 = vadd.f32 %v7696_v41, %v1502_v30  ;;  %v4478_v48 = vrot.slane %v4476_v35, 4  ;;  %v4479_v63 = vrot.slane %v4336_v54, 6 }
 0x164   : > { %v7815_v40 = vpop.f32.mrf.mxu0  ;;  %v6100_v39 = vpop.f32.mrf.mxu1  ;;  %6315 = vmatmul.mubr.msk.bf16.gmra.mxu1 %vm1074_vm7, %v5622_v29  ;;  %v3974_v41 = vsel %vm6569_vm6, %v5605_v18, %v3973_v25  ;;  %v3977_v17 = vsel %vm6569_vm6, %v3975_v20, %v3976_v52  ;;  %v3987_v3 = vrot.slane %v7726_v13, 5  ;;  %v5624_v29 = vcombine.low %v7790_v27, %v3970_v33  ;;  %v8527_v20 = vld [vmem:[#allocation5_spill] sm:$0xff] }
 0x165   : > { %v1515_v11 = vadd.f32 %v6100_v39, %v7296_v42  ;;  %6318 = vmatprep.mubr.msk.bf16.mxu1 %vm1074_vm7, %v5623_v32  ;;  %v7827_v46 = vadd.f32 %v7713_v31, %v1494_v34  ;;  %v3833_v31 = vld [vmem:[#allocation2 + $0xd8] sm:$0xe]  ;;  %v5606_v32 = vrot.slane %v3830_v16, 9  ;;  %v3982_v50 = vrot.slane %v3980_v7, 4 }
 0x166   : > { %v7824_v56 = vpop.f32.mrf.mxu0  ;;  %v1506_v38 = vpop.f32.mrf.mxu1  ;;  %v4477_v13 = vsel %vm6875_vm14, %v5662_v22, %v4476_v35  ;;  %v4480_v27 = vsel %vm6875_vm14, %v4478_v48, %v4479_v63  ;;  %v5625_v5 = vcombine.low %v3974_v41, %v3977_v17  ;;  %v3983_v36 = vrot.slane %v3832_v14, 5  ;;  %v3838_v41 = vld [vmem:[#allocation2 + $0xec] sm:$0x1]  ;;  %v8529_v17 = vld [vmem:[#allocation7_spill] sm:$0xff] }
 0x167   : > { %v1507_v42 = vadd.f32 %v1506_v38, %v8525_v47  ;;  %v7840_v57 = vadd.f32 %v7729_v23, %v1515_v11  ;;  %v5607_v10 = vrot.slane %v3833_v31, 9  ;;  %v3989_v33 = vrot.slane %v3987_v3, 4  ;;  %v3836_v11 = vld [vmem:[#allocation2 + $0xe4] sm:$0xe] }
 0x168   : > { %v7836_v28 = vpop.f32.mrf.mxu0  ;;  %6359 = vmatmul.mubr.msk.bf16.gmra.mxu0 %vm1074_vm7, %v5680_v26  ;;  %v6101_v25 = vpop.f32.mrf.mxu1  ;;  %v3990_v18 = vrot.slane %v3835_v19, 5  ;;  %v5682_v26 = vcombine.low %v4477_v13, %v4480_v27  ;;  %v3994_v39 = vrot.slane %v7776_v55, 5  ;;  %v3984_v48 = vsel %vm6569_vm6, %v3982_v50, %v3983_v36  ;;  %v8530_v19 = vld [vmem:[#allocation8_spill] sm:$0xff] }
 0x169   : > { %6362 = vmatprep.mubr.msk.bf16.mxu0 %vm1074_vm7, %v5681_v49  ;;  %v1518_v30 = vadd.f32 %v6101_v25, %v8526_v12  ;;  %v7849_v54 = vadd.f32 %v7747_v58, %v1507_v42  ;;  %v8528_v49 = vld [vmem:[#allocation6_spill] sm:$0xff]  ;;  %v3981_v58 = vsel %vm6569_vm6, %v5606_v32, %v3980_v7  ;;  %v3988_v38 = vsel %vm6569_vm6, %v5607_v10, %v3987_v3  ;;  %v8531_v12 = vld [vmem:[#allocation9_spill] sm:$0xff] }
 0x16a   : > { %v1991_v9 = vpop.f32.mrf.mxu0  ;;  %v1509_v23 = vpop.f32.mrf.mxu1  ;;  %v3991_v55 = vsel %vm6569_vm6, %v3989_v33, %v3990_v18  ;;  %v3996_v31 = vrot.slane %v3994_v39, 4  ;;  %v3997_v50 = vrot.slane %v3838_v41, 5 }
 0x16b   : > { %v1510_v52 = vadd.f32 %v1509_v23, %v8527_v20  ;;  %v7853_v35 = vadd.f32 %v7761_v44, %v1518_v30  ;;  %v5627_v3 = vcombine.low %v3988_v38, %v3991_v55  ;;  %v8532_v23 = vld [vmem:[#allocation10_spill] sm:$0xff]  ;;  %v8535_v38 = vld [vmem:[#allocation13_spill] sm:$0xff] }
 0x16c   : > { %v6145_v34 = vpop.f32.mrf.mxu0  ;;  %v6104_v8 = vpop.f32.mrf.mxu1  ;;  %6319 = vmatmul.mubr.msk.bf16.gmra.mxu1 %vm1074_vm7, %v5624_v29  ;;  %v5626_v29 = vcombine.low %v3981_v58, %v3984_v48  ;;  %v8534_v48 = vld [vmem:[#allocation12_spill] sm:$0xff] }
 0x16d   : > { %v1531_v22 = vadd.f32 %v6104_v8, %v8528_v49  ;;  %6322 = vmatprep.mubr.msk.bf16.mxu1 %vm1074_vm7, %v5625_v5  ;;  %v7864_v44 = vadd.f32 %v7774_v62, %v1510_v52  ;;  %v5608_v62 = vrot.slane %v3836_v11, 9 }
 0x16e   : > { %v1994_v63 = vpop.f32.mrf.mxu0  ;;  %v1522_v16 = vpop.f32.mrf.mxu1 }
 0x16f   : > { %v1523_v14 = vadd.f32 %v1522_v16, %v8529_v17  ;;  %v7873_v7 = vadd.f32 %v7785_v59, %v1531_v22  ;;  %v3995_v33 = vsel %vm6569_vm6, %v5608_v62, %v3994_v39 }
 0x170   : > { %v6148_v47 = vpop.f32.mrf.mxu0  ;;  %6363 = vmatmul.mubr.msk.bf16.gmra.mxu0 %vm1074_vm7, %v5682_v26  ;;  %v6105_v42 = vpop.f32.mrf.mxu1 }
 0x171   : > { %v1534_v25 = vadd.f32 %v6105_v42, %v8530_v19  ;;  %v7877_v13 = vadd.f32 %v7803_v43, %v1523_v14  ;;  %v3998_v43 = vsel %vm6569_vm6, %v3996_v31, %v3997_v50  ;;  %v8536_v14 = vld [vmem:[#allocation14_spill] sm:$0xff]  ;;  %v8537_v31 = vld [vmem:[#allocation15_spill] sm:$0xff]  ;;  %v8538_v50 = vld [vmem:[#allocation16_spill] sm:$0xff] }
 0x172   : > { %v2007_v32 = vpop.f32.mrf.mxu0  ;;  %v1525_v27 = vpop.f32.mrf.mxu1  ;;  %v5628_v58 = vcombine.low %v3995_v33, %v3998_v43 }
 0x173   : > { %v1526_v30 = vadd.f32 %v1525_v27, %v8531_v12  ;;  %v7881_v36 = vadd.f32 %v7815_v40, %v1534_v25  ;;  %v8533_v40 = vld [vmem:[#allocation11_spill] sm:$0xff] }
 0x174   : > { %v6149_v5 = vpop.f32.mrf.mxu0  ;;  %v6108_v59 = vpop.f32.mrf.mxu1  ;;  %6323 = vmatmul.mubr.msk.bf16.gmra.mxu1 %vm1074_vm7, %v5626_v29 }
 0x175   : > { %v1547_v10 = vadd.f32 %v6108_v59, %v8532_v23  ;;  %6326 = vmatprep.mubr.msk.bf16.mxu1 %vm1074_vm7, %v5627_v3  ;;  %v7891_v20 = vadd.f32 %v7824_v56, %v1526_v30  ;;  %v8539_v59 = vld [vmem:[#allocation17_spill] sm:$0xff] }
 0x176   : > { %v2010_v18 = vpop.f32.mrf.mxu0  ;;  %v1538_v52 = vpop.f32.mrf.mxu1 }
 0x177   : > { %v1539_v26 = vadd.f32 %v1538_v52, %v8533_v40  ;;  %v7895_v49 = vadd.f32 %v7836_v28, %v1547_v10 }
 0x178   : > { %v6192_v8 = vpop.f32.mrf.mxu0  ;;  %v6109_v22 = vpop.f32.mrf.mxu1 }
 0x179   : > { %v1550_v11 = vadd.f32 %v6109_v22, %v8534_v48  ;;  %v7898_v39 = vadd.f32 %v1991_v9, %v1539_v26 }
 0x17a   : > { %v2779_v16 = vpop.f32.mrf.mxu0  ;;  %v1541_v4 = vpop.f32.mrf.mxu1 }
 0x17b   : > { %v1542_v55 = vadd.f32 %v1541_v4, %v8535_v38  ;;  %v7901_v56 = vadd.f32 %v6145_v34, %v1550_v11  ;;  %v8540_v38 = vld [vmem:[#allocation18_spill] sm:$0xff] }
 0x17c   : > { %v6193_v41 = vpop.f32.mrf.mxu0  ;;  %v6112_v17 = vpop.f32.mrf.mxu1  ;;  %6327 = vmatmul.mubr.msk.bf16.gmra.mxu1 %vm1074_vm7, %v5628_v58 }
 0x17d   : > { %v1563_v42 = vadd.f32 %v6112_v17, %v8536_v14  ;;  %v7905_v29 = vadd.f32 %v1994_v63, %v1542_v55  ;;  %v8541_v14 = vld [vmem:[#allocation19_spill] sm:$0xff] }
 0x17e   : > { %v2782_v28 = vpop.f32.mrf.mxu0  ;;  %v1554_v62 = vpop.f32.mrf.mxu1 }
 0x17f   : > { %v1555_v19 = vadd.f32 %v1554_v62, %v8537_v31  ;;  %v7908_v9 = vadd.f32 %v6148_v47, %v1563_v42 }
 0x180   : > { %v6196_v25 = vpop.f32.mrf.mxu0  ;;  %v6113_v3 = vpop.f32.mrf.mxu1 }
 0x181   : > { %v1566_v27 = vadd.f32 %v6113_v3, %v8538_v50  ;;  %v7911_v34 = vadd.f32 %v2007_v32, %v1555_v19 }
 0x182   : > { %v2795_v12 = vpop.f32.mrf.mxu0  ;;  %v1557_v30 = vpop.f32.mrf.mxu1 }
 0x183   : > { %v1558_v23 = vadd.f32 %v1557_v30, %v8539_v59  ;;  %v7914_v33 = vadd.f32 %v6149_v5, %v1566_v27 }
 0x184   : > { %v6197_v10 = vpop.f32.mrf.mxu0  ;;  %v6156_v63 = vpop.f32.mrf.mxu1 }
 0x185   : > { %v2394_v43 = vadd.f32 %v6156_v63, %v7613_v15  ;;  %v7917_v40 = vadd.f32 %v2010_v18, %v1558_v23 }
 0x186   : > { %v2798_v52 = vpop.f32.mrf.mxu0  ;;  %v2265_v47 = vpop.f32.mrf.mxu1 }
 0x187   : > { %v2392_v26 = vadd.f32 %v2265_v47, %v7633_v53  ;;  %v7920_v58 = vadd.f32 %v6192_v8, %v2394_v43 }
 0x188   : > { %v6200_v22 = vpop.f32.mrf.mxu0  ;;  %v6157_v32 = vpop.f32.mrf.mxu1 }
 0x189   : > { %v2395_v48 = vadd.f32 %v6157_v32, %v7646_v6  ;;  %v7923_v4 = vadd.f32 %v2779_v16, %v2392_v26 }
 0x18a   : > { %v2811_v11 = vpop.f32.mrf.mxu0  ;;  %v2268_v5 = vpop.f32.mrf.mxu1 }
 0x18b   : > { %v2393_v55 = vadd.f32 %v2268_v5, %v8540_v38  ;;  %v7926_v15 = vadd.f32 %v6193_v41, %v2395_v48 }
 0x18c   : > { %v6201_v17 = vpop.f32.mrf.mxu0  ;;  %v6160_v18 = vpop.f32.mrf.mxu1 }
 0x18d   : > { %v2398_v42 = vadd.f32 %v6160_v18, %v8541_v14  ;;  %v7929_v53 = vadd.f32 %v2782_v28, %v2393_v55 }
 0x18e   : > { %v2814_v62 = vpop.f32.mrf.mxu0  ;;  %v2281_v8 = vpop.f32.mrf.mxu1 }
 0x18f   : > { %v2396_v31 = vadd.f32 %v2281_v8, %v7693_v24  ;;  %v7932_v6 = vadd.f32 %v6196_v25, %v2398_v42 }
 0x190   : > { %v6204_v19 = vpop.f32.mrf.mxu0  ;;  %v6161_v16 = vpop.f32.mrf.mxu1 }
 0x191   : > { %v2399_v3 = vadd.f32 %v6161_v16, %v7700_v61  ;;  %v7935_v27 = vadd.f32 %v2795_v12, %v2396_v31 }
 0x192   : > { %v2827_v50 = vpop.f32.mrf.mxu0  ;;  %v2284_v41 = vpop.f32.mrf.mxu1 }
 0x193   : > { %v2397_v30 = vadd.f32 %v2284_v41, %v7718_v2  ;;  %v7938_v23 = vadd.f32 %v6197_v10, %v2399_v3 }
 0x194   : > { %v6205_v59 = vpop.f32.mrf.mxu0  ;;  %v6164_v28 = vpop.f32.mrf.mxu1 }
 0x195   : > { %v2402_v63 = vadd.f32 %v6164_v28, %v7735_v60  ;;  %v7941_v24 = vadd.f32 %v2798_v52, %v2397_v30 }
 0x196   : > { %v2830_v43 = vpop.f32.mrf.mxu0  ;;  %v2297_v25 = vpop.f32.mrf.mxu1 }
 0x197   : > { %v2400_v47 = vadd.f32 %v2297_v25, %v7753_v51  ;;  %v7944_v61 = vadd.f32 %v6200_v22, %v2402_v63 }
 0x198   : > { %v6208_v26 = vpop.f32.mrf.mxu0  ;;  %v6165_v12 = vpop.f32.mrf.mxu1 }
 0x199   : > { %v2403_v32 = vadd.f32 %v6165_v12, %v7766_v21  ;;  %v7947_v2 = vadd.f32 %v2811_v11, %v2400_v47 }
 0x19a   : > { %v2843_v48 = vpop.f32.mrf.mxu0  ;;  %v2300_v10 = vpop.f32.mrf.mxu1 }
 0x19b   : > { %v2401_v5 = vadd.f32 %v2300_v10, %v7779_v1  ;;  %v7950_v60 = vadd.f32 %v6201_v17, %v2403_v32 }
 0x19c   : > { %v6209_v38 = vpop.f32.mrf.mxu0  ;;  %v6168_v52 = vpop.f32.mrf.mxu1 }
 0x19d   : > { %v2406_v55 = vadd.f32 %v6168_v52, %v7793_v0  ;;  %v7953_v51 = vadd.f32 %v2814_v62, %v2401_v5 }
 0x19e   : > { %v2846_v18 = vpop.f32.mrf.mxu0  ;;  %v2313_v22 = vpop.f32.mrf.mxu1 }
 0x19f   : > { %v2404_v14 = vadd.f32 %v2313_v22, %v7810_v37  ;;  %v7956_v21 = vadd.f32 %v6204_v19, %v2406_v55 }
 0x1a0   : > { %v6212_v42 = vpop.f32.mrf.mxu0  ;;  %v6169_v11 = vpop.f32.mrf.mxu1 }
 0x1a1   : > { %v2407_v8 = vadd.f32 %v6169_v11, %v7819_v45  ;;  %v7959_v1 = vadd.f32 %v2827_v50, %v2404_v14 }
 0x1a2   : > { %v2859_v31 = vpop.f32.mrf.mxu0  ;;  %v2316_v17 = vpop.f32.mrf.mxu1 }
 0x1a3   : > { %v2405_v16 = vadd.f32 %v2316_v17, %v7827_v46  ;;  %v7962_v0 = vadd.f32 %v6205_v59, %v2407_v8 }
 0x1a4   : > { %v6213_v3 = vpop.f32.mrf.mxu0  ;;  %v6172_v62 = vpop.f32.mrf.mxu1 }
 0x1a5   : > { %v2410_v41 = vadd.f32 %v6172_v62, %v7840_v57  ;;  %v7965_v37 = vadd.f32 %v2830_v43, %v2405_v16 }
 0x1a6   : > { %v2862_v30 = vpop.f32.mrf.mxu0  ;;  %v2329_v19 = vpop.f32.mrf.mxu1 }
 0x1a7   : > { %v2408_v28 = vadd.f32 %v2329_v19, %v7849_v54  ;;  %v7968_v45 = vadd.f32 %v6208_v26, %v2410_v41 }
 0x1a8   : > { %v6216_v63 = vpop.f32.mrf.mxu0  ;;  %v6173_v50 = vpop.f32.mrf.mxu1 }
 0x1a9   : > { %v2411_v25 = vadd.f32 %v6173_v50, %v7853_v35  ;;  %v7971_v46 = vadd.f32 %v2843_v48, %v2408_v28 }
 0x1aa   : > { %v2875_v47 = vpop.f32.mrf.mxu0  ;;  %v2332_v59 = vpop.f32.mrf.mxu1 }
 0x1ab   : > { %v2409_v12 = vadd.f32 %v2332_v59, %v7864_v44  ;;  %v7974_v57 = vadd.f32 %v6209_v38, %v2411_v25 }
 0x1ac   : > { %v6217_v32 = vpop.f32.mrf.mxu0  ;;  %v6176_v43 = vpop.f32.mrf.mxu1 }
 0x1ad   : > { %v2414_v10 = vadd.f32 %v6176_v43, %v7873_v7  ;;  %v7977_v54 = vadd.f32 %v2846_v18, %v2409_v12 }
 0x1ae   : > { %v2878_v5 = vpop.f32.mrf.mxu0  ;;  %v2345_v26 = vpop.f32.mrf.mxu1 }
 0x1af   : > { %8542 = vst [vmem:[#allocation3_spill] sm:$0xff] %v7977_v54  ;;  %v2412_v52 = vadd.f32 %v2345_v26, %v7877_v13  ;;  %v7980_v35 = vadd.f32 %v6212_v42, %v2414_v10 }
 0x1b0   : > { %v6220_v55 = vpop.f32.mrf.mxu0  ;;  %v6177_v48 = vpop.f32.mrf.mxu1 }
 0x1b1   : > { %8543 = vst [vmem:[#allocation4_spill] sm:$0xff] %v7980_v35  ;;  %v2415_v22 = vadd.f32 %v6177_v48, %v7881_v36  ;;  %v7983_v44 = vadd.f32 %v2859_v31, %v2412_v52 }
 0x1b2   : > { %v2891_v14 = vpop.f32.mrf.mxu0  ;;  %v2348_v38 = vpop.f32.mrf.mxu1 }
 0x1b3   : > { %8544 = vst [vmem:[#allocation5_spill] sm:$0xff] %v7983_v44  ;;  %v2413_v11 = vadd.f32 %v2348_v38, %v7891_v20  ;;  %v7986_v7 = vadd.f32 %v6213_v3, %v2415_v22 }
 0x1b4   : > { %v6221_v8 = vpop.f32.mrf.mxu0  ;;  %v6180_v18 = vpop.f32.mrf.mxu1 }
 0x1b5   : > { %8545 = vst [vmem:[#allocation6_spill] sm:$0xff] %v7986_v7  ;;  %v2418_v17 = vadd.f32 %v6180_v18, %v7895_v49  ;;  %v7989_v13 = vadd.f32 %v2862_v30, %v2413_v11 }
 0x1b6   : > { %v2894_v16 = vpop.f32.mrf.mxu0  ;;  %v2361_v42 = vpop.f32.mrf.mxu1 }
 0x1b7   : > { %8546 = vst [vmem:[#allocation7_spill] sm:$0xff] %v7989_v13  ;;  %v2416_v62 = vadd.f32 %v2361_v42, %v7898_v39  ;;  %v7994_v36 = vadd.f32 %v6216_v63, %v2418_v17 }
 0x1b8   : > { %v7992_v41 = vpop.f32.mrf.mxu0  ;;  %v6181_v31 = vpop.f32.mrf.mxu1 }
 0x1b9   : > { %8547 = vst [vmem:[#allocation8_spill] sm:$0xff] %v7994_v36  ;;  %v2419_v19 = vadd.f32 %v6181_v31, %v7901_v56  ;;  %v7999_v3 = vadd.f32 %v2875_v47, %v2416_v62 }
 0x1ba   : > { %v7997_v20 = vpop.f32.mrf.mxu0  ;;  %v2364_v28 = vpop.f32.mrf.mxu1 }
 0x1bb   : > { %8548 = vst [vmem:[#allocation9_spill] sm:$0xff] %v7999_v3  ;;  %v2417_v49 = vadd.f32 %v2364_v28, %v7905_v29  ;;  %v8004_v30 = vadd.f32 %v6217_v32, %v2419_v19 }
 0x1bc   : > { %v8002_v50 = vpop.f32.mrf.mxu0  ;;  %v6184_v25 = vpop.f32.mrf.mxu1 }
 0x1bd   : > { %8549 = vst [vmem:[#allocation10_spill] sm:$0xff] %v8004_v30  ;;  %v2422_v39 = vadd.f32 %v6184_v25, %v7908_v9  ;;  %v8009_v63 = vadd.f32 %v2878_v5, %v2417_v49 }
 0x1be   : > { %v8007_v59 = vpop.f32.mrf.mxu0  ;;  %v2377_v12 = vpop.f32.mrf.mxu1 }
 0x1bf   : > { %8550 = vst [vmem:[#allocation11_spill] sm:$0xff] %v8009_v63  ;;  %v2420_v56 = vadd.f32 %v2377_v12, %v7911_v34  ;;  %v8014_v47 = vadd.f32 %v6220_v55, %v2422_v39 }
 0x1c0   : > { %v8012_v43 = vpop.f32.mrf.mxu0  ;;  %v6185_v10 = vpop.f32.mrf.mxu1 }
 0x1c1   : > { %8551 = vst [vmem:[#allocation12_spill] sm:$0xff] %v8014_v47  ;;  %v2423_v29 = vadd.f32 %v6185_v10, %v7914_v33  ;;  %v8019_v32 = vadd.f32 %v2891_v14, %v2420_v56 }
 0x1c2   : > { %v8017_v26 = vpop.f32.mrf.mxu0  ;;  %v2380_v52 = vpop.f32.mrf.mxu1 }
 0x1c3   : > { %8552 = vst [vmem:[#allocation13_spill] sm:$0xff] %v8019_v32  ;;  %v2421_v9 = vadd.f32 %v2380_v52, %v7917_v40  ;;  %v8024_v5 = vadd.f32 %v6221_v8, %v2423_v29 }
 0x1c4   : > { %v8022_v48 = vpop.f32.mrf.mxu0  ;;  %v6228_v22 = vpop.f32.mrf.mxu1 }
 0x1c5   : > { %8553 = vst [vmem:[#allocation14_spill] sm:$0xff] %v8024_v5  ;;  %v8028_v38 = vadd.f32 %v2894_v16, %v2421_v9 }
 0x1c6   : > { %v8026_v34 = vpop.f32.mrf.mxu0  ;;  %v3261_v55 = vpop.f32.mrf.mxu1 }
 0x1c7   : > { %8554 = vst [vmem:[#allocation15_spill] sm:$0xff] %v8028_v38 }
 0x1c8   : > { %v8030_v11 = vpop.f32.mrf.mxu0  ;;  %v6229_v33 = vpop.f32.mrf.mxu1 }
 0x1ca   : > { %v8032_v18 = vpop.f32.mrf.mxu0  ;;  %v3264_v14 = vpop.f32.mrf.mxu1 }
 0x1cc   : > { %v8034_v17 = vpop.f32.mrf.mxu0  ;;  %v6232_v42 = vpop.f32.mrf.mxu1 }
 0x1ce   : > { %v8036_v40 = vpop.f32.mrf.mxu0  ;;  %v3277_v62 = vpop.f32.mrf.mxu1 }
 0x1d0   : > { %v8038_v8 = vpop.f32.mrf.mxu0  ;;  %v6233_v31 = vpop.f32.mrf.mxu1 }
 0x1d2   : > { %v8040_v19 = vpop.f32.mrf.mxu0  ;;  %v3280_v16 = vpop.f32.mrf.mxu1 }
 0x1d3   : > { %8555 = vst [vmem:[#allocation16_spill] sm:$0xff] %v8040_v19 }
 0x1d4   : > { %v8042_v28 = vpop.f32.mrf.mxu0  ;;  %v6236_v49 = vpop.f32.mrf.mxu1 }
 0x1d5   : > { %8556 = vst [vmem:[#allocation17_spill] sm:$0xff] %v8042_v28 }
 0x1d6   : > { %v8044_v25 = vpop.f32.mrf.mxu0  ;;  %v3293_v39 = vpop.f32.mrf.mxu1 }
 0x1d7   : > { %8557 = vst [vmem:[#allocation18_spill] sm:$0xff] %v8044_v25 }
 0x1d8   : > { %v8046_v12 = vpop.f32.mrf.mxu0  ;;  %v6237_v56 = vpop.f32.mrf.mxu1 }
 0x1d9   : > { %8558 = vst [vmem:[#allocation19_spill] sm:$0xff] %v8046_v12 }
 0x1da   : > { %v8048_v10 = vpop.f32.mrf.mxu0  ;;  %v3296_v29 = vpop.f32.mrf.mxu1 }
 0x1db   : > { %8559 = vst [vmem:[#allocation20_spill] sm:$0xff] %v8048_v10 }
 0x1dc   : > { %v8050_v52 = vpop.f32.mrf.mxu0  ;;  %v6240_v9 = vpop.f32.mrf.mxu1 }
 0x1dd   : > { %8560 = vst [vmem:[#allocation21_spill] sm:$0xff] %v8050_v52 }
 0x1de   : > { %v8052_v38 = vpop.f32.mrf.mxu0  ;;  %v3309_v5 = vpop.f32.mrf.mxu1 }
 0x1df   : > { %8561 = vst [vmem:[#allocation22_spill] sm:$0xff] %v8052_v38 }
 0x1e0   : > { %v8054_v32 = vpop.f32.mrf.mxu0  ;;  %v6241_v47 = vpop.f32.mrf.mxu1 }
 0x1e1   : > { %8562 = vst [vmem:[#allocation23_spill] sm:$0xff] %v8054_v32 }
 0x1e2   : > { %v8056_v63 = vpop.f32.mrf.mxu0  ;;  %v3312_v30 = vpop.f32.mrf.mxu1 }
 0x1e3   : > { %8563 = vst [vmem:[#allocation24_spill] sm:$0xff] %v8056_v63 }
 0x1e4   : > { %v8058_v3 = vpop.f32.mrf.mxu0  ;;  %v6244_v36 = vpop.f32.mrf.mxu1 }
 0x1e5   : > { %8564 = vst [vmem:[#allocation25_spill] sm:$0xff] %v8058_v3 }
 0x1e6   : > { %v8060_v13 = vpop.f32.mrf.mxu0  ;;  %v3325_v7 = vpop.f32.mrf.mxu1 }
 0x1e7   : > { %8565 = vst [vmem:[#allocation26_spill] sm:$0xff] %v8060_v13 }
 0x1e8   : > { %v8062_v10 = vpop.f32.mrf.mxu0  ;;  %v6245_v12 = vpop.f32.mrf.mxu1 }
 0x1e9   : > { %8566 = vst [vmem:[#allocation27_spill] sm:$0xff] %v8062_v10 }
 0x1ea   : > { %v8064_v52 = vpop.f32.mrf.mxu0  ;;  %v8066_v44 = vpop.f32.mrf.mxu1 }
 0x1eb   : > { %8567 = vst [vmem:[#allocation28_spill] sm:$0xff] %v8064_v52  ;;  %8568 = vst [vmem:[#allocation29_spill] sm:$0xff] %v8066_v44 }
 0x1ec   : > { %v8068_v38 = vpop.f32.mrf.mxu0  ;;  %v8070_v32 = vpop.f32.mrf.mxu1 }
 0x1ed   : > { %8569 = vst [vmem:[#allocation30_spill] sm:$0xff] %v8068_v38  ;;  %8570 = vst [vmem:[#allocation31_spill] sm:$0xff] %v8070_v32 }
 0x1ee   : > { %v8072_v35 = vpop.f32.mrf.mxu0  ;;  %v3341_v63 = vpop.f32.mrf.mxu1 }
 0x1ef   : > { %8571 = vst [vmem:[#allocation32_spill] sm:$0xff] %v8072_v35 }
 0x1f0   : > { %v8074_v54 = vpop.f32.mrf.mxu0  ;;  %v8076_v3 = vpop.f32.mrf.mxu1 }
 0x1f1   : > { %8572 = vst [vmem:[#allocation33_spill] sm:$0xff] %v8074_v54  ;;  %8573 = vst [vmem:[#allocation34_spill] sm:$0xff] %v8076_v3  ;;  %v3390_v54 = vadd.f32 %v6228_v22, %v7920_v58  ;;  %v3395_v58 = vadd.f32 %v6233_v31, %v7938_v23 }
 0x1f2   : > { %v8078_v13 = vpop.f32.mrf.mxu0  ;;  %v3344_v25 = vpop.f32.mrf.mxu1 }
 0x1f3   : > { %8574 = vst [vmem:[#allocation35_spill] sm:$0xff] %v8078_v13  ;;  %v3388_v13 = vadd.f32 %v3261_v55, %v7923_v4  ;;  %v3393_v4 = vadd.f32 %v3280_v16, %v7941_v24  ;;  %v3396_v55 = vadd.f32 %v3293_v39, %v7947_v2  ;;  %v3400_v24 = vadd.f32 %v3309_v5, %v7959_v1  ;;  %v8583_v5 = vld [vmem:[#allocation17_spill] sm:$0xff]  ;;  %v8590_v16 = vld [vmem:[#allocation19_spill] sm:$0xff]  ;;  %v8591_v39 = vld [vmem:[#allocation6_spill] sm:$0xff] }
 0x1f4   : > { %v8080_v10 = vpop.f32.mrf.mxu0  ;;  %v8082_v28 = vpop.f32.mrf.mxu1  ;;  %v3401_v2 = vadd.f32 %v3312_v30, %v7965_v37 }
 0x1f5   : > { %8575 = vst [vmem:[#allocation36_spill] sm:$0xff] %v8080_v10  ;;  %8576 = vst [vmem:[#allocation37_spill] sm:$0xff] %v8082_v28  ;;  %v3391_v10 = vadd.f32 %v6229_v33, %v7926_v15  ;;  %v3398_v15 = vadd.f32 %v6236_v49, %v7944_v61  ;;  %v3759_v23 = vadd.f32 %v7997_v20, %v3388_v13 }
 0x1f6   : > { %v8084_v52 = vpop.f32.mrf.mxu0  ;;  %v8086_v44 = vpop.f32.mrf.mxu1  ;;  %v3403_v61 = vadd.f32 %v6241_v47, %v7962_v0  ;;  %v8136_v20 = vadd.f32 %v8022_v48, %v3395_v58  ;;  %v8141_v0 = vadd.f32 %v8026_v34, %v3393_v4 }
 0x1f7   : > { %8577 = vst [vmem:[#allocation38_spill] sm:$0xff] %v8084_v52  ;;  %8578 = vst [vmem:[#allocation39_spill] sm:$0xff] %v8086_v44  ;;  %v3389_v52 = vadd.f32 %v3264_v14, %v7929_v53  ;;  %v3399_v53 = vadd.f32 %v6237_v56, %v7950_v60  ;;  %v8144_v37 = vadd.f32 %v8030_v11, %v3398_v15  ;;  %v8586_v11 = vld [vmem:[#allocation29_spill] sm:$0xff] }
 0x1f8   : > { %v6336_v38 = vpop.f32.mrf.mxu0  ;;  %v8088_v32 = vpop.f32.mrf.mxu1  ;;  %v8166_v34 = vadd.f32 %v8583_v5, %v3403_v61  ;;  %v8600_v61 = vld [vmem:[#allocation10_spill] sm:$0xff] }
 0x1f9   : > { %8579 = vst [vmem:[#allocation40_spill] sm:$0xff] %v8088_v32  ;;  %v3394_v32 = vadd.f32 %v6232_v42, %v7932_v6  ;;  %v3397_v6 = vadd.f32 %v3296_v29, %v7953_v51  ;;  %v3760_v60 = vadd.f32 %v8007_v59, %v3389_v52  ;;  %v3406_v51 = vadd.f32 %v6244_v36, %v7968_v45 }
 0x1fa   : > { %v8090_v35 = vpop.f32.mrf.mxu0  ;;  %v8093_v19 = vpop.f32.mrf.mxu1  ;;  %v8147_v45 = vadd.f32 %v8032_v18, %v3396_v55  ;;  %v8150_v36 = vadd.f32 %v8034_v17, %v3399_v53  ;;  %v8587_v17 = vld [vmem:[#allocation4_spill] sm:$0xff]  ;;  %v8596_v55 = vld [vmem:[#allocation9_spill] sm:$0xff] }
 0x1fb   : > { %8580 = vst [vmem:[#allocation41_spill] sm:$0xff] %v8090_v35  ;;  %v3392_v35 = vadd.f32 %v3277_v62, %v7935_v27  ;;  %v3402_v27 = vadd.f32 %v6240_v9, %v7956_v21  ;;  %v3765_v21 = vadd.f32 %v8012_v43, %v3394_v32  ;;  %v8155_v59 = vadd.f32 %v8036_v40, %v3397_v6  ;;  %v8582_v32 = vld [vmem:[#allocation16_spill] sm:$0xff]  ;;  %v8588_v40 = vld [vmem:[#allocation31_spill] sm:$0xff] }
 0x1fc   : > { %v8095_v3 = vpop.f32.mrf.mxu0  ;;  %v8099_v28 = vpop.f32.mrf.mxu1  ;;  %v8163_v48 = vadd.f32 %v8582_v32, %v3400_v24  ;;  %v3410_v62 = vadd.f32 %v8588_v40, %v8587_v17  ;;  %v8177_v49 = vadd.f32 %v8590_v16, %v3406_v51  ;;  %v8595_v4 = vld [vmem:[#allocation37_spill] sm:$0xff]  ;;  %v8598_v24 = vld [vmem:[#allocation20_spill] sm:$0xff] }
 0x1fd   : > { %8581 = vst [vmem:[#allocation42_spill] sm:$0xff] %v8095_v3  ;;  %v3761_v3 = vadd.f32 %v7992_v41, %v3390_v54  ;;  %v3762_v54 = vadd.f32 %v8002_v50, %v3391_v10  ;;  %v8133_v13 = vadd.f32 %v8017_v26, %v3392_v35  ;;  %v3404_v35 = vadd.f32 %v3325_v7, %v7971_v46  ;;  %v8584_v46 = vld [vmem:[#allocation18_spill] sm:$0xff]  ;;  %v8593_v10 = vld [vmem:[#allocation7_spill] sm:$0xff] }
 0x1fe   : > { %v8102_v44 = vpop.f32.mrf.mxu0  ;;  %v8107_v22 = vpop.f32.mrf.mxu1  ;;  %v3407_v50 = vadd.f32 %v6245_v12, %v7974_v57  ;;  %v8158_v43 = vadd.f32 %v8038_v8, %v3402_v27  ;;  %v8169_v7 = vadd.f32 %v8584_v46, %v3401_v2  ;;  %v8585_v57 = vld [vmem:[#allocation3_spill] sm:$0xff]  ;;  %v8589_v8 = vld [vmem:[#allocation5_spill] sm:$0xff]  ;;  %v8592_v12 = vld [vmem:[#allocation34_spill] sm:$0xff]  ;;  %v3409_v29 = vadd.f32 %v3344_v25, %v8593_v10 }
 0x1ff   : > { %v3405_v18 = vadd.f32 %v8586_v11, %v8585_v57  ;;  %v3408_v31 = vadd.f32 %v3341_v63, %v8589_v8  ;;  %v3411_v56 = vadd.f32 %v8592_v12, %v8591_v39  ;;  %v8594_v63 = vld [vmem:[#allocation8_spill] sm:$0xff]  ;;  %v8597_v53 = vld [vmem:[#allocation39_spill] sm:$0xff]  ;;  %v8196_v25 = vadd.f32 %v8598_v24, %v3404_v35  ;;  %v8605_v8 = vld [vmem:[#allocation22_spill] sm:$0xff] }
 0x200   : > { %v8114_v33 = vpop.f32.mrf.mxu0  ;;  %v8118_v14 = vpop.f32.mrf.mxu1  ;;  %v3414_v15 = vadd.f32 %v8595_v4, %v8594_v63  ;;  %v3412_v6 = vadd.f32 %v8597_v53, %v8596_v55  ;;  %v8601_v2 = vld [vmem:[#allocation40_spill] sm:$0xff] }
 0x201   : > { %v3415_v51 = vadd.f32 %v8601_v2, %v8600_v61  ;;  %v8604_v11 = vld [vmem:[#allocation12_spill] sm:$0xff]  ;;  %v8613_v2 = vld [vmem:[#allocation30_spill] sm:$0xff] }
 0x202   : > { %v8126_v41 = vpop.f32.mrf.mxu0  ;;  %v8129_v42 = vpop.f32.mrf.mxu1  ;;  %v8603_v5 = vld [vmem:[#allocation41_spill] sm:$0xff]  ;;  %v3418_v17 = vadd.f32 %v8099_v28, %v8604_v11  ;;  %v8607_v12 = vld [vmem:[#allocation24_spill] sm:$0xff]  ;;  %v8609_v28 = vld [vmem:[#allocation26_spill] sm:$0xff] }
 0x203   : > { %v8221_v10 = vadd.f32 %v8607_v12, %v3408_v31  ;;  %v8612_v24 = vld [vmem:[#allocation28_spill] sm:$0xff] }
 0x204   : > { %v8138_v1 = vpop.f32.mrf.mxu0  ;;  %v6300_v30 = vpop.f32.mrf.mxu1  ;;  %v8610_v4 = vld [vmem:[#allocation42_spill] sm:$0xff] }
 0x205   : > { %v4275_v47 = vadd.f32 %v6300_v30, %v3761_v3  ;;  %v8602_v30 = vld [vmem:[#allocation11_spill] sm:$0xff] }
 0x206   : > { %v8160_v26 = vpop.f32.mrf.mxu0  ;;  %v4146_v3 = vpop.f32.mrf.mxu1 }
 0x207   : > { %v4757_v52 = vadd.f32 %v6336_v38, %v4275_v47  ;;  %v4273_v9 = vadd.f32 %v4146_v3, %v3759_v23  ;;  %v8599_v38 = vld [vmem:[#allocation21_spill] sm:$0xff]  ;;  %v3413_v47 = vadd.f32 %v8093_v19, %v8602_v30  ;;  %v8606_v3 = vld [vmem:[#allocation23_spill] sm:$0xff]  ;;  %v8614_v30 = vld [vmem:[#allocation32_spill] sm:$0xff] }
 0x208   : > { %v8182_v58 = vpop.f32.mrf.mxu0  ;;  %v6301_v27 = vpop.f32.mrf.mxu1  ;;  %v8199_v23 = vadd.f32 %v8599_v38, %v3407_v50  ;;  %v8211_v50 = vadd.f32 %v8605_v8, %v3405_v18  ;;  %v8214_v16 = vadd.f32 %v8606_v3, %v3410_v62  ;;  %v8611_v62 = vld [vmem:[#allocation27_spill] sm:$0xff]  ;;  %v8234_v38 = vadd.f32 %v8612_v24, %v3412_v6 }
 0x209   : > { %v5771_v32 = vpack.c.bf16 %v4757_v52, %v4757_v52  ;;  %v4755_v46 = vadd.f32 %v8603_v5, %v4273_v9  ;;  %v4276_v35 = vadd.f32 %v6301_v27, %v3762_v54  ;;  %v8608_v9 = vld [vmem:[#allocation25_spill] sm:$0xff]  ;;  %v8227_v54 = vadd.f32 %v8609_v28, %v3409_v29 }
 0x20a   : > { %v8206_v57 = vpop.f32.mrf.mxu0  ;;  %v4149_v40 = vpop.f32.mrf.mxu1  ;;  %v8224_v63 = vadd.f32 %v8608_v9, %v3411_v56  ;;  %v8231_v27 = vadd.f32 %v8611_v62, %v3414_v15  ;;  %v8241_v29 = vadd.f32 %v8613_v2, %v3415_v51  ;;  %v5019_v51 = vmul.f32 %v4757_v52, %v4757_v52 }
 0x20b   : > { %4917 = vst.msk [vmem:[%s8189_s8 + $0x8] sm:$0xf] %vm444_vm0, %v5771_v32  ;;  %v5769_v19 = vpack.c.bf16 %v4755_v46, %v4755_v46  ;;  %v4758_v18 = vadd.f32 %v8610_v4, %v4276_v35  ;;  %v4274_v55 = vadd.f32 %v4149_v40, %v3760_v60  ;;  %v5017_v31 = vmul.f32 %v4755_v46, %v4755_v46  ;;  %v8615_v60 = vld [vmem:[#allocation13_spill] sm:$0xff] }
 0x20c   : > { %v8218_v39 = vpop.f32.mrf.mxu0  ;;  %v6304_v53 = vpop.f32.mrf.mxu1  ;;  %v8244_v32 = vadd.f32 %v8614_v30, %v3413_v47  ;;  %v8248_v15 = vadd.f32 %v8107_v22, %v8615_v60  ;;  %v8616_v35 = vld [vmem:[#allocation33_spill] sm:$0xff]  ;;  %v4947_v22 = vsel %vm1074_vm7, %v4755_v46, 0.0 }
 0x20d   : > { %4915 = vst.msk [vmem:[%s8189_s8] sm:$0xf] %vm444_vm0, %v5769_v19  ;;  %v4279_v61 = vadd.f32 %v6304_v53, %v3765_v21  ;;  %v5772_v5 = vpack.c.bf16 %v4758_v18, %v4758_v18  ;;  %v4756_v6 = vadd.f32 %v8102_v44, %v4274_v55  ;;  %v8252_v40 = vadd.f32 %v8616_v35, %v3418_v17  ;;  %v8617_v21 = vld [vmem:[#allocation14_spill] sm:$0xff] }
 0x20e   : > { %v8238_v56 = vpop.f32.mrf.mxu0  ;;  %v4162_v11 = vpop.f32.mrf.mxu1  ;;  %v8256_v8 = vadd.f32 %v8118_v14, %v8617_v21  ;;  %v4950_v14 = vsel %vm1074_vm7, %v4757_v52, 0.0  ;;  %v5049_v28 = vsel %vm1074_vm7, %v5017_v31, 0.0  ;;  %v4952_v60 = vsel %vm1074_vm7, %v4758_v18, 0.0 }
 0x20f   : > { %v4761_v47 = vadd.f32 %v8114_v33, %v4279_v61  ;;  %v4277_v3 = vadd.f32 %v4162_v11, %v8133_v13  ;;  %4918 = vst.msk [vmem:[%s8189_s8 + $0xc] sm:$0xf] %vm444_vm0, %v5772_v5  ;;  %v5770_v44 = vpack.c.bf16 %v4756_v6, %v4756_v6  ;;  %v4948_v17 = vsel %vm1074_vm7, %v4756_v6, 0.0 }
 0x210   : > { %v8260_v19 = vpop.f32.mrf.mxu0  ;;  %v5018_v12 = vmul.f32 %v4756_v6, %v4756_v6  ;;  %v6305_v9 = vpop.f32.mrf.mxu1  ;;  %v4949_v4 = vadd.f32 %v4948_v17, %v4947_v22  ;;  %v5020_v13 = vmul.f32 %v4758_v18, %v4758_v18  ;;  %v5052_v61 = vsel %vm1074_vm7, %v5019_v51, 0.0 }
 0x211   : > { %v5775_v33 = vpack.c.bf16 %v4761_v47, %v4761_v47  ;;  %4916 = vst.msk [vmem:[%s8189_s8 + $0x4] sm:$0xf] %vm444_vm0, %v5770_v44  ;;  %v4759_v53 = vadd.f32 %v8126_v41, %v4277_v3  ;;  %v4280_v62 = vadd.f32 %v6305_v9, %v8136_v20  ;;  %v5023_v22 = vmul.f32 %v4761_v47, %v4761_v47 }
 0x212   : > { %v8268_v55 = vpop.f32.mrf.mxu0  ;;  %v5050_v46 = vsel %vm1074_vm7, %v5018_v12, 0.0  ;;  %v4165_v24 = vpop.f32.mrf.mxu1  ;;  %v4951_v2 = vadd.f32 %v4950_v14, %v4949_v4 }
 0x213   : > { %v5051_v52 = vadd.f32 %v5050_v46, %v5049_v28  ;;  %4921 = vst.msk [vmem:[%s8189_s8 + $0x18] sm:$0xf] %vm444_vm0, %v5775_v33  ;;  %v4278_v31 = vadd.f32 %v4165_v24, %v8141_v0  ;;  %v5773_v5 = vpack.c.bf16 %v4759_v53, %v4759_v53  ;;  %v5021_v6 = vmul.f32 %v4759_v53, %v4759_v53 }
 0x214   : > { %v8279_v30 = vpop.f32.mrf.mxu0  ;;  %v4762_v41 = vadd.f32 %v8138_v1, %v4280_v62  ;;  %v6308_v11 = vpop.f32.mrf.mxu1  ;;  %v4953_v35 = vadd.f32 %v4952_v60, %v4951_v2  ;;  %v5054_v0 = vsel %vm1074_vm7, %v5020_v13, 0.0  ;;  %v4954_v18 = vsel %vm1074_vm7, %v4759_v53, 0.0 }
 0x215   : > { %v5053_v20 = vadd.f32 %v5052_v61, %v5051_v52  ;;  %v4760_v21 = vadd.f32 %v8160_v26, %v4278_v31  ;;  %v4283_v51 = vadd.f32 %v6308_v11, %v8144_v37  ;;  %4919 = vst.msk [vmem:[%s8189_s8 + $0x10] sm:$0xf] %vm444_vm0, %v5773_v5  ;;  %v5056_v37 = vsel %vm1074_vm7, %v5021_v6, 0.0  ;;  %v8618_v61 = vld [vmem:[#allocation35_spill] sm:$0xff] }
 0x216   : > { %v8285_v3 = vpop.f32.mrf.mxu0  ;;  %v5776_v44 = vpack.c.bf16 %v4762_v41, %v4762_v41  ;;  %v4178_v1 = vpop.f32.mrf.mxu1  ;;  %v4955_v17 = vadd.f32 %v4954_v18, %v4953_v35  ;;  %v8306_v2 = vadd.f32 %v8618_v61, %v8248_v15  ;;  %v4958_v52 = vsel %vm1074_vm7, %v4761_v47, 0.0  ;;  %v8619_v35 = vld [vmem:[#allocation15_spill] sm:$0xff] }
 0x217   : > { %v5055_v12 = vadd.f32 %v5054_v0, %v5053_v20  ;;  %v5774_v9 = vpack.c.bf16 %v4760_v21, %v4760_v21  ;;  %v4956_v14 = vsel %vm1074_vm7, %v4760_v21, 0.0  ;;  %v5022_v28 = vmul.f32 %v4760_v21, %v4760_v21 }
 0x218   : > { %v8292_v26 = vpop.f32.mrf.mxu0  ;;  %4922 = vst.msk [vmem:[%s8189_s8 + $0x1c] sm:$0xf] %vm444_vm0, %v5776_v44  ;;  %v4765_v4 = vadd.f32 %v8182_v58, %v4283_v51  ;;  %v4281_v33 = vadd.f32 %v4178_v1, %v8147_v45  ;;  %v6309_v13 = vpop.f32.mrf.mxu1  ;;  %v4957_v53 = vadd.f32 %v4956_v14, %v4955_v17  ;;  %v5024_v31 = vmul.f32 %v4762_v41, %v4762_v41  ;;  %v8620_v1 = vld [vmem:[#allocation36_spill] sm:$0xff] }
 0x219   : > { %v5057_v46 = vadd.f32 %v5056_v37, %v5055_v12  ;;  %4920 = vst.msk [vmem:[%s8189_s8 + $0x14] sm:$0xf] %vm444_vm0, %v5774_v9  ;;  %v4284_v62 = vadd.f32 %v6309_v13, %v8150_v36  ;;  %v5058_v58 = vsel %vm1074_vm7, %v5022_v28, 0.0  ;;  %v3417_v21 = vadd.f32 %v8129_v42, %v8619_v35 }
 0x21a   : > { %v8302_v24 = vpop.f32.mrf.mxu0  ;;  %v5779_v45 = vpack.c.bf16 %v4765_v4, %v4765_v4  ;;  %v4181_v60 = vpop.f32.mrf.mxu1  ;;  %v4959_v5 = vadd.f32 %v4958_v52, %v4957_v53  ;;  %v4763_v11 = vadd.f32 %v8206_v57, %v4281_v33  ;;  %v5060_v15 = vsel %vm1074_vm7, %v5023_v22, 0.0 }
 0x21b   : > { %v5059_v6 = vadd.f32 %v5058_v58, %v5057_v46  ;;  %v4766_v36 = vadd.f32 %v8218_v39, %v4284_v62  ;;  %v4960_v47 = vsel %vm1074_vm7, %v4762_v41, 0.0  ;;  %v4282_v51 = vadd.f32 %v4181_v60, %v8155_v59 }
 0x21c   : > { %v8312_v20 = vpop.f32.mrf.mxu0  ;;  %4925 = vst.msk [vmem:[%s8189_s8 + $0x28] sm:$0xf] %vm444_vm0, %v5779_v45  ;;  %v6312_v0 = vpop.f32.mrf.mxu1  ;;  %v5777_v44 = vpack.c.bf16 %v4763_v11, %v4763_v11  ;;  %v4961_v57 = vadd.f32 %v4960_v47, %v4959_v5  ;;  %v8325_v17 = vadd.f32 %v8620_v1, %v8256_v8  ;;  %v5062_v42 = vsel %vm1074_vm7, %v5024_v31, 0.0  ;;  %v8621_v47 = vld [vmem:[#allocation38_spill] sm:$0xff] }
 0x21d   : > { %v5061_v18 = vadd.f32 %v5060_v15, %v5059_v6  ;;  %v4962_v22 = vsel %vm1074_vm7, %v4763_v11, 0.0  ;;  %v5025_v41 = vmul.f32 %v4763_v11, %v4763_v11  ;;  %v5780_v12 = vpack.c.bf16 %v4766_v36, %v4766_v36 }
 0x21e   : > { %v8321_v39 = vpop.f32.mrf.mxu0  ;;  %v4194_v9 = vpop.f32.mrf.mxu1  ;;  %4923 = vst.msk [vmem:[%s8189_s8 + $0x20] sm:$0xf] %vm444_vm0, %v5777_v44  ;;  %v4963_v59 = vadd.f32 %v4962_v22, %v4961_v57  ;;  %v4764_v37 = vadd.f32 %v8238_v56, %v4282_v51  ;;  %v4287_v28 = vadd.f32 %v6312_v0, %v8158_v43  ;;  %v5027_v13 = vmul.f32 %v4765_v4, %v4765_v4 }
 0x21f   : > { %v5063_v14 = vadd.f32 %v5062_v42, %v5061_v18  ;;  %v5064_v8 = vsel %vm1074_vm7, %v5025_v41, 0.0  ;;  %4926 = vst.msk [vmem:[%s8189_s8 + $0x2c] sm:$0xf] %vm444_vm0, %v5780_v12  ;;  %v5028_v46 = vmul.f32 %v4766_v36, %v4766_v36  ;;  %v4285_v53 = vadd.f32 %v4194_v9, %v8163_v48 }
 0x220   : > { %v8333_v33 = vpop.f32.mrf.mxu0  ;;  %v6313_v62 = vpop.f32.mrf.mxu1  ;;  %v5778_v52 = vpack.c.bf16 %v4764_v37, %v4764_v37  ;;  %v4964_v31 = vsel %vm1074_vm7, %v4764_v37, 0.0  ;;  %v5026_v58 = vmul.f32 %v4764_v37, %v4764_v37  ;;  %v4769_v45 = vadd.f32 %v8260_v19, %v4287_v28 }
 0x221   : > { %v5065_v61 = vadd.f32 %v5064_v8, %v5063_v14  ;;  %v4965_v43 = vadd.f32 %v4964_v31, %v4963_v59  ;;  %v4767_v60 = vadd.f32 %v8268_v55, %v4285_v53  ;;  %v4288_v5 = vadd.f32 %v6313_v62, %v8166_v34 }
 0x222   : > { %v8340_v56 = vpop.f32.mrf.mxu0  ;;  %v4197_v6 = vpop.f32.mrf.mxu1  ;;  %v4966_v11 = vsel %vm1074_vm7, %v4765_v4, 0.0  ;;  %4924 = vst.msk [vmem:[%s8189_s8 + $0x24] sm:$0xf] %vm444_vm0, %v5778_v52  ;;  %v5066_v48 = vsel %vm1074_vm7, %v5026_v58, 0.0  ;;  %v8353_v51 = vadd.f32 %v8621_v47, %v3417_v21  ;;  %v5068_v19 = vsel %vm1074_vm7, %v5027_v13, 0.0 }
 0x223   : > { %v4286_v35 = vadd.f32 %v4197_v6, %v8169_v7  ;;  %v4967_v55 = vadd.f32 %v4966_v11, %v4965_v43  ;;  %v5067_v34 = vadd.f32 %v5066_v48, %v5065_v61  ;;  %v5783_v0 = vpack.c.bf16 %v4769_v45, %v4769_v45 }
 0x224   : > { %v8350_v15 = vpop.f32.mrf.mxu0  ;;  %v6316_v18 = vpop.f32.mrf.mxu1  ;;  %v4968_v4 = vsel %vm1074_vm7, %v4766_v36, 0.0  ;;  %v5070_v44 = vsel %vm1074_vm7, %v5028_v46, 0.0  ;;  %v5781_v57 = vpack.c.bf16 %v4767_v60, %v4767_v60  ;;  %v5029_v1 = vmul.f32 %v4767_v60, %v4767_v60 }
 0x225   : > { %v5069_v7 = vadd.f32 %v5068_v19, %v5067_v34  ;;  %4929 = vst.msk [vmem:[%s8189_s8 + $0x38] sm:$0xf] %vm444_vm0, %v5783_v0  ;;  %v4969_v21 = vadd.f32 %v4968_v4, %v4967_v55  ;;  %v4770_v22 = vadd.f32 %v8279_v30, %v4288_v5  ;;  %v4768_v41 = vadd.f32 %v8285_v3, %v4286_v35 }
 0x226   : > { %v8358_v42 = vpop.f32.mrf.mxu0  ;;  %v4210_v12 = vpop.f32.mrf.mxu1  ;;  %v5031_v9 = vmul.f32 %v4769_v45, %v4769_v45  ;;  %4927 = vst.msk [vmem:[%s8189_s8 + $0x30] sm:$0xf] %vm444_vm0, %v5781_v57  ;;  %v4970_v36 = vsel %vm1074_vm7, %v4767_v60, 0.0  ;;  %v4291_v59 = vadd.f32 %v6316_v18, %v8177_v49  ;;  %v5072_v13 = vsel %vm1074_vm7, %v5029_v1, 0.0 }
 0x227   : > { %v4289_v14 = vadd.f32 %v4210_v12, %v8196_v25  ;;  %v4971_v37 = vadd.f32 %v4970_v36, %v4969_v21  ;;  %v5071_v28 = vadd.f32 %v5070_v44, %v5069_v7  ;;  %v5784_v8 = vpack.c.bf16 %v4770_v22, %v4770_v22 }
 0x228   : > { %v6317_v30 = vpop.f32.mrf.mxu1  ;;  %v5032_v46 = vmul.f32 %v4770_v22, %v4770_v22  ;;  %v5782_v3 = vpack.c.bf16 %v4768_v41, %v4768_v41  ;;  %v4972_v53 = vsel %vm1074_vm7, %v4768_v41, 0.0  ;;  %v5030_v62 = vmul.f32 %v4768_v41, %v4768_v41  ;;  %v8371_v61 = vpop.f32.mrf.mxu0 }
 0x229   : > { %v5073_v52 = vadd.f32 %v5072_v13, %v5071_v28  ;;  %4930 = vst.msk [vmem:[%s8189_s8 + $0x3c] sm:$0xf] %vm444_vm0, %v5784_v8  ;;  %v4973_v49 = vadd.f32 %v4972_v53, %v4971_v37  ;;  %v4773_v25 = vadd.f32 %v8292_v26, %v4291_v59  ;;  %v4771_v31 = vadd.f32 %v8302_v24, %v4289_v14 }
 0x22a   : > { %v4213_v58 = vpop.f32.mrf.mxu1  ;;  %v4974_v43 = vsel %vm1074_vm7, %v4769_v45, 0.0  ;;  %4928 = vst.msk [vmem:[%s8189_s8 + $0x34] sm:$0xf] %vm444_vm0, %v5782_v3  ;;  %v5074_v60 = vsel %vm1074_vm7, %v5030_v62, 0.0  ;;  %v4292_v5 = vadd.f32 %v6317_v30, %v8199_v23  ;;  %v5076_v11 = vsel %vm1074_vm7, %v5031_v9, 0.0  ;;  %v8386_v34 = vpop.f32.mrf.mxu0 }
 0x22b   : > { %v4290_v6 = vadd.f32 %v4213_v58, %v8211_v50  ;;  %v4975_v48 = vadd.f32 %v4974_v43, %v4973_v49  ;;  %v5075_v35 = vadd.f32 %v5074_v60, %v5073_v52  ;;  %v5787_v26 = vpack.c.bf16 %v4773_v25, %v4773_v25 }
 0x22c   : > { %v6320_v47 = vpop.f32.mrf.mxu1  ;;  %v4976_v24 = vsel %vm1074_vm7, %v4770_v22, 0.0  ;;  %v5078_v45 = vsel %vm1074_vm7, %v5032_v46, 0.0  ;;  %v5785_v19 = vpack.c.bf16 %v4771_v31, %v4771_v31  ;;  %v5033_v55 = vmul.f32 %v4771_v31, %v4771_v31  ;;  %v8399_v14 = vpop.f32.mrf.mxu0 }
 0x22d   : > { %v5077_v0 = vadd.f32 %v5076_v11, %v5075_v35  ;;  %4933 = vst.msk [vmem:[%s8189_s8 + $0x48] sm:$0xf] %vm444_vm0, %v5787_v26  ;;  %v4977_v23 = vadd.f32 %v4976_v24, %v4975_v48  ;;  %v4774_v50 = vadd.f32 %v8312_v20, %v4292_v5  ;;  %v4772_v18 = vadd.f32 %v8321_v39, %v4290_v6 }
 0x22e   : > { %v4226_v4 = vpop.f32.mrf.mxu1  ;;  %v5035_v44 = vmul.f32 %v4773_v25, %v4773_v25  ;;  %4931 = vst.msk [vmem:[%s8189_s8 + $0x40] sm:$0xf] %vm444_vm0, %v5785_v19  ;;  %v4978_v57 = vsel %vm1074_vm7, %v4771_v31, 0.0  ;;  %v4295_v1 = vadd.f32 %v6320_v47, %v8214_v16  ;;  %v5080_v41 = vsel %vm1074_vm7, %v5033_v55, 0.0  ;;  %v4727_v43 = vpop.f32.mrf.mxu0 }
 0x22f   : > { %v4293_v7 = vadd.f32 %v4226_v4, %v8221_v10  ;;  %v4979_v21 = vadd.f32 %v4978_v57, %v4977_v23  ;;  %v5079_v22 = vadd.f32 %v5078_v45, %v5077_v0  ;;  %v5788_v12 = vpack.c.bf16 %v4774_v50, %v4774_v50 }
 0x230   : > { %v6321_v20 = vpop.f32.mrf.mxu1  ;;  %v5036_v9 = vmul.f32 %v4774_v50, %v4774_v50  ;;  %v5786_v39 = vpack.c.bf16 %v4772_v18, %v4772_v18  ;;  %v4980_v36 = vsel %vm1074_vm7, %v4772_v18, 0.0  ;;  %v5034_v59 = vmul.f32 %v4772_v18, %v4772_v18 }
 0x231   : > { %v5081_v37 = vadd.f32 %v5080_v41, %v5079_v22  ;;  %4934 = vst.msk [vmem:[%s8189_s8 + $0x4c] sm:$0xf] %vm444_vm0, %v5788_v12  ;;  %v4981_v16 = vadd.f32 %v4980_v36, %v4979_v21  ;;  %v4777_v10 = vadd.f32 %v8333_v33, %v4295_v1  ;;  %v4775_v28 = vadd.f32 %v8340_v56, %v4293_v7 }
 0x232   : > { %v4229_v13 = vpop.f32.mrf.mxu1  ;;  %v4982_v8 = vsel %vm1074_vm7, %v4773_v25, 0.0  ;;  %4932 = vst.msk [vmem:[%s8189_s8 + $0x44] sm:$0xf] %vm444_vm0, %v5786_v39  ;;  %v5082_v30 = vsel %vm1074_vm7, %v5034_v59, 0.0  ;;  %v4296_v46 = vadd.f32 %v6321_v20, %v8224_v63  ;;  %v5084_v53 = vsel %vm1074_vm7, %v5035_v44, 0.0 }
 0x233   : > { %v4294_v3 = vadd.f32 %v4229_v13, %v8227_v54  ;;  %v4983_v62 = vadd.f32 %v4982_v8, %v4981_v16  ;;  %v5083_v52 = vadd.f32 %v5082_v30, %v5081_v37  ;;  %v5791_v33 = vpack.c.bf16 %v4777_v10, %v4777_v10 }
 0x234   : > { %v6324_v49 = vpop.f32.mrf.mxu1  ;;  %v4984_v56 = vsel %vm1074_vm7, %v4774_v50, 0.0  ;;  %v5086_v25 = vsel %vm1074_vm7, %v5036_v9, 0.0  ;;  %v5789_v31 = vpack.c.bf16 %v4775_v28, %v4775_v28  ;;  %v5037_v58 = vmul.f32 %v4775_v28, %v4775_v28  ;;  %v6364_v50 = vpop.f32.mrf.mxu0 }
 0x235   : > { %v5085_v60 = vadd.f32 %v5084_v53, %v5083_v52  ;;  %4937 = vst.msk [vmem:[%s8189_s8 + $0x58] sm:$0xf] %vm444_vm0, %v5791_v33  ;;  %v4985_v63 = vadd.f32 %v4984_v56, %v4983_v62  ;;  %v4778_v54 = vadd.f32 %v8350_v15, %v4296_v46  ;;  %v4776_v5 = vadd.f32 %v8358_v42, %v4294_v3 }
 0x236   : > { %v4242_v6 = vpop.f32.mrf.mxu1  ;;  %v5039_v11 = vmul.f32 %v4777_v10, %v4777_v10  ;;  %4935 = vst.msk [vmem:[%s8189_s8 + $0x50] sm:$0xf] %vm444_vm0, %v5789_v31  ;;  %v4986_v48 = vsel %vm1074_vm7, %v4775_v28, 0.0  ;;  %v4299_v35 = vadd.f32 %v6324_v49, %v8231_v27  ;;  %v5088_v45 = vsel %vm1074_vm7, %v5037_v58, 0.0  ;;  %v4740_v59 = vpop.f32.mrf.mxu0 }
 0x237   : > { %v4297_v26 = vadd.f32 %v4242_v6, %v8234_v38  ;;  %v4987_v47 = vadd.f32 %v4986_v48, %v4985_v63  ;;  %v5087_v24 = vadd.f32 %v5086_v25, %v5085_v60  ;;  %v5792_v19 = vpack.c.bf16 %v4778_v54, %v4778_v54 }
 0x238   : > { %v6325_v15 = vpop.f32.mrf.mxu1  ;;  %v5040_v55 = vmul.f32 %v4778_v54, %v4778_v54  ;;  %v5790_v42 = vpack.c.bf16 %v4776_v5, %v4776_v5  ;;  %v4988_v0 = vsel %vm1074_vm7, %v4776_v5, 0.0  ;;  %v5038_v23 = vmul.f32 %v4776_v5, %v4776_v5  ;;  %v6365_v25 = vpop.f32.mrf.mxu0 }
 0x239   : > { %v5089_v18 = vadd.f32 %v5088_v45, %v5087_v24  ;;  %4938 = vst.msk [vmem:[%s8189_s8 + $0x5c] sm:$0xf] %vm444_vm0, %v5792_v19  ;;  %v4989_v4 = vadd.f32 %v4988_v0, %v4987_v47  ;;  %v4781_v27 = vadd.f32 %v8371_v61, %v4299_v35  ;;  %v4779_v38 = vadd.f32 %v8386_v34, %v4297_v26 }
 0x23a   : > { %v4245_v44 = vpop.f32.mrf.mxu1  ;;  %v4990_v57 = vsel %vm1074_vm7, %v4777_v10, 0.0  ;;  %4936 = vst.msk [vmem:[%s8189_s8 + $0x54] sm:$0xf] %vm444_vm0, %v5790_v42  ;;  %v5090_v1 = vsel %vm1074_vm7, %v5038_v23, 0.0  ;;  %v4300_v7 = vadd.f32 %v6325_v15, %v8241_v29  ;;  %v5092_v22 = vsel %vm1074_vm7, %v5039_v11, 0.0  ;;  %v4743_v45 = vpop.f32.mrf.mxu0 }
 0x23b   : > { %v4298_v21 = vadd.f32 %v4245_v44, %v8244_v32  ;;  %v4991_v41 = vadd.f32 %v4990_v57, %v4989_v4  ;;  %v5091_v12 = vadd.f32 %v5090_v1, %v5089_v18  ;;  %v5795_v61 = vpack.c.bf16 %v4781_v27, %v4781_v27 }
 0x23c   : > { %v6328_v20 = vpop.f32.mrf.mxu1  ;;  %v4992_v34 = vsel %vm1074_vm7, %v4778_v54, 0.0  ;;  %v5094_v9 = vsel %vm1074_vm7, %v5040_v55, 0.0  ;;  %v5793_v39 = vpack.c.bf16 %v4779_v38, %v4779_v38  ;;  %v5041_v36 = vmul.f32 %v4779_v38, %v4779_v38 }
 0x23d   : > { %v5093_v37 = vadd.f32 %v5092_v22, %v5091_v12  ;;  %4941 = vst.msk [vmem:[%s8189_s8 + $0x68] sm:$0xf] %vm444_vm0, %v5795_v61  ;;  %v4993_v29 = vadd.f32 %v4992_v34, %v4991_v41  ;;  %v4782_v32 = vadd.f32 %v8399_v14, %v4300_v7  ;;  %v4780_v16 = vadd.f32 %v4727_v43, %v4298_v21 }
 0x23e   : > { %v4258_v10 = vpop.f32.mrf.mxu1  ;;  %v4998_v28 = vsel %vm1074_vm7, %v4781_v27, 0.0  ;;  %4939 = vst.msk [vmem:[%s8189_s8 + $0x60] sm:$0xf] %vm444_vm0, %v5793_v39  ;;  %v4994_v13 = vsel %vm1074_vm7, %v4779_v38, 0.0  ;;  %v4303_v8 = vadd.f32 %v6328_v20, %v8252_v40  ;;  %v5043_v46 = vmul.f32 %v4781_v27, %v4781_v27 }
 0x23f   : > { %v4301_v30 = vadd.f32 %v4258_v10, %v8306_v2  ;;  %v4995_v3 = vadd.f32 %v4994_v13, %v4993_v29  ;;  %v5095_v53 = vadd.f32 %v5094_v9, %v5093_v37  ;;  %v5796_v62 = vpack.c.bf16 %v4782_v32, %v4782_v32 }
 0x240   : > { %v6329_v52 = vpop.f32.mrf.mxu1  ;;  %v5096_v14 = vsel %vm1074_vm7, %v5041_v36, 0.0  ;;  %v5794_v33 = vpack.c.bf16 %v4780_v16, %v4780_v16  ;;  %v4996_v49 = vsel %vm1074_vm7, %v4780_v16, 0.0  ;;  %v5042_v56 = vmul.f32 %v4780_v16, %v4780_v16 }
 0x241   : > { %v5097_v31 = vadd.f32 %v5096_v14, %v5095_v53  ;;  %4942 = vst.msk [vmem:[%s8189_s8 + $0x6c] sm:$0xf] %vm444_vm0, %v5796_v62  ;;  %v4997_v58 = vadd.f32 %v4996_v49, %v4995_v3  ;;  %v4785_v40 = vadd.f32 %v6364_v50, %v4303_v8  ;;  %v4783_v43 = vadd.f32 %v4740_v59, %v4301_v30 }
 0x242   : > { %v4261_v2 = vpop.f32.mrf.mxu1  ;;  %v5044_v60 = vmul.f32 %v4782_v32, %v4782_v32  ;;  %4940 = vst.msk [vmem:[%s8189_s8 + $0x64] sm:$0xf] %vm444_vm0, %v5794_v33  ;;  %v5098_v63 = vsel %vm1074_vm7, %v5042_v56, 0.0  ;;  %v4304_v54 = vadd.f32 %v6329_v52, %v8325_v17  ;;  %v5100_v35 = vsel %vm1074_vm7, %v5043_v46, 0.0 }
 0x243   : > { %v4302_v5 = vadd.f32 %v4261_v2, %v8353_v51  ;;  %v4999_v6 = vadd.f32 %v4998_v28, %v4997_v58  ;;  %v5099_v11 = vadd.f32 %v5098_v63, %v5097_v31  ;;  %v5799_v48 = vpack.c.bf16 %v4785_v40, %v4785_v40 }
 0x244   : > { %v5000_v26 = vsel %vm1074_vm7, %v4782_v32, 0.0  ;;  %v5797_v47 = vpack.c.bf16 %v4783_v43, %v4783_v43  ;;  %v5045_v24 = vmul.f32 %v4783_v43, %v4783_v43  ;;  %v4786_v55 = vadd.f32 %v6365_v25, %v4304_v54 }
 0x245   : > { %v5101_v19 = vadd.f32 %v5100_v35, %v5099_v11  ;;  %4945 = vst.msk [vmem:[%s8189_s8 + $0x78] sm:$0xf] %vm444_vm0, %v5799_v48  ;;  %v5001_v15 = vadd.f32 %v5000_v26, %v4999_v6  ;;  %v4784_v17 = vadd.f32 %v4743_v45, %v4302_v5  ;;  %v5102_v42 = vsel %vm1074_vm7, %v5044_v60, 0.0 }
 0x246   : > { %4943 = vst.msk [vmem:[%s8189_s8 + $0x70] sm:$0xf] %vm444_vm0, %v5797_v47  ;;  %v5002_v51 = vsel %vm1074_vm7, %v4783_v43, 0.0  ;;  %v5047_v0 = vmul.f32 %v4785_v40, %v4785_v40  ;;  %v5800_v18 = vpack.c.bf16 %v4786_v55, %v4786_v55  ;;  %v5104_v4 = vsel %vm1074_vm7, %v5045_v24, 0.0 }
 0x247   : > { %v5003_v23 = vadd.f32 %v5002_v51, %v5001_v15  ;;  %v5103_v50 = vadd.f32 %v5102_v42, %v5101_v19  ;;  %v5798_v27 = vpack.c.bf16 %v4784_v17, %v4784_v17  ;;  %v5004_v38 = vsel %vm1074_vm7, %v4784_v17, 0.0 }
 0x248   : > { %v5046_v44 = vmul.f32 %v4784_v17, %v4784_v17  ;;  %4946 = vst.msk [vmem:[%s8189_s8 + $0x7c] sm:$0xf] %vm444_vm0, %v5800_v18  ;;  %v5006_v7 = vsel %vm1074_vm7, %v4785_v40, 0.0  ;;  %v5048_v21 = vmul.f32 %v4786_v55, %v4786_v55  ;;  %v5108_v61 = vsel %vm1074_vm7, %v5047_v0, 0.0 }
 0x249   : > { %v5105_v57 = vadd.f32 %v5104_v4, %v5103_v50  ;;  %v5005_v1 = vadd.f32 %v5004_v38, %v5003_v23  ;;  %4944 = vst.msk [vmem:[%s8189_s8 + $0x74] sm:$0xf] %vm444_vm0, %v5798_v27  ;;  %v5008_v20 = vsel %vm1074_vm7, %v4786_v55, 0.0 }
 0x24a   : > { %v5106_v22 = vsel %vm1074_vm7, %v5046_v44, 0.0  ;;  %v5110_v39 = vsel %vm1074_vm7, %v5048_v21, 0.0 }
 0x24b   : > { %v5007_v41 = vadd.f32 %v5006_v7, %v5005_v1  ;;  %v5107_v12 = vadd.f32 %v5106_v22, %v5105_v57 }
 0x24d   : > { %v5009_v34 = vadd.f32 %v5008_v20, %v5007_v41  ;;  %v5109_v9 = vadd.f32 %v5108_v61, %v5107_v12 }
 0x24f   : > { %v5010_v36 = vrot.slane %v5009_v34, 4  ;;  %v5111_v59 = vadd.f32 %v5110_v39, %v5109_v9 }
 0x251   : > { %v5011_v37 = vadd.f32 %v5010_v36, %v5009_v34  ;;  %v5112_v29 = vrot.slane %v5111_v59, 4 }
 0x253   : > { %v5012_v32 = vrot.slane %v5011_v37, 2  ;;  %v5113_v16 = vadd.f32 %v5112_v29, %v5111_v59 }
 0x255   : > { %v5013_v10 = vadd.f32 %v5012_v32, %v5011_v37  ;;  %v5114_v28 = vrot.slane %v5113_v16, 2 }
 0x257   : > { %v5014_v13 = vrot.slane %v5013_v10, 1  ;;  %v5115_v8 = vadd.f32 %v5114_v28, %v5113_v16 }
 0x259   : > { %v5015_v30 = vadd.f32 %v5014_v13, %v5013_v10  ;;  %v5116_v46 = vrot.slane %v5115_v8, 1 }
 0x25b   : > { %5016 = vst.msk [vmem:[%s265_s10] sm:$0x1] %vm459_vm5, %v5015_v30  ;;  %v5117_v3 = vadd.f32 %v5116_v46, %v5115_v8 }
 0x25d   : > { %5118 = vst.msk [vmem:[%s268_s13] sm:$0x1] %vm459_vm5, %v5117_v3 }
 0x25e PF: > { %s17_s21 = sadd.s32 1, %s6442_s21  }
 0x25f   : > { %p14_p4 = scmp.ge.s32.totalorder %s17_s21, 4  }
 0x261   :  { %16 = sbr.rel (!%p14_p4) target bundleno = 1 (0x1), region = 101 }

</bundles_post_ra>
